<compile_context>
chip_gen: v5e
topology: v5e:2x2
jax: 0.10.0
libtpu: 0.0.40
codegen_flags: <defaults>
</compile_context>

<pallas_src>
import functools

import jax
import jax.numpy as jnp
from jax.experimental import pallas as pl
from jax.experimental.pallas import tpu as pltpu

EPS = 1e-5


# --------------------------------------------------------------------------
# Fully fused kernel: ReLU -> 3x3 conv -> BatchNorm (batch stats) -> ReLU
# --------------------------------------------------------------------------
def _fused_kernel(x_ref, w_ref, g_ref, b_ref, o_ref, *, W, eps):
    # x_ref: (N, H+2, Wp, Cin)  zero-padded input (data cols [0,W), zeros after)
    # w_ref: (9*Cin, Cout)      taps ordered kh-major, then kw (L,C,R), then Cin
    # g_ref, b_ref: (1, Cout)   BatchNorm gamma / beta
    # o_ref: (N, H, W, Cout)    final output (valid columns only)
    N, Hp2, Wp, Cin = x_ref.shape
    H = Hp2 - 2
    Cout = w_ref.shape[-1]
    rows_full = Hp2 * Wp          # flattened padded rows per image
    rows = H * Wp                 # flattened output rows per image (padded W)
    count = float(N * H * W)      # valid pixels per channel

    # valid (non-padded) output columns are [0, W)
    col = jax.lax.broadcasted_iota(jnp.int32, (rows, 1), 0) % Wp
    valid = col < W

    s1 = jnp.zeros((1, Cout), jnp.float32)
    s2 = jnp.zeros((1, Cout), jnp.float32)
    convs = []

    for n in range(N):
        # leading ReLU computed exactly once (zero padding is ReLU-invariant)
        xr = jnp.maximum(x_ref[n], 0.0).reshape(rows_full, Cin)
        # kw shifts as sublane rotations (XLU, off the load/store path).
        # Wrapped elements always land on zero-pad columns -> conv stays exact.
        left = pltpu.roll(xr, shift=1, axis=0)                # x[., c-1]
        right = pltpu.roll(xr, shift=rows_full - 1, axis=0)   # x[., c+1]
        taps = []
        for kh in range(3):
            lo = kh * Wp   # Wp % 8 == 0 -> sublane-aligned static slice
            taps += [left[lo:lo + rows], xr[lo:lo + rows], right[lo:lo + rows]]
        patch = jnp.concatenate(taps, axis=-1)                 # (rows, 9*Cin)
        # single fat-K MXU matmul, f32 accumulation
        acc = jnp.dot(patch, w_ref[...], preferred_element_type=jnp.float32)
        convs.append(acc)

        # partial BN statistics over valid pixels only
        am = jnp.where(valid, acc, 0.0)
        s1 = s1 + jnp.sum(am, axis=0, keepdims=True)
        s2 = s2 + jnp.sum(am * am, axis=0, keepdims=True)

    # fold batch statistics into per-channel scale/shift (all in-kernel)
    mean = s1 / count
    var = jnp.maximum(s2 / count - mean * mean, 0.0)   # clamp E[x^2]-mean^2 >= 0
    inv = jax.lax.rsqrt(var + eps)
    scale = g_ref[...] * inv
    shift = b_ref[...] - mean * scale

    # normalize + affine + trailing ReLU; store only the valid W columns
    for n in range(N):
        y = jnp.maximum(convs[n] * scale + shift, 0.0)
        o_ref[n] = y.reshape(H, Wp, Cout)[:, :W, :]

    # TODO(synk): BatchNorm running_mean/running_var (momentum=0.1) update is a
    # training-time side effect and does not affect the forward output; omitted.


def pack_weights(w_oihw):
    """(Cout, Cin, 3, 3) -> (9*Cin, Cout), taps ordered (kh, kw, Cin). Do once."""
    Cout, Cin = w_oihw.shape[0], w_oihw.shape[1]
    return jnp.transpose(w_oihw, (2, 3, 1, 0)).reshape(9 * Cin, Cout)


@jax.jit
def relu_conv_bn_relu(x_nchw, w_packed, gamma, beta):
    N, Cin, H, W = x_nchw.shape
    Cout = w_packed.shape[-1]

    # NHWC; pad H by (1,1); pad W on the RIGHT only up to a multiple of 8
    # (>= W+1 so the circular left-tap wrap always reads a zero column).
    Wp = ((W + 1 + 7) // 8) * 8
    x_nhwc = jnp.transpose(x_nchw, (0, 2, 3, 1))
    x_pad = jnp.pad(x_nhwc, ((0, 0), (1, 1), (0, Wp - W), (0, 0)))

    out_nhwc = pl.pallas_call(
        functools.partial(_fused_kernel, W=W, eps=EPS),
        grid=(1,),
        in_specs=[
            pl.BlockSpec((N, H + 2, Wp, Cin), lambda i: (0, 0, 0, 0)),
            pl.BlockSpec((9 * Cin, Cout), lambda i: (0, 0)),
            pl.BlockSpec((1, Cout), lambda i: (0, 0)),
            pl.BlockSpec((1, Cout), lambda i: (0, 0)),
        ],
        out_specs=pl.BlockSpec((N, H, W, Cout), lambda i: (0, 0, 0, 0)),
        out_shape=jax.ShapeDtypeStruct((N, H, W, Cout), jnp.float32),
        compiler_params=pltpu.CompilerParams(
            dimension_semantics=("arbitrary",),
            vmem_limit_bytes=32 * 1024 * 1024),
    )(x_pad, w_packed, gamma.reshape(1, Cout), beta.reshape(1, Cout))

    # back to NCHW (single XLA relayout, no crop needed)
    return jnp.transpose(out_nhwc, (0, 3, 1, 2))


# --------------------------------------------------------------------------
# Pure-JAX reference (train-mode BatchNorm with biased batch statistics)
# --------------------------------------------------------------------------
def reference(x_nchw, w_oihw, gamma, beta):
    x = jnp.maximum(x_nchw, 0.0)
    conv = jax.lax.conv_general_dilated(
        x, w_oihw, window_strides=(1, 1), padding=((1, 1), (1, 1)),
        dimension_numbers=("NCHW", "OIHW", "NCHW"))
    mean = jnp.mean(conv, axis=(0, 2, 3), keepdims=True)
    var = jnp.mean((conv - mean) ** 2, axis=(0, 2, 3), keepdims=True)
    y = (conv - mean) * jax.lax.rsqrt(var + EPS)
    y = y * gamma.reshape(1, -1, 1, 1) + beta.reshape(1, -1, 1, 1)
    return jnp.maximum(y, 0.0)


if __name__ == "__main__":
    # Shape implied by the module spec: x40 = torch.randn([1, 128, 28, 28])
    N, C, H, W = 1, 128, 28, 28
    key = jax.random.PRNGKey(0)
    kx, kw, kg, kb = jax.random.split(key, 4)

    x = jax.random.normal(kx, (N, C, H, W), dtype=jnp.float32)
    w = jax.random.normal(kw, (C, C, 3, 3), dtype=jnp.float32) * 0.05
    gamma = 1.0 + 0.1 * jax.random.normal(kg, (C,), dtype=jnp.float32)
    beta = 0.1 * jax.random.normal(kb, (C,), dtype=jnp.float32)

    w_packed = pack_weights(w)   # hoisted out of the per-call jitted path

    out = jax.block_until_ready(relu_conv_bn_relu(x, w_packed, gamma, beta))
    ref = jax.block_until_ready(reference(x, w, gamma, beta))

    assert out.shape == (N, C, H, W)
    max_err = float(jnp.max(jnp.abs(out - ref)))
    assert jnp.allclose(out, ref, rtol=1e-4, atol=1e-4), max_err

    print("KERNEL_OK")
</pallas_src>

<mosaic_0001>
module attributes {stable_mosaic.version = 11 : i64} {
  func.func @_fused_kernel(%arg0: i32, %arg1: memref<1x30x32x128xf32, #tpu.memory_space<vmem>>, %arg2: memref<1152x128xf32, #tpu.memory_space<vmem>>, %arg3: memref<1x128xf32, #tpu.memory_space<vmem>>, %arg4: memref<1x128xf32, #tpu.memory_space<vmem>>, %arg5: memref<1x28x28x128xf32, #tpu.memory_space<vmem>>) attributes {dimension_semantics = [#tpu.dimension_semantics<arbitrary>], iteration_bounds = array<i64: 1>, scalar_prefetch = 0 : i64, scratch_operands = 0 : i64, tpu.core_type = #tpu.core_type<tc>, window_params = [{pipeline_mode = #tpu.pipeline_mode<synchronous>, transform_indices = @transform_0, window_bounds = array<i64: 1, 30, 32, 128>}, {pipeline_mode = #tpu.pipeline_mode<synchronous>, transform_indices = @transform_1, window_bounds = array<i64: 1152, 128>}, {pipeline_mode = #tpu.pipeline_mode<synchronous>, transform_indices = @transform_2, window_bounds = array<i64: 1, 128>}, {pipeline_mode = #tpu.pipeline_mode<synchronous>, transform_indices = @transform_3, window_bounds = array<i64: 1, 128>}, {pipeline_mode = #tpu.pipeline_mode<synchronous>, transform_indices = @transform_4, window_bounds = array<i64: 1, 28, 28, 128>}]} {
    %0 = tpu.iota {dimensions = array<i32: 0>} : vector<896x1xi32>
    %c32_i32 = arith.constant 32 : i32
    %c0_i32 = arith.constant 0 : i32
    %1 = arith.cmpi eq, %c32_i32, %c0_i32 : i32
    %c1_i32 = arith.constant 1 : i32
    %2 = arith.select %1, %c1_i32, %c32_i32 : i32
    %3 = vector.broadcast %2 : i32 to vector<896x1xi32>
    %4 = arith.remsi %0, %3 : vector<896x1xi32>
    %c0_i32_0 = arith.constant 0 : i32
    %5 = vector.broadcast %c0_i32_0 : i32 to vector<896x1xi32>
    %6 = arith.cmpi ne, %4, %5 : vector<896x1xi32>
    %c0_i32_1 = arith.constant 0 : i32
    %7 = vector.broadcast %c0_i32_1 : i32 to vector<896x1xi32>
    %8 = arith.cmpi slt, %4, %7 : vector<896x1xi32>
    %c0_i32_2 = arith.constant 0 : i32
    %9 = arith.cmpi slt, %2, %c0_i32_2 : i32
    %10 = vector.broadcast %9 : i1 to vector<896x1xi1>
    %11 = vector.broadcast %10 : vector<896x1xi1> to vector<896x1xi1>
    %12 = arith.xori %8, %11 : vector<896x1xi1>
    %13 = arith.andi %12, %6 : vector<896x1xi1>
    %14 = vector.broadcast %2 : i32 to vector<896x1xi32>
    %15 = arith.addi %4, %14 : vector<896x1xi32>
    %16 = arith.select %13, %15, %4 : vector<896x1xi1>, vector<896x1xi32>
    %c28_i32 = arith.constant 28 : i32
    %17 = vector.broadcast %c28_i32 : i32 to vector<896x1xi32>
    %18 = arith.cmpi slt, %16, %17 : vector<896x1xi32>
    %cst = arith.constant 0.000000e+00 : f32
    %19 = vector.broadcast %cst : f32 to vector<1x128xf32>
    %cst_3 = arith.constant 0.000000e+00 : f32
    %20 = vector.broadcast %cst_3 : f32 to vector<1x128xf32>
    %c0 = arith.constant 0 : index
    %c0_4 = arith.constant 0 : index
    %c0_5 = arith.constant 0 : index
    %c0_6 = arith.constant 0 : index
    %21 = vector.load %arg1[%c0, %c0_4, %c0_5, %c0_6] : memref<1x30x32x128xf32, #tpu.memory_space<vmem>>, vector<1x30x32x128xf32>
    %22 = vector.shape_cast %21 : vector<1x30x32x128xf32> to vector<30x32x128xf32>
    %cst_7 = arith.constant 0.000000e+00 : f32
    %23 = vector.broadcast %cst_7 : f32 to vector<30x32x128xf32>
    %24 = arith.maximumf %22, %23 : vector<30x32x128xf32>
    %25 = vector.shape_cast %24 : vector<30x32x128xf32> to vector<960x128xf32>
    %c1_i32_8 = arith.constant 1 : i32
    %26 = tpu.dynamic_rotate %25 by %c1_i32_8 dim 0 : vector<960x128xf32>, i32 -> vector<960x128xf32>
    %c959_i32 = arith.constant 959 : i32
    %27 = tpu.dynamic_rotate %25 by %c959_i32 dim 0 : vector<960x128xf32>, i32 -> vector<960x128xf32>
    %28 = vector.extract_strided_slice %26 {offsets = [0, 0], sizes = [896, 128], strides = [1, 1]} : vector<960x128xf32> to vector<896x128xf32>
    %29 = vector.extract_strided_slice %25 {offsets = [0, 0], sizes = [896, 128], strides = [1, 1]} : vector<960x128xf32> to vector<896x128xf32>
    %30 = vector.extract_strided_slice %27 {offsets = [0, 0], sizes = [896, 128], strides = [1, 1]} : vector<960x128xf32> to vector<896x128xf32>
    %31 = vector.extract_strided_slice %26 {offsets = [32, 0], sizes = [896, 128], strides = [1, 1]} : vector<960x128xf32> to vector<896x128xf32>
    %32 = vector.extract_strided_slice %25 {offsets = [32, 0], sizes = [896, 128], strides = [1, 1]} : vector<960x128xf32> to vector<896x128xf32>
    %33 = vector.extract_strided_slice %27 {offsets = [32, 0], sizes = [896, 128], strides = [1, 1]} : vector<960x128xf32> to vector<896x128xf32>
    %34 = vector.extract_strided_slice %26 {offsets = [64, 0], sizes = [896, 128], strides = [1, 1]} : vector<960x128xf32> to vector<896x128xf32>
    %35 = vector.extract_strided_slice %25 {offsets = [64, 0], sizes = [896, 128], strides = [1, 1]} : vector<960x128xf32> to vector<896x128xf32>
    %36 = vector.extract_strided_slice %27 {offsets = [64, 0], sizes = [896, 128], strides = [1, 1]} : vector<960x128xf32> to vector<896x128xf32>
    %37 = tpu.concatenate %28, %29, %30, %31, %32, %33, %34, %35, %36 in 1 : vector<896x128xf32>, vector<896x128xf32>, vector<896x128xf32>, vector<896x128xf32>, vector<896x128xf32>, vector<896x128xf32>, vector<896x128xf32>, vector<896x128xf32>, vector<896x128xf32> -> vector<896x1152xf32>
    %c0_9 = arith.constant 0 : index
    %c0_10 = arith.constant 0 : index
    %38 = vector.load %arg2[%c0_9, %c0_10] : memref<1152x128xf32, #tpu.memory_space<vmem>>, vector<1152x128xf32>
    %cst_11 = arith.constant dense<0.000000e+00> : vector<896x128xf32>
    %39 = tpu.matmul %37, %38, %cst_11 {dimension_numbers = #tpu.dot_dimension_numbers<[1], [0], [0], [1], [0, 0, 1, 1], [], []>} : vector<896x1152xf32>, vector<1152x128xf32>, vector<896x128xf32> -> vector<896x128xf32>
    %cst_12 = arith.constant 0.000000e+00 : f32
    %40 = vector.shape_cast %18 : vector<896x1xi1> to vector<896x1xi1>
    %41 = vector.broadcast %40 : vector<896x1xi1> to vector<896x128xi1>
    %42 = vector.broadcast %cst_12 : f32 to vector<896x128xf32>
    %43 = arith.select %41, %39, %42 : vector<896x128xi1>, vector<896x128xf32>
    %cst_13 = arith.constant dense<0.000000e+00> : vector<128xf32>
    %44 = vector.multi_reduction <add>, %43, %cst_13 [0] : vector<896x128xf32> to vector<128xf32>
    %45 = vector.shape_cast %44 : vector<128xf32> to vector<1x128xf32>
    %46 = arith.addf %19, %45 : vector<1x128xf32>
    %47 = arith.mulf %43, %43 : vector<896x128xf32>
    %cst_14 = arith.constant dense<0.000000e+00> : vector<128xf32>
    %48 = vector.multi_reduction <add>, %47, %cst_14 [0] : vector<896x128xf32> to vector<128xf32>
    %49 = vector.shape_cast %48 : vector<128xf32> to vector<1x128xf32>
    %50 = arith.addf %20, %49 : vector<1x128xf32>
    %cst_15 = arith.constant 7.840000e+02 : f32
    %51 = vector.broadcast %cst_15 : f32 to vector<1x128xf32>
    %52 = arith.divf %46, %51 : vector<1x128xf32>
    %cst_16 = arith.constant 7.840000e+02 : f32
    %53 = vector.broadcast %cst_16 : f32 to vector<1x128xf32>
    %54 = arith.divf %50, %53 : vector<1x128xf32>
    %55 = arith.mulf %52, %52 : vector<1x128xf32>
    %56 = arith.subf %54, %55 : vector<1x128xf32>
    %cst_17 = arith.constant 0.000000e+00 : f32
    %57 = vector.broadcast %cst_17 : f32 to vector<1x128xf32>
    %58 = arith.maximumf %56, %57 : vector<1x128xf32>
    %cst_18 = arith.constant 9.99999974E-6 : f32
    %59 = vector.broadcast %cst_18 : f32 to vector<1x128xf32>
    %60 = arith.addf %58, %59 : vector<1x128xf32>
    %61 = math.rsqrt %60 : vector<1x128xf32>
    %c0_19 = arith.constant 0 : index
    %c0_20 = arith.constant 0 : index
    %62 = vector.load %arg3[%c0_19, %c0_20] : memref<1x128xf32, #tpu.memory_space<vmem>>, vector<1x128xf32>
    %63 = arith.mulf %62, %61 : vector<1x128xf32>
    %c0_21 = arith.constant 0 : index
    %c0_22 = arith.constant 0 : index
    %64 = vector.load %arg4[%c0_21, %c0_22] : memref<1x128xf32, #tpu.memory_space<vmem>>, vector<1x128xf32>
    %65 = arith.mulf %52, %63 : vector<1x128xf32>
    %66 = arith.subf %64, %65 : vector<1x128xf32>
    %67 = vector.broadcast %63 : vector<1x128xf32> to vector<896x128xf32>
    %68 = arith.mulf %39, %67 : vector<896x128xf32>
    %69 = vector.broadcast %66 : vector<1x128xf32> to vector<896x128xf32>
    %70 = arith.addf %68, %69 : vector<896x128xf32>
    %cst_23 = arith.constant 0.000000e+00 : f32
    %71 = vector.broadcast %cst_23 : f32 to vector<896x128xf32>
    %72 = arith.maximumf %70, %71 : vector<896x128xf32>
    %73 = vector.shape_cast %72 : vector<896x128xf32> to vector<28x32x128xf32>
    %74 = vector.extract_strided_slice %73 {offsets = [0, 0, 0], sizes = [28, 28, 128], strides = [1, 1, 1]} : vector<28x32x128xf32> to vector<28x28x128xf32>
    %c0_24 = arith.constant 0 : index
    %c0_25 = arith.constant 0 : index
    %c0_26 = arith.constant 0 : index
    %c0_27 = arith.constant 0 : index
    %75 = vector.load %arg5[%c0_24, %c0_25, %c0_26, %c0_27] : memref<1x28x28x128xf32, #tpu.memory_space<vmem>>, vector<1x28x28x128xf32>
    %76 = vector.shape_cast %75 : vector<1x28x28x128xf32> to vector<28x28x128xf32>
    %77 = vector.shape_cast %74 : vector<28x28x128xf32> to vector<1x28x28x128xf32>
    tpu.vector_store %arg5[%c0_24, %c0_25, %c0_26, %c0_27], %77 {strides = array<i32>} : memref<1x28x28x128xf32, #tpu.memory_space<vmem>>, vector<1x28x28x128xf32>,
    return
  }
  func.func @transform_0(%arg0: i32) -> (i32, i32, i32, i32) {
    %c0_i32 = arith.constant 0 : i32
    %c0_i32_0 = arith.constant 0 : i32
    %c0_i32_1 = arith.constant 0 : i32
    %c0_i32_2 = arith.constant 0 : i32
    %c0_i32_3 = arith.constant 0 : i32
    return %c0_i32, %c0_i32_0, %c0_i32_1, %c0_i32_2 : i32, i32, i32, i32
  }
  func.func @transform_1(%arg0: i32) -> (i32, i32) {
    %c0_i32 = arith.constant 0 : i32
    %c0_i32_0 = arith.constant 0 : i32
    %c0_i32_1 = arith.constant 0 : i32
    return %c0_i32, %c0_i32_0 : i32, i32
  }
  func.func @transform_2(%arg0: i32) -> (i32, i32) {
    %c0_i32 = arith.constant 0 : i32
    %c0_i32_0 = arith.constant 0 : i32
    %c0_i32_1 = arith.constant 0 : i32
    return %c0_i32, %c0_i32_0 : i32, i32
  }
  func.func @transform_3(%arg0: i32) -> (i32, i32) {
    %c0_i32 = arith.constant 0 : i32
    %c0_i32_0 = arith.constant 0 : i32
    %c0_i32_1 = arith.constant 0 : i32
    return %c0_i32, %c0_i32_0 : i32, i32
  }
  func.func @transform_4(%arg0: i32) -> (i32, i32, i32, i32) {
    %c0_i32 = arith.constant 0 : i32
    %c0_i32_0 = arith.constant 0 : i32
    %c0_i32_1 = arith.constant 0 : i32
    %c0_i32_2 = arith.constant 0 : i32
    %c0_i32_3 = arith.constant 0 : i32
    return %c0_i32, %c0_i32_0, %c0_i32_1, %c0_i32_2 : i32, i32, i32, i32
  }
}

</mosaic_0001>

<bundles_post_ra>
// kernel: relu_conv_bn_relu.1
= control target key start
LH: loop header
LB: loop body
LE: loop exit
PB: predicated region body
PF: predicated region fallthrough
CT: control target
= control target key end

     0   :  { %v17_v10 = vlaneseq  ;;  %s12260_s1 = inlined_call_operand.vmem [shape: f32[1152,128], index: 1, kind: input, shape index: {}]   ;;  %s12261_s0 = inlined_call_operand.vmem [shape: f32[1,30,32,128], index: 0, kind: input, shape index: {}]   ;;  %s12262_s2 = inlined_call_operand.vmem [shape: f32[1,128], index: 2, kind: input, shape index: {}]   ;;  %s12263_s3 = inlined_call_operand.vmem [shape: f32[1,128], index: 3, kind: input, shape index: {}]   ;;  %s12264_s4 = inlined_call_operand.vmem [shape: f32[1,28,28,128], index: 4, kind: output, shape index: {}]  }
   0x1   :  { %v2323_v0 = vld [vmem:[%s12260_s1 + $0x78] sm:$0xff]  ;;  %v2322_v1 = vld [vmem:[%s12260_s1 + $0x70] sm:$0xff]  ;;  %v2321_v2 = vld [vmem:[%s12260_s1 + $0x68] sm:$0xff] }
   0x2   :  { %6799 = vmatpush.msra.mxu1 %v2323_v0  ;;  %6800 = vmatpush.msra.mxu2 %v2323_v0  ;;  %v2320_v3 = vld [vmem:[%s12260_s1 + $0x60] sm:$0xff]  ;;  %v2319_v4 = vld [vmem:[%s12260_s1 + $0x58] sm:$0xff]  ;;  %v2318_v5 = vld [vmem:[%s12260_s1 + $0x50] sm:$0xff]  ;;  %v6926_v17 = vshrl.u32 %v17_v10, 7 }
   0x3   :  { %6801 = vmatpush.msra.mxu3 %v2323_v0  ;;  %2452 = vmatpush.msra.mxu0 %v2323_v0  ;;  %v2317_v6 = vld [vmem:[%s12260_s1 + $0x48] sm:$0xff]  ;;  %v2316_v7 = vld [vmem:[%s12260_s1 + $0x40] sm:$0xff]  ;;  %v2315_v8 = vld [vmem:[%s12260_s1 + $0x38] sm:$0xff] }
   0x4   :  { %6802 = vmatpush.msra.mxu1 %v2322_v1  ;;  %6803 = vmatpush.msra.mxu2 %v2322_v1  ;;  %v2314_v9 = vld [vmem:[%s12260_s1 + $0x30] sm:$0xff]  ;;  %v1613_v11 = vld [vmem:[%s12261_s0 + $0xd8] sm:$0xff]  ;;  %v1614_v12 = vld [vmem:[%s12261_s0 + $0xe0] sm:$0xff]  ;;  %vm1946_vm0 = vcmp.lt.s32.totalorder %v6926_v17, 1  ;;  %vm2187_vm1 = vcmp.lt.s32.totalorder %v6926_v17, 7 }
   0x5   :  { %6804 = vmatpush.msra.mxu3 %v2322_v1  ;;  %2453 = vmatpush.msra.mxu0 %v2322_v1  ;;  %v2313_v13 = vld [vmem:[%s12260_s1 + $0x28] sm:$0xff]  ;;  %v1641_v14 = vld [vmem:[%s12261_s0 + $0x1b8] sm:$0xff]  ;;  %v1642_v15 = vld [vmem:[%s12261_s0 + $0x1c0] sm:$0xff]  ;;  %v6928_v18 = vmax.f32 %v1613_v11, 0.0  ;;  %v6930_v19 = vmax.f32 %v1614_v12, 0.0 }
   0x6   :  { %6805 = vmatpush.msra.mxu1 %v2321_v2  ;;  %6806 = vmatpush.msra.mxu2 %v2321_v2  ;;  %v2312_v16 = vld [vmem:[%s12260_s1 + $0x20] sm:$0xff]  ;;  %v1669_v20 = vld [vmem:[%s12261_s0 + $0x298] sm:$0xff]  ;;  %v6938_v22 = vmax.f32 %v1641_v14, 0.0  ;;  %v6940_v23 = vmax.f32 %v1642_v15, 0.0  ;;  %v2310_v29 = vld [vmem:[%s12260_s1 + $0x10] sm:$0xff] }
   0x7   :  { %6807 = vmatpush.msra.mxu3 %v2321_v2  ;;  %2454 = vmatpush.msra.mxu0 %v2321_v2  ;;  %13041 = vst [vmem:[#allocation2_spill] sm:$0xff] %v6930_v19  ;;  %v1670_v21 = vld [vmem:[%s12261_s0 + $0x2a0] sm:$0xff]  ;;  %v2311_v24 = vld [vmem:[%s12260_s1 + $0x18] sm:$0xff]  ;;  %v6951_v27 = vmax.f32 %v1669_v20, 0.0  ;;  %v12266_v30 = vrot.slane %v6928_v18, 7  ;;  %v1854_v31 = vrot.slane %v6930_v19, 7 }
   0x8   :  { %6808 = vmatpush.msra.mxu1 %v2320_v3  ;;  %6809 = vmatpush.msra.mxu2 %v2320_v3  ;;  %13042 = vst [vmem:[#allocation3_spill] sm:$0xff] %v6940_v23  ;;  %v1586_v25 = vld [vmem:[%s12261_s0] sm:$0xff]  ;;  %v1705_v26 = vld [vmem:[%s12261_s0 + $0x3b8] sm:$0xff]  ;;  %v6953_v28 = vmax.f32 %v1670_v21, 0.0  ;;  %v12268_v32 = vrot.slane %v6938_v22, 7  ;;  %v1882_v33 = vrot.slane %v6940_v23, 7 }
   0x9   :  { %6810 = vmatpush.msra.mxu3 %v2320_v3  ;;  %2455 = vmatpush.msra.mxu0 %v2320_v3  ;;  %13043 = vst [vmem:[#allocation4_spill] sm:$0xff] %v6951_v27  ;;  %v1615_v34 = vld [vmem:[%s12261_s0 + $0xe8] sm:$0xff]  ;;  %v6966_v35 = vmax.f32 %v1586_v25, 0.0  ;;  %v6968_v36 = vmax.f32 %v1705_v26, 0.0  ;;  %v12267_v39 = vrot.slane %v6951_v27, 7  ;;  %v2308_v41 = vld [vmem:[%s12260_s1] sm:$0xff]  ;;  %v6987_v42 = vsel %vm1946_vm0, %v12266_v30, %v1854_v31 }
   0xa   :  { %6811 = vmatpush.msra.mxu1 %v2319_v4  ;;  %6812 = vmatpush.msra.mxu2 %v2319_v4  ;;  %13044 = vst [vmem:[#allocation5_spill] sm:$0xff] %v6953_v28  ;;  %v2309_v37 = vld [vmem:[%s12260_s1 + $0x8] sm:$0xff]  ;;  %v1910_v40 = vrot.slane %v6953_v28, 7  ;;  %v6989_v43 = vmax.f32 %v1615_v34, 0.0  ;;  %v6998_v45 = vsel %vm1946_vm0, %v12268_v32, %v1882_v33  ;;  %v2355_v49 = vld [vmem:[%s12260_s1 + $0x178] sm:$0xff]  ;;  %v2354_v58 = vld [vmem:[%s12260_s1 + $0x170] sm:$0xff] }
   0xb   :  { %6813 = vmatpush.msra.mxu3 %v2319_v4  ;;  %2456 = vmatpush.msra.mxu0 %v2319_v4  ;;  %13045 = vst [vmem:[#allocation6_spill] sm:$0xff] %v6966_v35  ;;  %v1643_v38 = vld [vmem:[%s12261_s0 + $0x1c8] sm:$0xff]  ;;  %v1826_v47 = vrot.slane %v6966_v35, 7  ;;  %v12265_v48 = vrot.slane %v6968_v36, 7  ;;  %v2339_v52 = vld [vmem:[%s12260_s1 + $0xf8] sm:$0xff]  ;;  %v1616_v59 = vld [vmem:[%s12261_s0 + $0xf0] sm:$0xff] }
   0xc   :  { %6814 = vmatpush.msra.mxu1 %v2318_v5  ;;  %6815 = vmatpush.msra.mxu2 %v2318_v5  ;;  %13046 = vst [vmem:[#allocation7_spill] sm:$0xff] %v6968_v36  ;;  %v1671_v44 = vld [vmem:[%s12261_s0 + $0x2a8] sm:$0xff]  ;;  %v7000_v46 = vmax.f32 %v1643_v38, 0.0  ;;  %v7014_v51 = vsel %vm1946_vm0, %v12267_v39, %v1910_v40  ;;  %v2371_v54 = vld [vmem:[%s12260_s1 + $0x1f8] sm:$0xff]  ;;  %v1855_v55 = vrot.slane %v6989_v43, 7  ;;  %v1644_v62 = vld [vmem:[%s12261_s0 + $0x1d0] sm:$0xff] }
   0xd   :  { %6816 = vmatpush.msra.mxu3 %v2318_v5  ;;  %2457 = vmatpush.msra.mxu0 %v2318_v5  ;;  %13047 = vst [vmem:[#allocation8_spill] sm:$0xff] %v6987_v42  ;;  %v1587_v50 = vld [vmem:[%s12261_s0 + $0x8] sm:$0xff]  ;;  %v7019_v53 = vmax.f32 %v1671_v44, 0.0  ;;  %v2066_v57 = vsel %vm1946_vm0, %v12265_v48, %v1826_v47  ;;  %v2387_v61 = vld [vmem:[%s12260_s1 + $0x278] sm:$0xff]  ;;  %v2370_v63 = vld [vmem:[%s12260_s1 + $0x1f0] sm:$0xff]  ;;  %v7057_v3 = vmax.f32 %v1616_v59, 0.0 }
   0xe   :  { %6817 = vmatpush.msra.mxu1 %v2317_v6  ;;  %6818 = vmatpush.msra.mxu2 %v2317_v6  ;;  %13048 = vst [vmem:[#allocation9_spill] sm:$0xff] %v6989_v43  ;;  %v1883_v56 = vrot.slane %v7000_v46, 7  ;;  %v7038_v60 = vmax.f32 %v1587_v50, 0.0  ;;  %v2338_v1 = vld [vmem:[%s12260_s1 + $0xf0] sm:$0xff]  ;;  %v2353_v2 = vld [vmem:[%s12260_s1 + $0x168] sm:$0xff]  ;;  %v1645_v25 = vld [vmem:[%s12261_s0 + $0x1d8] sm:$0xff] }
   0xf   :  { %6819 = vmatpush.msra.mxu3 %v2317_v6  ;;  %2458 = vmatpush.msra.mxu0 %v2317_v6  ;;  %13049 = vst [vmem:[#allocation10_spill] sm:$0xff] %v6998_v45  ;;  %v1911_v0 = vrot.slane %v7019_v53, 7  ;;  %v1672_v4 = vld [vmem:[%s12261_s0 + $0x2b0] sm:$0xff]  ;;  %v2369_v6 = vld [vmem:[%s12260_s1 + $0x1e8] sm:$0xff]  ;;  %v1673_v38 = vld [vmem:[%s12261_s0 + $0x2b8] sm:$0xff]  ;;  %v7134_v44 = vmax.f32 %v1645_v25, 0.0 }
  0x10   :  { %6820 = vmatpush.msra.mxu1 %v2316_v7  ;;  %6821 = vmatpush.msra.mxu2 %v2316_v7  ;;  %13050 = vst [vmem:[#allocation11_spill] sm:$0xff] %v7000_v46  ;;  %v2386_v5 = vld [vmem:[%s12260_s1 + $0x270] sm:$0xff]  ;;  %v1827_v10 = vrot.slane %v7038_v60, 7  ;;  %v2337_v12 = vld [vmem:[%s12260_s1 + $0xe8] sm:$0xff]  ;;  %v7094_v15 = vmax.f32 %v1672_v4, 0.0  ;;  %v1646_v59 = vld [vmem:[%s12261_s0 + $0x1e0] sm:$0xff] }
  0x11   :  { %6822 = vmatpush.msra.mxu3 %v2316_v7  ;;  %2459 = vmatpush.msra.mxu0 %v2316_v7  ;;  %13051 = vst [vmem:[#allocation12_spill] sm:$0xff] %v7014_v51  ;;  %v7072_v7 = vsel %vm1946_vm0, %v1854_v31, %v1855_v55  ;;  %v1588_v11 = vld [vmem:[%s12261_s0 + $0x10] sm:$0xff]  ;;  %v7092_v14 = vsel %vm1946_vm0, %v1910_v40, %v1911_v0  ;;  %v2368_v31 = vld [vmem:[%s12260_s1 + $0x1e0] sm:$0xff]  ;;  %v7178_v4 = vmax.f32 %v1646_v59, 0.0  ;;  %v1647_v25 = vld [vmem:[%s12261_s0 + $0x1e8] sm:$0xff] }
  0x12   :  { %6823 = vmatpush.msra.mxu1 %v2315_v8  ;;  %6824 = vmatpush.msra.mxu2 %v2315_v8  ;;  %13052 = vst [vmem:[#allocation13_spill] sm:$0xff] %v7019_v53  ;;  %v2065_v21 = vsel %vm1946_vm0, %v1826_v47, %v1827_v10  ;;  %v7108_v26 = vmax.f32 %v1588_v11, 0.0  ;;  %v1912_v34 = vrot.slane %v7094_v15, 7  ;;  %v1591_v59 = vld [vmem:[%s12261_s0 + $0x28] sm:$0xff]  ;;  %v1649_v32 = vld [vmem:[%s12261_s0 + $0x1f8] sm:$0xff]  ;;  %v2334_v36 = vld [vmem:[%s12260_s1 + $0xd0] sm:$0xff] }
  0x13   :  { %6825 = vmatpush.msra.mxu3 %v2315_v8  ;;  %2460 = vmatpush.msra.mxu0 %v2315_v8  ;;  %13053 = vst [vmem:[#allocation14_spill] sm:$0xff] %v7057_v3  ;;  %v7076_v8 = vsel %vm1946_vm0, %v1882_v33, %v1883_v56  ;;  %v2336_v33 = vld [vmem:[%s12260_s1 + $0xe0] sm:$0xff] }
  0x14   :  { %6826 = vmatpush.msra.mxu1 %v2314_v9  ;;  %6827 = vmatpush.msra.mxu2 %v2314_v9  ;;  %13054 = vst [vmem:[#allocation15_spill] sm:$0xff] %v7072_v7  ;;  %v1828_v47 = vrot.slane %v7108_v26, 7  ;;  %v7142_v50 = vsel %vm1946_vm0, %v1911_v0, %v1912_v34  ;;  %v1674_v0 = vld [vmem:[%s12261_s0 + $0x2c0] sm:$0xff] }
  0x15   :  { %6828 = vmatpush.msra.mxu3 %v2314_v9  ;;  %2461 = vmatpush.msra.mxu0 %v2314_v9  ;;  %13055 = vst [vmem:[#allocation16_spill] sm:$0xff] %v7076_v8  ;;  %v7078_v9 = vmax.f32 %v1644_v62, 0.0  ;;  %v7188_v11 = vmax.f32 %v1674_v0, 0.0 }
  0x16   :  { %6829 = vmatpush.msra.mxu1 %v2313_v13  ;;  %6830 = vmatpush.msra.mxu2 %v2313_v13  ;;  %13057 = vst [vmem:[#allocation18_spill] sm:$0xff] %v7092_v14 }
  0x17   :  { %6831 = vmatpush.msra.mxu3 %v2313_v13  ;;  %2462 = vmatpush.msra.mxu0 %v2313_v13  ;;  %13056 = vst [vmem:[#allocation17_spill] sm:$0xff] %v7078_v9  ;;  %v2385_v13 = vld [vmem:[%s12260_s1 + $0x268] sm:$0xff]  ;;  %v1884_v20 = vrot.slane %v7078_v9, 7 }
  0x18   :  { %6832 = vmatpush.msra.mxu1 %v2312_v16  ;;  %6833 = vmatpush.msra.mxu2 %v2312_v16  ;;  %13058 = vst [vmem:[#allocation19_spill] sm:$0xff] %v7094_v15  ;;  %v2349_v15 = vld [vmem:[%s12260_s1 + $0x148] sm:$0xff] }
  0x19   :  { %6834 = vmatpush.msra.mxu3 %v2312_v16  ;;  %2463 = vmatpush.msra.mxu0 %v2312_v16  ;;  %v1856_v16 = vrot.slane %v7057_v3, 7  ;;  %13062 = vst [vmem:[#allocation23_spill] sm:$0xff] %v7134_v44  ;;  %v2342_v3 = vld [vmem:[%s12260_s1 + $0x110] sm:$0xff] }
  0x1a   :  { %6835 = vmatpush.msra.mxu1 %v2311_v24  ;;  %6836 = vmatpush.msra.mxu2 %v2311_v24  ;;  %13063 = vst [vmem:[#allocation24_spill] sm:$0xff] %v7142_v50 }
  0x1b   :  { %6837 = vmatpush.msra.mxu3 %v2311_v24  ;;  %2464 = vmatpush.msra.mxu0 %v2311_v24  ;;  %v1617_v24 = vld [vmem:[%s12261_s0 + $0xf8] sm:$0xff]  ;;  %v7128_v40 = vsel %vm1946_vm0, %v1855_v55, %v1856_v16  ;;  %v1885_v55 = vrot.slane %v7134_v44, 7  ;;  %13068 = vst [vmem:[#allocation29_spill] sm:$0xff] %v7178_v4 }
  0x1c   :  { %6838 = vmatpush.msra.mxu1 %v2310_v29  ;;  %6839 = vmatpush.msra.mxu2 %v2310_v29  ;;  %13060 = vst [vmem:[#allocation21_spill] sm:$0xff] %v7128_v40 }
  0x1d   :  { %6840 = vmatpush.msra.mxu3 %v2310_v29  ;;  %2465 = vmatpush.msra.mxu0 %v2310_v29  ;;  %v2352_v29 = vld [vmem:[%s12260_s1 + $0x160] sm:$0xff]  ;;  %13070 = vst [vmem:[#allocation31_spill] sm:$0xff] %v7188_v11 }
  0x1e   :  { %6841 = vmatpush.msra.mxu1 %v2309_v37  ;;  %6842 = vmatpush.msra.mxu2 %v2309_v37 }
  0x1f   :  { %6843 = vmatpush.msra.mxu3 %v2309_v37  ;;  %2466 = vmatpush.msra.mxu0 %v2309_v37  ;;  %v7121_v37 = vmax.f32 %v1617_v24, 0.0 }
  0x20   :  { %6844 = vmatpush.msra.mxu1 %v2308_v41  ;;  %6845 = vmatpush.msra.mxu2 %v2308_v41 }
  0x21   :  { %2552 = vmatmul.f32.vlgmr.msra.gmra.mxu1 %v6987_v42  ;;  %2636 = vmatmul.f32.vlgmr.msra.gmra.mxu2 %v6998_v45  ;;  %13059 = vst [vmem:[#allocation20_spill] sm:$0xff] %v7121_v37  ;;  %v1627_v45 = vld [vmem:[%s12261_s0 + $0x148] sm:$0xff] }
  0x22   :  { %3158 = vmatpush.msrb.mxu2 %v2355_v49  ;;  %6846 = vmatpush.msra.mxu3 %v2308_v41  ;;  %v1589_v49 = vld [vmem:[%s12261_s0 + $0x18] sm:$0xff] }
  0x23   :  { %2720 = vmatmul.f32.vlgmr.msra.gmra.mxu3 %v7014_v51  ;;  %2805 = vmatpush.msrb.mxu1 %v2339_v52  ;;  %v7144_v52 = vmax.f32 %v1673_v38, 0.0  ;;  %v1675_v38 = vld [vmem:[%s12261_s0 + $0x2c8] sm:$0xff] }
  0x24   :  { %3511 = vmatpush.msrb.mxu3 %v2371_v54  ;;  %2467 = vmatpush.msra.mxu0 %v2308_v41  ;;  %v7132_v41 = vsel %vm1946_vm0, %v1883_v56, %v1884_v20  ;;  %v1857_v54 = vrot.slane %v7121_v37, 7  ;;  %v2064_v56 = vsel %vm1946_vm0, %v1827_v10, %v1828_v47  ;;  %v7238_v0 = vmax.f32 %v1675_v38, 0.0  ;;  %v1651_v51 = vld [vmem:[%s12261_s0 + $0x208] sm:$0xff] }
  0x25   :  { %2468 = vmatmul.f32.vlgmr.msra.gmra.mxu0 %v2066_v57  ;;  %3159 = vmatpush.msrb.mxu2 %v2354_v58  ;;  %13061 = vst [vmem:[#allocation22_spill] sm:$0xff] %v7132_v41  ;;  %v7152_v57 = vmax.f32 %v1589_v49, 0.0  ;;  %v1618_v58 = vld [vmem:[%s12261_s0 + $0x100] sm:$0xff]  ;;  %v1913_v62 = vrot.slane %v7144_v52, 7 }
  0x26   :  { %3864 = vmatpush.msrb.mxu0 %v2387_v61  ;;  %3512 = vmatpush.msrb.mxu3 %v2370_v63  ;;  %13064 = vst [vmem:[#allocation25_spill] sm:$0xff] %v7144_v52  ;;  %v2384_v61 = vld [vmem:[%s12260_s1 + $0x260] sm:$0xff]  ;;  %v7167_v63 = vsel %vm1946_vm0, %v1856_v16, %v1857_v54  ;;  %v1886_v16 = vrot.slane %v7178_v4, 7 }
  0x27   :  { %2806 = vmatpush.msrb.mxu1 %v2338_v1  ;;  %3160 = vmatpush.msrb.mxu2 %v2353_v2  ;;  %13065 = vst [vmem:[#allocation26_spill] sm:$0xff] %v7167_v63  ;;  %v7174_v1 = vsel %vm1946_vm0, %v1884_v20, %v1885_v55  ;;  %v7176_v2 = vmax.f32 %v1618_v58, 0.0  ;;  %v7186_v10 = vsel %vm1946_vm0, %v1912_v34, %v1913_v62 }
  0x28   :  { %3865 = vmatpush.msrb.mxu0 %v2386_v5  ;;  %3513 = vmatpush.msrb.mxu3 %v2369_v6  ;;  %13066 = vst [vmem:[#allocation27_spill] sm:$0xff] %v7174_v1  ;;  %v1829_v5 = vrot.slane %v7152_v57, 7  ;;  %v1590_v6 = vld [vmem:[%s12261_s0 + $0x20] sm:$0xff]  ;;  %v7226_v49 = vsel %vm1946_vm0, %v1885_v55, %v1886_v16 }
  0x29   :  { %2555 = vmatmul.f32.gmra.mxu1 %v7072_v7  ;;  %2639 = vmatmul.f32.gmra.mxu2 %v7076_v8  ;;  %13067 = vst [vmem:[#allocation28_spill] sm:$0xff] %v7176_v2  ;;  %v7202_v24 = vmax.f32 %v1590_v6, 0.0 }
  0x2a   :  { %2807 = vmatpush.msrb.mxu1 %v2337_v12  ;;  %3866 = vmatpush.msrb.mxu0 %v2385_v13  ;;  %13069 = vst [vmem:[#allocation30_spill] sm:$0xff] %v7186_v10  ;;  %v2351_v12 = vld [vmem:[%s12260_s1 + $0x158] sm:$0xff]  ;;  %v1858_v13 = vrot.slane %v7176_v2, 7  ;;  %v2063_v20 = vsel %vm1946_vm0, %v1828_v47, %v1829_v5 }
  0x2b   :  { %2723 = vmatmul.f32.gmra.mxu3 %v7092_v14  ;;  %3161 = vmatpush.msrb.mxu2 %v2352_v29  ;;  %v2367_v29 = vld [vmem:[%s12260_s1 + $0x1d8] sm:$0xff]  ;;  %13073 = vst [vmem:[#allocation34_spill] sm:$0xff] %v7226_v49  ;;  %v1830_v58 = vrot.slane %v7202_v24, 7 }
  0x2c   :  { %3514 = vmatpush.msrb.mxu3 %v2368_v31  ;;  %2808 = vmatpush.msrb.mxu1 %v2336_v33  ;;  %v2335_v31 = vld [vmem:[%s12260_s1 + $0xd8] sm:$0xff]  ;;  %v1914_v33 = vrot.slane %v7188_v11, 7  ;;  %v7222_v47 = vsel %vm1946_vm0, %v1857_v54, %v1858_v13  ;;  %13076 = vst [vmem:[#allocation37_spill] sm:$0xff] %v7238_v0  ;;  %v7328_v11 = vmax.f32 %v1649_v32, 0.0  ;;  %v2382_v32 = vld [vmem:[%s12260_s1 + $0x250] sm:$0xff] }
  0x2d   :  { %2471 = vmatmul.f32.gmra.mxu0 %v2065_v21  ;;  %v1619_v21 = vld [vmem:[%s12261_s0 + $0x108] sm:$0xff]  ;;  %3162 = vmatpush.msrb.mxu2 %v2351_v12  ;;  %13072 = vst [vmem:[#allocation33_spill] sm:$0xff] %v7222_v47  ;;  %v7246_v6 = vsel %vm1946_vm0, %v1829_v5, %v1830_v58  ;;  %v1620_v12 = vld [vmem:[%s12261_s0 + $0x110] sm:$0xff] }
  0x2e   :  { %3867 = vmatpush.msrb.mxu0 %v2384_v61  ;;  %3515 = vmatpush.msrb.mxu3 %v2367_v29  ;;  %v7215_v34 = vmax.f32 %v1619_v21, 0.0  ;;  %v7236_v61 = vsel %vm1946_vm0, %v1913_v62, %v1914_v33  ;;  %v7251_v62 = vmax.f32 %v1591_v59, 0.0  ;;  %v2383_v21 = vld [vmem:[%s12260_s1 + $0x258] sm:$0xff]  ;;  %v2350_v5 = vld [vmem:[%s12260_s1 + $0x150] sm:$0xff]  ;;  %v7276_v59 = vmax.f32 %v1620_v12, 0.0  ;;  %13086 = vst [vmem:[#allocation47_spill] sm:$0xff] %v7328_v11 }
  0x2f   :  { %2809 = vmatpush.msrb.mxu1 %v2335_v31  ;;  %13075 = vst [vmem:[#allocation36_spill] sm:$0xff] %v7236_v61  ;;  %3163 = vmatpush.msrb.mxu2 %v2350_v5  ;;  %v1676_v31 = vld [vmem:[%s12261_s0 + $0x2d0] sm:$0xff] }
  0x30   :  { %13071 = vst [vmem:[#allocation32_spill] sm:$0xff] %v7215_v34  ;;  %v1859_v54 = vrot.slane %v7215_v34, 7  ;;  %3868 = vmatpush.msrb.mxu0 %v2383_v21  ;;  %v1831_v21 = vrot.slane %v7251_v62, 7  ;;  %v7288_v30 = vmax.f32 %v1676_v31, 0.0  ;;  %v1860_v12 = vrot.slane %v7276_v59, 7 }
  0x31   :  { %2558 = vmatmul.f32.gmra.mxu1 %v7128_v40  ;;  %2642 = vmatmul.f32.gmra.mxu2 %v7132_v41  ;;  %13079 = vst [vmem:[#allocation40_spill] sm:$0xff] %v7276_v59 }
  0x32   :  { %v7266_v29 = vsel %vm1946_vm0, %v1858_v13, %v1859_v54  ;;  %v1592_v13 = vld [vmem:[%s12261_s0 + $0x30] sm:$0xff]  ;;  %13082 = vst [vmem:[#allocation43_spill] sm:$0xff] %v7288_v30  ;;  %v7299_v39 = vsel %vm1946_vm0, %v1830_v58, %v1831_v21  ;;  %v1916_v58 = vrot.slane %v7288_v30, 7  ;;  %2810 = vmatpush.msrb.mxu1 %v2334_v36  ;;  %3869 = vmatpush.msrb.mxu0 %v2382_v32  ;;  %v1678_v32 = vld [vmem:[%s12261_s0 + $0x2e0] sm:$0xff] }
  0x33   :  { %2726 = vmatmul.f32.gmra.mxu3 %v7142_v50  ;;  %13077 = vst [vmem:[#allocation38_spill] sm:$0xff] %v7266_v29  ;;  %v7304_v31 = vmax.f32 %v1592_v13, 0.0  ;;  %v1677_v13 = vld [vmem:[%s12261_s0 + $0x2d8] sm:$0xff]  ;;  %3164 = vmatpush.msrb.mxu2 %v2349_v15 }
  0x35   :  { %2474 = vmatmul.f32.gmra.mxu0 %v2064_v56  ;;  %v7228_v56 = vmax.f32 %v1647_v25, 0.0  ;;  %v1915_v25 = vrot.slane %v7238_v0, 7  ;;  %v1832_v36 = vrot.slane %v7304_v31, 7 }
  0x37   :  { %13074 = vst [vmem:[#allocation35_spill] sm:$0xff] %v7228_v56  ;;  %v1887_v55 = vrot.slane %v7228_v56, 7  ;;  %v7286_v5 = vsel %vm1946_vm0, %v1914_v33, %v1915_v25  ;;  %v1621_v33 = vld [vmem:[%s12261_s0 + $0x118] sm:$0xff]  ;;  %v7336_v30 = vsel %vm1946_vm0, %v1915_v25, %v1916_v58  ;;  %v7349_v52 = vsel %vm1946_vm0, %v1831_v21, %v1832_v36  ;;  %v1622_v25 = vld [vmem:[%s12261_s0 + $0x120] sm:$0xff]  ;;  %v2365_v21 = vld [vmem:[%s12260_s1 + $0x1c8] sm:$0xff] }
  0x38   :  { %13081 = vst [vmem:[#allocation42_spill] sm:$0xff] %v7286_v5  ;;  %v7315_v0 = vmax.f32 %v1621_v33, 0.0  ;;  %v1593_v33 = vld [vmem:[%s12261_s0 + $0x38] sm:$0xff]  ;;  %v7379_v53 = vmax.f32 %v1622_v25, 0.0 }
  0x39   :  { %2561 = vmatmul.f32.gmra.mxu1 %v7167_v63  ;;  %2645 = vmatmul.f32.gmra.mxu2 %v7174_v1  ;;  %v7274_v38 = vsel %vm1946_vm0, %v1886_v16, %v1887_v55  ;;  %v2366_v16 = vld [vmem:[%s12260_s1 + $0x1d0] sm:$0xff]  ;;  %13087 = vst [vmem:[#allocation48_spill] sm:$0xff] %v7336_v30 }
  0x3a   :  { %13078 = vst [vmem:[#allocation39_spill] sm:$0xff] %v7274_v38  ;;  %3516 = vmatpush.msrb.mxu3 %v2366_v16  ;;  %v7322_v16 = vsel %vm1946_vm0, %v1859_v54, %v1860_v12  ;;  %v1861_v54 = vrot.slane %v7315_v0, 7 }
  0x3b   :  { %2729 = vmatmul.f32.gmra.mxu3 %v7186_v10  ;;  %13083 = vst [vmem:[#allocation44_spill] sm:$0xff] %v7315_v0  ;;  %v1650_v10 = vld [vmem:[%s12261_s0 + $0x200] sm:$0xff] }
  0x3c   :  { %13084 = vst [vmem:[#allocation45_spill] sm:$0xff] %v7322_v16  ;;  %3517 = vmatpush.msrb.mxu3 %v2365_v21  ;;  %v7381_v14 = vmax.f32 %v1650_v10, 0.0  ;;  %v2333_v10 = vld [vmem:[%s12260_s1 + $0xc8] sm:$0xff] }
  0x3d   :  { %2477 = vmatmul.f32.gmra.mxu0 %v2063_v20  ;;  %v1648_v20 = vld [vmem:[%s12261_s0 + $0x1f0] sm:$0xff]  ;;  %13091 = vst [vmem:[#allocation52_spill] sm:$0xff] %v7379_v53  ;;  %2811 = vmatpush.msrb.mxu1 %v2333_v10 }
  0x3e   :  { %v7278_v48 = vmax.f32 %v1648_v20, 0.0  ;;  %13092 = vst [vmem:[#allocation53_spill] sm:$0xff] %v7381_v14  ;;  %v1890_v25 = vrot.slane %v7381_v14, 7  ;;  %v2381_v14 = vld [vmem:[%s12260_s1 + $0x248] sm:$0xff] }
  0x3f   :  { %3870 = vmatpush.msrb.mxu0 %v2381_v14 }
  0x40   :  { %13080 = vst [vmem:[#allocation41_spill] sm:$0xff] %v7278_v48  ;;  %v1888_v20 = vrot.slane %v7278_v48, 7 }
  0x41   :  { %2564 = vmatmul.f32.gmra.mxu1 %v7222_v47  ;;  %2648 = vmatmul.f32.gmra.mxu2 %v7226_v49 }
  0x43   :  { %2732 = vmatmul.f32.gmra.mxu3 %v7236_v61  ;;  %v7338_v61 = vmax.f32 %v1677_v13, 0.0  ;;  %v7354_v13 = vmax.f32 %v1593_v33, 0.0  ;;  %v7369_v33 = vsel %vm1946_vm0, %v1860_v12, %v1861_v54  ;;  %v1594_v12 = vld [vmem:[%s12261_s0 + $0x40] sm:$0xff] }
  0x44   :  { %13089 = vst [vmem:[#allocation50_spill] sm:$0xff] %v7369_v33 }
  0x45   :  { %2480 = vmatmul.f32.gmra.mxu0 %v7246_v6  ;;  %13088 = vst [vmem:[#allocation49_spill] sm:$0xff] %v7338_v61  ;;  %v1917_v50 = vrot.slane %v7338_v61, 7  ;;  %v1833_v15 = vrot.slane %v7354_v13, 7  ;;  %v7391_v61 = vmax.f32 %v1678_v32, 0.0  ;;  %v7407_v32 = vmax.f32 %v1594_v12, 0.0  ;;  %v1679_v12 = vld [vmem:[%s12261_s0 + $0x2e8] sm:$0xff] }
  0x46   :  { %v7441_v48 = vmax.f32 %v1679_v12, 0.0 }
  0x47   :  { %v7389_v21 = vsel %vm1946_vm0, %v1916_v58, %v1917_v50  ;;  %13094 = vst [vmem:[#allocation55_spill] sm:$0xff] %v7391_v61  ;;  %v7402_v28 = vsel %vm1946_vm0, %v1832_v36, %v1833_v15  ;;  %v1623_v58 = vld [vmem:[%s12261_s0 + $0x128] sm:$0xff]  ;;  %v1918_v36 = vrot.slane %v7391_v61, 7  ;;  %v1834_v14 = vrot.slane %v7407_v32, 7 }
  0x48   :  { %13093 = vst [vmem:[#allocation54_spill] sm:$0xff] %v7389_v21  ;;  %v1919_v56 = vrot.slane %v7441_v48, 7 }
  0x49   :  { %2567 = vmatmul.f32.gmra.mxu1 %v7266_v29  ;;  %2651 = vmatmul.f32.gmra.mxu2 %v7274_v38  ;;  %13095 = vst [vmem:[#allocation56_spill] sm:$0xff] %v7407_v32  ;;  %v7439_v61 = vsel %vm1946_vm0, %v1917_v50, %v1918_v36  ;;  %v1652_v50 = vld [vmem:[%s12261_s0 + $0x210] sm:$0xff] }
  0x4a   :  { %13100 = vst [vmem:[#allocation61_spill] sm:$0xff] %v7439_v61  ;;  %v1604_v29 = vld [vmem:[%s12261_s0 + $0x90] sm:$0xff] }
  0x4b   :  { %2735 = vmatmul.f32.gmra.mxu3 %v7286_v5  ;;  %v7326_v5 = vsel %vm1946_vm0, %v1887_v55, %v1888_v20  ;;  %v1889_v55 = vrot.slane %v7328_v11, 7  ;;  %v7418_v11 = vmax.f32 %v1623_v58, 0.0  ;;  %v1595_v58 = vld [vmem:[%s12261_s0 + $0x48] sm:$0xff]  ;;  %13101 = vst [vmem:[#allocation62_spill] sm:$0xff] %v7441_v48  ;;  %v7484_v48 = vmax.f32 %v1652_v50, 0.0  ;;  %v1625_v50 = vld [vmem:[%s12261_s0 + $0x138] sm:$0xff] }
  0x4c   :  { %13085 = vst [vmem:[#allocation46_spill] sm:$0xff] %v7326_v5  ;;  %v7457_v12 = vmax.f32 %v1595_v58, 0.0 }
  0x4d   :  { %2483 = vmatmul.f32.gmra.mxu0 %v7299_v39  ;;  %13096 = vst [vmem:[#allocation57_spill] sm:$0xff] %v7418_v11 }
  0x4e   :  { %13103 = vst [vmem:[#allocation64_spill] sm:$0xff] %v7457_v12 }
  0x4f   :  { %13107 = vst [vmem:[#allocation68_spill] sm:$0xff] %v7484_v48 }
  0x51   :  { %2570 = vmatmul.f32.gmra.mxu1 %v7322_v16  ;;  %2654 = vmatmul.f32.gmra.mxu2 %v7326_v5  ;;  %v1624_v5 = vld [vmem:[%s12261_s0 + $0x130] sm:$0xff] }
  0x52   :  { %v7482_v4 = vmax.f32 %v1624_v5, 0.0 }
  0x53   :  { %2738 = vmatmul.f32.gmra.mxu3 %v7336_v30  ;;  %v7377_v30 = vsel %vm1946_vm0, %v1888_v20, %v1889_v55  ;;  %v1862_v20 = vrot.slane %v7379_v53, 7 }
  0x54   :  { %13090 = vst [vmem:[#allocation51_spill] sm:$0xff] %v7377_v30  ;;  %v1864_v5 = vrot.slane %v7482_v4, 7 }
  0x55   :  { %2486 = vmatmul.f32.gmra.mxu0 %v7349_v52  ;;  %v7425_v10 = vsel %vm1946_vm0, %v1861_v54, %v1862_v20  ;;  %v1863_v54 = vrot.slane %v7418_v11, 7  ;;  %13106 = vst [vmem:[#allocation67_spill] sm:$0xff] %v7482_v4 }
  0x56   :  { %13097 = vst [vmem:[#allocation58_spill] sm:$0xff] %v7425_v10 }
  0x57   :  { %v7472_v58 = vsel %vm1946_vm0, %v1862_v20, %v1863_v54  ;;  %v1596_v20 = vld [vmem:[%s12261_s0 + $0x50] sm:$0xff] }
  0x58   :  { %13104 = vst [vmem:[#allocation65_spill] sm:$0xff] %v7472_v58 }
  0x59   :  { %2573 = vmatmul.f32.gmra.mxu1 %v7369_v33  ;;  %2657 = vmatmul.f32.gmra.mxu2 %v7377_v30  ;;  %v7431_v30 = vmax.f32 %v1651_v51, 0.0  ;;  %v2328_v33 = vld [vmem:[%s12260_s1 + $0xa0] sm:$0xff] }
  0x5b   :  { %2741 = vmatmul.f32.gmra.mxu3 %v7389_v21  ;;  %v7429_v21 = vsel %vm1946_vm0, %v1889_v55, %v1890_v25  ;;  %13099 = vst [vmem:[#allocation60_spill] sm:$0xff] %v7431_v30  ;;  %v1891_v51 = vrot.slane %v7431_v30, 7  ;;  %v7449_v55 = vsel %vm1946_vm0, %v1833_v15, %v1834_v14  ;;  %v2348_v30 = vld [vmem:[%s12260_s1 + $0x140] sm:$0xff] }
  0x5c   :  { %13098 = vst [vmem:[#allocation59_spill] sm:$0xff] %v7429_v21  ;;  %v2364_v15 = vld [vmem:[%s12260_s1 + $0x1c0] sm:$0xff]  ;;  %3165 = vmatpush.msrb.mxu2 %v2348_v30  ;;  %v1835_v30 = vrot.slane %v7457_v12, 7 }
  0x5d   :  { %2489 = vmatmul.f32.gmra.mxu0 %v7402_v28  ;;  %13102 = vst [vmem:[#allocation63_spill] sm:$0xff] %v7449_v55  ;;  %3518 = vmatpush.msrb.mxu3 %v2364_v15  ;;  %v7480_v38 = vsel %vm1946_vm0, %v1890_v25, %v1891_v51  ;;  %v7492_v15 = vsel %vm1946_vm0, %v1918_v36, %v1919_v56  ;;  %v7507_v36 = vmax.f32 %v1596_v20, 0.0  ;;  %v1681_v20 = vld [vmem:[%s12261_s0 + $0x2f8] sm:$0xff] }
  0x5e   :  { %13105 = vst [vmem:[#allocation66_spill] sm:$0xff] %v7480_v38  ;;  %v7502_v25 = vsel %vm1946_vm0, %v1834_v14, %v1835_v30  ;;  %v7518_v14 = vmax.f32 %v1625_v50, 0.0  ;;  %v1597_v50 = vld [vmem:[%s12261_s0 + $0x58] sm:$0xff]  ;;  %v7541_v9 = vmax.f32 %v1681_v20, 0.0 }
  0x5f   :  { %13108 = vst [vmem:[#allocation69_spill] sm:$0xff] %v7492_v15  ;;  %v7557_v20 = vmax.f32 %v1597_v50, 0.0 }
  0x60   :  { %13110 = vst [vmem:[#allocation71_spill] sm:$0xff] %v7502_v25  ;;  %v1921_v46 = vrot.slane %v7541_v9, 7 }
  0x61   :  { %2576 = vmatmul.f32.gmra.mxu1 %v7425_v10  ;;  %2660 = vmatmul.f32.gmra.mxu2 %v7429_v21  ;;  %v2332_v21 = vld [vmem:[%s12260_s1 + $0xc0] sm:$0xff]  ;;  %13111 = vst [vmem:[#allocation72_spill] sm:$0xff] %v7507_v36 }
  0x62   :  { %2812 = vmatpush.msrb.mxu1 %v2332_v21  ;;  %v1892_v21 = vrot.slane %v7484_v48, 7  ;;  %v2380_v48 = vld [vmem:[%s12260_s1 + $0x240] sm:$0xff]  ;;  %13112 = vst [vmem:[#allocation73_spill] sm:$0xff] %v7518_v14 }
  0x63   :  { %2744 = vmatmul.f32.gmra.mxu3 %v7439_v61  ;;  %v1680_v61 = vld [vmem:[%s12261_s0 + $0x2f0] sm:$0xff]  ;;  %3871 = vmatpush.msrb.mxu0 %v2380_v48  ;;  %v1836_v48 = vrot.slane %v7507_v36, 7  ;;  %13117 = vst [vmem:[#allocation78_spill] sm:$0xff] %v7541_v9 }
  0x64   :  { %v7494_v49 = vmax.f32 %v1680_v61, 0.0  ;;  %v1653_v61 = vld [vmem:[%s12261_s0 + $0x218] sm:$0xff]  ;;  %v7529_v44 = vsel %vm1946_vm0, %v1891_v51, %v1892_v21  ;;  %13119 = vst [vmem:[#allocation80_spill] sm:$0xff] %v7557_v20 }
  0x65   :  { %2492 = vmatmul.f32.gmra.mxu0 %v7449_v55  ;;  %13114 = vst [vmem:[#allocation75_spill] sm:$0xff] %v7529_v44  ;;  %v7531_v1 = vmax.f32 %v1653_v61, 0.0  ;;  %v2347_v51 = vld [vmem:[%s12260_s1 + $0x138] sm:$0xff]  ;;  %v7552_v41 = vsel %vm1946_vm0, %v1835_v30, %v1836_v48 }
  0x66   :  { %13109 = vst [vmem:[#allocation70_spill] sm:$0xff] %v7494_v49  ;;  %3166 = vmatpush.msrb.mxu2 %v2347_v51  ;;  %v2331_v30 = vld [vmem:[%s12260_s1 + $0xb8] sm:$0xff]  ;;  %v1682_v51 = vld [vmem:[%s12261_s0 + $0x300] sm:$0xff] }
  0x67   :  { %13115 = vst [vmem:[#allocation76_spill] sm:$0xff] %v7531_v1  ;;  %v1893_v61 = vrot.slane %v7531_v1, 7  ;;  %v2363_v1 = vld [vmem:[%s12260_s1 + $0x1b8] sm:$0xff]  ;;  %2813 = vmatpush.msrb.mxu1 %v2331_v30  ;;  %v7594_v9 = vmax.f32 %v1682_v51, 0.0  ;;  %v1655_v51 = vld [vmem:[%s12261_s0 + $0x228] sm:$0xff] }
  0x68   :  { %13118 = vst [vmem:[#allocation79_spill] sm:$0xff] %v7552_v41  ;;  %3519 = vmatpush.msrb.mxu3 %v2363_v1  ;;  %v1837_v1 = vrot.slane %v7557_v20, 7 }
  0x69   :  { %2579 = vmatmul.f32.gmra.mxu1 %v7472_v58  ;;  %2663 = vmatmul.f32.gmra.mxu2 %v7480_v38  ;;  %v1920_v38 = vrot.slane %v7494_v49, 7  ;;  %13125 = vst [vmem:[#allocation86_spill] sm:$0xff] %v7594_v9 }
  0x6b   :  { %2747 = vmatmul.f32.gmra.mxu3 %v7492_v15  ;;  %v7525_v15 = vsel %vm1946_vm0, %v1863_v54, %v1864_v5  ;;  %v7539_v49 = vsel %vm1946_vm0, %v1919_v56, %v1920_v38  ;;  %v1865_v54 = vrot.slane %v7518_v14, 7  ;;  %v1626_v56 = vld [vmem:[%s12261_s0 + $0x140] sm:$0xff]  ;;  %v7592_v30 = vsel %vm1946_vm0, %v1920_v38, %v1921_v46 }
  0x6c   :  { %13113 = vst [vmem:[#allocation74_spill] sm:$0xff] %v7525_v15  ;;  %v7582_v8 = vmax.f32 %v1626_v56, 0.0  ;;  %v7602_v56 = vsel %vm1946_vm0, %v1836_v48, %v1837_v1  ;;  %v7618_v48 = vmax.f32 %v1627_v45, 0.0  ;;  %v7631_v14 = vmax.f32 %v1655_v51, 0.0  ;;  %v2346_v45 = vld [vmem:[%s12260_s1 + $0x130] sm:$0xff] }
  0x6d   :  { %2495 = vmatmul.f32.gmra.mxu0 %v7502_v25  ;;  %13116 = vst [vmem:[#allocation77_spill] sm:$0xff] %v7539_v49  ;;  %v7572_v50 = vsel %vm1946_vm0, %v1864_v5, %v1865_v54  ;;  %v1598_v5 = vld [vmem:[%s12261_s0 + $0x60] sm:$0xff]  ;;  %3167 = vmatpush.msrb.mxu2 %v2346_v45  ;;  %v2362_v51 = vld [vmem:[%s12260_s1 + $0x1b0] sm:$0xff] }
  0x6e   :  { %13120 = vst [vmem:[#allocation81_spill] sm:$0xff] %v7572_v50  ;;  %v7607_v38 = vmax.f32 %v1598_v5, 0.0  ;;  %v1683_v5 = vld [vmem:[%s12261_s0 + $0x308] sm:$0xff]  ;;  %v1895_v4 = vrot.slane %v7631_v14, 7  ;;  %3520 = vmatpush.msrb.mxu3 %v2362_v51  ;;  %v1684_v51 = vld [vmem:[%s12261_s0 + $0x310] sm:$0xff] }
  0x6f   :  { %13122 = vst [vmem:[#allocation83_spill] sm:$0xff] %v7582_v8 }
  0x70   :  { %13124 = vst [vmem:[#allocation85_spill] sm:$0xff] %v7592_v30 }
  0x71   :  { %2582 = vmatmul.f32.gmra.mxu1 %v7525_v15  ;;  %2666 = vmatmul.f32.gmra.mxu2 %v7529_v44  ;;  %v1654_v44 = vld [vmem:[%s12261_s0 + $0x220] sm:$0xff]  ;;  %13126 = vst [vmem:[#allocation87_spill] sm:$0xff] %v7602_v56  ;;  %v7694_v15 = vmax.f32 %v1684_v51, 0.0 }
  0x72   :  { %v7584_v23 = vmax.f32 %v1654_v44, 0.0  ;;  %13127 = vst [vmem:[#allocation88_spill] sm:$0xff] %v7607_v38 }
  0x73   :  { %2750 = vmatmul.f32.gmra.mxu3 %v7539_v49  ;;  %v7580_v49 = vsel %vm1946_vm0, %v1892_v21, %v1893_v61  ;;  %v1866_v21 = vrot.slane %v7582_v8, 7  ;;  %13128 = vst [vmem:[#allocation89_spill] sm:$0xff] %v7618_v48 }
  0x74   :  { %13121 = vst [vmem:[#allocation82_spill] sm:$0xff] %v7580_v49  ;;  %v1894_v44 = vrot.slane %v7584_v23, 7 }
  0x75   :  { %2498 = vmatmul.f32.gmra.mxu0 %v7552_v41  ;;  %13123 = vst [vmem:[#allocation84_spill] sm:$0xff] %v7584_v23  ;;  %v2379_v23 = vld [vmem:[%s12260_s1 + $0x238] sm:$0xff] }
  0x76   :  { %3872 = vmatpush.msrb.mxu0 %v2379_v23  ;;  %v7629_v8 = vsel %vm1946_vm0, %v1893_v61, %v1894_v44  ;;  %13131 = vst [vmem:[#allocation92_spill] sm:$0xff] %v7631_v14  ;;  %v1838_v23 = vrot.slane %v7607_v38, 7  ;;  %v1867_v61 = vrot.slane %v7618_v48, 7  ;;  %v2330_v14 = vld [vmem:[%s12260_s1 + $0xb0] sm:$0xff] }
  0x77   :  { %13130 = vst [vmem:[#allocation91_spill] sm:$0xff] %v7629_v8  ;;  %2814 = vmatpush.msrb.mxu1 %v2330_v14 }
  0x78   :  { %v7655_v45 = vsel %vm1946_vm0, %v1837_v1, %v1838_v23  ;;  %13141 = vst [vmem:[#allocation102_spill] sm:$0xff] %v7694_v15 }
  0x79   :  { %2585 = vmatmul.f32.gmra.mxu1 %v7572_v50  ;;  %2669 = vmatmul.f32.gmra.mxu2 %v7580_v49  ;;  %v1922_v49 = vrot.slane %v7594_v9, 7  ;;  %v1599_v9 = vld [vmem:[%s12261_s0 + $0x68] sm:$0xff]  ;;  %v7644_v50 = vmax.f32 %v1683_v5, 0.0  ;;  %13134 = vst [vmem:[#allocation95_spill] sm:$0xff] %v7655_v45  ;;  %v1628_v5 = vld [vmem:[%s12261_s0 + $0x150] sm:$0xff] }
  0x7a   :  { %v7682_v48 = vmax.f32 %v1628_v5, 0.0 }
  0x7b   :  { %2753 = vmatmul.f32.gmra.mxu3 %v7592_v30  ;;  %v7625_v30 = vsel %vm1946_vm0, %v1865_v54, %v1866_v21  ;;  %v7642_v54 = vsel %vm1946_vm0, %v1921_v46, %v1922_v49  ;;  %13133 = vst [vmem:[#allocation94_spill] sm:$0xff] %v7644_v50  ;;  %v7657_v46 = vmax.f32 %v1599_v9, 0.0  ;;  %v1923_v1 = vrot.slane %v7644_v50, 7 }
  0x7c   :  { %13129 = vst [vmem:[#allocation90_spill] sm:$0xff] %v7625_v30  ;;  %v7672_v9 = vsel %vm1946_vm0, %v1866_v21, %v1867_v61  ;;  %v1600_v21 = vld [vmem:[%s12261_s0 + $0x70] sm:$0xff] }
  0x7d   :  { %2501 = vmatmul.f32.gmra.mxu0 %v7602_v56  ;;  %13132 = vst [vmem:[#allocation93_spill] sm:$0xff] %v7642_v54  ;;  %v1839_v14 = vrot.slane %v7657_v46, 7  ;;  %v7692_v50 = vsel %vm1946_vm0, %v1922_v49, %v1923_v1  ;;  %v1629_v49 = vld [vmem:[%s12261_s0 + $0x158] sm:$0xff]  ;;  %v7710_v51 = vmax.f32 %v1600_v21, 0.0 }
  0x7e   :  { %13135 = vst [vmem:[#allocation96_spill] sm:$0xff] %v7657_v46  ;;  %v1685_v21 = vld [vmem:[%s12261_s0 + $0x318] sm:$0xff] }
  0x7f   :  { %13136 = vst [vmem:[#allocation97_spill] sm:$0xff] %v7672_v9  ;;  %v7705_v11 = vsel %vm1946_vm0, %v1838_v23, %v1839_v14  ;;  %v2345_v23 = vld [vmem:[%s12260_s1 + $0x128] sm:$0xff]  ;;  %v7747_v58 = vmax.f32 %v1685_v21, 0.0  ;;  %v1630_v21 = vld [vmem:[%s12261_s0 + $0x160] sm:$0xff] }
  0x80   :  { %13138 = vst [vmem:[#allocation99_spill] sm:$0xff] %v7682_v48  ;;  %3168 = vmatpush.msrb.mxu2 %v2345_v23  ;;  %v1601_v23 = vld [vmem:[%s12261_s0 + $0x78] sm:$0xff] }
  0x81   :  { %2588 = vmatmul.f32.gmra.mxu1 %v7625_v30  ;;  %2672 = vmatmul.f32.gmra.mxu2 %v7629_v8  ;;  %v1656_v8 = vld [vmem:[%s12261_s0 + $0x230] sm:$0xff]  ;;  %13140 = vst [vmem:[#allocation101_spill] sm:$0xff] %v7692_v50 }
  0x82   :  { %v7684_v30 = vmax.f32 %v1656_v8, 0.0  ;;  %v2378_v8 = vld [vmem:[%s12260_s1 + $0x230] sm:$0xff]  ;;  %13142 = vst [vmem:[#allocation103_spill] sm:$0xff] %v7705_v11 }
  0x83   :  { %2756 = vmatmul.f32.gmra.mxu3 %v7642_v54  ;;  %v7680_v54 = vsel %vm1946_vm0, %v1894_v44, %v1895_v4  ;;  %v1868_v44 = vrot.slane %v7682_v48, 7  ;;  %13143 = vst [vmem:[#allocation104_spill] sm:$0xff] %v7710_v51  ;;  %3873 = vmatpush.msrb.mxu0 %v2378_v8  ;;  %v1924_v48 = vrot.slane %v7694_v15, 7 }
  0x84   :  { %13137 = vst [vmem:[#allocation98_spill] sm:$0xff] %v7680_v54  ;;  %v1896_v5 = vrot.slane %v7684_v30, 7 }
  0x85   :  { %2504 = vmatmul.f32.gmra.mxu0 %v7655_v45  ;;  %13139 = vst [vmem:[#allocation100_spill] sm:$0xff] %v7684_v30  ;;  %v7721_v30 = vmax.f32 %v1629_v49, 0.0  ;;  %v7728_v8 = vsel %vm1946_vm0, %v1867_v61, %v1868_v44  ;;  %v2361_v49 = vld [vmem:[%s12260_s1 + $0x1a8] sm:$0xff]  ;;  %v7745_v61 = vsel %vm1946_vm0, %v1923_v1, %v1924_v48  ;;  %v7760_v1 = vmax.f32 %v1601_v23, 0.0 }
  0x86   :  { %13145 = vst [vmem:[#allocation106_spill] sm:$0xff] %v7728_v8  ;;  %v7732_v15 = vsel %vm1946_vm0, %v1895_v4, %v1896_v5  ;;  %3521 = vmatpush.msrb.mxu3 %v2361_v49 }
  0x87   :  { %13144 = vst [vmem:[#allocation105_spill] sm:$0xff] %v7721_v30  ;;  %v1869_v4 = vrot.slane %v7721_v30, 7  ;;  %v1925_v30 = vrot.slane %v7747_v58, 7 }
  0x88   :  { %13146 = vst [vmem:[#allocation107_spill] sm:$0xff] %v7732_v15 }
  0x89   :  { %2591 = vmatmul.f32.gmra.mxu1 %v7672_v9  ;;  %2675 = vmatmul.f32.gmra.mxu2 %v7680_v54  ;;  %v1657_v54 = vld [vmem:[%s12261_s0 + $0x238] sm:$0xff]  ;;  %v1840_v9 = vrot.slane %v7710_v51, 7  ;;  %13148 = vst [vmem:[#allocation109_spill] sm:$0xff] %v7745_v61  ;;  %v7795_v10 = vsel %vm1946_vm0, %v1924_v48, %v1925_v30 }
  0x8a   :  { %13149 = vst [vmem:[#allocation110_spill] sm:$0xff] %v7747_v58  ;;  %v1841_v58 = vrot.slane %v7760_v1, 7 }
  0x8b   :  { %2759 = vmatmul.f32.gmra.mxu3 %v7692_v50  ;;  %v7734_v50 = vmax.f32 %v1657_v54, 0.0  ;;  %v2329_v54 = vld [vmem:[%s12260_s1 + $0xa8] sm:$0xff]  ;;  %v7758_v49 = vsel %vm1946_vm0, %v1839_v14, %v1840_v9  ;;  %13151 = vst [vmem:[#allocation112_spill] sm:$0xff] %v7760_v1  ;;  %v1686_v14 = vld [vmem:[%s12261_s0 + $0x320] sm:$0xff] }
  0x8c   :  { %13150 = vst [vmem:[#allocation111_spill] sm:$0xff] %v7758_v49  ;;  %2815 = vmatpush.msrb.mxu1 %v2329_v54  ;;  %v7782_v54 = vmax.f32 %v1630_v21, 0.0  ;;  %v7805_v0 = vsel %vm1946_vm0, %v1840_v9, %v1841_v58  ;;  %v2360_v9 = vld [vmem:[%s12260_s1 + $0x1a0] sm:$0xff] }
  0x8d   :  { %2507 = vmatmul.f32.gmra.mxu0 %v7705_v11  ;;  %13147 = vst [vmem:[#allocation108_spill] sm:$0xff] %v7734_v50  ;;  %v1897_v53 = vrot.slane %v7734_v50, 7  ;;  %v7772_v50 = vsel %vm1946_vm0, %v1868_v44, %v1869_v4  ;;  %v2377_v44 = vld [vmem:[%s12260_s1 + $0x228] sm:$0xff]  ;;  %3522 = vmatpush.msrb.mxu3 %v2360_v9 }
  0x8e   :  { %13152 = vst [vmem:[#allocation113_spill] sm:$0xff] %v7772_v50  ;;  %3874 = vmatpush.msrb.mxu0 %v2377_v44  ;;  %v1631_v44 = vld [vmem:[%s12261_s0 + $0x168] sm:$0xff]  ;;  %2816 = vmatpush.msrb.mxu1 %v2328_v33 }
  0x8f   :  { %v7780_v23 = vsel %vm1946_vm0, %v1896_v5, %v1897_v53  ;;  %13154 = vst [vmem:[#allocation115_spill] sm:$0xff] %v7782_v54  ;;  %v7797_v5 = vmax.f32 %v1686_v14, 0.0  ;;  %v1659_v14 = vld [vmem:[%s12261_s0 + $0x248] sm:$0xff] }
  0x90   :  { %13153 = vst [vmem:[#allocation114_spill] sm:$0xff] %v7780_v23  ;;  %v1603_v9 = vld [vmem:[%s12261_s0 + $0x88] sm:$0xff] }
  0x91   :  { %2594 = vmatmul.f32.gmra.mxu1 %v7728_v8  ;;  %2678 = vmatmul.f32.gmra.mxu2 %v7732_v15  ;;  %v1658_v15 = vld [vmem:[%s12261_s0 + $0x240] sm:$0xff]  ;;  %13156 = vst [vmem:[#allocation117_spill] sm:$0xff] %v7795_v10  ;;  %v7864_v33 = vmax.f32 %v1603_v9, 0.0 }
  0x92   :  { %v1602_v8 = vld [vmem:[%s12261_s0 + $0x80] sm:$0xff]  ;;  %13157 = vst [vmem:[#allocation118_spill] sm:$0xff] %v7797_v5 }
  0x93   :  { %2762 = vmatmul.f32.gmra.mxu3 %v7745_v61  ;;  %v7784_v61 = vmax.f32 %v1658_v15, 0.0  ;;  %v1870_v15 = vrot.slane %v7782_v54, 7  ;;  %13158 = vst [vmem:[#allocation119_spill] sm:$0xff] %v7805_v0  ;;  %v7810_v48 = vmax.f32 %v1602_v8, 0.0  ;;  %v7824_v8 = vmax.f32 %v1631_v44, 0.0 }
  0x94   :  { %13168 = vst [vmem:[#allocation129_spill] sm:$0xff] %v7864_v33 }
  0x95   :  { %2510 = vmatmul.f32.gmra.mxu0 %v7758_v49  ;;  %13155 = vst [vmem:[#allocation116_spill] sm:$0xff] %v7784_v61  ;;  %v1898_v21 = vrot.slane %v7784_v61, 7  ;;  %v2344_v61 = vld [vmem:[%s12260_s1 + $0x120] sm:$0xff]  ;;  %v1842_v44 = vrot.slane %v7810_v48, 7 }
  0x96   :  { %13159 = vst [vmem:[#allocation120_spill] sm:$0xff] %v7810_v48  ;;  %3169 = vmatpush.msrb.mxu2 %v2344_v61 }
  0x97   :  { %13160 = vst [vmem:[#allocation121_spill] sm:$0xff] %v7824_v8  ;;  %v7837_v61 = vsel %vm1946_vm0, %v1897_v53, %v1898_v21  ;;  %v1871_v53 = vrot.slane %v7824_v8, 7  ;;  %v7862_v16 = vsel %vm1946_vm0, %v1841_v58, %v1842_v44  ;;  %v2376_v58 = vld [vmem:[%s12260_s1 + $0x220] sm:$0xff] }
  0x98   :  { %13163 = vst [vmem:[#allocation124_spill] sm:$0xff] %v7837_v61  ;;  %3875 = vmatpush.msrb.mxu0 %v2376_v58 }
  0x99   :  { %2597 = vmatmul.f32.gmra.mxu1 %v7772_v50  ;;  %2681 = vmatmul.f32.gmra.mxu2 %v7780_v23  ;;  %v1926_v23 = vrot.slane %v7797_v5, 7  ;;  %v7833_v50 = vsel %vm1946_vm0, %v1869_v4, %v1870_v15  ;;  %v7839_v5 = vmax.f32 %v1659_v14, 0.0  ;;  %13167 = vst [vmem:[#allocation128_spill] sm:$0xff] %v7862_v16  ;;  %v7881_v9 = vsel %vm1946_vm0, %v1870_v15, %v1871_v53 }
  0x9a   :  { %13162 = vst [vmem:[#allocation123_spill] sm:$0xff] %v7833_v50  ;;  %v1843_v15 = vrot.slane %v7864_v33, 7 }
  0x9b   :  { %2765 = vmatmul.f32.gmra.mxu3 %v7795_v10  ;;  %v1687_v10 = vld [vmem:[%s12261_s0 + $0x328] sm:$0xff]  ;;  %13164 = vst [vmem:[#allocation125_spill] sm:$0xff] %v7839_v5  ;;  %v7850_v4 = vsel %vm1946_vm0, %v1925_v30, %v1926_v23  ;;  %v1899_v59 = vrot.slane %v7839_v5, 7  ;;  %v1660_v30 = vld [vmem:[%s12261_s0 + $0x250] sm:$0xff] }
  0x9c   :  { %13165 = vst [vmem:[#allocation126_spill] sm:$0xff] %v7850_v4  ;;  %v7897_v34 = vmax.f32 %v1660_v30, 0.0 }
  0x9d   :  { %2513 = vmatmul.f32.gmra.mxu0 %v7805_v0  ;;  %13170 = vst [vmem:[#allocation131_spill] sm:$0xff] %v7881_v9 }
  0x9e   :  { %v7829_v54 = vpop.f32.mrf.mxu1  ;;  %13175 = vst [vmem:[#allocation136_spill] sm:$0xff] %v7897_v34  ;;  %v1900_v58 = vrot.slane %v7897_v34, 7  ;;  %v2359_v34 = vld [vmem:[%s12260_s1 + $0x198] sm:$0xff] }
  0x9f   :  { %13161 = vst [vmem:[#allocation122_spill] sm:$0xff] %v7829_v54  ;;  %v7852_v54 = vmax.f32 %v1687_v10, 0.0  ;;  %v1632_v10 = vld [vmem:[%s12261_s0 + $0x170] sm:$0xff]  ;;  %3523 = vmatpush.msrb.mxu3 %v2359_v34 }
  0xa1   :  { %13166 = vst [vmem:[#allocation127_spill] sm:$0xff] %v7852_v54  ;;  %2600 = vmatmul.f32.gmra.mxu1 %v7833_v50  ;;  %2684 = vmatmul.f32.gmra.mxu2 %v7837_v61  ;;  %v1927_v5 = vrot.slane %v7852_v54, 7  ;;  %v7893_v54 = vsel %vm1946_vm0, %v1898_v21, %v1899_v59  ;;  %v2343_v21 = vld [vmem:[%s12260_s1 + $0x118] sm:$0xff] }
  0xa2   :  { %v7857_v14 = vpop.f32.mrf.mxu0  ;;  %13173 = vst [vmem:[#allocation134_spill] sm:$0xff] %v7893_v54  ;;  %3170 = vmatpush.msrb.mxu2 %v2343_v21 }
  0xa3   :  { %2768 = vmatmul.f32.gmra.mxu3 %v7850_v4  ;;  %v1688_v4 = vld [vmem:[%s12261_s0 + $0x330] sm:$0xff] }
  0xa4   :  { %v7873_v61 = vpop.f32.mrf.mxu2  ;;  %3171 = vmatpush.msrb.mxu2 %v2342_v3 }
  0xa5   :  { %13169 = vst [vmem:[#allocation130_spill] sm:$0xff] %v7873_v61  ;;  %2516 = vmatmul.f32.gmra.mxu0 %v7862_v16  ;;  %v7895_v61 = vmax.f32 %v1632_v10, 0.0 }
  0xa6   :  { %v7887_v8 = vpop.f32.mrf.mxu1  ;;  %v7889_v50 = vpop.f32.mrf.mxu3 }
  0xa7   :  { %13171 = vst [vmem:[#allocation132_spill] sm:$0xff] %v7887_v8  ;;  %v7905_v8 = vsel %vm1946_vm0, %v1926_v23, %v1927_v5  ;;  %v1872_v30 = vrot.slane %v7895_v61, 7  ;;  %v7920_v23 = vsel %vm1946_vm0, %v1842_v44, %v1843_v15 }
  0xa8   :  { %13172 = vst [vmem:[#allocation133_spill] sm:$0xff] %v7889_v50  ;;  %v7907_v50 = vmax.f32 %v1688_v4, 0.0  ;;  %v1633_v4 = vld [vmem:[%s12261_s0 + $0x178] sm:$0xff] }
  0xa9   :  { %13174 = vst [vmem:[#allocation135_spill] sm:$0xff] %v7895_v61  ;;  %2603 = vmatmul.f32.gmra.mxu1 %v7881_v9  ;;  %2687 = vmatmul.f32.gmra.mxu2 %v7893_v54  ;;  %v7925_v9 = vmax.f32 %v1604_v29, 0.0  ;;  %v1661_v54 = vld [vmem:[%s12261_s0 + $0x258] sm:$0xff]  ;;  %v7941_v21 = vmax.f32 %v1633_v4, 0.0  ;;  %v7952_v34 = vsel %vm1946_vm0, %v1871_v53, %v1872_v30 }
  0xaa   :  { %13176 = vst [vmem:[#allocation137_spill] sm:$0xff] %v7905_v8  ;;  %v7914_v10 = vpop.f32.mrf.mxu0  ;;  %v1928_v44 = vrot.slane %v7907_v50, 7  ;;  %v2327_v29 = vld [vmem:[%s12260_s1 + $0x98] sm:$0xff] }
  0xab   :  { %13177 = vst [vmem:[#allocation138_spill] sm:$0xff] %v7907_v50  ;;  %2771 = vmatmul.f32.gmra.mxu3 %v7905_v8  ;;  %v1689_v8 = vld [vmem:[%s12261_s0 + $0x338] sm:$0xff]  ;;  %2817 = vmatpush.msrb.mxu1 %v2327_v29  ;;  %v7956_v50 = vsel %vm1946_vm0, %v1899_v59, %v1900_v58  ;;  %v1844_v4 = vrot.slane %v7925_v9, 7  ;;  %v1873_v59 = vrot.slane %v7941_v21, 7 }
  0xac   :  { %13178 = vst [vmem:[#allocation139_spill] sm:$0xff] %v7920_v23  ;;  %v7934_v61 = vpop.f32.mrf.mxu2  ;;  %v1605_v29 = vld [vmem:[%s12261_s0 + $0x98] sm:$0xff] }
  0xad   :  { %13179 = vst [vmem:[#allocation140_spill] sm:$0xff] %v7925_v9  ;;  %2519 = vmatmul.f32.gmra.mxu0 %v7920_v23  ;;  %v7978_v37 = vsel %vm1946_vm0, %v1843_v15, %v1844_v4  ;;  %v7980_v63 = vmax.f32 %v1605_v29, 0.0  ;;  %v7997_v29 = vsel %vm1946_vm0, %v1872_v30, %v1873_v59 }
  0xae   :  { %13180 = vst [vmem:[#allocation141_spill] sm:$0xff] %v7934_v61  ;;  %v7946_v2 = vpop.f32.mrf.mxu1  ;;  %v7948_v47 = vpop.f32.mrf.mxu3  ;;  %v7958_v61 = vmax.f32 %v1661_v54, 0.0 }
  0xaf   :  { %13181 = vst [vmem:[#allocation142_spill] sm:$0xff] %v7941_v21  ;;  %v1845_v30 = vrot.slane %v7980_v63, 7 }
  0xb0   :  { %13182 = vst [vmem:[#allocation143_spill] sm:$0xff] %v7946_v2  ;;  %v7966_v2 = vsel %vm1946_vm0, %v1927_v5, %v1928_v44  ;;  %v1901_v53 = vrot.slane %v7958_v61, 7  ;;  %v1634_v5 = vld [vmem:[%s12261_s0 + $0x180] sm:$0xff] }
  0xb1   :  { %13183 = vst [vmem:[#allocation144_spill] sm:$0xff] %v7948_v47  ;;  %v7968_v47 = vmax.f32 %v1689_v8, 0.0  ;;  %2606 = vmatmul.f32.gmra.mxu1 %v7952_v34  ;;  %2690 = vmatmul.f32.gmra.mxu2 %v7956_v50  ;;  %v1662_v8 = vld [vmem:[%s12261_s0 + $0x260] sm:$0xff] }
  0xb2   :  { %13184 = vst [vmem:[#allocation145_spill] sm:$0xff] %v7952_v34  ;;  %v7973_v54 = vpop.f32.mrf.mxu0 }
  0xb3   :  { %13185 = vst [vmem:[#allocation146_spill] sm:$0xff] %v7956_v50  ;;  %2774 = vmatmul.f32.gmra.mxu3 %v7966_v2  ;;  %v1929_v15 = vrot.slane %v7968_v47, 7 }
  0xb4   :  { %13186 = vst [vmem:[#allocation147_spill] sm:$0xff] %v7958_v61  ;;  %v2375_v61 = vld [vmem:[%s12260_s1 + $0x218] sm:$0xff]  ;;  %v7992_v50 = vpop.f32.mrf.mxu2 }
  0xb5   :  { %13187 = vst [vmem:[#allocation148_spill] sm:$0xff] %v7966_v2  ;;  %3876 = vmatpush.msrb.mxu0 %v2375_v61  ;;  %v1690_v2 = vld [vmem:[%s12261_s0 + $0x340] sm:$0xff]  ;;  %v8013_v61 = vmax.f32 %v1662_v8, 0.0 }
  0xb6   :  { %13188 = vst [vmem:[#allocation149_spill] sm:$0xff] %v7968_v47  ;;  %2522 = vmatmul.f32.gmra.mxu0 %v7978_v37  ;;  %v8003_v21 = vpop.f32.mrf.mxu1  ;;  %v8005_v34 = vpop.f32.mrf.mxu3  ;;  %v8011_v47 = vmax.f32 %v1634_v5, 0.0  ;;  %v2358_v5 = vld [vmem:[%s12260_s1 + $0x190] sm:$0xff] }
  0xb7   :  { %13189 = vst [vmem:[#allocation150_spill] sm:$0xff] %v7973_v54  ;;  %v1902_v3 = vrot.slane %v8013_v61, 7  ;;  %3524 = vmatpush.msrb.mxu3 %v2358_v5  ;;  %v1691_v5 = vld [vmem:[%s12261_s0 + $0x348] sm:$0xff] }
  0xb8   :  { %13190 = vst [vmem:[#allocation151_spill] sm:$0xff] %v7978_v37  ;;  %v1874_v40 = vrot.slane %v8011_v47, 7  ;;  %v2373_v54 = vld [vmem:[%s12260_s1 + $0x208] sm:$0xff] }
  0xb9   :  { %13191 = vst [vmem:[#allocation152_spill] sm:$0xff] %v7980_v63  ;;  %2609 = vmatmul.f32.gmra.mxu1 %v7997_v29 }
  0xba   :  { %13192 = vst [vmem:[#allocation153_spill] sm:$0xff] %v7992_v50  ;;  %v8009_v50 = vsel %vm1946_vm0, %v1900_v58, %v1901_v53  ;;  %v8026_v58 = vmax.f32 %v1690_v2, 0.0  ;;  %v8033_v8 = vpop.f32.mrf.mxu0  ;;  %v1635_v2 = vld [vmem:[%s12261_s0 + $0x188] sm:$0xff]  ;;  %v8068_v7 = vsel %vm1946_vm0, %v1873_v59, %v1874_v40 }
  0xbb   :  { %13193 = vst [vmem:[#allocation154_spill] sm:$0xff] %v7997_v29  ;;  %2693 = vmatmul.f32.gmra.mxu2 %v8009_v50 }
  0xbc   :  { %13194 = vst [vmem:[#allocation155_spill] sm:$0xff] %v8003_v21  ;;  %v1606_v21 = vld [vmem:[%s12261_s0 + $0xa0] sm:$0xff] }
  0xbd   :  { %13195 = vst [vmem:[#allocation156_spill] sm:$0xff] %v8005_v34  ;;  %v8024_v34 = vsel %vm1946_vm0, %v1928_v44, %v1929_v15  ;;  %v8039_v44 = vsel %vm1946_vm0, %v1844_v4, %v1845_v30  ;;  %v8044_v29 = vmax.f32 %v1606_v21, 0.0  ;;  %v1930_v4 = vrot.slane %v8026_v58, 7 }
  0xbe   :  { %13196 = vst [vmem:[#allocation157_spill] sm:$0xff] %v8009_v50  ;;  %2777 = vmatmul.f32.gmra.mxu3 %v8024_v34  ;;  %v1663_v50 = vld [vmem:[%s12261_s0 + $0x268] sm:$0xff]  ;;  %2525 = vmatmul.f32.gmra.mxu0 %v8039_v44  ;;  %v8057_v21 = vmax.f32 %v1635_v2, 0.0  ;;  %v8064_v43 = vpop.f32.mrf.mxu3 }
  0xbf   :  { %13197 = vst [vmem:[#allocation158_spill] sm:$0xff] %v8011_v47  ;;  %v8053_v47 = vpop.f32.mrf.mxu2  ;;  %v1846_v2 = vrot.slane %v8044_v29, 7 }
  0xc0   :  { %13198 = vst [vmem:[#allocation159_spill] sm:$0xff] %v8013_v61  ;;  %v2326_v61 = vld [vmem:[%s12260_s1 + $0x90] sm:$0xff]  ;;  %v1875_v59 = vrot.slane %v8057_v21, 7 }
  0xc1   :  { %13199 = vst [vmem:[#allocation160_spill] sm:$0xff] %v8024_v34  ;;  %2818 = vmatpush.msrb.mxu1 %v2326_v61  ;;  %v8062_v34 = vpop.f32.mrf.mxu1  ;;  %v8074_v61 = vmax.f32 %v1663_v50, 0.0  ;;  %v2374_v50 = vld [vmem:[%s12260_s1 + $0x210] sm:$0xff] }
  0xc2   :  { %13200 = vst [vmem:[#allocation161_spill] sm:$0xff] %v8026_v58  ;;  %v8072_v58 = vsel %vm1946_vm0, %v1901_v53, %v1902_v3  ;;  %2612 = vmatmul.f32.gmra.mxu1 %v8068_v7  ;;  %v8092_v53 = vpop.f32.mrf.mxu0  ;;  %3877 = vmatpush.msrb.mxu0 %v2374_v50  ;;  %v1692_v50 = vld [vmem:[%s12261_s0 + $0x350] sm:$0xff] }
  0xc3   :  { %13201 = vst [vmem:[#allocation162_spill] sm:$0xff] %v8033_v8  ;;  %2696 = vmatmul.f32.gmra.mxu2 %v8072_v58  ;;  %v1903_v19 = vrot.slane %v8074_v61, 7  ;;  %v2357_v8 = vld [vmem:[%s12260_s1 + $0x188] sm:$0xff] }
  0xc4   :  { %13202 = vst [vmem:[#allocation163_spill] sm:$0xff] %v8039_v44  ;;  %3525 = vmatpush.msrb.mxu3 %v2357_v8  ;;  %3878 = vmatpush.msrb.mxu0 %v2373_v54 }
  0xc5   :  { %13203 = vst [vmem:[#allocation164_spill] sm:$0xff] %v8053_v47  ;;  %v1607_v47 = vld [vmem:[%s12261_s0 + $0xa8] sm:$0xff] }
  0xc6   :  { %13204 = vst [vmem:[#allocation165_spill] sm:$0xff] %v8057_v21  ;;  %v1664_v21 = vld [vmem:[%s12261_s0 + $0x270] sm:$0xff] }
  0xc7   :  { %13205 = vst [vmem:[#allocation166_spill] sm:$0xff] %v8062_v34  ;;  %v8082_v34 = vsel %vm1946_vm0, %v1929_v15, %v1930_v4  ;;  %v8097_v15 = vsel %vm1946_vm0, %v1845_v30, %v1846_v2  ;;  %v8116_v30 = vsel %vm1946_vm0, %v1874_v40, %v1875_v59 }
  0xc8   :  { %13206 = vst [vmem:[#allocation167_spill] sm:$0xff] %v8064_v43  ;;  %v8084_v43 = vmax.f32 %v1691_v5, 0.0  ;;  %v8099_v5 = vmax.f32 %v1607_v47, 0.0  ;;  %2780 = vmatmul.f32.gmra.mxu3 %v8082_v34  ;;  %v2341_v47 = vld [vmem:[%s12260_s1 + $0x108] sm:$0xff]  ;;  %2528 = vmatmul.f32.gmra.mxu0 %v8097_v15 }
  0xc9   :  { %13207 = vst [vmem:[#allocation168_spill] sm:$0xff] %v8068_v7  ;;  %v8108_v7 = vpop.f32.mrf.mxu2  ;;  %3172 = vmatpush.msrb.mxu2 %v2341_v47  ;;  %v1608_v47 = vld [vmem:[%s12261_s0 + $0xb0] sm:$0xff] }
  0xca   :  { %13208 = vst [vmem:[#allocation169_spill] sm:$0xff] %v8072_v58  ;;  %v1636_v58 = vld [vmem:[%s12261_s0 + $0x190] sm:$0xff]  ;;  %v1847_v40 = vrot.slane %v8099_v5, 7  ;;  %2615 = vmatmul.f32.gmra.mxu1 %v8116_v30 }
  0xcb   :  { %13209 = vst [vmem:[#allocation170_spill] sm:$0xff] %v8074_v61  ;;  %v1931_v61 = vrot.slane %v8084_v43, 7  ;;  %v8130_v42 = vmax.f32 %v1636_v58, 0.0  ;;  %v2325_v58 = vld [vmem:[%s12260_s1 + $0x88] sm:$0xff] }
  0xcc   :  { %13210 = vst [vmem:[#allocation171_spill] sm:$0xff] %v8082_v34  ;;  %v8122_v34 = vpop.f32.mrf.mxu1  ;;  %2819 = vmatpush.msrb.mxu1 %v2325_v58 }
  0xcd   :  { %13211 = vst [vmem:[#allocation172_spill] sm:$0xff] %v8084_v43  ;;  %v8128_v43 = vsel %vm1946_vm0, %v1902_v3, %v1903_v19  ;;  %v8145_v3 = vmax.f32 %v1692_v50, 0.0  ;;  %v1637_v50 = vld [vmem:[%s12261_s0 + $0x198] sm:$0xff] }
  0xce   :  { %13212 = vst [vmem:[#allocation173_spill] sm:$0xff] %v8092_v53  ;;  %v8132_v53 = vmax.f32 %v1664_v21, 0.0  ;;  %2699 = vmatmul.f32.gmra.mxu2 %v8128_v43  ;;  %v8152_v21 = vpop.f32.mrf.mxu0 }
  0xcf   :  { %13213 = vst [vmem:[#allocation174_spill] sm:$0xff] %v8097_v15 }
  0xd0   :  { %13214 = vst [vmem:[#allocation175_spill] sm:$0xff] %v8099_v5  ;;  %v1904_v8 = vrot.slane %v8132_v53, 7 }
  0xd1   :  { %13215 = vst [vmem:[#allocation176_spill] sm:$0xff] %v8108_v7  ;;  %v8124_v7 = vpop.f32.mrf.mxu3 }
  0xd2   :  { %13216 = vst [vmem:[#allocation177_spill] sm:$0xff] %v8116_v30  ;;  %v8163_v30 = vmax.f32 %v1608_v47, 0.0  ;;  %v1693_v47 = vld [vmem:[%s12261_s0 + $0x358] sm:$0xff] }
  0xd3   :  { %13217 = vst [vmem:[#allocation178_spill] sm:$0xff] %v8122_v34  ;;  %v1876_v34 = vrot.slane %v8130_v42, 7 }
  0xd4   :  { %13218 = vst [vmem:[#allocation179_spill] sm:$0xff] %v8124_v7  ;;  %v8143_v7 = vsel %vm1946_vm0, %v1930_v4, %v1931_v61  ;;  %v8158_v4 = vsel %vm1946_vm0, %v1846_v2, %v1847_v40  ;;  %v8173_v2 = vmax.f32 %v1637_v50, 0.0  ;;  %v1848_v50 = vrot.slane %v8163_v30, 7 }
  0xd5   :  { %13219 = vst [vmem:[#allocation180_spill] sm:$0xff] %v8128_v43  ;;  %2783 = vmatmul.f32.gmra.mxu3 %v8143_v7  ;;  %v1665_v43 = vld [vmem:[%s12261_s0 + $0x278] sm:$0xff]  ;;  %2531 = vmatmul.f32.gmra.mxu0 %v8158_v4 }
  0xd6   :  { %13220 = vst [vmem:[#allocation181_spill] sm:$0xff] %v8130_v42  ;;  %v8169_v42 = vpop.f32.mrf.mxu2  ;;  %v8213_v5 = vsel %vm1946_vm0, %v1847_v40, %v1848_v50 }
  0xd7   :  { %13221 = vst [vmem:[#allocation182_spill] sm:$0xff] %v8132_v53  ;;  %v1932_v53 = vrot.slane %v8145_v3, 7 }
  0xd8   :  { %13222 = vst [vmem:[#allocation183_spill] sm:$0xff] %v8143_v7  ;;  %v8184_v7 = vsel %vm1946_vm0, %v1875_v59, %v1876_v34 }
  0xd9   :  { %13223 = vst [vmem:[#allocation184_spill] sm:$0xff] %v8145_v3  ;;  %v8180_v58 = vpop.f32.mrf.mxu3  ;;  %v8190_v3 = vmax.f32 %v1665_v43, 0.0  ;;  %v8201_v59 = vsel %vm1946_vm0, %v1931_v61, %v1932_v53  ;;  %2618 = vmatmul.f32.gmra.mxu1 %v8184_v7  ;;  %v8208_v43 = vpop.f32.mrf.mxu0  ;;  %v1638_v61 = vld [vmem:[%s12261_s0 + $0x1a0] sm:$0xff] }
  0xda   :  { %13224 = vst [vmem:[#allocation185_spill] sm:$0xff] %v8152_v21  ;;  %v8178_v21 = vpop.f32.mrf.mxu1 }
  0xdb   :  { %13225 = vst [vmem:[#allocation186_spill] sm:$0xff] %v8158_v4 }
  0xdc   :  { %13226 = vst [vmem:[#allocation187_spill] sm:$0xff] %v8163_v30  ;;  %v1905_v30 = vrot.slane %v8190_v3, 7 }
  0xdd   :  { %13227 = vst [vmem:[#allocation188_spill] sm:$0xff] %v8169_v42  ;;  %v8188_v42 = vsel %vm1946_vm0, %v1903_v19, %v1904_v8  ;;  %v1877_v19 = vrot.slane %v8173_v2, 7  ;;  %2786 = vmatmul.f32.gmra.mxu3 %v8201_v59  ;;  %2534 = vmatmul.f32.gmra.mxu0 %v8213_v5 }
  0xde   :  { %13228 = vst [vmem:[#allocation189_spill] sm:$0xff] %v8173_v2  ;;  %2702 = vmatmul.f32.gmra.mxu2 %v8188_v42  ;;  %v1694_v2 = vld [vmem:[%s12261_s0 + $0x360] sm:$0xff] }
  0xdf   :  { %13229 = vst [vmem:[#allocation190_spill] sm:$0xff] %v8178_v21  ;;  %v8203_v21 = vmax.f32 %v1693_v47, 0.0  ;;  %v1666_v47 = vld [vmem:[%s12261_s0 + $0x280] sm:$0xff] }
  0xe0   :  { %13230 = vst [vmem:[#allocation191_spill] sm:$0xff] %v8180_v58  ;;  %v1609_v58 = vld [vmem:[%s12261_s0 + $0xb8] sm:$0xff] }
  0xe1   :  { %13231 = vst [vmem:[#allocation192_spill] sm:$0xff] %v8184_v7  ;;  %v8215_v54 = vmax.f32 %v1609_v58, 0.0  ;;  %v1933_v40 = vrot.slane %v8203_v21, 7  ;;  %v2356_v58 = vld [vmem:[%s12260_s1 + $0x180] sm:$0xff] }
  0xe2   :  { %13232 = vst [vmem:[#allocation193_spill] sm:$0xff] %v8188_v42  ;;  %v8227_v42 = vpop.f32.mrf.mxu2  ;;  %3526 = vmatpush.msrb.mxu3 %v2356_v58  ;;  %v8241_v7 = vpop.f32.mrf.mxu1  ;;  %v1610_v58 = vld [vmem:[%s12261_s0 + $0xc0] sm:$0xff] }
  0xe3   :  { %13233 = vst [vmem:[#allocation194_spill] sm:$0xff] %v8190_v3  ;;  %v2340_v3 = vld [vmem:[%s12260_s1 + $0x100] sm:$0xff] }
  0xe4   :  { %13234 = vst [vmem:[#allocation195_spill] sm:$0xff] %v8201_v59  ;;  %3173 = vmatpush.msrb.mxu2 %v2340_v3  ;;  %v8235_v59 = vsel %vm1946_vm0, %v1876_v34, %v1877_v19  ;;  %v8247_v3 = vsel %vm1946_vm0, %v1904_v8, %v1905_v30  ;;  %v1849_v34 = vrot.slane %v8215_v54, 7  ;;  %v8264_v8 = vmax.f32 %v1694_v2, 0.0  ;;  %v1667_v2 = vld [vmem:[%s12261_s0 + $0x288] sm:$0xff] }
  0xe5   :  { %13235 = vst [vmem:[#allocation196_spill] sm:$0xff] %v8203_v21  ;;  %v8249_v21 = vmax.f32 %v1638_v61, 0.0  ;;  %2621 = vmatmul.f32.gmra.mxu1 %v8235_v59  ;;  %v8268_v61 = vpop.f32.mrf.mxu0 }
  0xe6   :  { %13236 = vst [vmem:[#allocation197_spill] sm:$0xff] %v8208_v43  ;;  %v8251_v43 = vmax.f32 %v1666_v47, 0.0  ;;  %2705 = vmatmul.f32.gmra.mxu2 %v8247_v3 }
  0xe7   :  { %13237 = vst [vmem:[#allocation198_spill] sm:$0xff] %v8213_v5  ;;  %v2324_v5 = vld [vmem:[%s12260_s1 + $0x80] sm:$0xff]  ;;  %v1878_v47 = vrot.slane %v8249_v21, 7 }
  0xe8   :  { %13238 = vst [vmem:[#allocation199_spill] sm:$0xff] %v8215_v54  ;;  %2820 = vmatpush.msrb.mxu1 %v2324_v5  ;;  %v8274_v54 = vsel %vm1946_vm0, %v1848_v50, %v1849_v34  ;;  %v8279_v5 = vmax.f32 %v1610_v58, 0.0  ;;  %v2372_v50 = vld [vmem:[%s12260_s1 + $0x200] sm:$0xff]  ;;  %v1695_v58 = vld [vmem:[%s12261_s0 + $0x368] sm:$0xff] }
  0xe9   :  { %13239 = vst [vmem:[#allocation200_spill] sm:$0xff] %v8227_v42  ;;  %v8243_v42 = vpop.f32.mrf.mxu3  ;;  %2537 = vmatmul.f32.gmra.mxu0 %v8274_v54 }
  0xea   :  { %13240 = vst [vmem:[#allocation201_spill] sm:$0xff] %v8235_v59  ;;  %3879 = vmatpush.msrb.mxu0 %v2372_v50 }
  0xeb   :  { %13241 = vst [vmem:[#allocation202_spill] sm:$0xff] %v8241_v7  ;;  %v1906_v7 = vrot.slane %v8251_v43, 7 }
  0xec   :  { %13242 = vst [vmem:[#allocation203_spill] sm:$0xff] %v8243_v42  ;;  %v8262_v42 = vsel %vm1946_vm0, %v1932_v53, %v1933_v40  ;;  %v1639_v53 = vld [vmem:[%s12261_s0 + $0x1a8] sm:$0xff] }
  0xed   :  { %13243 = vst [vmem:[#allocation204_spill] sm:$0xff] %v8247_v3  ;;  %2789 = vmatmul.f32.gmra.mxu3 %v8262_v42  ;;  %v8285_v3 = vpop.f32.mrf.mxu2 }
  0xee   :  { %13244 = vst [vmem:[#allocation205_spill] sm:$0xff] %v8249_v21  ;;  %v8292_v21 = vmax.f32 %v1639_v53, 0.0  ;;  %v1850_v53 = vrot.slane %v8279_v5, 7 }
  0xef   :  { %13245 = vst [vmem:[#allocation206_spill] sm:$0xff] %v8251_v43  ;;  %v1934_v43 = vrot.slane %v8264_v8, 7 }
  0xf0   :  { %13246 = vst [vmem:[#allocation207_spill] sm:$0xff] %v8262_v42  ;;  %v8297_v42 = vpop.f32.mrf.mxu1 }
  0xf1   :  { %13247 = vst [vmem:[#allocation208_spill] sm:$0xff] %v8264_v8  ;;  %v8299_v59 = vpop.f32.mrf.mxu3  ;;  %v8307_v8 = vsel %vm1946_vm0, %v1905_v30, %v1906_v7  ;;  %v1879_v30 = vrot.slane %v8292_v21, 7 }
  0xf2   :  { %13248 = vst [vmem:[#allocation209_spill] sm:$0xff] %v8268_v61  ;;  %v8309_v61 = vmax.f32 %v1667_v2, 0.0  ;;  %2708 = vmatmul.f32.gmra.mxu2 %v8307_v8  ;;  %v8327_v2 = vpop.f32.mrf.mxu0 }
  0xf3   :  { %13249 = vst [vmem:[#allocation210_spill] sm:$0xff] %v8274_v54  ;;  %v1611_v54 = vld [vmem:[%s12261_s0 + $0xc8] sm:$0xff] }
  0xf4   :  { %13250 = vst [vmem:[#allocation211_spill] sm:$0xff] %v8279_v5  ;;  %v1907_v50 = vrot.slane %v8309_v61, 7 }
  0xf5   :  { %13251 = vst [vmem:[#allocation212_spill] sm:$0xff] %v8285_v3  ;;  %v8303_v3 = vsel %vm1946_vm0, %v1877_v19, %v1878_v47  ;;  %v2419_v19 = vld [vmem:[%s12260_s1 + $0x378] sm:$0xff] }
  0xf6   :  { %13252 = vst [vmem:[#allocation213_spill] sm:$0xff] %v8292_v21  ;;  %2624 = vmatmul.f32.gmra.mxu1 %v8303_v3  ;;  %4570 = vmatpush.msra.mxu2 %v2419_v19  ;;  %v1668_v21 = vld [vmem:[%s12261_s0 + $0x290] sm:$0xff]  ;;  %v8354_v19 = vsel %vm1946_vm0, %v1878_v47, %v1879_v30 }
  0xf7   :  { %13253 = vst [vmem:[#allocation214_spill] sm:$0xff] %v8297_v42  ;;  %v8319_v42 = vmax.f32 %v1695_v58, 0.0  ;;  %v8334_v58 = vmax.f32 %v1611_v54, 0.0  ;;  %v8370_v5 = vmax.f32 %v1668_v21, 0.0 }
  0xf8   :  { %13254 = vst [vmem:[#allocation215_spill] sm:$0xff] %v8299_v59  ;;  %v8317_v59 = vsel %vm1946_vm0, %v1933_v40, %v1934_v43  ;;  %v8332_v40 = vsel %vm1946_vm0, %v1849_v34, %v1850_v53  ;;  %v2403_v34 = vld [vmem:[%s12260_s1 + $0x2f8] sm:$0xff] }
  0xf9   :  { %13255 = vst [vmem:[#allocation216_spill] sm:$0xff] %v8303_v3  ;;  %2792 = vmatmul.f32.gmra.mxu3 %v8317_v59  ;;  %v8346_v3 = vpop.f32.mrf.mxu2  ;;  %v1935_v54 = vrot.slane %v8319_v42, 7  ;;  %2540 = vmatmul.f32.gmra.mxu0 %v8332_v40  ;;  %v1851_v47 = vrot.slane %v8334_v58, 7 }
  0xfa   :  { %13256 = vst [vmem:[#allocation217_spill] sm:$0xff] %v8307_v8  ;;  %v1640_v8 = vld [vmem:[%s12261_s0 + $0x1b0] sm:$0xff]  ;;  %4217 = vmatpush.msra.mxu1 %v2403_v34 }
  0xfb   :  { %13257 = vst [vmem:[#allocation218_spill] sm:$0xff] %v8309_v61  ;;  %v2435_v61 = vld [vmem:[%s12260_s1 + $0x3f8] sm:$0xff]  ;;  %v8378_v34 = vsel %vm1946_vm0, %v1934_v43, %v1935_v54 }
  0xfc   :  { %13258 = vst [vmem:[#allocation219_spill] sm:$0xff] %v8317_v59  ;;  %4923 = vmatpush.msra.mxu3 %v2435_v61  ;;  %v1696_v59 = vld [vmem:[%s12261_s0 + $0x370] sm:$0xff]  ;;  %v8366_v61 = vsel %vm1946_vm0, %v1906_v7, %v1907_v50  ;;  %v8384_v7 = vpop.f32.mrf.mxu0 }
  0xfd   :  { %13259 = vst [vmem:[#allocation220_spill] sm:$0xff] %v8319_v42  ;;  %v8368_v42 = vmax.f32 %v1640_v8, 0.0  ;;  %2711 = vmatmul.f32.gmra.mxu2 %v8366_v61  ;;  %v1908_v8 = vrot.slane %v8370_v5, 7 }
  0xfe   :  { %13260 = vst [vmem:[#allocation221_spill] sm:$0xff] %v8327_v2  ;;  %v8360_v2 = vpop.f32.mrf.mxu1  ;;  %2627 = vmatmul.f32.gmra.mxu1 %v8354_v19 }
  0xff   :  { %13261 = vst [vmem:[#allocation222_spill] sm:$0xff] %v8332_v40  ;;  %v1612_v40 = vld [vmem:[%s12261_s0 + $0xd0] sm:$0xff]  ;;  %v1880_v21 = vrot.slane %v8368_v42, 7 }
 0x100   :  { %13262 = vst [vmem:[#allocation223_spill] sm:$0xff] %v8334_v58  ;;  %v8392_v58 = vmax.f32 %v1612_v40, 0.0 }
 0x101   :  { %13263 = vst [vmem:[#allocation224_spill] sm:$0xff] %v8346_v3  ;;  %v8362_v3 = vpop.f32.mrf.mxu3  ;;  %2795 = vmatmul.f32.gmra.mxu3 %v8378_v34  ;;  %v8398_v43 = vpop.f32.mrf.mxu2 }
 0x102   :  { %13264 = vst [vmem:[#allocation225_spill] sm:$0xff] %v8354_v19 }
 0x103   :  { %13265 = vst [vmem:[#allocation226_spill] sm:$0xff] %v8360_v2  ;;  %v8380_v2 = vmax.f32 %v1696_v59, 0.0  ;;  %v2451_v59 = vld [vmem:[%s12260_s1 + $0x478] sm:$0xff] }
 0x104   :  { %13266 = vst [vmem:[#allocation227_spill] sm:$0xff] %v8362_v3  ;;  %v8390_v3 = vsel %vm1946_vm0, %v1850_v53, %v1851_v47  ;;  %5276 = vmatpush.msra.mxu0 %v2451_v59  ;;  %v1697_v53 = vld [vmem:[%s12261_s0 + $0x378] sm:$0xff]  ;;  %v1852_v59 = vrot.slane %v8392_v58, 7 }
 0x105   :  { %13267 = vst [vmem:[#allocation228_spill] sm:$0xff] %v8366_v61  ;;  %v1936_v61 = vrot.slane %v8380_v2, 7  ;;  %2543 = vmatmul.f32.gmra.mxu0 %v8390_v3 }
 0x106   :  { %13268 = vst [vmem:[#allocation229_spill] sm:$0xff] %v8368_v42  ;;  %v8422_v42 = vmax.f32 %v1697_v53, 0.0 }
 0x107   :  { %13269 = vst [vmem:[#allocation230_spill] sm:$0xff] %v8370_v5  ;;  %v8405_v5 = vpop.f32.mrf.mxu1 }
 0x108   :  { %13270 = vst [vmem:[#allocation231_spill] sm:$0xff] %v8378_v34  ;;  %v8411_v34 = vsel %vm1946_vm0, %v1879_v30, %v1880_v21  ;;  %v8430_v30 = vsel %vm1946_vm0, %v1851_v47, %v1852_v59  ;;  %v13285_v47 = vrot.slane %v6951_v27, 7  ;;  %v13288_v27 = vrot.slane %v6928_v18, 7 }
 0x109   :  { %13271 = vst [vmem:[#allocation232_spill] sm:$0xff] %v8380_v2  ;;  %v8407_v40 = vpop.f32.mrf.mxu3  ;;  %v8420_v2 = vsel %vm1946_vm0, %v1935_v54, %v1936_v61  ;;  %2630 = vmatmul.f32.gmra.mxu1 %v8411_v34 }
 0x10a   :  { %13272 = vst [vmem:[#allocation233_spill] sm:$0xff] %v8390_v3  ;;  %2798 = vmatmul.f32.gmra.mxu3 %v8420_v2 }
 0x10b   :  { %13273 = vst [vmem:[#allocation234_spill] sm:$0xff] %v8398_v43  ;;  %v8415_v43 = vsel %vm1946_vm0, %v1907_v50, %v1908_v8  ;;  %v8433_v50 = vpop.f32.mrf.mxu2 }
 0x10c   :  { %13274 = vst [vmem:[#allocation235_spill] sm:$0xff] %v8405_v5  ;;  %2714 = vmatmul.f32.gmra.mxu2 %v8415_v43  ;;  %v12611_v5 = vrot.slane %v8422_v42, 7 }
 0x10d   :  { %13275 = vst [vmem:[#allocation236_spill] sm:$0xff] %v8407_v40  ;;  %v8426_v40 = vpop.f32.mrf.mxu0  ;;  %2546 = vmatmul.f32.gmra.mxu0 %v8430_v30 }
 0x10e   :  { %13276 = vst [vmem:[#allocation237_spill] sm:$0xff] %v8411_v34 }
 0x10f   :  { %13277 = vst [vmem:[#allocation238_spill] sm:$0xff] %v8415_v43  ;;  %v8437_v54 = vpop.f32.mrf.mxu1  ;;  %v13283_v43 = vrot.slane %v6938_v22, 7 }
 0x110   :  { %13278 = vst [vmem:[#allocation239_spill] sm:$0xff] %v8420_v2  ;;  %v8451_v2 = vsel %vm1946_vm0, %v1908_v8, %v13285_v47  ;;  %v8469_v8 = vsel %vm1946_vm0, %v1852_v59, %v13288_v27  ;;  %v2069_v59 = vrot.slane %v7108_v26, 1 }
 0x111   :  { %13279 = vst [vmem:[#allocation240_spill] sm:$0xff] %v8422_v42  ;;  %v8439_v53 = vpop.f32.mrf.mxu3  ;;  %v8445_v34 = vsel %vm1946_vm0, %v1880_v21, %v13283_v43  ;;  %v12616_v21 = vrot.slane %v6966_v35, 1  ;;  %v2068_v43 = vrot.slane %v7038_v60, 1 }
 0x112   :  { %13280 = vst [vmem:[#allocation241_spill] sm:$0xff] %v8430_v30  ;;  %2633 = vmatmul.f32.gmra.mxu1 %v8445_v34 }
 0x113   :  { %13281 = vst [vmem:[#allocation242_spill] sm:$0xff] %v8433_v50  ;;  %v8457_v50 = vsel %vm1946_vm0, %v1936_v61, %v12611_v5  ;;  %v8473_v61 = vpop.f32.mrf.mxu2  ;;  %v2306_v42 = vsel %vm2187_vm1, %v12616_v21, %v2068_v43  ;;  %v2305_v21 = vsel %vm2187_vm1, %v2068_v43, %v2069_v59 }
 0x114   :  { %13282 = vst [vmem:[#allocation243_spill] sm:$0xff] %v8439_v53  ;;  %2717 = vmatmul.f32.gmra.mxu2 %v8451_v2  ;;  %2801 = vmatmul.f32.gmra.mxu3 %v8457_v50 }
 0x115   :  { %13284 = vst [vmem:[#allocation244_spill] sm:$0xff] %v8445_v34  ;;  %v8461_v53 = vpop.f32.mrf.mxu0  ;;  %2549 = vmatmul.f32.gmra.mxu0 %v8469_v8 }
 0x116   :  { %13286 = vst [vmem:[#allocation245_spill] sm:$0xff] %v8451_v2 }
 0x117   :  { %13287 = vst [vmem:[#allocation246_spill] sm:$0xff] %v8457_v50  ;;  %v8476_v47 = vpop.f32.mrf.mxu1 }
 0x118   :  { %13289 = vst [vmem:[#allocation247_spill] sm:$0xff] %v8469_v8 }
 0x119   :  { %13290 = vst [vmem:[#allocation248_spill] sm:$0xff] %v8473_v61  ;;  %v8478_v5 = vpop.f32.mrf.mxu3 }
 0x11a   :  { %13291 = vst [vmem:[#allocation249_spill] sm:$0xff] %v8478_v5  ;;  %2821 = vmatmul.f32.vlgmr.msrb.gmra.mxu1 %v6966_v35  ;;  %v2070_v35 = vrot.slane %v7152_v57, 1 }
 0x11b   :  { %v8489_v50 = vpop.f32.mrf.mxu2 }
 0x11c   :  { %3174 = vmatmul.f32.vlgmr.msrb.gmra.mxu2 %v2306_v42  ;;  %3527 = vmatmul.f32.vlgmr.msrb.gmra.mxu3 %v7246_v6  ;;  %13292 = vst [vmem:[#allocation250_spill] sm:$0xff] %v8489_v50  ;;  %v2304_v43 = vsel %vm2187_vm1, %v2069_v59, %v2070_v35 }
 0x11d   :  { %v8485_v27 = vpop.f32.mrf.mxu0  ;;  %3880 = vmatmul.f32.vlgmr.msrb.gmra.mxu0 %v7202_v24 }
 0x11f   :  { %v8492_v61 = vpop.f32.mrf.mxu1 }
 0x121   :  { %v8494_v5 = vpop.f32.mrf.mxu3 }
 0x122   :  { %13293 = vst [vmem:[#allocation251_spill] sm:$0xff] %v8494_v5  ;;  %2824 = vmatmul.f32.gmra.mxu1 %v7038_v60 }
 0x123   :  { %v8503_v6 = vpop.f32.mrf.mxu2 }
 0x124   :  { %3177 = vmatmul.f32.gmra.mxu2 %v2305_v21  ;;  %3530 = vmatmul.f32.gmra.mxu3 %v7299_v39  ;;  %13294 = vst [vmem:[#allocation252_spill] sm:$0xff] %v8503_v6  ;;  %v2071_v21 = vrot.slane %v7202_v24, 1 }
 0x125   :  { %v8499_v42 = vpop.f32.mrf.mxu0  ;;  %3883 = vmatmul.f32.gmra.mxu0 %v7251_v62 }
 0x126   :  { %v2303_v59 = vsel %vm2187_vm1, %v2070_v35, %v2071_v21  ;;  %v2402_v35 = vld [vmem:[%s12260_s1 + $0x2f0] sm:$0xff] }
 0x127   :  { %v8506_v50 = vpop.f32.mrf.mxu1  ;;  %4218 = vmatpush.msra.mxu1 %v2402_v35  ;;  %v2450_v35 = vld [vmem:[%s12260_s1 + $0x470] sm:$0xff] }
 0x128   :  { %5277 = vmatpush.msra.mxu0 %v2450_v35 }
 0x129   :  { %v8508_v2 = vpop.f32.mrf.mxu3 }
 0x12a   :  { %13295 = vst [vmem:[#allocation253_spill] sm:$0xff] %v8508_v2  ;;  %2827 = vmatmul.f32.gmra.mxu1 %v7108_v26  ;;  %v2418_v26 = vld [vmem:[%s12260_s1 + $0x370] sm:$0xff] }
 0x12b   :  { %v8517_v39 = vpop.f32.mrf.mxu2  ;;  %4571 = vmatpush.msra.mxu2 %v2418_v26  ;;  %v2073_v26 = vrot.slane %v7304_v31, 1 }
 0x12c   :  { %3180 = vmatmul.f32.gmra.mxu2 %v2304_v43  ;;  %3533 = vmatmul.f32.gmra.mxu3 %v7349_v52  ;;  %13296 = vst [vmem:[#allocation254_spill] sm:$0xff] %v8517_v39  ;;  %v2072_v52 = vrot.slane %v7251_v62, 1 }
 0x12d   :  { %v8513_v60 = vpop.f32.mrf.mxu0  ;;  %3886 = vmatmul.f32.gmra.mxu0 %v7304_v31 }
 0x12f   :  { %v8520_v5 = vpop.f32.mrf.mxu1 }
 0x131   :  { %v8522_v6 = vpop.f32.mrf.mxu3 }
 0x132   :  { %13297 = vst [vmem:[#allocation255_spill] sm:$0xff] %v8522_v6  ;;  %2830 = vmatmul.f32.gmra.mxu1 %v7152_v57  ;;  %v2434_v6 = vld [vmem:[%s12260_s1 + $0x3f0] sm:$0xff] }
 0x133   :  { %v8537_v2 = vpop.f32.mrf.mxu2  ;;  %4924 = vmatpush.msra.mxu3 %v2434_v6 }
 0x134   :  { %3183 = vmatmul.f32.gmra.mxu2 %v2303_v59  ;;  %3536 = vmatmul.f32.gmra.mxu3 %v7402_v28  ;;  %13298 = vst [vmem:[#allocation256_spill] sm:$0xff] %v8537_v2  ;;  %v8549_v28 = vsel %vm2187_vm1, %v2071_v21, %v2072_v52 }
 0x135   :  { %v8530_v43 = vpop.f32.mrf.mxu0  ;;  %3889 = vmatmul.f32.gmra.mxu0 %v7354_v13  ;;  %13300 = vst [vmem:[#allocation258_spill] sm:$0xff] %v8549_v28 }
 0x137   :  { %v8543_v57 = vpop.f32.mrf.mxu1 }
 0x139   :  { %v8545_v59 = vpop.f32.mrf.mxu3 }
 0x13a   :  { %13299 = vst [vmem:[#allocation257_spill] sm:$0xff] %v8545_v59  ;;  %2833 = vmatmul.f32.gmra.mxu1 %v7202_v24  ;;  %v8569_v59 = vsel %vm2187_vm1, %v2072_v52, %v2073_v26 }
 0x13b   :  { %v8560_v2 = vpop.f32.mrf.mxu2  ;;  %13303 = vst [vmem:[#allocation261_spill] sm:$0xff] %v8569_v59 }
 0x13c   :  { %3186 = vmatmul.f32.gmra.mxu2 %v8549_v28  ;;  %3539 = vmatmul.f32.gmra.mxu3 %v7449_v55  ;;  %13301 = vst [vmem:[#allocation259_spill] sm:$0xff] %v8560_v2  ;;  %v2074_v28 = vrot.slane %v7354_v13, 1 }
 0x13d   :  { %v8553_v6 = vpop.f32.mrf.mxu0  ;;  %3892 = vmatmul.f32.gmra.mxu0 %v7407_v32 }
 0x13e   :  { %v8586_v52 = vsel %vm2187_vm1, %v2073_v26, %v2074_v28 }
 0x13f   :  { %v8563_v21 = vpop.f32.mrf.mxu1  ;;  %13306 = vst [vmem:[#allocation264_spill] sm:$0xff] %v8586_v52 }
 0x141   :  { %v8565_v24 = vpop.f32.mrf.mxu3 }
 0x142   :  { %13302 = vst [vmem:[#allocation260_spill] sm:$0xff] %v8565_v24  ;;  %2836 = vmatmul.f32.gmra.mxu1 %v7251_v62 }
 0x143   :  { %v8577_v35 = vpop.f32.mrf.mxu2 }
 0x144   :  { %3189 = vmatmul.f32.gmra.mxu2 %v8569_v59  ;;  %3542 = vmatmul.f32.gmra.mxu3 %v7502_v25  ;;  %13304 = vst [vmem:[#allocation262_spill] sm:$0xff] %v8577_v35  ;;  %v2075_v25 = vrot.slane %v7407_v32, 1 }
 0x145   :  { %v8573_v55 = vpop.f32.mrf.mxu0  ;;  %3895 = vmatmul.f32.gmra.mxu0 %v7457_v12 }
 0x146   :  { %v8603_v26 = vsel %vm2187_vm1, %v2074_v28, %v2075_v25 }
 0x147   :  { %v8580_v2 = vpop.f32.mrf.mxu1  ;;  %13309 = vst [vmem:[#allocation267_spill] sm:$0xff] %v8603_v26 }
 0x149   :  { %v8582_v24 = vpop.f32.mrf.mxu3 }
 0x14a   :  { %13305 = vst [vmem:[#allocation263_spill] sm:$0xff] %v8582_v24  ;;  %2839 = vmatmul.f32.gmra.mxu1 %v7304_v31 }
 0x14b   :  { %v8594_v59 = vpop.f32.mrf.mxu2 }
 0x14c   :  { %3192 = vmatmul.f32.gmra.mxu2 %v8586_v52  ;;  %3545 = vmatmul.f32.gmra.mxu3 %v7552_v41  ;;  %13307 = vst [vmem:[#allocation265_spill] sm:$0xff] %v8594_v59  ;;  %v2076_v41 = vrot.slane %v7457_v12, 1 }
 0x14d   :  { %v8590_v62 = vpop.f32.mrf.mxu0  ;;  %3898 = vmatmul.f32.gmra.mxu0 %v7507_v36 }
 0x14e   :  { %v8620_v28 = vsel %vm2187_vm1, %v2075_v25, %v2076_v41 }
 0x14f   :  { %v8597_v35 = vpop.f32.mrf.mxu1  ;;  %13312 = vst [vmem:[#allocation270_spill] sm:$0xff] %v8620_v28 }
 0x151   :  { %v8599_v24 = vpop.f32.mrf.mxu3 }
 0x152   :  { %13308 = vst [vmem:[#allocation266_spill] sm:$0xff] %v8599_v24  ;;  %2842 = vmatmul.f32.gmra.mxu1 %v7354_v13 }
 0x153   :  { %v8611_v52 = vpop.f32.mrf.mxu2 }
 0x154   :  { %3195 = vmatmul.f32.gmra.mxu2 %v8603_v26  ;;  %3548 = vmatmul.f32.gmra.mxu3 %v7602_v56  ;;  %13310 = vst [vmem:[#allocation268_spill] sm:$0xff] %v8611_v52  ;;  %v2077_v56 = vrot.slane %v7507_v36, 1 }
 0x155   :  { %v8607_v31 = vpop.f32.mrf.mxu0  ;;  %3901 = vmatmul.f32.gmra.mxu0 %v7557_v20 }
 0x156   :  { %v8637_v25 = vsel %vm2187_vm1, %v2076_v41, %v2077_v56 }
 0x157   :  { %v8614_v59 = vpop.f32.mrf.mxu1  ;;  %13315 = vst [vmem:[#allocation273_spill] sm:$0xff] %v8637_v25 }
 0x159   :  { %v8616_v24 = vpop.f32.mrf.mxu3 }
 0x15a   :  { %13311 = vst [vmem:[#allocation269_spill] sm:$0xff] %v8616_v24  ;;  %2845 = vmatmul.f32.gmra.mxu1 %v7407_v32 }
 0x15b   :  { %v8628_v26 = vpop.f32.mrf.mxu2 }
 0x15c   :  { %3198 = vmatmul.f32.gmra.mxu2 %v8620_v28  ;;  %3551 = vmatmul.f32.gmra.mxu3 %v7655_v45  ;;  %13313 = vst [vmem:[#allocation271_spill] sm:$0xff] %v8628_v26  ;;  %v2078_v45 = vrot.slane %v7557_v20, 1 }
 0x15d   :  { %v8624_v13 = vpop.f32.mrf.mxu0  ;;  %3904 = vmatmul.f32.gmra.mxu0 %v7607_v38 }
 0x15e   :  { %v8654_v41 = vsel %vm2187_vm1, %v2077_v56, %v2078_v45  ;;  %v2433_v56 = vld [vmem:[%s12260_s1 + $0x3e8] sm:$0xff] }
 0x15f   :  { %v8631_v52 = vpop.f32.mrf.mxu1  ;;  %13318 = vst [vmem:[#allocation276_spill] sm:$0xff] %v8654_v41  ;;  %4925 = vmatpush.msra.mxu3 %v2433_v56 }
 0x161   :  { %v8633_v24 = vpop.f32.mrf.mxu3 }
 0x162   :  { %13314 = vst [vmem:[#allocation272_spill] sm:$0xff] %v8633_v24  ;;  %2848 = vmatmul.f32.gmra.mxu1 %v7457_v12  ;;  %v2079_v12 = vrot.slane %v7607_v38, 1 }
 0x163   :  { %v8645_v32 = vpop.f32.mrf.mxu2 }
 0x164   :  { %3201 = vmatmul.f32.gmra.mxu2 %v8637_v25  ;;  %3554 = vmatmul.f32.gmra.mxu3 %v7705_v11  ;;  %13316 = vst [vmem:[#allocation274_spill] sm:$0xff] %v8645_v32  ;;  %v2417_v11 = vld [vmem:[%s12260_s1 + $0x368] sm:$0xff] }
 0x165   :  { %v8641_v28 = vpop.f32.mrf.mxu0  ;;  %3907 = vmatmul.f32.gmra.mxu0 %v7657_v46  ;;  %4572 = vmatpush.msra.mxu2 %v2417_v11  ;;  %v8680_v11 = vsel %vm2187_vm1, %v2078_v45, %v2079_v12 }
 0x166   :  { %13321 = vst [vmem:[#allocation279_spill] sm:$0xff] %v8680_v11 }
 0x167   :  { %v8648_v26 = vpop.f32.mrf.mxu1 }
 0x169   :  { %v8650_v24 = vpop.f32.mrf.mxu3 }
 0x16a   :  { %13317 = vst [vmem:[#allocation275_spill] sm:$0xff] %v8650_v24  ;;  %2851 = vmatmul.f32.gmra.mxu1 %v7507_v36 }
 0x16b   :  { %v8668_v24 = vpop.f32.mrf.mxu2 }
 0x16c   :  { %3204 = vmatmul.f32.gmra.mxu2 %v8654_v41  ;;  %3557 = vmatmul.f32.gmra.mxu3 %v7758_v49  ;;  %13319 = vst [vmem:[#allocation277_spill] sm:$0xff] %v8668_v24  ;;  %v2401_v41 = vld [vmem:[%s12260_s1 + $0x2e8] sm:$0xff]  ;;  %v2080_v49 = vrot.slane %v7657_v46, 1 }
 0x16d   :  { %v8661_v25 = vpop.f32.mrf.mxu0  ;;  %3910 = vmatmul.f32.gmra.mxu0 %v7710_v51  ;;  %4219 = vmatpush.msra.mxu1 %v2401_v41  ;;  %v2449_v41 = vld [vmem:[%s12260_s1 + $0x468] sm:$0xff] }
 0x16e   :  { %5278 = vmatpush.msra.mxu0 %v2449_v41 }
 0x16f   :  { %v8674_v36 = vpop.f32.mrf.mxu1 }
 0x171   :  { %v8676_v32 = vpop.f32.mrf.mxu3 }
 0x172   :  { %13320 = vst [vmem:[#allocation278_spill] sm:$0xff] %v8676_v32  ;;  %2854 = vmatmul.f32.gmra.mxu1 %v7557_v20  ;;  %v2081_v20 = vrot.slane %v7710_v51, 1 }
 0x173   :  { %v8691_v24 = vpop.f32.mrf.mxu2 }
 0x174   :  { %3207 = vmatmul.f32.gmra.mxu2 %v8680_v11  ;;  %3560 = vmatmul.f32.gmra.mxu3 %v7805_v0  ;;  %13322 = vst [vmem:[#allocation280_spill] sm:$0xff] %v8691_v24  ;;  %v8700_v11 = vsel %vm2187_vm1, %v2079_v12, %v2080_v49  ;;  %v8717_v12 = vsel %vm2187_vm1, %v2080_v49, %v2081_v20 }
 0x175   :  { %v8684_v56 = vpop.f32.mrf.mxu0  ;;  %3913 = vmatmul.f32.gmra.mxu0 %v7760_v1  ;;  %13324 = vst [vmem:[#allocation282_spill] sm:$0xff] %v8700_v11 }
 0x176   :  { %13328 = vst [vmem:[#allocation286_spill] sm:$0xff] %v8717_v12 }
 0x177   :  { %v8694_v45 = vpop.f32.mrf.mxu1 }
 0x179   :  { %v8696_v32 = vpop.f32.mrf.mxu3 }
 0x17a   :  { %13323 = vst [vmem:[#allocation281_spill] sm:$0xff] %v8696_v32  ;;  %2857 = vmatmul.f32.gmra.mxu1 %v7607_v38 }
 0x17b   :  { %v8708_v41 = vpop.f32.mrf.mxu2 }
 0x17c   :  { %3210 = vmatmul.f32.gmra.mxu2 %v8700_v11  ;;  %3563 = vmatmul.f32.gmra.mxu3 %v7862_v16  ;;  %13325 = vst [vmem:[#allocation283_spill] sm:$0xff] %v8708_v41  ;;  %v2082_v16 = vrot.slane %v7760_v1, 1 }
 0x17d   :  { %v8704_v0 = vpop.f32.mrf.mxu0  ;;  %3916 = vmatmul.f32.gmra.mxu0 %v7810_v48 }
 0x17e   :  { %v8734_v49 = vsel %vm2187_vm1, %v2081_v20, %v2082_v16 }
 0x17f   :  { %v8711_v24 = vpop.f32.mrf.mxu1  ;;  %13332 = vst [vmem:[#allocation290_spill] sm:$0xff] %v8734_v49 }
 0x180   :  { %13326 = vst [vmem:[#allocation284_spill] sm:$0xff] %v8711_v24 }
 0x181   :  { %v8713_v32 = vpop.f32.mrf.mxu3 }
 0x182   :  { %13327 = vst [vmem:[#allocation285_spill] sm:$0xff] %v8713_v32  ;;  %2860 = vmatmul.f32.gmra.mxu1 %v7657_v46 }
 0x183   :  { %v8725_v38 = vpop.f32.mrf.mxu2 }
 0x184   :  { %3213 = vmatmul.f32.gmra.mxu2 %v8717_v12  ;;  %3566 = vmatmul.f32.gmra.mxu3 %v7920_v23  ;;  %13329 = vst [vmem:[#allocation287_spill] sm:$0xff] %v8725_v38  ;;  %v2083_v23 = vrot.slane %v7810_v48, 1 }
 0x185   :  { %v8721_v11 = vpop.f32.mrf.mxu0  ;;  %3919 = vmatmul.f32.gmra.mxu0 %v7864_v33 }
 0x186   :  { %v8751_v20 = vsel %vm2187_vm1, %v2082_v16, %v2083_v23 }
 0x187   :  { %v8728_v41 = vpop.f32.mrf.mxu1  ;;  %13336 = vst [vmem:[#allocation294_spill] sm:$0xff] %v8751_v20 }
 0x188   :  { %13330 = vst [vmem:[#allocation288_spill] sm:$0xff] %v8728_v41 }
 0x189   :  { %v8730_v32 = vpop.f32.mrf.mxu3 }
 0x18a   :  { %13331 = vst [vmem:[#allocation289_spill] sm:$0xff] %v8730_v32  ;;  %2863 = vmatmul.f32.gmra.mxu1 %v7710_v51 }
 0x18c   :  { %3216 = vmatmul.f32.gmra.mxu2 %v8734_v49  ;;  %3569 = vmatmul.f32.gmra.mxu3 %v7978_v37  ;;  %v2084_v37 = vrot.slane %v7864_v33, 1 }
 0x18d   :  { %v8738_v12 = vpop.f32.mrf.mxu0  ;;  %3922 = vmatmul.f32.gmra.mxu0 %v7925_v9 }
 0x18e   :  { %v8766_v16 = vsel %vm2187_vm1, %v2083_v23, %v2084_v37 }
 0x18f   :  { %v8742_v46 = vpop.f32.mrf.mxu2  ;;  %v8745_v38 = vpop.f32.mrf.mxu1  ;;  %13339 = vst [vmem:[#allocation297_spill] sm:$0xff] %v8766_v16 }
 0x190   :  { %13333 = vst [vmem:[#allocation291_spill] sm:$0xff] %v8742_v46 }
 0x191   :  { %13334 = vst [vmem:[#allocation292_spill] sm:$0xff] %v8745_v38  ;;  %v8747_v32 = vpop.f32.mrf.mxu3 }
 0x192   :  { %13335 = vst [vmem:[#allocation293_spill] sm:$0xff] %v8747_v32  ;;  %2866 = vmatmul.f32.gmra.mxu1 %v7760_v1  ;;  %v2085_v1 = vrot.slane %v7925_v9, 1 }
 0x194   :  { %3219 = vmatmul.f32.gmra.mxu2 %v8751_v20  ;;  %3572 = vmatmul.f32.gmra.mxu3 %v8039_v44  ;;  %v8776_v23 = vsel %vm2187_vm1, %v2084_v37, %v2085_v1  ;;  %v2432_v37 = vld [vmem:[%s12260_s1 + $0x3e0] sm:$0xff] }
 0x195   :  { %v8755_v49 = vpop.f32.mrf.mxu0  ;;  %3925 = vmatmul.f32.gmra.mxu0 %v7980_v63  ;;  %13340 = vst [vmem:[#allocation298_spill] sm:$0xff] %v8776_v23  ;;  %4926 = vmatpush.msra.mxu3 %v2432_v37  ;;  %v2087_v37 = vrot.slane %v8044_v29, 1 }
 0x197   :  { %v8759_v51 = vpop.f32.mrf.mxu2  ;;  %v2822_v32 = vpop.f32.mrf.mxu1 }
 0x198   :  { %13337 = vst [vmem:[#allocation295_spill] sm:$0xff] %v8759_v51  ;;  %v2823_v44 = vadd.f32 %v2822_v32, %v7857_v14  ;;  %v2416_v32 = vld [vmem:[%s12260_s1 + $0x360] sm:$0xff]  ;;  %v2086_v14 = vrot.slane %v7980_v63, 1 }
 0x199   :  { %v8762_v46 = vpop.f32.mrf.mxu3  ;;  %4573 = vmatpush.msra.mxu2 %v2416_v32 }
 0x19a   :  { %13338 = vst [vmem:[#allocation296_spill] sm:$0xff] %v8762_v46  ;;  %2869 = vmatmul.f32.gmra.mxu1 %v7810_v48 }
 0x19c   :  { %3222 = vmatmul.f32.gmra.mxu2 %v8766_v16  ;;  %3575 = vmatmul.f32.gmra.mxu3 %v8097_v15  ;;  %v13352_v16 = vld [vmem:[#allocation199_spill] sm:$0xff] }
 0x19d   :  { %v3881_v20 = vpop.f32.mrf.mxu0  ;;  %3928 = vmatmul.f32.gmra.mxu0 %v8044_v29 }
 0x19f   :  { %v3175_v51 = vpop.f32.mrf.mxu2  ;;  %v2825_v46 = vpop.f32.mrf.mxu1 }
 0x1a0   :  { %v3176_v39 = vadd.f32 %v3175_v51, %v2823_v44  ;;  %v2826_v44 = vadd.f32 %v2825_v46, %v7914_v10  ;;  %v8797_v46 = vsel %vm2187_vm1, %v2085_v1, %v2086_v14  ;;  %v2448_v1 = vld [vmem:[%s12260_s1 + $0x460] sm:$0xff] }
 0x1a1   :  { %v3528_v38 = vpop.f32.mrf.mxu3  ;;  %5279 = vmatpush.msra.mxu0 %v2448_v1  ;;  %v13350_v1 = vld [vmem:[#allocation162_spill] sm:$0xff] }
 0x1a2   :  { %v3529_v48 = vadd.f32 %v3528_v38, %v3176_v39  ;;  %2872 = vmatmul.f32.gmra.mxu1 %v7864_v33  ;;  %v13342_v39 = vld [vmem:[#allocation175_spill] sm:$0xff] }
 0x1a3   :  { %13343 = vst [vmem:[#allocation175_spill] sm:$0xff] %v8797_v46 }
 0x1a4   :  { %v8778_v41 = vadd.f32 %v3881_v20, %v3529_v48  ;;  %3225 = vmatmul.f32.gmra.mxu2 %v8776_v23  ;;  %3578 = vmatmul.f32.gmra.mxu3 %v8158_v4  ;;  %v2400_v20 = vld [vmem:[%s12260_s1 + $0x2e0] sm:$0xff] }
 0x1a5   :  { %v3884_v51 = vpop.f32.mrf.mxu0  ;;  %3931 = vmatmul.f32.gmra.mxu0 %v13342_v39  ;;  %4220 = vmatpush.msra.mxu1 %v2400_v20  ;;  %v13346_v23 = vld [vmem:[#allocation198_spill] sm:$0xff] }
 0x1a6   :  { %13341 = vst [vmem:[#allocation299_spill] sm:$0xff] %v8778_v41 }
 0x1a7   :  { %v3178_v38 = vpop.f32.mrf.mxu2  ;;  %v2828_v41 = vpop.f32.mrf.mxu1 }
 0x1a8   :  { %v3179_v48 = vadd.f32 %v3178_v38, %v2826_v44  ;;  %v13345_v38 = vld [vmem:[#allocation150_spill] sm:$0xff] }
 0x1a9   :  { %v3531_v15 = vpop.f32.mrf.mxu3  ;;  %v2829_v4 = vadd.f32 %v2828_v41, %v13345_v38  ;;  %v2088_v38 = vrot.slane %v13342_v39, 1 }
 0x1aa   :  { %v3532_v10 = vadd.f32 %v3531_v15, %v3179_v48  ;;  %2875 = vmatmul.f32.gmra.mxu1 %v7925_v9 }
 0x1ac   :  { %v8799_v32 = vadd.f32 %v3884_v51, %v3532_v10  ;;  %3228 = vmatmul.f32.gmra.mxu2 %v8797_v46  ;;  %3581 = vmatmul.f32.gmra.mxu3 %v13346_v23  ;;  %v13347_v51 = vld [vmem:[#allocation187_spill] sm:$0xff]  ;;  %v8812_v10 = vsel %vm2187_vm1, %v2086_v14, %v2087_v37 }
 0x1ad   :  { %v3887_v44 = vpop.f32.mrf.mxu0  ;;  %3934 = vmatmul.f32.gmra.mxu0 %v13347_v51  ;;  %13348 = vst [vmem:[#allocation150_spill] sm:$0xff] %v8812_v10 }
 0x1ae   :  { %13344 = vst [vmem:[#allocation300_spill] sm:$0xff] %v8799_v32 }
 0x1af   :  { %v3181_v33 = vpop.f32.mrf.mxu2  ;;  %v2831_v48 = vpop.f32.mrf.mxu1 }
 0x1b0   :  { %v3182_v15 = vadd.f32 %v3181_v33, %v2829_v4  ;;  %v2832_v33 = vadd.f32 %v2831_v48, %v13350_v1  ;;  %v13351_v4 = vld [vmem:[#allocation210_spill] sm:$0xff]  ;;  %v13355_v1 = vld [vmem:[#allocation173_spill] sm:$0xff] }
 0x1b1   :  { %v3534_v20 = vpop.f32.mrf.mxu3 }
 0x1b2   :  { %v3535_v32 = vadd.f32 %v3534_v20, %v3182_v15  ;;  %2878 = vmatmul.f32.gmra.mxu1 %v7980_v63  ;;  %v2089_v20 = vrot.slane %v13347_v51, 1 }
 0x1b4   :  { %v8814_v46 = vadd.f32 %v3887_v44, %v3535_v32  ;;  %3231 = vmatmul.f32.gmra.mxu2 %v8812_v10  ;;  %3584 = vmatmul.f32.gmra.mxu3 %v13351_v4  ;;  %v8824_v32 = vsel %vm2187_vm1, %v2087_v37, %v2088_v38  ;;  %v13357_v10 = vld [vmem:[#allocation211_spill] sm:$0xff] }
 0x1b5   :  { %v3890_v41 = vpop.f32.mrf.mxu0  ;;  %3937 = vmatmul.f32.gmra.mxu0 %v13352_v16  ;;  %13353 = vst [vmem:[#allocation162_spill] sm:$0xff] %v8824_v32 }
 0x1b6   :  { %13349 = vst [vmem:[#allocation187_spill] sm:$0xff] %v8814_v46 }
 0x1b7   :  { %v3184_v23 = vpop.f32.mrf.mxu2  ;;  %v2834_v14 = vpop.f32.mrf.mxu1 }
 0x1b8   :  { %v3185_v9 = vadd.f32 %v3184_v23, %v2832_v33  ;;  %v2835_v23 = vadd.f32 %v2834_v14, %v13355_v1  ;;  %v13356_v33 = vld [vmem:[#allocation222_spill] sm:$0xff]  ;;  %v13359_v1 = vld [vmem:[#allocation185_spill] sm:$0xff] }
 0x1b9   :  { %v3537_v24 = vpop.f32.mrf.mxu3 }
 0x1ba   :  { %v3538_v44 = vadd.f32 %v3537_v24, %v3185_v9  ;;  %2881 = vmatmul.f32.gmra.mxu1 %v8044_v29  ;;  %v8836_v9 = vsel %vm2187_vm1, %v2088_v38, %v2089_v20 }
 0x1bc   :  { %v8826_v15 = vadd.f32 %v3890_v41, %v3538_v44  ;;  %3234 = vmatmul.f32.gmra.mxu2 %v8824_v32  ;;  %3587 = vmatmul.f32.gmra.mxu3 %v13356_v33  ;;  %v2090_v44 = vrot.slane %v13352_v16, 1  ;;  %v13360_v33 = vld [vmem:[#allocation223_spill] sm:$0xff] }
 0x1bd   :  { %v3893_v48 = vpop.f32.mrf.mxu0  ;;  %3940 = vmatmul.f32.gmra.mxu0 %v13357_v10 }
 0x1be   :  { %13354 = vst [vmem:[#allocation199_spill] sm:$0xff] %v8826_v15 }
 0x1bf   :  { %v3187_v46 = vpop.f32.mrf.mxu2  ;;  %v2837_v37 = vpop.f32.mrf.mxu1 }
 0x1c0   :  { %v3188_v4 = vadd.f32 %v3187_v46, %v2835_v23  ;;  %v2838_v46 = vadd.f32 %v2837_v37, %v13359_v1  ;;  %v13362_v1 = vld [vmem:[#allocation197_spill] sm:$0xff] }
 0x1c1   :  { %v3540_v63 = vpop.f32.mrf.mxu3 }
 0x1c2   :  { %v3541_v24 = vadd.f32 %v3540_v63, %v3188_v4  ;;  %2884 = vmatmul.f32.gmra.mxu1 %v13342_v39  ;;  %v8848_v63 = vsel %vm2187_vm1, %v2089_v20, %v2090_v44 }
 0x1c4   :  { %v8838_v41 = vadd.f32 %v3893_v48, %v3541_v24  ;;  %3237 = vmatmul.f32.gmra.mxu2 %v8836_v9  ;;  %3590 = vmatmul.f32.gmra.mxu3 %v8390_v3  ;;  %v2091_v24 = vrot.slane %v13357_v10, 1 }
 0x1c5   :  { %v3896_v14 = vpop.f32.mrf.mxu0  ;;  %3943 = vmatmul.f32.gmra.mxu0 %v13360_v33 }
 0x1c6   :  { %13358 = vst [vmem:[#allocation173_spill] sm:$0xff] %v8838_v41 }
 0x1c7   :  { %v3190_v23 = vpop.f32.mrf.mxu2  ;;  %v2840_v38 = vpop.f32.mrf.mxu1 }
 0x1c8   :  { %v3191_v15 = vadd.f32 %v3190_v23, %v2838_v46  ;;  %v2841_v46 = vadd.f32 %v2840_v38, %v13362_v1  ;;  %v13364_v1 = vld [vmem:[#allocation209_spill] sm:$0xff] }
 0x1c9   :  { %v3543_v32 = vpop.f32.mrf.mxu3 }
 0x1ca   :  { %v3544_v4 = vadd.f32 %v3543_v32, %v3191_v15  ;;  %2887 = vmatmul.f32.gmra.mxu1 %v13347_v51  ;;  %v8860_v32 = vsel %vm2187_vm1, %v2090_v44, %v2091_v24 }
 0x1cc   :  { %v8850_v48 = vadd.f32 %v3896_v14, %v3544_v4  ;;  %3240 = vmatmul.f32.gmra.mxu2 %v8848_v63  ;;  %3593 = vmatmul.f32.gmra.mxu3 %v8430_v30  ;;  %v2092_v4 = vrot.slane %v13360_v33, 1 }
 0x1cd   :  { %v3899_v37 = vpop.f32.mrf.mxu0  ;;  %3946 = vmatmul.f32.gmra.mxu0 %v8392_v58 }
 0x1ce   :  { %13361 = vst [vmem:[#allocation185_spill] sm:$0xff] %v8850_v48 }
 0x1cf   :  { %v3193_v23 = vpop.f32.mrf.mxu2  ;;  %v2843_v20 = vpop.f32.mrf.mxu1 }
 0x1d0   :  { %v3194_v41 = vadd.f32 %v3193_v23, %v2841_v46  ;;  %v2844_v46 = vadd.f32 %v2843_v20, %v13364_v1  ;;  %v2415_v20 = vld [vmem:[%s12260_s1 + $0x358] sm:$0xff]  ;;  %v2093_v1 = vrot.slane %v8392_v58, 1 }
 0x1d1   :  { %v3546_v3 = vpop.f32.mrf.mxu3  ;;  %4574 = vmatpush.msra.mxu2 %v2415_v20 }
 0x1d2   :  { %v3547_v15 = vadd.f32 %v3546_v3, %v3194_v41  ;;  %2890 = vmatmul.f32.gmra.mxu1 %v13352_v16  ;;  %v8872_v3 = vsel %vm2187_vm1, %v2091_v24, %v2092_v4 }
 0x1d3   :  { %13365 = vst [vmem:[#allocation209_spill] sm:$0xff] %v8872_v3 }
 0x1d4   :  { %v8862_v14 = vadd.f32 %v3899_v37, %v3547_v15  ;;  %3243 = vmatmul.f32.gmra.mxu2 %v8860_v32  ;;  %3596 = vmatmul.f32.gmra.mxu3 %v8469_v8 }
 0x1d5   :  { %v3902_v38 = vpop.f32.mrf.mxu0  ;;  %3949 = vmatmul.f32.gmra.mxu0 %v6928_v18 }
 0x1d6   :  { %13363 = vst [vmem:[#allocation197_spill] sm:$0xff] %v8862_v14  ;;  %v13368_v14 = vld [vmem:[#allocation8_spill] sm:$0xff] }
 0x1d7   :  { %v3196_v23 = vpop.f32.mrf.mxu2  ;;  %v2846_v44 = vpop.f32.mrf.mxu1 }
 0x1d8   :  { %v3197_v48 = vadd.f32 %v3196_v23, %v2844_v46  ;;  %v13367_v46 = vld [vmem:[#allocation221_spill] sm:$0xff] }
 0x1d9   :  { %v3549_v30 = vpop.f32.mrf.mxu3  ;;  %v2847_v23 = vadd.f32 %v2846_v44, %v13367_v46  ;;  %v8893_v44 = vsel %vm2187_vm1, %v2092_v4, %v2093_v1  ;;  %v2447_v4 = vld [vmem:[%s12260_s1 + $0x458] sm:$0xff] }
 0x1da   :  { %v3550_v41 = vadd.f32 %v3549_v30, %v3197_v48  ;;  %2893 = vmatmul.f32.gmra.mxu1 %v13357_v10  ;;  %v2431_v30 = vld [vmem:[%s12260_s1 + $0x3d8] sm:$0xff]  ;;  %13370 = vst [vmem:[#allocation221_spill] sm:$0xff] %v8893_v44  ;;  %5280 = vmatpush.msra.mxu0 %v2447_v4 }
 0x1db   :  { %4927 = vmatpush.msra.mxu3 %v2431_v30  ;;  %v2094_v30 = vrot.slane %v6928_v18, 1 }
 0x1dc   :  { %v8874_v37 = vadd.f32 %v3902_v38, %v3550_v41  ;;  %3246 = vmatmul.f32.gmra.mxu2 %v8872_v3  ;;  %3599 = vmatmul.f32.gmra.mxu3 %v13368_v14  ;;  %v13369_v38 = vld [vmem:[#allocation2_spill] sm:$0xff]  ;;  %v2399_v41 = vld [vmem:[%s12260_s1 + $0x2d8] sm:$0xff]  ;;  %v13372_v14 = vld [vmem:[#allocation15_spill] sm:$0xff] }
 0x1dd   :  { %v3905_v15 = vpop.f32.mrf.mxu0  ;;  %3952 = vmatmul.f32.gmra.mxu0 %v13369_v38  ;;  %4221 = vmatpush.msra.mxu1 %v2399_v41 }
 0x1de   :  { %13366 = vst [vmem:[#allocation301_spill] sm:$0xff] %v8874_v37 }
 0x1df   :  { %v3199_v48 = vpop.f32.mrf.mxu2  ;;  %v2849_v37 = vpop.f32.mrf.mxu1 }
 0x1e0   :  { %v3200_v24 = vadd.f32 %v3199_v48, %v2847_v23  ;;  %v2850_v48 = vadd.f32 %v2849_v37, %v8384_v7  ;;  %v2095_v37 = vrot.slane %v13369_v38, 1 }
 0x1e1   :  { %v3552_v8 = vpop.f32.mrf.mxu3 }
 0x1e2   :  { %v3553_v20 = vadd.f32 %v3552_v8, %v3200_v24  ;;  %2896 = vmatmul.f32.gmra.mxu1 %v13360_v33  ;;  %v13377_v33 = vld [vmem:[#allocation14_spill] sm:$0xff] }
 0x1e4   :  { %v8895_v46 = vadd.f32 %v3905_v15, %v3553_v20  ;;  %3249 = vmatmul.f32.gmra.mxu2 %v8893_v44  ;;  %3602 = vmatmul.f32.gmra.mxu3 %v13372_v14  ;;  %v13373_v15 = vld [vmem:[#allocation9_spill] sm:$0xff]  ;;  %v8908_v20 = vsel %vm2187_vm1, %v2093_v1, %v2094_v30 }
 0x1e5   :  { %v3908_v23 = vpop.f32.mrf.mxu0  ;;  %3955 = vmatmul.f32.gmra.mxu0 %v13373_v15  ;;  %13374 = vst [vmem:[#allocation9_spill] sm:$0xff] %v8908_v20 }
 0x1e6   :  { %13371 = vst [vmem:[#allocation2_spill] sm:$0xff] %v8895_v46 }
 0x1e7   :  { %v3202_v3 = vpop.f32.mrf.mxu2  ;;  %v2852_v24 = vpop.f32.mrf.mxu1 }
 0x1e8   :  { %v3203_v8 = vadd.f32 %v3202_v3, %v2850_v48  ;;  %v2853_v3 = vadd.f32 %v2852_v24, %v8426_v40  ;;  %v13376_v48 = vld [vmem:[#allocation21_spill] sm:$0xff]  ;;  %v2096_v24 = vrot.slane %v13373_v15, 1 }
 0x1e9   :  { %v3555_v41 = vpop.f32.mrf.mxu3 }
 0x1ea   :  { %v3556_v46 = vadd.f32 %v3555_v41, %v3203_v8  ;;  %2899 = vmatmul.f32.gmra.mxu1 %v8392_v58 }
 0x1ec   :  { %v8910_v44 = vadd.f32 %v3908_v23, %v3556_v46  ;;  %3252 = vmatmul.f32.gmra.mxu2 %v8908_v20  ;;  %3605 = vmatmul.f32.gmra.mxu3 %v13376_v48  ;;  %v8920_v46 = vsel %vm2187_vm1, %v2094_v30, %v2095_v37  ;;  %v13381_v48 = vld [vmem:[#allocation20_spill] sm:$0xff] }
 0x1ed   :  { %v3911_v7 = vpop.f32.mrf.mxu0  ;;  %3958 = vmatmul.f32.gmra.mxu0 %v13377_v33  ;;  %13378 = vst [vmem:[#allocation14_spill] sm:$0xff] %v8920_v46 }
 0x1ee   :  { %13375 = vst [vmem:[#allocation302_spill] sm:$0xff] %v8910_v44 }
 0x1ef   :  { %v3205_v4 = vpop.f32.mrf.mxu2  ;;  %v2855_v1 = vpop.f32.mrf.mxu1 }
 0x1f0   :  { %v3206_v14 = vadd.f32 %v3205_v4, %v2853_v3  ;;  %v2856_v41 = vadd.f32 %v2855_v1, %v8461_v53  ;;  %v13380_v3 = vld [vmem:[#allocation26_spill] sm:$0xff]  ;;  %v2097_v1 = vrot.slane %v13377_v33, 1 }
 0x1f1   :  { %v3558_v10 = vpop.f32.mrf.mxu3 }
 0x1f2   :  { %v3559_v23 = vadd.f32 %v3558_v10, %v3206_v14  ;;  %2902 = vmatmul.f32.gmra.mxu1 %v6928_v18  ;;  %v8932_v10 = vsel %vm2187_vm1, %v2095_v37, %v2096_v24 }
 0x1f3   :  { %13382 = vst [vmem:[#allocation20_spill] sm:$0xff] %v8932_v10 }
 0x1f4   :  { %v8922_v8 = vadd.f32 %v3911_v7, %v3559_v23  ;;  %3255 = vmatmul.f32.gmra.mxu2 %v8920_v46  ;;  %3608 = vmatmul.f32.gmra.mxu3 %v13380_v3  ;;  %v13385_v3 = vld [vmem:[#allocation28_spill] sm:$0xff] }
 0x1f5   :  { %v3914_v40 = vpop.f32.mrf.mxu0  ;;  %3961 = vmatmul.f32.gmra.mxu0 %v13381_v48 }
 0x1f6   :  { %13379 = vst [vmem:[#allocation303_spill] sm:$0xff] %v8922_v8 }
 0x1f7   :  { %v3208_v4 = vpop.f32.mrf.mxu2  ;;  %v2858_v30 = vpop.f32.mrf.mxu1 }
 0x1f8   :  { %v3209_v44 = vadd.f32 %v3208_v4, %v2856_v41  ;;  %v2859_v23 = vadd.f32 %v2858_v30, %v8485_v27  ;;  %v13384_v41 = vld [vmem:[#allocation33_spill] sm:$0xff]  ;;  %v2098_v30 = vrot.slane %v13381_v48, 1 }
 0x1f9   :  { %v3561_v20 = vpop.f32.mrf.mxu3 }
 0x1fa   :  { %v3562_v14 = vadd.f32 %v3561_v20, %v3209_v44  ;;  %2905 = vmatmul.f32.gmra.mxu1 %v13369_v38  ;;  %v8944_v44 = vsel %vm2187_vm1, %v2096_v24, %v2097_v1 }
 0x1fb   :  { %13386 = vst [vmem:[#allocation305_spill] sm:$0xff] %v8944_v44 }
 0x1fc   :  { %v8934_v7 = vadd.f32 %v3914_v40, %v3562_v14  ;;  %3258 = vmatmul.f32.gmra.mxu2 %v8932_v10  ;;  %3611 = vmatmul.f32.gmra.mxu3 %v13384_v41  ;;  %v13389_v41 = vld [vmem:[#allocation32_spill] sm:$0xff] }
 0x1fd   :  { %v3917_v53 = vpop.f32.mrf.mxu0  ;;  %3964 = vmatmul.f32.gmra.mxu0 %v13385_v3 }
 0x1fe   :  { %13383 = vst [vmem:[#allocation304_spill] sm:$0xff] %v8934_v7 }
 0x1ff   :  { %v3211_v4 = vpop.f32.mrf.mxu2  ;;  %v2861_v37 = vpop.f32.mrf.mxu1 }
 0x200   :  { %v3212_v8 = vadd.f32 %v3211_v4, %v2859_v23  ;;  %v2862_v14 = vadd.f32 %v2861_v37, %v8499_v42  ;;  %v13388_v23 = vld [vmem:[#allocation38_spill] sm:$0xff]  ;;  %v2099_v37 = vrot.slane %v13385_v3, 1 }
 0x201   :  { %v3564_v46 = vpop.f32.mrf.mxu3 }
 0x202   :  { %v3565_v20 = vadd.f32 %v3564_v46, %v3212_v8  ;;  %2908 = vmatmul.f32.gmra.mxu1 %v13373_v15  ;;  %v8956_v46 = vsel %vm2187_vm1, %v2097_v1, %v2098_v30 }
 0x204   :  { %v8946_v40 = vadd.f32 %v3917_v53, %v3565_v20  ;;  %3261 = vmatmul.f32.gmra.mxu2 %v8944_v44  ;;  %3614 = vmatmul.f32.gmra.mxu3 %v13388_v23  ;;  %v13392_v23 = vld [vmem:[#allocation40_spill] sm:$0xff] }
 0x205   :  { %v3920_v27 = vpop.f32.mrf.mxu0  ;;  %3967 = vmatmul.f32.gmra.mxu0 %v13389_v41 }
 0x206   :  { %13387 = vst [vmem:[#allocation306_spill] sm:$0xff] %v8946_v40 }
 0x207   :  { %v3214_v4 = vpop.f32.mrf.mxu2  ;;  %v2864_v24 = vpop.f32.mrf.mxu1 }
 0x208   :  { %v3215_v7 = vadd.f32 %v3214_v4, %v2862_v14  ;;  %v2865_v20 = vadd.f32 %v2864_v24, %v8513_v60  ;;  %v13391_v14 = vld [vmem:[#allocation45_spill] sm:$0xff]  ;;  %v2414_v60 = vld [vmem:[%s12260_s1 + $0x350] sm:$0xff] }
 0x209   :  { %v3567_v10 = vpop.f32.mrf.mxu3  ;;  %4575 = vmatpush.msra.mxu2 %v2414_v60 }
 0x20a   :  { %v3568_v8 = vadd.f32 %v3567_v10, %v3215_v7  ;;  %2911 = vmatmul.f32.gmra.mxu1 %v13377_v33  ;;  %v8968_v10 = vsel %vm2187_vm1, %v2098_v30, %v2099_v37 }
 0x20b   :  { %13393 = vst [vmem:[#allocation40_spill] sm:$0xff] %v8968_v10 }
 0x20c   :  { %v8958_v53 = vadd.f32 %v3920_v27, %v3568_v8  ;;  %3264 = vmatmul.f32.gmra.mxu2 %v8956_v46  ;;  %3617 = vmatmul.f32.gmra.mxu3 %v13391_v14  ;;  %v2100_v8 = vrot.slane %v13389_v41, 1 }
 0x20d   :  { %v3923_v42 = vpop.f32.mrf.mxu0  ;;  %3970 = vmatmul.f32.gmra.mxu0 %v13392_v23 }
 0x20e   :  { %13390 = vst [vmem:[#allocation32_spill] sm:$0xff] %v8958_v53 }
 0x20f   :  { %v3217_v4 = vpop.f32.mrf.mxu2  ;;  %v2867_v1 = vpop.f32.mrf.mxu1 }
 0x210   :  { %v3218_v40 = vadd.f32 %v3217_v4, %v2865_v20  ;;  %v2868_v20 = vadd.f32 %v2867_v1, %v8530_v43  ;;  %v13395_v4 = vld [vmem:[#allocation50_spill] sm:$0xff]  ;;  %v8989_v43 = vsel %vm2187_vm1, %v2099_v37, %v2100_v8  ;;  %v2446_v37 = vld [vmem:[%s12260_s1 + $0x450] sm:$0xff] }
 0x211   :  { %v3570_v44 = vpop.f32.mrf.mxu3  ;;  %5281 = vmatpush.msra.mxu0 %v2446_v37 }
 0x212   :  { %v3571_v7 = vadd.f32 %v3570_v44, %v3218_v40  ;;  %2914 = vmatmul.f32.gmra.mxu1 %v13381_v48  ;;  %v2430_v44 = vld [vmem:[%s12260_s1 + $0x3d0] sm:$0xff] }
 0x213   :  { %4928 = vmatpush.msra.mxu3 %v2430_v44  ;;  %v2101_v44 = vrot.slane %v13392_v23, 1 }
 0x214   :  { %v8970_v27 = vadd.f32 %v3923_v42, %v3571_v7  ;;  %3267 = vmatmul.f32.gmra.mxu2 %v8968_v10  ;;  %3620 = vmatmul.f32.gmra.mxu3 %v13395_v4  ;;  %v13396_v42 = vld [vmem:[#allocation44_spill] sm:$0xff]  ;;  %v13399_v4 = vld [vmem:[#allocation58_spill] sm:$0xff] }
 0x215   :  { %v3926_v24 = vpop.f32.mrf.mxu0  ;;  %3973 = vmatmul.f32.gmra.mxu0 %v13396_v42  ;;  %v2398_v7 = vld [vmem:[%s12260_s1 + $0x2d0] sm:$0xff]  ;;  %13397 = vst [vmem:[#allocation44_spill] sm:$0xff] %v8989_v43 }
 0x216   :  { %13394 = vst [vmem:[#allocation307_spill] sm:$0xff] %v8970_v27  ;;  %4222 = vmatpush.msra.mxu1 %v2398_v7 }
 0x217   :  { %v3220_v40 = vpop.f32.mrf.mxu2  ;;  %v2870_v27 = vpop.f32.mrf.mxu1 }
 0x218   :  { %v3221_v30 = vadd.f32 %v3220_v40, %v2868_v20  ;;  %v2871_v40 = vadd.f32 %v2870_v27, %v8553_v6  ;;  %v2102_v27 = vrot.slane %v13396_v42, 1 }
 0x219   :  { %v3573_v53 = vpop.f32.mrf.mxu3 }
 0x21a   :  { %v3574_v1 = vadd.f32 %v3573_v53, %v3221_v30  ;;  %2917 = vmatmul.f32.gmra.mxu1 %v13385_v3  ;;  %v13404_v3 = vld [vmem:[#allocation57_spill] sm:$0xff] }
 0x21c   :  { %v8991_v60 = vadd.f32 %v3926_v24, %v3574_v1  ;;  %3270 = vmatmul.f32.gmra.mxu2 %v8989_v43  ;;  %3623 = vmatmul.f32.gmra.mxu3 %v13399_v4  ;;  %v13400_v24 = vld [vmem:[#allocation52_spill] sm:$0xff]  ;;  %v9004_v1 = vsel %vm2187_vm1, %v2100_v8, %v2101_v44 }
 0x21d   :  { %v3929_v20 = vpop.f32.mrf.mxu0  ;;  %3976 = vmatmul.f32.gmra.mxu0 %v13400_v24  ;;  %13401 = vst [vmem:[#allocation52_spill] sm:$0xff] %v9004_v1 }
 0x21e   :  { %13398 = vst [vmem:[#allocation308_spill] sm:$0xff] %v8991_v60 }
 0x21f   :  { %v3223_v14 = vpop.f32.mrf.mxu2  ;;  %v2873_v30 = vpop.f32.mrf.mxu1 }
 0x220   :  { %v3224_v53 = vadd.f32 %v3223_v14, %v2871_v40  ;;  %v2874_v14 = vadd.f32 %v2873_v30, %v8573_v55  ;;  %v13403_v40 = vld [vmem:[#allocation65_spill] sm:$0xff]  ;;  %v2103_v30 = vrot.slane %v13400_v24, 1 }
 0x221   :  { %v3576_v7 = vpop.f32.mrf.mxu3 }
 0x222   :  { %v3577_v60 = vadd.f32 %v3576_v7, %v3224_v53  ;;  %2920 = vmatmul.f32.gmra.mxu1 %v13389_v41 }
 0x224   :  { %v9006_v43 = vadd.f32 %v3929_v20, %v3577_v60  ;;  %3273 = vmatmul.f32.gmra.mxu2 %v9004_v1  ;;  %3626 = vmatmul.f32.gmra.mxu3 %v13403_v40  ;;  %v9016_v60 = vsel %vm2187_vm1, %v2101_v44, %v2102_v27  ;;  %v13408_v40 = vld [vmem:[#allocation67_spill] sm:$0xff] }
 0x225   :  { %v3932_v6 = vpop.f32.mrf.mxu0  ;;  %3979 = vmatmul.f32.gmra.mxu0 %v13404_v3  ;;  %13405 = vst [vmem:[#allocation57_spill] sm:$0xff] %v9016_v60 }
 0x226   :  { %13402 = vst [vmem:[#allocation309_spill] sm:$0xff] %v9006_v43 }
 0x227   :  { %v3226_v37 = vpop.f32.mrf.mxu2  ;;  %v2876_v8 = vpop.f32.mrf.mxu1 }
 0x228   :  { %v3227_v4 = vadd.f32 %v3226_v37, %v2874_v14  ;;  %v2877_v7 = vadd.f32 %v2876_v8, %v8590_v62  ;;  %v13407_v14 = vld [vmem:[#allocation74_spill] sm:$0xff]  ;;  %v2104_v8 = vrot.slane %v13404_v3, 1 }
 0x229   :  { %v3579_v10 = vpop.f32.mrf.mxu3 }
 0x22a   :  { %v3580_v20 = vadd.f32 %v3579_v10, %v3227_v4  ;;  %2923 = vmatmul.f32.gmra.mxu1 %v13392_v23  ;;  %v9028_v10 = vsel %vm2187_vm1, %v2102_v27, %v2103_v30 }
 0x22b   :  { %13409 = vst [vmem:[#allocation67_spill] sm:$0xff] %v9028_v10 }
 0x22c   :  { %v9018_v53 = vadd.f32 %v3932_v6, %v3580_v20  ;;  %3276 = vmatmul.f32.gmra.mxu2 %v9016_v60  ;;  %3629 = vmatmul.f32.gmra.mxu3 %v13407_v14  ;;  %v13412_v14 = vld [vmem:[#allocation73_spill] sm:$0xff] }
 0x22d   :  { %v3935_v55 = vpop.f32.mrf.mxu0  ;;  %3982 = vmatmul.f32.gmra.mxu0 %v13408_v40 }
 0x22e   :  { %13406 = vst [vmem:[#allocation310_spill] sm:$0xff] %v9018_v53 }
 0x22f   :  { %v3229_v37 = vpop.f32.mrf.mxu2  ;;  %v2879_v44 = vpop.f32.mrf.mxu1 }
 0x230   :  { %v3230_v43 = vadd.f32 %v3229_v37, %v2877_v7  ;;  %v2880_v20 = vadd.f32 %v2879_v44, %v8607_v31  ;;  %v13411_v7 = vld [vmem:[#allocation81_spill] sm:$0xff]  ;;  %v2105_v44 = vrot.slane %v13408_v40, 1 }
 0x231   :  { %v3582_v1 = vpop.f32.mrf.mxu3 }
 0x232   :  { %v3583_v4 = vadd.f32 %v3582_v1, %v3230_v43  ;;  %2926 = vmatmul.f32.gmra.mxu1 %v13396_v42  ;;  %v9040_v43 = vsel %vm2187_vm1, %v2103_v30, %v2104_v8 }
 0x233   :  { %13413 = vst [vmem:[#allocation312_spill] sm:$0xff] %v9040_v43 }
 0x234   :  { %v9030_v6 = vadd.f32 %v3935_v55, %v3583_v4  ;;  %3279 = vmatmul.f32.gmra.mxu2 %v9028_v10  ;;  %3632 = vmatmul.f32.gmra.mxu3 %v13411_v7  ;;  %v13416_v7 = vld [vmem:[#allocation83_spill] sm:$0xff] }
 0x235   :  { %v3938_v62 = vpop.f32.mrf.mxu0  ;;  %3985 = vmatmul.f32.gmra.mxu0 %v13412_v14 }
 0x236   :  { %13410 = vst [vmem:[#allocation311_spill] sm:$0xff] %v9030_v6 }
 0x237   :  { %v3232_v37 = vpop.f32.mrf.mxu2  ;;  %v2882_v27 = vpop.f32.mrf.mxu1 }
 0x238   :  { %v3233_v53 = vadd.f32 %v3232_v37, %v2880_v20  ;;  %v2883_v4 = vadd.f32 %v2882_v27, %v8624_v13  ;;  %v13415_v20 = vld [vmem:[#allocation90_spill] sm:$0xff]  ;;  %v2106_v27 = vrot.slane %v13412_v14, 1 }
 0x239   :  { %v3585_v60 = vpop.f32.mrf.mxu3 }
 0x23a   :  { %v3586_v1 = vadd.f32 %v3585_v60, %v3233_v53  ;;  %2929 = vmatmul.f32.gmra.mxu1 %v13400_v24  ;;  %v9052_v60 = vsel %vm2187_vm1, %v2104_v8, %v2105_v44 }
 0x23c   :  { %v9042_v55 = vadd.f32 %v3938_v62, %v3586_v1  ;;  %3282 = vmatmul.f32.gmra.mxu2 %v9040_v43  ;;  %3635 = vmatmul.f32.gmra.mxu3 %v13415_v20  ;;  %v13419_v20 = vld [vmem:[#allocation89_spill] sm:$0xff] }
 0x23d   :  { %v3941_v31 = vpop.f32.mrf.mxu0  ;;  %3988 = vmatmul.f32.gmra.mxu0 %v13416_v7 }
 0x23e   :  { %13414 = vst [vmem:[#allocation313_spill] sm:$0xff] %v9042_v55 }
 0x23f   :  { %v3235_v37 = vpop.f32.mrf.mxu2  ;;  %v2885_v30 = vpop.f32.mrf.mxu1 }
 0x240   :  { %v3236_v6 = vadd.f32 %v3235_v37, %v2883_v4  ;;  %v2886_v1 = vadd.f32 %v2885_v30, %v8641_v28  ;;  %v13418_v4 = vld [vmem:[#allocation97_spill] sm:$0xff]  ;;  %v2413_v28 = vld [vmem:[%s12260_s1 + $0x348] sm:$0xff] }
 0x241   :  { %v3588_v10 = vpop.f32.mrf.mxu3  ;;  %4576 = vmatpush.msra.mxu2 %v2413_v28 }
 0x242   :  { %v3589_v53 = vadd.f32 %v3588_v10, %v3236_v6  ;;  %2932 = vmatmul.f32.gmra.mxu1 %v13404_v3  ;;  %v9064_v10 = vsel %vm2187_vm1, %v2105_v44, %v2106_v27 }
 0x243   :  { %13420 = vst [vmem:[#allocation89_spill] sm:$0xff] %v9064_v10 }
 0x244   :  { %v9054_v62 = vadd.f32 %v3941_v31, %v3589_v53  ;;  %3285 = vmatmul.f32.gmra.mxu2 %v9052_v60  ;;  %3638 = vmatmul.f32.gmra.mxu3 %v13418_v4  ;;  %v2107_v53 = vrot.slane %v13416_v7, 1 }
 0x245   :  { %v3944_v13 = vpop.f32.mrf.mxu0  ;;  %3991 = vmatmul.f32.gmra.mxu0 %v13419_v20 }
 0x246   :  { %13417 = vst [vmem:[#allocation83_spill] sm:$0xff] %v9054_v62 }
 0x247   :  { %v3238_v37 = vpop.f32.mrf.mxu2  ;;  %v2888_v8 = vpop.f32.mrf.mxu1 }
 0x248   :  { %v3239_v55 = vadd.f32 %v3238_v37, %v2886_v1  ;;  %v2889_v1 = vadd.f32 %v2888_v8, %v8661_v25  ;;  %v13422_v37 = vld [vmem:[#allocation106_spill] sm:$0xff]  ;;  %v9085_v25 = vsel %vm2187_vm1, %v2106_v27, %v2107_v53  ;;  %v2445_v27 = vld [vmem:[%s12260_s1 + $0x448] sm:$0xff] }
 0x249   :  { %v3591_v43 = vpop.f32.mrf.mxu3  ;;  %5282 = vmatpush.msra.mxu0 %v2445_v27 }
 0x24a   :  { %v3592_v6 = vadd.f32 %v3591_v43, %v3239_v55  ;;  %2935 = vmatmul.f32.gmra.mxu1 %v13408_v40  ;;  %v2429_v43 = vld [vmem:[%s12260_s1 + $0x3c8] sm:$0xff] }
 0x24b   :  { %4929 = vmatpush.msra.mxu3 %v2429_v43  ;;  %v2108_v43 = vrot.slane %v13419_v20, 1 }
 0x24c   :  { %v9066_v31 = vadd.f32 %v3944_v13, %v3592_v6  ;;  %3288 = vmatmul.f32.gmra.mxu2 %v9064_v10  ;;  %3641 = vmatmul.f32.gmra.mxu3 %v13422_v37  ;;  %v13423_v13 = vld [vmem:[#allocation99_spill] sm:$0xff]  ;;  %v13426_v37 = vld [vmem:[#allocation113_spill] sm:$0xff] }
 0x24d   :  { %v3947_v30 = vpop.f32.mrf.mxu0  ;;  %3994 = vmatmul.f32.gmra.mxu0 %v13423_v13  ;;  %v2397_v6 = vld [vmem:[%s12260_s1 + $0x2c8] sm:$0xff]  ;;  %13424 = vst [vmem:[#allocation99_spill] sm:$0xff] %v9085_v25 }
 0x24e   :  { %13421 = vst [vmem:[#allocation314_spill] sm:$0xff] %v9066_v31  ;;  %4223 = vmatpush.msra.mxu1 %v2397_v6 }
 0x24f   :  { %v3241_v55 = vpop.f32.mrf.mxu2  ;;  %v2891_v31 = vpop.f32.mrf.mxu1 }
 0x250   :  { %v3242_v44 = vadd.f32 %v3241_v55, %v2889_v1  ;;  %v2892_v55 = vadd.f32 %v2891_v31, %v8684_v56  ;;  %v2109_v31 = vrot.slane %v13423_v13, 1 }
 0x251   :  { %v3594_v62 = vpop.f32.mrf.mxu3 }
 0x252   :  { %v3595_v8 = vadd.f32 %v3594_v62, %v3242_v44  ;;  %2938 = vmatmul.f32.gmra.mxu1 %v13412_v14  ;;  %v13431_v14 = vld [vmem:[#allocation115_spill] sm:$0xff] }
 0x254   :  { %v9087_v28 = vadd.f32 %v3947_v30, %v3595_v8  ;;  %3291 = vmatmul.f32.gmra.mxu2 %v9085_v25  ;;  %3644 = vmatmul.f32.gmra.mxu3 %v13426_v37  ;;  %v13427_v30 = vld [vmem:[#allocation105_spill] sm:$0xff]  ;;  %v9100_v8 = vsel %vm2187_vm1, %v2107_v53, %v2108_v43 }
 0x255   :  { %v3950_v1 = vpop.f32.mrf.mxu0  ;;  %3997 = vmatmul.f32.gmra.mxu0 %v13427_v30  ;;  %13428 = vst [vmem:[#allocation316_spill] sm:$0xff] %v9100_v8 }
 0x256   :  { %13425 = vst [vmem:[#allocation315_spill] sm:$0xff] %v9087_v28 }
 0x257   :  { %v3244_v4 = vpop.f32.mrf.mxu2  ;;  %v2894_v44 = vpop.f32.mrf.mxu1 }
 0x258   :  { %v3245_v62 = vadd.f32 %v3244_v4, %v2892_v55  ;;  %v2895_v4 = vadd.f32 %v2894_v44, %v8704_v0  ;;  %v13430_v55 = vld [vmem:[#allocation123_spill] sm:$0xff]  ;;  %v2110_v44 = vrot.slane %v13427_v30, 1 }
 0x259   :  { %v3597_v6 = vpop.f32.mrf.mxu3 }
 0x25a   :  { %v3598_v28 = vadd.f32 %v3597_v6, %v3245_v62  ;;  %2941 = vmatmul.f32.gmra.mxu1 %v13416_v7 }
 0x25c   :  { %v9102_v25 = vadd.f32 %v3950_v1, %v3598_v28  ;;  %3294 = vmatmul.f32.gmra.mxu2 %v9100_v8  ;;  %3647 = vmatmul.f32.gmra.mxu3 %v13430_v55  ;;  %v9112_v28 = vsel %vm2187_vm1, %v2108_v43, %v2109_v31  ;;  %v13435_v55 = vld [vmem:[#allocation121_spill] sm:$0xff] }
 0x25d   :  { %v3953_v56 = vpop.f32.mrf.mxu0  ;;  %4000 = vmatmul.f32.gmra.mxu0 %v13431_v14  ;;  %13432 = vst [vmem:[#allocation318_spill] sm:$0xff] %v9112_v28 }
 0x25e   :  { %13429 = vst [vmem:[#allocation317_spill] sm:$0xff] %v9102_v25 }
 0x25f   :  { %v3247_v27 = vpop.f32.mrf.mxu2  ;;  %v2897_v53 = vpop.f32.mrf.mxu1 }
 0x260   :  { %v3248_v37 = vadd.f32 %v3247_v27, %v2895_v4  ;;  %v2898_v6 = vadd.f32 %v2897_v53, %v8721_v11  ;;  %v13434_v4 = vld [vmem:[#allocation131_spill] sm:$0xff]  ;;  %v2111_v53 = vrot.slane %v13431_v14, 1 }
 0x261   :  { %v3600_v10 = vpop.f32.mrf.mxu3 }
 0x262   :  { %v3601_v1 = vadd.f32 %v3600_v10, %v3248_v37  ;;  %2944 = vmatmul.f32.gmra.mxu1 %v13419_v20  ;;  %v9124_v10 = vsel %vm2187_vm1, %v2109_v31, %v2110_v44 }
 0x263   :  { %13436 = vst [vmem:[#allocation320_spill] sm:$0xff] %v9124_v10 }
 0x264   :  { %v9114_v62 = vadd.f32 %v3953_v56, %v3601_v1  ;;  %3297 = vmatmul.f32.gmra.mxu2 %v9112_v28  ;;  %3650 = vmatmul.f32.gmra.mxu3 %v13434_v4  ;;  %v13439_v4 = vld [vmem:[#allocation135_spill] sm:$0xff] }
 0x265   :  { %v3956_v0 = vpop.f32.mrf.mxu0  ;;  %4003 = vmatmul.f32.gmra.mxu0 %v13435_v55 }
 0x266   :  { %13433 = vst [vmem:[#allocation319_spill] sm:$0xff] %v9114_v62 }
 0x267   :  { %v3250_v27 = vpop.f32.mrf.mxu2  ;;  %v2900_v43 = vpop.f32.mrf.mxu1 }
 0x268   :  { %v3251_v25 = vadd.f32 %v3250_v27, %v2898_v6  ;;  %v2901_v1 = vadd.f32 %v2900_v43, %v8738_v12  ;;  %v13438_v6 = vld [vmem:[#allocation145_spill] sm:$0xff]  ;;  %v2112_v43 = vrot.slane %v13435_v55, 1 }
 0x269   :  { %v3603_v8 = vpop.f32.mrf.mxu3 }
 0x26a   :  { %v3604_v37 = vadd.f32 %v3603_v8, %v3251_v25  ;;  %2947 = vmatmul.f32.gmra.mxu1 %v13423_v13  ;;  %v9136_v25 = vsel %vm2187_vm1, %v2110_v44, %v2111_v53 }
 0x26b   :  { %13440 = vst [vmem:[#allocation322_spill] sm:$0xff] %v9136_v25 }
 0x26c   :  { %v9126_v56 = vadd.f32 %v3956_v0, %v3604_v37  ;;  %3300 = vmatmul.f32.gmra.mxu2 %v9124_v10  ;;  %3653 = vmatmul.f32.gmra.mxu3 %v13438_v6  ;;  %v13443_v6 = vld [vmem:[#allocation142_spill] sm:$0xff] }
 0x26d   :  { %v3959_v11 = vpop.f32.mrf.mxu0  ;;  %4006 = vmatmul.f32.gmra.mxu0 %v13439_v4 }
 0x26e   :  { %13437 = vst [vmem:[#allocation321_spill] sm:$0xff] %v9126_v56 }
 0x26f   :  { %v3253_v27 = vpop.f32.mrf.mxu2  ;;  %v2903_v31 = vpop.f32.mrf.mxu1 }
 0x270   :  { %v3254_v62 = vadd.f32 %v3253_v27, %v2901_v1  ;;  %v2904_v37 = vadd.f32 %v2903_v31, %v8755_v49  ;;  %v13442_v1 = vld [vmem:[#allocation154_spill] sm:$0xff]  ;;  %v2113_v31 = vrot.slane %v13439_v4, 1 }
 0x271   :  { %v3606_v28 = vpop.f32.mrf.mxu3 }
 0x272   :  { %v3607_v8 = vadd.f32 %v3606_v28, %v3254_v62  ;;  %2950 = vmatmul.f32.gmra.mxu1 %v13427_v30  ;;  %v9148_v28 = vsel %vm2187_vm1, %v2111_v53, %v2112_v43 }
 0x273   :  { %13444 = vst [vmem:[#allocation324_spill] sm:$0xff] %v9148_v28 }
 0x274   :  { %v9138_v0 = vadd.f32 %v3959_v11, %v3607_v8  ;;  %3303 = vmatmul.f32.gmra.mxu2 %v9136_v25  ;;  %3656 = vmatmul.f32.gmra.mxu3 %v13442_v1  ;;  %v13446_v8 = vld [vmem:[#allocation122_spill] sm:$0xff] }
 0x275   :  { %v3962_v12 = vpop.f32.mrf.mxu0  ;;  %4009 = vmatmul.f32.gmra.mxu0 %v13443_v6  ;;  %v13448_v25 = vld [vmem:[#allocation158_spill] sm:$0xff] }
 0x276   :  { %13441 = vst [vmem:[#allocation323_spill] sm:$0xff] %v9138_v0 }
 0x277   :  { %v3256_v27 = vpop.f32.mrf.mxu2  ;;  %v2906_v44 = vpop.f32.mrf.mxu1 }
 0x278   :  { %v3257_v56 = vadd.f32 %v3256_v27, %v2904_v37  ;;  %v2907_v37 = vadd.f32 %v2906_v44, %v13446_v8  ;;  %v13447_v27 = vld [vmem:[#allocation168_spill] sm:$0xff]  ;;  %v2412_v44 = vld [vmem:[%s12260_s1 + $0x340] sm:$0xff] }
 0x279   :  { %v3609_v10 = vpop.f32.mrf.mxu3  ;;  %4577 = vmatpush.msra.mxu2 %v2412_v44  ;;  %v13451_v8 = vld [vmem:[#allocation132_spill] sm:$0xff] }
 0x27a   :  { %v3610_v62 = vadd.f32 %v3609_v10, %v3257_v56  ;;  %2953 = vmatmul.f32.gmra.mxu1 %v13431_v14  ;;  %v9160_v10 = vsel %vm2187_vm1, %v2112_v43, %v2113_v31 }
 0x27b   :  { %13449 = vst [vmem:[#allocation122_spill] sm:$0xff] %v9160_v10 }
 0x27c   :  { %v9150_v11 = vadd.f32 %v3962_v12, %v3610_v62  ;;  %3306 = vmatmul.f32.gmra.mxu2 %v9148_v28  ;;  %3659 = vmatmul.f32.gmra.mxu3 %v13447_v27  ;;  %v2114_v62 = vrot.slane %v13443_v6, 1  ;;  %v13463_v28 = vld [vmem:[#allocation189_spill] sm:$0xff] }
 0x27d   :  { %v3965_v49 = vpop.f32.mrf.mxu0  ;;  %4012 = vmatmul.f32.gmra.mxu0 %v13448_v25 }
 0x27e   :  { %13445 = vst [vmem:[#allocation325_spill] sm:$0xff] %v9150_v11  ;;  %v13452_v11 = vld [vmem:[#allocation177_spill] sm:$0xff] }
 0x27f   :  { %v3259_v0 = vpop.f32.mrf.mxu2  ;;  %v2909_v53 = vpop.f32.mrf.mxu1 }
 0x280   :  { %v3260_v1 = vadd.f32 %v3259_v0, %v2907_v37  ;;  %v2910_v37 = vadd.f32 %v2909_v53, %v13451_v8  ;;  %v9181_v53 = vsel %vm2187_vm1, %v2113_v31, %v2114_v62  ;;  %v2444_v31 = vld [vmem:[%s12260_s1 + $0x440] sm:$0xff] }
 0x281   :  { %v3612_v30 = vpop.f32.mrf.mxu3  ;;  %13454 = vst [vmem:[#allocation132_spill] sm:$0xff] %v9181_v53  ;;  %5283 = vmatpush.msra.mxu0 %v2444_v31  ;;  %v13461_v31 = vld [vmem:[#allocation155_spill] sm:$0xff] }
 0x282   :  { %v3613_v56 = vadd.f32 %v3612_v30, %v3260_v1  ;;  %2956 = vmatmul.f32.gmra.mxu1 %v13435_v55  ;;  %v2428_v30 = vld [vmem:[%s12260_s1 + $0x3c0] sm:$0xff] }
 0x283   :  { %4930 = vmatpush.msra.mxu3 %v2428_v30  ;;  %v2115_v30 = vrot.slane %v13448_v25, 1 }
 0x284   :  { %v9162_v12 = vadd.f32 %v3965_v49, %v3613_v56  ;;  %3309 = vmatmul.f32.gmra.mxu2 %v9160_v10  ;;  %3662 = vmatmul.f32.gmra.mxu3 %v13452_v11  ;;  %v13453_v49 = vld [vmem:[#allocation165_spill] sm:$0xff]  ;;  %v2396_v56 = vld [vmem:[%s12260_s1 + $0x2c0] sm:$0xff]  ;;  %v13457_v10 = vld [vmem:[#allocation192_spill] sm:$0xff] }
 0x285   :  { %v3968_v0 = vpop.f32.mrf.mxu0  ;;  %4015 = vmatmul.f32.gmra.mxu0 %v13453_v49  ;;  %4224 = vmatpush.msra.mxu1 %v2396_v56 }
 0x286   :  { %13450 = vst [vmem:[#allocation158_spill] sm:$0xff] %v9162_v12 }
 0x287   :  { %v3262_v43 = vpop.f32.mrf.mxu2  ;;  %v2912_v12 = vpop.f32.mrf.mxu1 }
 0x288   :  { %v3263_v1 = vadd.f32 %v3262_v43, %v2910_v37  ;;  %v13456_v43 = vld [vmem:[#allocation143_spill] sm:$0xff] }
 0x289   :  { %v3615_v27 = vpop.f32.mrf.mxu3  ;;  %v2913_v11 = vadd.f32 %v2912_v12, %v13456_v43  ;;  %v2116_v43 = vrot.slane %v13453_v49, 1 }
 0x28a   :  { %v3616_v44 = vadd.f32 %v3615_v27, %v3263_v1  ;;  %2959 = vmatmul.f32.gmra.mxu1 %v13439_v4 }
 0x28c   :  { %v9183_v8 = vadd.f32 %v3968_v0, %v3616_v44  ;;  %3312 = vmatmul.f32.gmra.mxu2 %v9181_v53  ;;  %3665 = vmatmul.f32.gmra.mxu3 %v13457_v10  ;;  %v13458_v0 = vld [vmem:[#allocation181_spill] sm:$0xff]  ;;  %v9196_v44 = vsel %vm2187_vm1, %v2114_v62, %v2115_v30 }
 0x28d   :  { %v3971_v37 = vpop.f32.mrf.mxu0  ;;  %4018 = vmatmul.f32.gmra.mxu0 %v13458_v0  ;;  %13459 = vst [vmem:[#allocation143_spill] sm:$0xff] %v9196_v44 }
 0x28e   :  { %13455 = vst [vmem:[#allocation326_spill] sm:$0xff] %v9183_v8 }
 0x28f   :  { %v3265_v55 = vpop.f32.mrf.mxu2  ;;  %v2915_v1 = vpop.f32.mrf.mxu1 }
 0x290   :  { %v3266_v27 = vadd.f32 %v3265_v55, %v2913_v11  ;;  %v2916_v55 = vadd.f32 %v2915_v1, %v13461_v31  ;;  %v13462_v11 = vld [vmem:[#allocation201_spill] sm:$0xff]  ;;  %v13466_v31 = vld [vmem:[#allocation166_spill] sm:$0xff] }
 0x291   :  { %v3618_v56 = vpop.f32.mrf.mxu3 }
 0x292   :  { %v3619_v8 = vadd.f32 %v3618_v56, %v3266_v27  ;;  %2962 = vmatmul.f32.gmra.mxu1 %v13443_v6  ;;  %v2117_v56 = vrot.slane %v13458_v0, 1 }
 0x294   :  { %v9198_v53 = vadd.f32 %v3971_v37, %v3619_v8  ;;  %3315 = vmatmul.f32.gmra.mxu2 %v9196_v44  ;;  %3668 = vmatmul.f32.gmra.mxu3 %v13462_v11  ;;  %v9208_v8 = vsel %vm2187_vm1, %v2115_v30, %v2116_v43  ;;  %v13468_v44 = vld [vmem:[#allocation205_spill] sm:$0xff] }
 0x295   :  { %v3974_v12 = vpop.f32.mrf.mxu0  ;;  %4021 = vmatmul.f32.gmra.mxu0 %v13463_v28  ;;  %13464 = vst [vmem:[#allocation155_spill] sm:$0xff] %v9208_v8 }
 0x296   :  { %13460 = vst [vmem:[#allocation181_spill] sm:$0xff] %v9198_v53 }
 0x297   :  { %v3268_v10 = vpop.f32.mrf.mxu2  ;;  %v2918_v62 = vpop.f32.mrf.mxu1 }
 0x298   :  { %v3269_v4 = vadd.f32 %v3268_v10, %v2916_v55  ;;  %v2919_v10 = vadd.f32 %v2918_v62, %v13466_v31  ;;  %v13467_v55 = vld [vmem:[#allocation216_spill] sm:$0xff]  ;;  %v13471_v31 = vld [vmem:[#allocation178_spill] sm:$0xff] }
 0x299   :  { %v3621_v14 = vpop.f32.mrf.mxu3 }
 0x29a   :  { %v3622_v37 = vadd.f32 %v3621_v14, %v3269_v4  ;;  %2965 = vmatmul.f32.gmra.mxu1 %v13448_v25  ;;  %v9220_v14 = vsel %vm2187_vm1, %v2116_v43, %v2117_v56 }
 0x29b   :  { %13469 = vst [vmem:[#allocation166_spill] sm:$0xff] %v9220_v14 }
 0x29c   :  { %v9210_v27 = vadd.f32 %v3974_v12, %v3622_v37  ;;  %3318 = vmatmul.f32.gmra.mxu2 %v9208_v8  ;;  %3671 = vmatmul.f32.gmra.mxu3 %v13467_v55  ;;  %v2118_v37 = vrot.slane %v13463_v28, 1  ;;  %v13472_v55 = vld [vmem:[#allocation213_spill] sm:$0xff] }
 0x29d   :  { %v3977_v1 = vpop.f32.mrf.mxu0  ;;  %4024 = vmatmul.f32.gmra.mxu0 %v13468_v44 }
 0x29e   :  { %13465 = vst [vmem:[#allocation327_spill] sm:$0xff] %v9210_v27 }
 0x29f   :  { %v3271_v53 = vpop.f32.mrf.mxu2  ;;  %v2921_v30 = vpop.f32.mrf.mxu1 }
 0x2a0   :  { %v3272_v11 = vadd.f32 %v3271_v53, %v2919_v10  ;;  %v2922_v53 = vadd.f32 %v2921_v30, %v13471_v31  ;;  %v13474_v31 = vld [vmem:[#allocation190_spill] sm:$0xff] }
 0x2a1   :  { %v3624_v6 = vpop.f32.mrf.mxu3 }
 0x2a2   :  { %v3625_v4 = vadd.f32 %v3624_v6, %v3272_v11  ;;  %2968 = vmatmul.f32.gmra.mxu1 %v13453_v49  ;;  %v9232_v6 = vsel %vm2187_vm1, %v2117_v56, %v2118_v37 }
 0x2a4   :  { %v9222_v12 = vadd.f32 %v3977_v1, %v3625_v4  ;;  %3321 = vmatmul.f32.gmra.mxu2 %v9220_v14  ;;  %3674 = vmatmul.f32.gmra.mxu3 %v8354_v19  ;;  %v2119_v4 = vrot.slane %v13468_v44, 1  ;;  %v13476_v14 = vld [vmem:[#allocation229_spill] sm:$0xff] }
 0x2a5   :  { %v3980_v62 = vpop.f32.mrf.mxu0  ;;  %4027 = vmatmul.f32.gmra.mxu0 %v13472_v55 }
 0x2a6   :  { %13470 = vst [vmem:[#allocation328_spill] sm:$0xff] %v9222_v12 }
 0x2a7   :  { %v3274_v10 = vpop.f32.mrf.mxu2  ;;  %v2924_v43 = vpop.f32.mrf.mxu1 }
 0x2a8   :  { %v3275_v27 = vadd.f32 %v3274_v10, %v2922_v53  ;;  %v2925_v53 = vadd.f32 %v2924_v43, %v13474_v31  ;;  %v13475_v10 = vld [vmem:[#allocation237_spill] sm:$0xff]  ;;  %v13479_v31 = vld [vmem:[#allocation202_spill] sm:$0xff] }
 0x2a9   :  { %v3627_v8 = vpop.f32.mrf.mxu3 }
 0x2aa   :  { %v3628_v11 = vadd.f32 %v3627_v8, %v3275_v27  ;;  %2971 = vmatmul.f32.gmra.mxu1 %v13458_v0  ;;  %v9244_v8 = vsel %vm2187_vm1, %v2118_v37, %v2119_v4 }
 0x2ab   :  { %13477 = vst [vmem:[#allocation190_spill] sm:$0xff] %v9244_v8 }
 0x2ac   :  { %v9234_v1 = vadd.f32 %v3980_v62, %v3628_v11  ;;  %3324 = vmatmul.f32.gmra.mxu2 %v9232_v6  ;;  %3677 = vmatmul.f32.gmra.mxu3 %v13475_v10  ;;  %v2120_v11 = vrot.slane %v13472_v55, 1 }
 0x2ad   :  { %v3983_v30 = vpop.f32.mrf.mxu0  ;;  %4030 = vmatmul.f32.gmra.mxu0 %v13476_v14 }
 0x2ae   :  { %13473 = vst [vmem:[#allocation178_spill] sm:$0xff] %v9234_v1 }
 0x2af   :  { %v3277_v12 = vpop.f32.mrf.mxu2  ;;  %v2927_v56 = vpop.f32.mrf.mxu1 }
 0x2b0   :  { %v3278_v19 = vadd.f32 %v3277_v12, %v2925_v53  ;;  %v2928_v12 = vadd.f32 %v2927_v56, %v13479_v31  ;;  %v2411_v56 = vld [vmem:[%s12260_s1 + $0x338] sm:$0xff]  ;;  %v2121_v31 = vrot.slane %v13476_v14, 1 }
 0x2b1   :  { %v3630_v49 = vpop.f32.mrf.mxu3  ;;  %4578 = vmatpush.msra.mxu2 %v2411_v56 }
 0x2b2   :  { %v3631_v27 = vadd.f32 %v3630_v49, %v3278_v19  ;;  %2974 = vmatmul.f32.gmra.mxu1 %v13463_v28  ;;  %v9256_v19 = vsel %vm2187_vm1, %v2119_v4, %v2120_v11 }
 0x2b3   :  { %13480 = vst [vmem:[#allocation202_spill] sm:$0xff] %v9256_v19 }
 0x2b4   :  { %v9246_v62 = vadd.f32 %v3983_v30, %v3631_v27  ;;  %3327 = vmatmul.f32.gmra.mxu2 %v9244_v8  ;;  %3680 = vmatmul.f32.gmra.mxu3 %v8445_v34  ;;  %v13494_v8 = vld [vmem:[#allocation17_spill] sm:$0xff] }
 0x2b5   :  { %v3986_v43 = vpop.f32.mrf.mxu0  ;;  %4033 = vmatmul.f32.gmra.mxu0 %v6938_v22 }
 0x2b6   :  { %13478 = vst [vmem:[#allocation229_spill] sm:$0xff] %v9246_v62  ;;  %v13483_v62 = vld [vmem:[#allocation10_spill] sm:$0xff] }
 0x2b7   :  { %v3280_v53 = vpop.f32.mrf.mxu2  ;;  %v2930_v37 = vpop.f32.mrf.mxu1 }
 0x2b8   :  { %v3281_v1 = vadd.f32 %v3280_v53, %v2928_v12  ;;  %v13482_v12 = vld [vmem:[#allocation214_spill] sm:$0xff] }
 0x2b9   :  { %v3633_v10 = vpop.f32.mrf.mxu3  ;;  %v2931_v53 = vadd.f32 %v2930_v37, %v13482_v12  ;;  %v9277_v37 = vsel %vm2187_vm1, %v2120_v11, %v2121_v31  ;;  %v2443_v11 = vld [vmem:[%s12260_s1 + $0x438] sm:$0xff] }
 0x2ba   :  { %v3634_v49 = vadd.f32 %v3633_v10, %v3281_v1  ;;  %2977 = vmatmul.f32.gmra.mxu1 %v13468_v44  ;;  %v2427_v1 = vld [vmem:[%s12260_s1 + $0x3b8] sm:$0xff]  ;;  %13485 = vst [vmem:[#allocation214_spill] sm:$0xff] %v9277_v37  ;;  %5284 = vmatpush.msra.mxu0 %v2443_v11  ;;  %v13492_v11 = vld [vmem:[#allocation235_spill] sm:$0xff] }
 0x2bb   :  { %4931 = vmatpush.msra.mxu3 %v2427_v1  ;;  %v2122_v1 = vrot.slane %v6938_v22, 1 }
 0x2bc   :  { %v9258_v30 = vadd.f32 %v3986_v43, %v3634_v49  ;;  %3330 = vmatmul.f32.gmra.mxu2 %v9256_v19  ;;  %3683 = vmatmul.f32.gmra.mxu3 %v13483_v62  ;;  %v13484_v43 = vld [vmem:[#allocation3_spill] sm:$0xff]  ;;  %v2395_v49 = vld [vmem:[%s12260_s1 + $0x2b8] sm:$0xff]  ;;  %v13488_v19 = vld [vmem:[#allocation16_spill] sm:$0xff] }
 0x2bd   :  { %v3989_v27 = vpop.f32.mrf.mxu0  ;;  %4036 = vmatmul.f32.gmra.mxu0 %v13484_v43  ;;  %4225 = vmatpush.msra.mxu1 %v2395_v49 }
 0x2be   :  { %13481 = vst [vmem:[#allocation329_spill] sm:$0xff] %v9258_v30 }
 0x2bf   :  { %v3283_v4 = vpop.f32.mrf.mxu2  ;;  %v2933_v30 = vpop.f32.mrf.mxu1 }
 0x2c0   :  { %v3284_v10 = vadd.f32 %v3283_v4, %v2931_v53  ;;  %v13487_v4 = vld [vmem:[#allocation226_spill] sm:$0xff] }
 0x2c1   :  { %v3636_v34 = vpop.f32.mrf.mxu3  ;;  %v2934_v62 = vadd.f32 %v2933_v30, %v13487_v4  ;;  %v2123_v4 = vrot.slane %v13484_v43, 1 }
 0x2c2   :  { %v3637_v56 = vadd.f32 %v3636_v34, %v3284_v10  ;;  %2980 = vmatmul.f32.gmra.mxu1 %v13472_v55 }
 0x2c4   :  { %v9279_v12 = vadd.f32 %v3989_v27, %v3637_v56  ;;  %3333 = vmatmul.f32.gmra.mxu2 %v9277_v37  ;;  %3686 = vmatmul.f32.gmra.mxu3 %v13488_v19  ;;  %v13489_v27 = vld [vmem:[#allocation11_spill] sm:$0xff]  ;;  %v9292_v56 = vsel %vm2187_vm1, %v2121_v31, %v2122_v1 }
 0x2c5   :  { %v3992_v53 = vpop.f32.mrf.mxu0  ;;  %4039 = vmatmul.f32.gmra.mxu0 %v13489_v27  ;;  %13490 = vst [vmem:[#allocation226_spill] sm:$0xff] %v9292_v56 }
 0x2c6   :  { %13486 = vst [vmem:[#allocation3_spill] sm:$0xff] %v9279_v12 }
 0x2c7   :  { %v3286_v44 = vpop.f32.mrf.mxu2  ;;  %v2936_v10 = vpop.f32.mrf.mxu1 }
 0x2c8   :  { %v3287_v34 = vadd.f32 %v3286_v44, %v2934_v62  ;;  %v2937_v44 = vadd.f32 %v2936_v10, %v13492_v11  ;;  %v13493_v62 = vld [vmem:[#allocation22_spill] sm:$0xff]  ;;  %v13497_v11 = vld [vmem:[#allocation27_spill] sm:$0xff] }
 0x2c9   :  { %v3639_v49 = vpop.f32.mrf.mxu3 }
 0x2ca   :  { %v3640_v12 = vadd.f32 %v3639_v49, %v3287_v34  ;;  %2983 = vmatmul.f32.gmra.mxu1 %v13476_v14  ;;  %v2124_v49 = vrot.slane %v13489_v27, 1 }
 0x2cc   :  { %v9294_v37 = vadd.f32 %v3992_v53, %v3640_v12  ;;  %3336 = vmatmul.f32.gmra.mxu2 %v9292_v56  ;;  %3689 = vmatmul.f32.gmra.mxu3 %v13493_v62  ;;  %v9304_v12 = vsel %vm2187_vm1, %v2122_v1, %v2123_v4  ;;  %v13498_v62 = vld [vmem:[#allocation23_spill] sm:$0xff] }
 0x2cd   :  { %v3995_v30 = vpop.f32.mrf.mxu0  ;;  %4042 = vmatmul.f32.gmra.mxu0 %v13494_v8  ;;  %13495 = vst [vmem:[#allocation235_spill] sm:$0xff] %v9304_v12 }
 0x2ce   :  { %13491 = vst [vmem:[#allocation11_spill] sm:$0xff] %v9294_v37 }
 0x2cf   :  { %v3289_v19 = vpop.f32.mrf.mxu2  ;;  %v2939_v31 = vpop.f32.mrf.mxu1 }
 0x2d0   :  { %v3290_v55 = vadd.f32 %v3289_v19, %v2937_v44  ;;  %v2940_v19 = vadd.f32 %v2939_v31, %v8437_v54  ;;  %v2125_v31 = vrot.slane %v13494_v8, 1 }
 0x2d1   :  { %v3642_v28 = vpop.f32.mrf.mxu3 }
 0x2d2   :  { %v3643_v53 = vadd.f32 %v3642_v28, %v3290_v55  ;;  %2986 = vmatmul.f32.gmra.mxu1 %v6938_v22  ;;  %v9316_v28 = vsel %vm2187_vm1, %v2123_v4, %v2124_v49 }
 0x2d3   :  { %13499 = vst [vmem:[#allocation23_spill] sm:$0xff] %v9316_v28 }
 0x2d4   :  { %v9306_v34 = vadd.f32 %v3995_v30, %v3643_v53  ;;  %3339 = vmatmul.f32.gmra.mxu2 %v9304_v12  ;;  %3692 = vmatmul.f32.gmra.mxu3 %v13497_v11  ;;  %v13502_v11 = vld [vmem:[#allocation29_spill] sm:$0xff] }
 0x2d5   :  { %v3998_v10 = vpop.f32.mrf.mxu0  ;;  %4045 = vmatmul.f32.gmra.mxu0 %v13498_v62 }
 0x2d6   :  { %13496 = vst [vmem:[#allocation17_spill] sm:$0xff] %v9306_v34 }
 0x2d7   :  { %v3292_v44 = vpop.f32.mrf.mxu2  ;;  %v2942_v1 = vpop.f32.mrf.mxu1 }
 0x2d8   :  { %v3293_v37 = vadd.f32 %v3292_v44, %v2940_v19  ;;  %v2943_v53 = vadd.f32 %v2942_v1, %v8476_v47  ;;  %v13501_v19 = vld [vmem:[#allocation34_spill] sm:$0xff]  ;;  %v2126_v1 = vrot.slane %v13498_v62, 1 }
 0x2d9   :  { %v3645_v56 = vpop.f32.mrf.mxu3 }
 0x2da   :  { %v3646_v55 = vadd.f32 %v3645_v56, %v3293_v37  ;;  %2989 = vmatmul.f32.gmra.mxu1 %v13484_v43  ;;  %v9328_v37 = vsel %vm2187_vm1, %v2124_v49, %v2125_v31 }
 0x2db   :  { %13503 = vst [vmem:[#allocation331_spill] sm:$0xff] %v9328_v37 }
 0x2dc   :  { %v9318_v30 = vadd.f32 %v3998_v10, %v3646_v55  ;;  %3342 = vmatmul.f32.gmra.mxu2 %v9316_v28  ;;  %3695 = vmatmul.f32.gmra.mxu3 %v13501_v19  ;;  %v13506_v19 = vld [vmem:[#allocation35_spill] sm:$0xff] }
 0x2dd   :  { %v4001_v54 = vpop.f32.mrf.mxu0  ;;  %4048 = vmatmul.f32.gmra.mxu0 %v13502_v11 }
 0x2de   :  { %13500 = vst [vmem:[#allocation330_spill] sm:$0xff] %v9318_v30 }
 0x2df   :  { %v3295_v44 = vpop.f32.mrf.mxu2  ;;  %v2945_v4 = vpop.f32.mrf.mxu1 }
 0x2e0   :  { %v3296_v34 = vadd.f32 %v3295_v44, %v2943_v53  ;;  %v2946_v55 = vadd.f32 %v2945_v4, %v8492_v61  ;;  %v13505_v53 = vld [vmem:[#allocation39_spill] sm:$0xff]  ;;  %v2127_v4 = vrot.slane %v13502_v11, 1 }
 0x2e1   :  { %v3648_v12 = vpop.f32.mrf.mxu3 }
 0x2e2   :  { %v3649_v56 = vadd.f32 %v3648_v12, %v3296_v34  ;;  %2992 = vmatmul.f32.gmra.mxu1 %v13489_v27  ;;  %v9340_v12 = vsel %vm2187_vm1, %v2125_v31, %v2126_v1 }
 0x2e4   :  { %v9330_v10 = vadd.f32 %v4001_v54, %v3649_v56  ;;  %3345 = vmatmul.f32.gmra.mxu2 %v9328_v37  ;;  %3698 = vmatmul.f32.gmra.mxu3 %v13505_v53  ;;  %v13509_v53 = vld [vmem:[#allocation41_spill] sm:$0xff] }
 0x2e5   :  { %v4004_v47 = vpop.f32.mrf.mxu0  ;;  %4051 = vmatmul.f32.gmra.mxu0 %v13506_v19 }
 0x2e6   :  { %13504 = vst [vmem:[#allocation332_spill] sm:$0xff] %v9330_v10 }
 0x2e7   :  { %v3298_v44 = vpop.f32.mrf.mxu2  ;;  %v2948_v49 = vpop.f32.mrf.mxu1 }
 0x2e8   :  { %v3299_v30 = vadd.f32 %v3298_v44, %v2946_v55  ;;  %v2949_v56 = vadd.f32 %v2948_v49, %v8506_v50  ;;  %v13508_v55 = vld [vmem:[#allocation46_spill] sm:$0xff]  ;;  %v2410_v50 = vld [vmem:[%s12260_s1 + $0x330] sm:$0xff] }
 0x2e9   :  { %v3651_v28 = vpop.f32.mrf.mxu3  ;;  %4579 = vmatpush.msra.mxu2 %v2410_v50 }
 0x2ea   :  { %v3652_v34 = vadd.f32 %v3651_v28, %v3299_v30  ;;  %2995 = vmatmul.f32.gmra.mxu1 %v13494_v8  ;;  %v9352_v28 = vsel %vm2187_vm1, %v2126_v1, %v2127_v4 }
 0x2eb   :  { %13510 = vst [vmem:[#allocation41_spill] sm:$0xff] %v9352_v28 }
 0x2ec   :  { %v9342_v54 = vadd.f32 %v4004_v47, %v3652_v34  ;;  %3348 = vmatmul.f32.gmra.mxu2 %v9340_v12  ;;  %3701 = vmatmul.f32.gmra.mxu3 %v13508_v55  ;;  %v2128_v34 = vrot.slane %v13506_v19, 1 }
 0x2ed   :  { %v4007_v61 = vpop.f32.mrf.mxu0  ;;  %4054 = vmatmul.f32.gmra.mxu0 %v13509_v53 }
 0x2ee   :  { %13507 = vst [vmem:[#allocation35_spill] sm:$0xff] %v9342_v54 }
 0x2ef   :  { %v3301_v44 = vpop.f32.mrf.mxu2  ;;  %v2951_v31 = vpop.f32.mrf.mxu1 }
 0x2f0   :  { %v3302_v10 = vadd.f32 %v3301_v44, %v2949_v56  ;;  %v2952_v56 = vadd.f32 %v2951_v31, %v8520_v5  ;;  %v13512_v44 = vld [vmem:[#allocation51_spill] sm:$0xff]  ;;  %v9373_v5 = vsel %vm2187_vm1, %v2127_v4, %v2128_v34  ;;  %v2442_v4 = vld [vmem:[%s12260_s1 + $0x430] sm:$0xff] }
 0x2f1   :  { %v3654_v37 = vpop.f32.mrf.mxu3  ;;  %5285 = vmatpush.msra.mxu0 %v2442_v4 }
 0x2f2   :  { %v3655_v30 = vadd.f32 %v3654_v37, %v3302_v10  ;;  %2998 = vmatmul.f32.gmra.mxu1 %v13498_v62  ;;  %v2426_v37 = vld [vmem:[%s12260_s1 + $0x3b0] sm:$0xff] }
 0x2f3   :  { %4932 = vmatpush.msra.mxu3 %v2426_v37  ;;  %v2129_v37 = vrot.slane %v13509_v53, 1 }
 0x2f4   :  { %v9354_v47 = vadd.f32 %v4007_v61, %v3655_v30  ;;  %3351 = vmatmul.f32.gmra.mxu2 %v9352_v28  ;;  %3704 = vmatmul.f32.gmra.mxu3 %v13512_v44  ;;  %v13513_v61 = vld [vmem:[#allocation47_spill] sm:$0xff]  ;;  %v2394_v30 = vld [vmem:[%s12260_s1 + $0x2b0] sm:$0xff] }
 0x2f5   :  { %v4010_v49 = vpop.f32.mrf.mxu0  ;;  %4057 = vmatmul.f32.gmra.mxu0 %v13513_v61  ;;  %13514 = vst [vmem:[#allocation47_spill] sm:$0xff] %v9373_v5  ;;  %4226 = vmatpush.msra.mxu1 %v2394_v30  ;;  %v13516_v44 = vld [vmem:[#allocation59_spill] sm:$0xff] }
 0x2f6   :  { %13511 = vst [vmem:[#allocation333_spill] sm:$0xff] %v9354_v47 }
 0x2f7   :  { %v3304_v10 = vpop.f32.mrf.mxu2  ;;  %v2954_v47 = vpop.f32.mrf.mxu1 }
 0x2f8   :  { %v3305_v1 = vadd.f32 %v3304_v10, %v2952_v56  ;;  %v2955_v10 = vadd.f32 %v2954_v47, %v8543_v57  ;;  %v2130_v47 = vrot.slane %v13513_v61, 1 }
 0x2f9   :  { %v3657_v54 = vpop.f32.mrf.mxu3 }
 0x2fa   :  { %v3658_v31 = vadd.f32 %v3657_v54, %v3305_v1  ;;  %3001 = vmatmul.f32.gmra.mxu1 %v13502_v11  ;;  %v13521_v11 = vld [vmem:[#allocation60_spill] sm:$0xff] }
 0x2fc   :  { %v9375_v50 = vadd.f32 %v4010_v49, %v3658_v31  ;;  %3354 = vmatmul.f32.gmra.mxu2 %v9373_v5  ;;  %3707 = vmatmul.f32.gmra.mxu3 %v13516_v44  ;;  %v13517_v49 = vld [vmem:[#allocation53_spill] sm:$0xff]  ;;  %v9388_v31 = vsel %vm2187_vm1, %v2128_v34, %v2129_v37 }
 0x2fd   :  { %v4013_v56 = vpop.f32.mrf.mxu0  ;;  %4060 = vmatmul.f32.gmra.mxu0 %v13517_v49  ;;  %13518 = vst [vmem:[#allocation53_spill] sm:$0xff] %v9388_v31 }
 0x2fe   :  { %13515 = vst [vmem:[#allocation334_spill] sm:$0xff] %v9375_v50 }
 0x2ff   :  { %v3307_v55 = vpop.f32.mrf.mxu2  ;;  %v2957_v1 = vpop.f32.mrf.mxu1 }
 0x300   :  { %v3308_v54 = vadd.f32 %v3307_v55, %v2955_v10  ;;  %v2958_v55 = vadd.f32 %v2957_v1, %v8563_v21  ;;  %v13520_v10 = vld [vmem:[#allocation66_spill] sm:$0xff]  ;;  %v2131_v1 = vrot.slane %v13517_v49, 1 }
 0x301   :  { %v3660_v30 = vpop.f32.mrf.mxu3 }
 0x302   :  { %v3661_v50 = vadd.f32 %v3660_v30, %v3308_v54  ;;  %3004 = vmatmul.f32.gmra.mxu1 %v13506_v19 }
 0x304   :  { %v9390_v5 = vadd.f32 %v4013_v56, %v3661_v50  ;;  %3357 = vmatmul.f32.gmra.mxu2 %v9388_v31  ;;  %3710 = vmatmul.f32.gmra.mxu3 %v13520_v10  ;;  %v9400_v50 = vsel %vm2187_vm1, %v2129_v37, %v2130_v47  ;;  %v13525_v10 = vld [vmem:[#allocation68_spill] sm:$0xff] }
 0x305   :  { %v4016_v57 = vpop.f32.mrf.mxu0  ;;  %4063 = vmatmul.f32.gmra.mxu0 %v13521_v11  ;;  %13522 = vst [vmem:[#allocation60_spill] sm:$0xff] %v9400_v50 }
 0x306   :  { %13519 = vst [vmem:[#allocation335_spill] sm:$0xff] %v9390_v5 }
 0x307   :  { %v3310_v4 = vpop.f32.mrf.mxu2  ;;  %v2960_v34 = vpop.f32.mrf.mxu1 }
 0x308   :  { %v3311_v44 = vadd.f32 %v3310_v4, %v2958_v55  ;;  %v2961_v30 = vadd.f32 %v2960_v34, %v8580_v2  ;;  %v13524_v55 = vld [vmem:[#allocation75_spill] sm:$0xff]  ;;  %v2132_v34 = vrot.slane %v13521_v11, 1 }
 0x309   :  { %v3663_v28 = vpop.f32.mrf.mxu3 }
 0x30a   :  { %v3664_v56 = vadd.f32 %v3663_v28, %v3311_v44  ;;  %3007 = vmatmul.f32.gmra.mxu1 %v13509_v53  ;;  %v9412_v28 = vsel %vm2187_vm1, %v2130_v47, %v2131_v1 }
 0x30b   :  { %13526 = vst [vmem:[#allocation337_spill] sm:$0xff] %v9412_v28 }
 0x30c   :  { %v9402_v54 = vadd.f32 %v4016_v57, %v3664_v56  ;;  %3360 = vmatmul.f32.gmra.mxu2 %v9400_v50  ;;  %3713 = vmatmul.f32.gmra.mxu3 %v13524_v55  ;;  %v13529_v55 = vld [vmem:[#allocation76_spill] sm:$0xff] }
 0x30d   :  { %v4019_v21 = vpop.f32.mrf.mxu0  ;;  %4066 = vmatmul.f32.gmra.mxu0 %v13525_v10 }
 0x30e   :  { %13523 = vst [vmem:[#allocation336_spill] sm:$0xff] %v9402_v54 }
 0x30f   :  { %v3313_v4 = vpop.f32.mrf.mxu2  ;;  %v2963_v37 = vpop.f32.mrf.mxu1 }
 0x310   :  { %v3314_v5 = vadd.f32 %v3313_v4, %v2961_v30  ;;  %v2964_v56 = vadd.f32 %v2963_v37, %v8597_v35  ;;  %v13528_v30 = vld [vmem:[#allocation82_spill] sm:$0xff]  ;;  %v2133_v37 = vrot.slane %v13525_v10, 1 }
 0x311   :  { %v3666_v31 = vpop.f32.mrf.mxu3 }
 0x312   :  { %v3667_v44 = vadd.f32 %v3666_v31, %v3314_v5  ;;  %3010 = vmatmul.f32.gmra.mxu1 %v13513_v61  ;;  %v9424_v5 = vsel %vm2187_vm1, %v2131_v1, %v2132_v34 }
 0x313   :  { %13530 = vst [vmem:[#allocation339_spill] sm:$0xff] %v9424_v5 }
 0x314   :  { %v9414_v57 = vadd.f32 %v4019_v21, %v3667_v44  ;;  %3363 = vmatmul.f32.gmra.mxu2 %v9412_v28  ;;  %3716 = vmatmul.f32.gmra.mxu3 %v13528_v30  ;;  %v13533_v30 = vld [vmem:[#allocation84_spill] sm:$0xff] }
 0x315   :  { %v4022_v2 = vpop.f32.mrf.mxu0  ;;  %4069 = vmatmul.f32.gmra.mxu0 %v13529_v55 }
 0x316   :  { %13527 = vst [vmem:[#allocation338_spill] sm:$0xff] %v9414_v57 }
 0x317   :  { %v3316_v4 = vpop.f32.mrf.mxu2  ;;  %v2966_v47 = vpop.f32.mrf.mxu1 }
 0x318   :  { %v3317_v54 = vadd.f32 %v3316_v4, %v2964_v56  ;;  %v2967_v44 = vadd.f32 %v2966_v47, %v8614_v59  ;;  %v13532_v56 = vld [vmem:[#allocation91_spill] sm:$0xff]  ;;  %v2134_v47 = vrot.slane %v13529_v55, 1 }
 0x319   :  { %v3669_v50 = vpop.f32.mrf.mxu3 }
 0x31a   :  { %v3670_v31 = vadd.f32 %v3669_v50, %v3317_v54  ;;  %3013 = vmatmul.f32.gmra.mxu1 %v13517_v49  ;;  %v9436_v50 = vsel %vm2187_vm1, %v2132_v34, %v2133_v37 }
 0x31c   :  { %v9426_v21 = vadd.f32 %v4022_v2, %v3670_v31  ;;  %3366 = vmatmul.f32.gmra.mxu2 %v9424_v5  ;;  %3719 = vmatmul.f32.gmra.mxu3 %v13532_v56  ;;  %v13536_v56 = vld [vmem:[#allocation92_spill] sm:$0xff] }
 0x31d   :  { %v4025_v35 = vpop.f32.mrf.mxu0  ;;  %4072 = vmatmul.f32.gmra.mxu0 %v13533_v30 }
 0x31e   :  { %13531 = vst [vmem:[#allocation340_spill] sm:$0xff] %v9426_v21 }
 0x31f   :  { %v3319_v4 = vpop.f32.mrf.mxu2  ;;  %v2969_v1 = vpop.f32.mrf.mxu1 }
 0x320   :  { %v3320_v57 = vadd.f32 %v3319_v4, %v2967_v44  ;;  %v2970_v31 = vadd.f32 %v2969_v1, %v8631_v52  ;;  %v13535_v44 = vld [vmem:[#allocation98_spill] sm:$0xff]  ;;  %v2409_v52 = vld [vmem:[%s12260_s1 + $0x328] sm:$0xff] }
 0x321   :  { %v3672_v28 = vpop.f32.mrf.mxu3  ;;  %4580 = vmatpush.msra.mxu2 %v2409_v52 }
 0x322   :  { %v3673_v54 = vadd.f32 %v3672_v28, %v3320_v57  ;;  %3016 = vmatmul.f32.gmra.mxu1 %v13521_v11  ;;  %v9448_v28 = vsel %vm2187_vm1, %v2133_v37, %v2134_v47 }
 0x323   :  { %13537 = vst [vmem:[#allocation342_spill] sm:$0xff] %v9448_v28 }
 0x324   :  { %v9438_v2 = vadd.f32 %v4025_v35, %v3673_v54  ;;  %3369 = vmatmul.f32.gmra.mxu2 %v9436_v50  ;;  %3722 = vmatmul.f32.gmra.mxu3 %v13535_v44  ;;  %v2135_v54 = vrot.slane %v13533_v30, 1 }
 0x325   :  { %v4028_v59 = vpop.f32.mrf.mxu0  ;;  %4075 = vmatmul.f32.gmra.mxu0 %v13536_v56 }
 0x326   :  { %13534 = vst [vmem:[#allocation341_spill] sm:$0xff] %v9438_v2 }
 0x327   :  { %v3322_v4 = vpop.f32.mrf.mxu2  ;;  %v2972_v34 = vpop.f32.mrf.mxu1 }
 0x328   :  { %v3323_v21 = vadd.f32 %v3322_v4, %v2970_v31  ;;  %v2973_v31 = vadd.f32 %v2972_v34, %v8648_v26  ;;  %v13539_v4 = vld [vmem:[#allocation107_spill] sm:$0xff]  ;;  %v9469_v26 = vsel %vm2187_vm1, %v2134_v47, %v2135_v54 }
 0x329   :  { %v3675_v5 = vpop.f32.mrf.mxu3  ;;  %13541 = vst [vmem:[#allocation344_spill] sm:$0xff] %v9469_v26  ;;  %v2441_v47 = vld [vmem:[%s12260_s1 + $0x428] sm:$0xff] }
 0x32a   :  { %v3676_v57 = vadd.f32 %v3675_v5, %v3323_v21  ;;  %3019 = vmatmul.f32.gmra.mxu1 %v13525_v10  ;;  %v2425_v5 = vld [vmem:[%s12260_s1 + $0x3a8] sm:$0xff]  ;;  %5286 = vmatpush.msra.mxu0 %v2441_v47 }
 0x32b   :  { %4933 = vmatpush.msra.mxu3 %v2425_v5  ;;  %v2136_v5 = vrot.slane %v13536_v56, 1 }
 0x32c   :  { %v9450_v35 = vadd.f32 %v4028_v59, %v3676_v57  ;;  %3372 = vmatmul.f32.gmra.mxu2 %v9448_v28  ;;  %3725 = vmatmul.f32.gmra.mxu3 %v13539_v4  ;;  %v13540_v59 = vld [vmem:[#allocation100_spill] sm:$0xff]  ;;  %v2393_v57 = vld [vmem:[%s12260_s1 + $0x2a8] sm:$0xff]  ;;  %v13543_v4 = vld [vmem:[#allocation114_spill] sm:$0xff] }
 0x32d   :  { %v4031_v1 = vpop.f32.mrf.mxu0  ;;  %4078 = vmatmul.f32.gmra.mxu0 %v13540_v59  ;;  %4227 = vmatpush.msra.mxu1 %v2393_v57 }
 0x32e   :  { %13538 = vst [vmem:[#allocation343_spill] sm:$0xff] %v9450_v35 }
 0x32f   :  { %v3325_v21 = vpop.f32.mrf.mxu2  ;;  %v2975_v35 = vpop.f32.mrf.mxu1 }
 0x330   :  { %v3326_v37 = vadd.f32 %v3325_v21, %v2973_v31  ;;  %v2976_v21 = vadd.f32 %v2975_v35, %v8674_v36  ;;  %v2137_v35 = vrot.slane %v13540_v59, 1 }
 0x331   :  { %v3678_v2 = vpop.f32.mrf.mxu3 }
 0x332   :  { %v3679_v34 = vadd.f32 %v3678_v2, %v3326_v37  ;;  %3022 = vmatmul.f32.gmra.mxu1 %v13529_v55  ;;  %v13548_v55 = vld [vmem:[#allocation116_spill] sm:$0xff] }
 0x334   :  { %v9471_v52 = vadd.f32 %v4031_v1, %v3679_v34  ;;  %3375 = vmatmul.f32.gmra.mxu2 %v9469_v26  ;;  %3728 = vmatmul.f32.gmra.mxu3 %v13543_v4  ;;  %v13544_v1 = vld [vmem:[#allocation108_spill] sm:$0xff]  ;;  %v9484_v34 = vsel %vm2187_vm1, %v2135_v54, %v2136_v5 }
 0x335   :  { %v4034_v31 = vpop.f32.mrf.mxu0  ;;  %4081 = vmatmul.f32.gmra.mxu0 %v13544_v1  ;;  %13545 = vst [vmem:[#allocation346_spill] sm:$0xff] %v9484_v34 }
 0x336   :  { %13542 = vst [vmem:[#allocation345_spill] sm:$0xff] %v9471_v52 }
 0x337   :  { %v3328_v44 = vpop.f32.mrf.mxu2  ;;  %v2978_v37 = vpop.f32.mrf.mxu1 }
 0x338   :  { %v3329_v2 = vadd.f32 %v3328_v44, %v2976_v21  ;;  %v2979_v44 = vadd.f32 %v2978_v37, %v8694_v45  ;;  %v13547_v21 = vld [vmem:[#allocation124_spill] sm:$0xff]  ;;  %v2138_v37 = vrot.slane %v13544_v1, 1 }
 0x339   :  { %v3681_v57 = vpop.f32.mrf.mxu3 }
 0x33a   :  { %v3682_v52 = vadd.f32 %v3681_v57, %v3329_v2  ;;  %3025 = vmatmul.f32.gmra.mxu1 %v13533_v30  ;;  %v13551_v57 = vld [vmem:[#allocation284_spill] sm:$0xff] }
 0x33c   :  { %v9486_v26 = vadd.f32 %v4034_v31, %v3682_v52  ;;  %3378 = vmatmul.f32.gmra.mxu2 %v9484_v34  ;;  %3731 = vmatmul.f32.gmra.mxu3 %v13547_v21  ;;  %v9496_v52 = vsel %vm2187_vm1, %v2136_v5, %v2137_v35  ;;  %v13553_v34 = vld [vmem:[#allocation125_spill] sm:$0xff] }
 0x33d   :  { %v4037_v36 = vpop.f32.mrf.mxu0  ;;  %4084 = vmatmul.f32.gmra.mxu0 %v13548_v55  ;;  %13549 = vst [vmem:[#allocation348_spill] sm:$0xff] %v9496_v52 }
 0x33e   :  { %13546 = vst [vmem:[#allocation347_spill] sm:$0xff] %v9486_v26 }
 0x33f   :  { %v3331_v47 = vpop.f32.mrf.mxu2  ;;  %v2981_v54 = vpop.f32.mrf.mxu1 }
 0x340   :  { %v3332_v4 = vadd.f32 %v3331_v47, %v2979_v44  ;;  %v2982_v44 = vadd.f32 %v2981_v54, %v13551_v57  ;;  %v13552_v47 = vld [vmem:[#allocation134_spill] sm:$0xff]  ;;  %v13556_v57 = vld [vmem:[#allocation288_spill] sm:$0xff] }
 0x341   :  { %v3684_v28 = vpop.f32.mrf.mxu3 }
 0x342   :  { %v3685_v31 = vadd.f32 %v3684_v28, %v3332_v4  ;;  %3028 = vmatmul.f32.gmra.mxu1 %v13536_v56  ;;  %v9508_v28 = vsel %vm2187_vm1, %v2137_v35, %v2138_v37 }
 0x343   :  { %13554 = vst [vmem:[#allocation284_spill] sm:$0xff] %v9508_v28 }
 0x344   :  { %v9498_v2 = vadd.f32 %v4037_v36, %v3685_v31  ;;  %3381 = vmatmul.f32.gmra.mxu2 %v9496_v52  ;;  %3734 = vmatmul.f32.gmra.mxu3 %v13552_v47  ;;  %v2139_v31 = vrot.slane %v13548_v55, 1  ;;  %v13558_v52 = vld [vmem:[#allocation136_spill] sm:$0xff] }
 0x345   :  { %v4040_v45 = vpop.f32.mrf.mxu0  ;;  %4087 = vmatmul.f32.gmra.mxu0 %v13553_v34 }
 0x346   :  { %13550 = vst [vmem:[#allocation349_spill] sm:$0xff] %v9498_v2 }
 0x347   :  { %v3334_v26 = vpop.f32.mrf.mxu2  ;;  %v2984_v5 = vpop.f32.mrf.mxu1 }
 0x348   :  { %v3335_v21 = vadd.f32 %v3334_v26, %v2982_v44  ;;  %v2985_v26 = vadd.f32 %v2984_v5, %v13556_v57  ;;  %v13557_v44 = vld [vmem:[#allocation146_spill] sm:$0xff]  ;;  %v13561_v57 = vld [vmem:[#allocation292_spill] sm:$0xff] }
 0x349   :  { %v3687_v30 = vpop.f32.mrf.mxu3 }
 0x34a   :  { %v3688_v4 = vadd.f32 %v3687_v30, %v3335_v21  ;;  %3031 = vmatmul.f32.gmra.mxu1 %v13540_v59  ;;  %v9520_v30 = vsel %vm2187_vm1, %v2138_v37, %v2139_v31 }
 0x34b   :  { %13559 = vst [vmem:[#allocation288_spill] sm:$0xff] %v9520_v30 }
 0x34c   :  { %v9510_v36 = vadd.f32 %v4040_v45, %v3688_v4  ;;  %3384 = vmatmul.f32.gmra.mxu2 %v9508_v28  ;;  %3737 = vmatmul.f32.gmra.mxu3 %v13557_v44  ;;  %v2140_v4 = vrot.slane %v13553_v34, 1  ;;  %v13563_v28 = vld [vmem:[#allocation147_spill] sm:$0xff] }
 0x34d   :  { %v4043_v54 = vpop.f32.mrf.mxu0  ;;  %4090 = vmatmul.f32.gmra.mxu0 %v13558_v52 }
 0x34e   :  { %13555 = vst [vmem:[#allocation350_spill] sm:$0xff] %v9510_v36 }
 0x34f   :  { %v3337_v2 = vpop.f32.mrf.mxu2  ;;  %v2987_v35 = vpop.f32.mrf.mxu1 }
 0x350   :  { %v3338_v47 = vadd.f32 %v3337_v2, %v2985_v26  ;;  %v2988_v2 = vadd.f32 %v2987_v35, %v13561_v57  ;;  %v13562_v26 = vld [vmem:[#allocation157_spill] sm:$0xff]  ;;  %v13566_v57 = vld [vmem:[#allocation130_spill] sm:$0xff] }
 0x351   :  { %v3690_v56 = vpop.f32.mrf.mxu3 }
 0x352   :  { %v3691_v21 = vadd.f32 %v3690_v56, %v3338_v47  ;;  %3034 = vmatmul.f32.gmra.mxu1 %v13544_v1  ;;  %v9532_v56 = vsel %vm2187_vm1, %v2139_v31, %v2140_v4 }
 0x353   :  { %13564 = vst [vmem:[#allocation292_spill] sm:$0xff] %v9532_v56 }
 0x354   :  { %v9522_v45 = vadd.f32 %v4043_v54, %v3691_v21  ;;  %3387 = vmatmul.f32.gmra.mxu2 %v9520_v30  ;;  %3740 = vmatmul.f32.gmra.mxu3 %v13562_v26  ;;  %v2141_v21 = vrot.slane %v13558_v52, 1  ;;  %v13568_v30 = vld [vmem:[#allocation159_spill] sm:$0xff] }
 0x355   :  { %v4046_v5 = vpop.f32.mrf.mxu0  ;;  %4093 = vmatmul.f32.gmra.mxu0 %v13563_v28 }
 0x356   :  { %13560 = vst [vmem:[#allocation351_spill] sm:$0xff] %v9522_v45 }
 0x357   :  { %v3340_v36 = vpop.f32.mrf.mxu2  ;;  %v2990_v37 = vpop.f32.mrf.mxu1 }
 0x358   :  { %v3341_v44 = vadd.f32 %v3340_v36, %v2988_v2  ;;  %v2991_v36 = vadd.f32 %v2990_v37, %v13566_v57  ;;  %v13567_v2 = vld [vmem:[#allocation169_spill] sm:$0xff]  ;;  %v2408_v37 = vld [vmem:[%s12260_s1 + $0x320] sm:$0xff] }
 0x359   :  { %v3693_v59 = vpop.f32.mrf.mxu3  ;;  %4581 = vmatpush.msra.mxu2 %v2408_v37  ;;  %v13571_v57 = vld [vmem:[#allocation141_spill] sm:$0xff] }
 0x35a   :  { %v3694_v47 = vadd.f32 %v3693_v59, %v3341_v44  ;;  %3037 = vmatmul.f32.gmra.mxu1 %v13548_v55  ;;  %v9544_v59 = vsel %vm2187_vm1, %v2140_v4, %v2141_v21 }
 0x35b   :  { %13569 = vst [vmem:[#allocation130_spill] sm:$0xff] %v9544_v59 }
 0x35c   :  { %v9534_v54 = vadd.f32 %v4046_v5, %v3694_v47  ;;  %3390 = vmatmul.f32.gmra.mxu2 %v9532_v56  ;;  %3743 = vmatmul.f32.gmra.mxu3 %v13567_v2  ;;  %v2142_v47 = vrot.slane %v13563_v28, 1  ;;  %v13583_v56 = vld [vmem:[#allocation194_spill] sm:$0xff] }
 0x35d   :  { %v4049_v35 = vpop.f32.mrf.mxu0  ;;  %4096 = vmatmul.f32.gmra.mxu0 %v13568_v30 }
 0x35e   :  { %13565 = vst [vmem:[#allocation352_spill] sm:$0xff] %v9534_v54  ;;  %v13572_v54 = vld [vmem:[#allocation180_spill] sm:$0xff] }
 0x35f   :  { %v3343_v45 = vpop.f32.mrf.mxu2  ;;  %v2993_v31 = vpop.f32.mrf.mxu1 }
 0x360   :  { %v3344_v26 = vadd.f32 %v3343_v45, %v2991_v36  ;;  %v2994_v36 = vadd.f32 %v2993_v31, %v13571_v57  ;;  %v9565_v31 = vsel %vm2187_vm1, %v2141_v21, %v2142_v47  ;;  %v2440_v21 = vld [vmem:[%s12260_s1 + $0x420] sm:$0xff] }
 0x361   :  { %v3696_v1 = vpop.f32.mrf.mxu3  ;;  %13574 = vst [vmem:[#allocation141_spill] sm:$0xff] %v9565_v31  ;;  %5287 = vmatpush.msra.mxu0 %v2440_v21  ;;  %v13581_v21 = vld [vmem:[#allocation164_spill] sm:$0xff] }
 0x362   :  { %v3697_v44 = vadd.f32 %v3696_v1, %v3344_v26  ;;  %3040 = vmatmul.f32.gmra.mxu1 %v13553_v34  ;;  %v2424_v1 = vld [vmem:[%s12260_s1 + $0x3a0] sm:$0xff] }
 0x363   :  { %4934 = vmatpush.msra.mxu3 %v2424_v1  ;;  %v2143_v1 = vrot.slane %v13568_v30, 1 }
 0x364   :  { %v9546_v5 = vadd.f32 %v4049_v35, %v3697_v44  ;;  %3393 = vmatmul.f32.gmra.mxu2 %v9544_v59  ;;  %3746 = vmatmul.f32.gmra.mxu3 %v13572_v54  ;;  %v13573_v35 = vld [vmem:[#allocation170_spill] sm:$0xff]  ;;  %v13577_v59 = vld [vmem:[#allocation193_spill] sm:$0xff] }
 0x365   :  { %v4052_v45 = vpop.f32.mrf.mxu0  ;;  %4099 = vmatmul.f32.gmra.mxu0 %v13573_v35  ;;  %v2392_v44 = vld [vmem:[%s12260_s1 + $0x2a0] sm:$0xff] }
 0x366   :  { %13570 = vst [vmem:[#allocation353_spill] sm:$0xff] %v9546_v5  ;;  %4228 = vmatpush.msra.mxu1 %v2392_v44 }
 0x367   :  { %v3346_v4 = vpop.f32.mrf.mxu2  ;;  %v2996_v5 = vpop.f32.mrf.mxu1 }
 0x368   :  { %v3347_v26 = vadd.f32 %v3346_v4, %v2994_v36  ;;  %v13576_v4 = vld [vmem:[#allocation153_spill] sm:$0xff] }
 0x369   :  { %v3699_v2 = vpop.f32.mrf.mxu3  ;;  %v2997_v54 = vadd.f32 %v2996_v5, %v13576_v4  ;;  %v2144_v4 = vrot.slane %v13573_v35, 1 }
 0x36a   :  { %v3700_v37 = vadd.f32 %v3699_v2, %v3347_v26  ;;  %3043 = vmatmul.f32.gmra.mxu1 %v13558_v52 }
 0x36c   :  { %v9567_v57 = vadd.f32 %v4052_v45, %v3700_v37  ;;  %3396 = vmatmul.f32.gmra.mxu2 %v9565_v31  ;;  %3749 = vmatmul.f32.gmra.mxu3 %v13577_v59  ;;  %v13578_v45 = vld [vmem:[#allocation182_spill] sm:$0xff]  ;;  %v9580_v37 = vsel %vm2187_vm1, %v2142_v47, %v2143_v1 }
 0x36d   :  { %v4055_v36 = vpop.f32.mrf.mxu0  ;;  %4102 = vmatmul.f32.gmra.mxu0 %v13578_v45  ;;  %13579 = vst [vmem:[#allocation153_spill] sm:$0xff] %v9580_v37 }
 0x36e   :  { %13575 = vst [vmem:[#allocation354_spill] sm:$0xff] %v9567_v57 }
 0x36f   :  { %v3349_v34 = vpop.f32.mrf.mxu2  ;;  %v2999_v26 = vpop.f32.mrf.mxu1 }
 0x370   :  { %v3350_v2 = vadd.f32 %v3349_v34, %v2997_v54  ;;  %v3000_v34 = vadd.f32 %v2999_v26, %v13581_v21  ;;  %v13582_v54 = vld [vmem:[#allocation204_spill] sm:$0xff] }
 0x371   :  { %v3702_v44 = vpop.f32.mrf.mxu3  ;;  %v13586_v21 = vld [vmem:[#allocation176_spill] sm:$0xff] }
 0x372   :  { %v3703_v57 = vadd.f32 %v3702_v44, %v3350_v2  ;;  %3046 = vmatmul.f32.gmra.mxu1 %v13563_v28  ;;  %v2145_v44 = vrot.slane %v13578_v45, 1 }
 0x374   :  { %v9582_v31 = vadd.f32 %v4055_v36, %v3703_v57  ;;  %3399 = vmatmul.f32.gmra.mxu2 %v9580_v37  ;;  %3752 = vmatmul.f32.gmra.mxu3 %v13582_v54  ;;  %v9592_v57 = vsel %vm2187_vm1, %v2143_v1, %v2144_v4  ;;  %v13588_v37 = vld [vmem:[#allocation206_spill] sm:$0xff] }
 0x375   :  { %v4058_v5 = vpop.f32.mrf.mxu0  ;;  %4105 = vmatmul.f32.gmra.mxu0 %v13583_v56  ;;  %13584 = vst [vmem:[#allocation164_spill] sm:$0xff] %v9592_v57 }
 0x376   :  { %13580 = vst [vmem:[#allocation355_spill] sm:$0xff] %v9582_v31 }
 0x377   :  { %v3352_v59 = vpop.f32.mrf.mxu2  ;;  %v3002_v47 = vpop.f32.mrf.mxu1 }
 0x378   :  { %v3353_v52 = vadd.f32 %v3352_v59, %v3000_v34  ;;  %v3003_v59 = vadd.f32 %v3002_v47, %v13586_v21  ;;  %v13587_v34 = vld [vmem:[#allocation217_spill] sm:$0xff]  ;;  %v13591_v21 = vld [vmem:[#allocation188_spill] sm:$0xff] }
 0x379   :  { %v3705_v55 = vpop.f32.mrf.mxu3 }
 0x37a   :  { %v3706_v36 = vadd.f32 %v3705_v55, %v3353_v52  ;;  %3049 = vmatmul.f32.gmra.mxu1 %v13568_v30  ;;  %v9604_v55 = vsel %vm2187_vm1, %v2144_v4, %v2145_v44 }
 0x37b   :  { %13589 = vst [vmem:[#allocation176_spill] sm:$0xff] %v9604_v55 }
 0x37c   :  { %v9594_v2 = vadd.f32 %v4058_v5, %v3706_v36  ;;  %3402 = vmatmul.f32.gmra.mxu2 %v9592_v57  ;;  %3755 = vmatmul.f32.gmra.mxu3 %v13587_v34  ;;  %v2146_v36 = vrot.slane %v13583_v56, 1  ;;  %v13593_v57 = vld [vmem:[#allocation218_spill] sm:$0xff] }
 0x37d   :  { %v4061_v26 = vpop.f32.mrf.mxu0  ;;  %4108 = vmatmul.f32.gmra.mxu0 %v13588_v37 }
 0x37e   :  { %13585 = vst [vmem:[#allocation356_spill] sm:$0xff] %v9594_v2 }
 0x37f   :  { %v3355_v31 = vpop.f32.mrf.mxu2  ;;  %v3005_v1 = vpop.f32.mrf.mxu1 }
 0x380   :  { %v3356_v54 = vadd.f32 %v3355_v31, %v3003_v59  ;;  %v3006_v31 = vadd.f32 %v3005_v1, %v13591_v21  ;;  %v13592_v59 = vld [vmem:[#allocation228_spill] sm:$0xff] }
 0x381   :  { %v3708_v28 = vpop.f32.mrf.mxu3  ;;  %v13596_v21 = vld [vmem:[#allocation200_spill] sm:$0xff] }
 0x382   :  { %v3709_v52 = vadd.f32 %v3708_v28, %v3356_v54  ;;  %3052 = vmatmul.f32.gmra.mxu1 %v13573_v35  ;;  %v9616_v28 = vsel %vm2187_vm1, %v2145_v44, %v2146_v36 }
 0x383   :  { %13594 = vst [vmem:[#allocation188_spill] sm:$0xff] %v9616_v28 }
 0x384   :  { %v9606_v5 = vadd.f32 %v4061_v26, %v3709_v52  ;;  %3405 = vmatmul.f32.gmra.mxu2 %v9604_v55  ;;  %3758 = vmatmul.f32.gmra.mxu3 %v13592_v59  ;;  %v2147_v52 = vrot.slane %v13588_v37, 1  ;;  %v13598_v55 = vld [vmem:[#allocation230_spill] sm:$0xff] }
 0x385   :  { %v4064_v47 = vpop.f32.mrf.mxu0  ;;  %4111 = vmatmul.f32.gmra.mxu0 %v13593_v57 }
 0x386   :  { %13590 = vst [vmem:[#allocation357_spill] sm:$0xff] %v9606_v5 }
 0x387   :  { %v3358_v2 = vpop.f32.mrf.mxu2  ;;  %v3008_v4 = vpop.f32.mrf.mxu1 }
 0x388   :  { %v3359_v34 = vadd.f32 %v3358_v2, %v3006_v31  ;;  %v3009_v2 = vadd.f32 %v3008_v4, %v13596_v21  ;;  %v13597_v31 = vld [vmem:[#allocation238_spill] sm:$0xff]  ;;  %v13601_v21 = vld [vmem:[#allocation212_spill] sm:$0xff] }
 0x389   :  { %v3711_v30 = vpop.f32.mrf.mxu3 }
 0x38a   :  { %v3712_v54 = vadd.f32 %v3711_v30, %v3359_v34  ;;  %3055 = vmatmul.f32.gmra.mxu1 %v13578_v45  ;;  %v9628_v30 = vsel %vm2187_vm1, %v2146_v36, %v2147_v52 }
 0x38b   :  { %13599 = vst [vmem:[#allocation200_spill] sm:$0xff] %v9628_v30 }
 0x38c   :  { %v9618_v26 = vadd.f32 %v4064_v47, %v3712_v54  ;;  %3408 = vmatmul.f32.gmra.mxu2 %v9616_v28  ;;  %3761 = vmatmul.f32.gmra.mxu3 %v13597_v31  ;;  %v2148_v54 = vrot.slane %v13593_v57, 1  ;;  %v13603_v28 = vld [vmem:[#allocation4_spill] sm:$0xff] }
 0x38d   :  { %v4067_v1 = vpop.f32.mrf.mxu0  ;;  %4114 = vmatmul.f32.gmra.mxu0 %v13598_v55 }
 0x38e   :  { %13595 = vst [vmem:[#allocation358_spill] sm:$0xff] %v9618_v26 }
 0x38f   :  { %v3361_v5 = vpop.f32.mrf.mxu2  ;;  %v3011_v44 = vpop.f32.mrf.mxu1 }
 0x390   :  { %v3362_v59 = vadd.f32 %v3361_v5, %v3009_v2  ;;  %v3012_v5 = vadd.f32 %v3011_v44, %v13601_v21  ;;  %v13602_v2 = vld [vmem:[#allocation245_spill] sm:$0xff]  ;;  %v13606_v21 = vld [vmem:[#allocation224_spill] sm:$0xff] }
 0x391   :  { %v3714_v35 = vpop.f32.mrf.mxu3  ;;  %v2407_v44 = vld [vmem:[%s12260_s1 + $0x318] sm:$0xff] }
 0x392   :  { %v3715_v34 = vadd.f32 %v3714_v35, %v3362_v59  ;;  %3058 = vmatmul.f32.gmra.mxu1 %v13583_v56  ;;  %v9640_v35 = vsel %vm2187_vm1, %v2147_v52, %v2148_v54  ;;  %4582 = vmatpush.msra.mxu2 %v2407_v44 }
 0x393   :  { %13604 = vst [vmem:[#allocation212_spill] sm:$0xff] %v9640_v35 }
 0x394   :  { %v9630_v47 = vadd.f32 %v4067_v1, %v3715_v34  ;;  %3411 = vmatmul.f32.gmra.mxu2 %v9628_v30  ;;  %3764 = vmatmul.f32.gmra.mxu3 %v13602_v2  ;;  %v2149_v34 = vrot.slane %v13598_v55, 1  ;;  %v13618_v30 = vld [vmem:[#allocation19_spill] sm:$0xff] }
 0x395   :  { %v4070_v4 = vpop.f32.mrf.mxu0  ;;  %4117 = vmatmul.f32.gmra.mxu0 %v13603_v28 }
 0x396   :  { %13600 = vst [vmem:[#allocation359_spill] sm:$0xff] %v9630_v47  ;;  %v13607_v47 = vld [vmem:[#allocation12_spill] sm:$0xff] }
 0x397   :  { %v3364_v26 = vpop.f32.mrf.mxu2  ;;  %v3014_v36 = vpop.f32.mrf.mxu1 }
 0x398   :  { %v3365_v31 = vadd.f32 %v3364_v26, %v3012_v5  ;;  %v3015_v5 = vadd.f32 %v3014_v36, %v13606_v21  ;;  %v9661_v36 = vsel %vm2187_vm1, %v2148_v54, %v2149_v34  ;;  %v2439_v54 = vld [vmem:[%s12260_s1 + $0x418] sm:$0xff] }
 0x399   :  { %v3717_v45 = vpop.f32.mrf.mxu3  ;;  %13609 = vst [vmem:[#allocation224_spill] sm:$0xff] %v9661_v36  ;;  %5288 = vmatpush.msra.mxu0 %v2439_v54  ;;  %v13616_v54 = vld [vmem:[#allocation242_spill] sm:$0xff] }
 0x39a   :  { %v3718_v59 = vadd.f32 %v3717_v45, %v3365_v31  ;;  %3061 = vmatmul.f32.gmra.mxu1 %v13588_v37  ;;  %v2423_v45 = vld [vmem:[%s12260_s1 + $0x398] sm:$0xff] }
 0x39b   :  { %4935 = vmatpush.msra.mxu3 %v2423_v45  ;;  %v2150_v45 = vrot.slane %v13603_v28, 1 }
 0x39c   :  { %v9642_v1 = vadd.f32 %v4070_v4, %v3718_v59  ;;  %3414 = vmatmul.f32.gmra.mxu2 %v9640_v35  ;;  %3767 = vmatmul.f32.gmra.mxu3 %v13607_v47  ;;  %v13608_v4 = vld [vmem:[#allocation5_spill] sm:$0xff]  ;;  %v13612_v35 = vld [vmem:[#allocation18_spill] sm:$0xff] }
 0x39d   :  { %v4073_v26 = vpop.f32.mrf.mxu0  ;;  %4120 = vmatmul.f32.gmra.mxu0 %v13608_v4  ;;  %v2391_v59 = vld [vmem:[%s12260_s1 + $0x298] sm:$0xff] }
 0x39e   :  { %13605 = vst [vmem:[#allocation360_spill] sm:$0xff] %v9642_v1  ;;  %4229 = vmatpush.msra.mxu1 %v2391_v59 }
 0x39f   :  { %v3367_v52 = vpop.f32.mrf.mxu2  ;;  %v3017_v1 = vpop.f32.mrf.mxu1 }
 0x3a0   :  { %v3368_v31 = vadd.f32 %v3367_v52, %v3015_v5  ;;  %v13611_v52 = vld [vmem:[#allocation234_spill] sm:$0xff] }
 0x3a1   :  { %v3720_v2 = vpop.f32.mrf.mxu3  ;;  %v3018_v47 = vadd.f32 %v3017_v1, %v13611_v52  ;;  %v2151_v52 = vrot.slane %v13608_v4, 1 }
 0x3a2   :  { %v3721_v44 = vadd.f32 %v3720_v2, %v3368_v31  ;;  %3064 = vmatmul.f32.gmra.mxu1 %v13593_v57 }
 0x3a4   :  { %v9663_v21 = vadd.f32 %v4073_v26, %v3721_v44  ;;  %3417 = vmatmul.f32.gmra.mxu2 %v9661_v36  ;;  %3770 = vmatmul.f32.gmra.mxu3 %v13612_v35  ;;  %v13613_v26 = vld [vmem:[#allocation13_spill] sm:$0xff]  ;;  %v9676_v44 = vsel %vm2187_vm1, %v2149_v34, %v2150_v45 }
 0x3a5   :  { %v4076_v5 = vpop.f32.mrf.mxu0  ;;  %4123 = vmatmul.f32.gmra.mxu0 %v13613_v26  ;;  %13614 = vst [vmem:[#allocation234_spill] sm:$0xff] %v9676_v44 }
 0x3a6   :  { %13610 = vst [vmem:[#allocation361_spill] sm:$0xff] %v9663_v21 }
 0x3a7   :  { %v3370_v37 = vpop.f32.mrf.mxu2  ;;  %v3020_v31 = vpop.f32.mrf.mxu1 }
 0x3a8   :  { %v3371_v2 = vadd.f32 %v3370_v37, %v3018_v47  ;;  %v3021_v37 = vadd.f32 %v3020_v31, %v13616_v54  ;;  %v13617_v47 = vld [vmem:[#allocation24_spill] sm:$0xff] }
 0x3a9   :  { %v3723_v59 = vpop.f32.mrf.mxu3  ;;  %v13621_v54 = vld [vmem:[#allocation248_spill] sm:$0xff] }
 0x3aa   :  { %v3724_v21 = vadd.f32 %v3723_v59, %v3371_v2  ;;  %3067 = vmatmul.f32.gmra.mxu1 %v13598_v55  ;;  %v2152_v59 = vrot.slane %v13613_v26, 1 }
 0x3ac   :  { %v9678_v36 = vadd.f32 %v4076_v5, %v3724_v21  ;;  %3420 = vmatmul.f32.gmra.mxu2 %v9676_v44  ;;  %3773 = vmatmul.f32.gmra.mxu3 %v13617_v47  ;;  %v9688_v21 = vsel %vm2187_vm1, %v2150_v45, %v2151_v52  ;;  %v13623_v44 = vld [vmem:[#allocation25_spill] sm:$0xff] }
 0x3ad   :  { %v4079_v1 = vpop.f32.mrf.mxu0  ;;  %4126 = vmatmul.f32.gmra.mxu0 %v13618_v30  ;;  %13619 = vst [vmem:[#allocation242_spill] sm:$0xff] %v9688_v21 }
 0x3ae   :  { %13615 = vst [vmem:[#allocation362_spill] sm:$0xff] %v9678_v36 }
 0x3af   :  { %v3373_v35 = vpop.f32.mrf.mxu2  ;;  %v3023_v34 = vpop.f32.mrf.mxu1 }
 0x3b0   :  { %v3374_v57 = vadd.f32 %v3373_v35, %v3021_v37  ;;  %v3024_v35 = vadd.f32 %v3023_v34, %v13621_v54  ;;  %v13622_v37 = vld [vmem:[#allocation30_spill] sm:$0xff] }
 0x3b1   :  { %v3726_v56 = vpop.f32.mrf.mxu3  ;;  %v13626_v54 = vld [vmem:[#allocation250_spill] sm:$0xff] }
 0x3b2   :  { %v3727_v5 = vadd.f32 %v3726_v56, %v3374_v57  ;;  %3070 = vmatmul.f32.gmra.mxu1 %v13603_v28  ;;  %v9700_v56 = vsel %vm2187_vm1, %v2151_v52, %v2152_v59 }
 0x3b3   :  { %13624 = vst [vmem:[#allocation248_spill] sm:$0xff] %v9700_v56 }
 0x3b4   :  { %v9690_v2 = vadd.f32 %v4079_v1, %v3727_v5  ;;  %3423 = vmatmul.f32.gmra.mxu2 %v9688_v21  ;;  %3776 = vmatmul.f32.gmra.mxu3 %v13622_v37  ;;  %v2153_v5 = vrot.slane %v13618_v30, 1  ;;  %v13628_v21 = vld [vmem:[#allocation31_spill] sm:$0xff] }
 0x3b5   :  { %v4082_v31 = vpop.f32.mrf.mxu0  ;;  %4129 = vmatmul.f32.gmra.mxu0 %v13623_v44 }
 0x3b6   :  { %13620 = vst [vmem:[#allocation363_spill] sm:$0xff] %v9690_v2 }
 0x3b7   :  { %v3376_v36 = vpop.f32.mrf.mxu2  ;;  %v3026_v45 = vpop.f32.mrf.mxu1 }
 0x3b8   :  { %v3377_v47 = vadd.f32 %v3376_v36, %v3024_v35  ;;  %v3027_v36 = vadd.f32 %v3026_v45, %v13626_v54  ;;  %v13627_v35 = vld [vmem:[#allocation36_spill] sm:$0xff] }
 0x3b9   :  { %v3729_v55 = vpop.f32.mrf.mxu3  ;;  %v13631_v54 = vld [vmem:[#allocation252_spill] sm:$0xff] }
 0x3ba   :  { %v3730_v57 = vadd.f32 %v3729_v55, %v3377_v47  ;;  %3073 = vmatmul.f32.gmra.mxu1 %v13608_v4  ;;  %v9712_v55 = vsel %vm2187_vm1, %v2152_v59, %v2153_v5 }
 0x3bb   :  { %13629 = vst [vmem:[#allocation250_spill] sm:$0xff] %v9712_v55 }
 0x3bc   :  { %v9702_v1 = vadd.f32 %v4082_v31, %v3730_v57  ;;  %3426 = vmatmul.f32.gmra.mxu2 %v9700_v56  ;;  %3779 = vmatmul.f32.gmra.mxu3 %v13627_v35  ;;  %v2154_v57 = vrot.slane %v13623_v44, 1  ;;  %v13633_v56 = vld [vmem:[#allocation37_spill] sm:$0xff] }
 0x3bd   :  { %v4085_v34 = vpop.f32.mrf.mxu0  ;;  %4132 = vmatmul.f32.gmra.mxu0 %v13628_v21 }
 0x3be   :  { %13625 = vst [vmem:[#allocation364_spill] sm:$0xff] %v9702_v1 }
 0x3bf   :  { %v3379_v2 = vpop.f32.mrf.mxu2  ;;  %v3029_v52 = vpop.f32.mrf.mxu1 }
 0x3c0   :  { %v3380_v37 = vadd.f32 %v3379_v2, %v3027_v36  ;;  %v3030_v2 = vadd.f32 %v3029_v52, %v13631_v54  ;;  %v13632_v36 = vld [vmem:[#allocation42_spill] sm:$0xff] }
 0x3c1   :  { %v3732_v28 = vpop.f32.mrf.mxu3  ;;  %v13636_v54 = vld [vmem:[#allocation254_spill] sm:$0xff] }
 0x3c2   :  { %v3733_v47 = vadd.f32 %v3732_v28, %v3380_v37  ;;  %3076 = vmatmul.f32.gmra.mxu1 %v13613_v26  ;;  %v9724_v28 = vsel %vm2187_vm1, %v2153_v5, %v2154_v57 }
 0x3c3   :  { %13634 = vst [vmem:[#allocation252_spill] sm:$0xff] %v9724_v28 }
 0x3c4   :  { %v9714_v31 = vadd.f32 %v4085_v34, %v3733_v47  ;;  %3429 = vmatmul.f32.gmra.mxu2 %v9712_v55  ;;  %3782 = vmatmul.f32.gmra.mxu3 %v13632_v36  ;;  %v2155_v47 = vrot.slane %v13628_v21, 1  ;;  %v13638_v55 = vld [vmem:[#allocation43_spill] sm:$0xff] }
 0x3c5   :  { %v4088_v45 = vpop.f32.mrf.mxu0  ;;  %4135 = vmatmul.f32.gmra.mxu0 %v13633_v56 }
 0x3c6   :  { %13630 = vst [vmem:[#allocation365_spill] sm:$0xff] %v9714_v31 }
 0x3c7   :  { %v3382_v1 = vpop.f32.mrf.mxu2  ;;  %v3032_v59 = vpop.f32.mrf.mxu1 }
 0x3c8   :  { %v3383_v35 = vadd.f32 %v3382_v1, %v3030_v2  ;;  %v3033_v1 = vadd.f32 %v3032_v59, %v13636_v54  ;;  %v13637_v2 = vld [vmem:[#allocation48_spill] sm:$0xff] }
 0x3c9   :  { %v3735_v4 = vpop.f32.mrf.mxu3  ;;  %v2406_v59 = vld [vmem:[%s12260_s1 + $0x310] sm:$0xff] }
 0x3ca   :  { %v3736_v37 = vadd.f32 %v3735_v4, %v3383_v35  ;;  %3079 = vmatmul.f32.gmra.mxu1 %v13618_v30  ;;  %v9736_v4 = vsel %vm2187_vm1, %v2154_v57, %v2155_v47  ;;  %4583 = vmatpush.msra.mxu2 %v2406_v59  ;;  %v13641_v54 = vld [vmem:[#allocation256_spill] sm:$0xff] }
 0x3cb   :  { %13639 = vst [vmem:[#allocation254_spill] sm:$0xff] %v9736_v4 }
 0x3cc   :  { %v9726_v34 = vadd.f32 %v4088_v45, %v3736_v37  ;;  %3432 = vmatmul.f32.gmra.mxu2 %v9724_v28  ;;  %3785 = vmatmul.f32.gmra.mxu3 %v13637_v2  ;;  %v2156_v37 = vrot.slane %v13633_v56, 1  ;;  %v13653_v28 = vld [vmem:[#allocation62_spill] sm:$0xff] }
 0x3cd   :  { %v4091_v52 = vpop.f32.mrf.mxu0  ;;  %4138 = vmatmul.f32.gmra.mxu0 %v13638_v55 }
 0x3ce   :  { %13635 = vst [vmem:[#allocation366_spill] sm:$0xff] %v9726_v34  ;;  %v13642_v34 = vld [vmem:[#allocation54_spill] sm:$0xff] }
 0x3cf   :  { %v3385_v31 = vpop.f32.mrf.mxu2  ;;  %v3035_v5 = vpop.f32.mrf.mxu1 }
 0x3d0   :  { %v3386_v36 = vadd.f32 %v3385_v31, %v3033_v1  ;;  %v3036_v1 = vadd.f32 %v3035_v5, %v13641_v54  ;;  %v9757_v5 = vsel %vm2187_vm1, %v2155_v47, %v2156_v37  ;;  %v2438_v47 = vld [vmem:[%s12260_s1 + $0x410] sm:$0xff] }
 0x3d1   :  { %v3738_v26 = vpop.f32.mrf.mxu3  ;;  %13644 = vst [vmem:[#allocation256_spill] sm:$0xff] %v9757_v5  ;;  %5289 = vmatpush.msra.mxu0 %v2438_v47  ;;  %v13651_v47 = vld [vmem:[#allocation262_spill] sm:$0xff] }
 0x3d2   :  { %v3739_v35 = vadd.f32 %v3738_v26, %v3386_v36  ;;  %3082 = vmatmul.f32.gmra.mxu1 %v13623_v44  ;;  %v2422_v26 = vld [vmem:[%s12260_s1 + $0x390] sm:$0xff] }
 0x3d3   :  { %4936 = vmatpush.msra.mxu3 %v2422_v26  ;;  %v2157_v26 = vrot.slane %v13638_v55, 1 }
 0x3d4   :  { %v9738_v45 = vadd.f32 %v4091_v52, %v3739_v35  ;;  %3435 = vmatmul.f32.gmra.mxu2 %v9736_v4  ;;  %3788 = vmatmul.f32.gmra.mxu3 %v13642_v34  ;;  %v13643_v52 = vld [vmem:[#allocation49_spill] sm:$0xff]  ;;  %v2390_v35 = vld [vmem:[%s12260_s1 + $0x290] sm:$0xff] }
 0x3d5   :  { %v4094_v31 = vpop.f32.mrf.mxu0  ;;  %4141 = vmatmul.f32.gmra.mxu0 %v13643_v52  ;;  %4230 = vmatpush.msra.mxu1 %v2390_v35  ;;  %v13647_v4 = vld [vmem:[#allocation61_spill] sm:$0xff] }
 0x3d6   :  { %13640 = vst [vmem:[#allocation367_spill] sm:$0xff] %v9738_v45 }
 0x3d7   :  { %v3388_v57 = vpop.f32.mrf.mxu2  ;;  %v3038_v45 = vpop.f32.mrf.mxu1 }
 0x3d8   :  { %v3389_v36 = vadd.f32 %v3388_v57, %v3036_v1  ;;  %v13646_v57 = vld [vmem:[#allocation259_spill] sm:$0xff] }
 0x3d9   :  { %v3741_v2 = vpop.f32.mrf.mxu3  ;;  %v3039_v34 = vadd.f32 %v3038_v45, %v13646_v57  ;;  %v2158_v57 = vrot.slane %v13643_v52, 1 }
 0x3da   :  { %v3742_v59 = vadd.f32 %v3741_v2, %v3389_v36  ;;  %3085 = vmatmul.f32.gmra.mxu1 %v13628_v21 }
 0x3dc   :  { %v9759_v54 = vadd.f32 %v4094_v31, %v3742_v59  ;;  %3438 = vmatmul.f32.gmra.mxu2 %v9757_v5  ;;  %3791 = vmatmul.f32.gmra.mxu3 %v13647_v4  ;;  %v13648_v31 = vld [vmem:[#allocation55_spill] sm:$0xff]  ;;  %v9772_v59 = vsel %vm2187_vm1, %v2156_v37, %v2157_v26 }
 0x3dd   :  { %v4097_v1 = vpop.f32.mrf.mxu0  ;;  %4144 = vmatmul.f32.gmra.mxu0 %v13648_v31  ;;  %13649 = vst [vmem:[#allocation259_spill] sm:$0xff] %v9772_v59 }
 0x3de   :  { %13645 = vst [vmem:[#allocation368_spill] sm:$0xff] %v9759_v54 }
 0x3df   :  { %v3391_v44 = vpop.f32.mrf.mxu2  ;;  %v3041_v36 = vpop.f32.mrf.mxu1 }
 0x3e0   :  { %v3392_v2 = vadd.f32 %v3391_v44, %v3039_v34  ;;  %v3042_v44 = vadd.f32 %v3041_v36, %v13651_v47  ;;  %v13652_v34 = vld [vmem:[#allocation69_spill] sm:$0xff] }
 0x3e1   :  { %v3744_v35 = vpop.f32.mrf.mxu3  ;;  %v13656_v47 = vld [vmem:[#allocation265_spill] sm:$0xff] }
 0x3e2   :  { %v3745_v54 = vadd.f32 %v3744_v35, %v3392_v2  ;;  %3088 = vmatmul.f32.gmra.mxu1 %v13633_v56  ;;  %v2159_v35 = vrot.slane %v13648_v31, 1 }
 0x3e4   :  { %v9774_v5 = vadd.f32 %v4097_v1, %v3745_v54  ;;  %3441 = vmatmul.f32.gmra.mxu2 %v9772_v59  ;;  %3794 = vmatmul.f32.gmra.mxu3 %v13652_v34  ;;  %v9784_v54 = vsel %vm2187_vm1, %v2157_v26, %v2158_v57  ;;  %v13658_v59 = vld [vmem:[#allocation70_spill] sm:$0xff] }
 0x3e5   :  { %v4100_v45 = vpop.f32.mrf.mxu0  ;;  %4147 = vmatmul.f32.gmra.mxu0 %v13653_v28  ;;  %13654 = vst [vmem:[#allocation262_spill] sm:$0xff] %v9784_v54 }
 0x3e6   :  { %13650 = vst [vmem:[#allocation369_spill] sm:$0xff] %v9774_v5 }
 0x3e7   :  { %v3394_v4 = vpop.f32.mrf.mxu2  ;;  %v3044_v37 = vpop.f32.mrf.mxu1 }
 0x3e8   :  { %v3395_v21 = vadd.f32 %v3394_v4, %v3042_v44  ;;  %v3045_v4 = vadd.f32 %v3044_v37, %v13656_v47  ;;  %v13657_v44 = vld [vmem:[#allocation77_spill] sm:$0xff]  ;;  %v13661_v47 = vld [vmem:[#allocation268_spill] sm:$0xff] }
 0x3e9   :  { %v3747_v30 = vpop.f32.mrf.mxu3 }
 0x3ea   :  { %v3748_v1 = vadd.f32 %v3747_v30, %v3395_v21  ;;  %3091 = vmatmul.f32.gmra.mxu1 %v13638_v55  ;;  %v9796_v30 = vsel %vm2187_vm1, %v2158_v57, %v2159_v35 }
 0x3eb   :  { %13659 = vst [vmem:[#allocation265_spill] sm:$0xff] %v9796_v30 }
 0x3ec   :  { %v9786_v2 = vadd.f32 %v4100_v45, %v3748_v1  ;;  %3444 = vmatmul.f32.gmra.mxu2 %v9784_v54  ;;  %3797 = vmatmul.f32.gmra.mxu3 %v13657_v44  ;;  %v2160_v1 = vrot.slane %v13653_v28, 1  ;;  %v13663_v54 = vld [vmem:[#allocation78_spill] sm:$0xff] }
 0x3ed   :  { %v4103_v36 = vpop.f32.mrf.mxu0  ;;  %4150 = vmatmul.f32.gmra.mxu0 %v13658_v59 }
 0x3ee   :  { %13655 = vst [vmem:[#allocation370_spill] sm:$0xff] %v9786_v2 }
 0x3ef   :  { %v3397_v5 = vpop.f32.mrf.mxu2  ;;  %v3047_v26 = vpop.f32.mrf.mxu1 }
 0x3f0   :  { %v3398_v34 = vadd.f32 %v3397_v5, %v3045_v4  ;;  %v3048_v5 = vadd.f32 %v3047_v26, %v13661_v47  ;;  %v13662_v4 = vld [vmem:[#allocation85_spill] sm:$0xff]  ;;  %v13666_v47 = vld [vmem:[#allocation271_spill] sm:$0xff] }
 0x3f1   :  { %v3750_v56 = vpop.f32.mrf.mxu3 }
 0x3f2   :  { %v3751_v21 = vadd.f32 %v3750_v56, %v3398_v34  ;;  %3094 = vmatmul.f32.gmra.mxu1 %v13643_v52  ;;  %v9808_v56 = vsel %vm2187_vm1, %v2159_v35, %v2160_v1 }
 0x3f3   :  { %13664 = vst [vmem:[#allocation268_spill] sm:$0xff] %v9808_v56 }
 0x3f4   :  { %v9798_v45 = vadd.f32 %v4103_v36, %v3751_v21  ;;  %3447 = vmatmul.f32.gmra.mxu2 %v9796_v30  ;;  %3800 = vmatmul.f32.gmra.mxu3 %v13662_v4  ;;  %v2161_v21 = vrot.slane %v13658_v59, 1  ;;  %v13668_v30 = vld [vmem:[#allocation86_spill] sm:$0xff] }
 0x3f5   :  { %v4106_v37 = vpop.f32.mrf.mxu0  ;;  %4153 = vmatmul.f32.gmra.mxu0 %v13663_v54 }
 0x3f6   :  { %13660 = vst [vmem:[#allocation371_spill] sm:$0xff] %v9798_v45 }
 0x3f7   :  { %v3400_v2 = vpop.f32.mrf.mxu2  ;;  %v3050_v57 = vpop.f32.mrf.mxu1 }
 0x3f8   :  { %v3401_v44 = vadd.f32 %v3400_v2, %v3048_v5  ;;  %v3051_v2 = vadd.f32 %v3050_v57, %v13666_v47  ;;  %v13667_v5 = vld [vmem:[#allocation93_spill] sm:$0xff]  ;;  %v13671_v47 = vld [vmem:[#allocation274_spill] sm:$0xff] }
 0x3f9   :  { %v3753_v55 = vpop.f32.mrf.mxu3 }
 0x3fa   :  { %v3754_v34 = vadd.f32 %v3753_v55, %v3401_v44  ;;  %3097 = vmatmul.f32.gmra.mxu1 %v13648_v31  ;;  %v9820_v55 = vsel %vm2187_vm1, %v2160_v1, %v2161_v21 }
 0x3fb   :  { %13669 = vst [vmem:[#allocation271_spill] sm:$0xff] %v9820_v55 }
 0x3fc   :  { %v9810_v36 = vadd.f32 %v4106_v37, %v3754_v34  ;;  %3450 = vmatmul.f32.gmra.mxu2 %v9808_v56  ;;  %3803 = vmatmul.f32.gmra.mxu3 %v13667_v5  ;;  %v2162_v34 = vrot.slane %v13663_v54, 1  ;;  %v13673_v56 = vld [vmem:[#allocation94_spill] sm:$0xff] }
 0x3fd   :  { %v4109_v26 = vpop.f32.mrf.mxu0  ;;  %4156 = vmatmul.f32.gmra.mxu0 %v13668_v30 }
 0x3fe   :  { %13665 = vst [vmem:[#allocation372_spill] sm:$0xff] %v9810_v36 }
 0x3ff   :  { %v3403_v45 = vpop.f32.mrf.mxu2  ;;  %v3053_v35 = vpop.f32.mrf.mxu1 }
 0x400   :  { %v3404_v4 = vadd.f32 %v3403_v45, %v3051_v2  ;;  %v3054_v45 = vadd.f32 %v3053_v35, %v13671_v47  ;;  %v13672_v2 = vld [vmem:[#allocation101_spill] sm:$0xff]  ;;  %v2405_v35 = vld [vmem:[%s12260_s1 + $0x308] sm:$0xff] }
 0x401   :  { %v3756_v52 = vpop.f32.mrf.mxu3  ;;  %4584 = vmatpush.msra.mxu2 %v2405_v35  ;;  %v13676_v47 = vld [vmem:[#allocation277_spill] sm:$0xff] }
 0x402   :  { %v3757_v44 = vadd.f32 %v3756_v52, %v3404_v4  ;;  %3100 = vmatmul.f32.gmra.mxu1 %v13653_v28  ;;  %v9832_v52 = vsel %vm2187_vm1, %v2161_v21, %v2162_v34 }
 0x403   :  { %13674 = vst [vmem:[#allocation274_spill] sm:$0xff] %v9832_v52 }
 0x404   :  { %v9822_v37 = vadd.f32 %v4109_v26, %v3757_v44  ;;  %3453 = vmatmul.f32.gmra.mxu2 %v9820_v55  ;;  %3806 = vmatmul.f32.gmra.mxu3 %v13672_v2  ;;  %v2163_v44 = vrot.slane %v13668_v30, 1  ;;  %v13688_v55 = vld [vmem:[#allocation118_spill] sm:$0xff] }
 0x405   :  { %v4112_v57 = vpop.f32.mrf.mxu0  ;;  %4159 = vmatmul.f32.gmra.mxu0 %v13673_v56 }
 0x406   :  { %13670 = vst [vmem:[#allocation373_spill] sm:$0xff] %v9822_v37  ;;  %v13677_v37 = vld [vmem:[#allocation109_spill] sm:$0xff] }
 0x407   :  { %v3406_v36 = vpop.f32.mrf.mxu2  ;;  %v3056_v1 = vpop.f32.mrf.mxu1 }
 0x408   :  { %v3407_v5 = vadd.f32 %v3406_v36, %v3054_v45  ;;  %v3057_v45 = vadd.f32 %v3056_v1, %v13676_v47  ;;  %v9853_v1 = vsel %vm2187_vm1, %v2162_v34, %v2163_v44  ;;  %v2437_v34 = vld [vmem:[%s12260_s1 + $0x408] sm:$0xff] }
 0x409   :  { %v3759_v31 = vpop.f32.mrf.mxu3  ;;  %13679 = vst [vmem:[#allocation277_spill] sm:$0xff] %v9853_v1  ;;  %5290 = vmatpush.msra.mxu0 %v2437_v34  ;;  %v13686_v34 = vld [vmem:[#allocation283_spill] sm:$0xff] }
 0x40a   :  { %v3760_v4 = vadd.f32 %v3759_v31, %v3407_v5  ;;  %3103 = vmatmul.f32.gmra.mxu1 %v13658_v59  ;;  %v2421_v31 = vld [vmem:[%s12260_s1 + $0x388] sm:$0xff] }
 0x40b   :  { %4937 = vmatpush.msra.mxu3 %v2421_v31  ;;  %v2164_v31 = vrot.slane %v13673_v56, 1 }
 0x40c   :  { %v9834_v26 = vadd.f32 %v4112_v57, %v3760_v4  ;;  %3456 = vmatmul.f32.gmra.mxu2 %v9832_v52  ;;  %3809 = vmatmul.f32.gmra.mxu3 %v13677_v37  ;;  %v13678_v57 = vld [vmem:[#allocation102_spill] sm:$0xff]  ;;  %v2389_v4 = vld [vmem:[%s12260_s1 + $0x288] sm:$0xff]  ;;  %v13682_v52 = vld [vmem:[#allocation117_spill] sm:$0xff] }
 0x40d   :  { %v4115_v36 = vpop.f32.mrf.mxu0  ;;  %4162 = vmatmul.f32.gmra.mxu0 %v13678_v57  ;;  %4231 = vmatpush.msra.mxu1 %v2389_v4 }
 0x40e   :  { %13675 = vst [vmem:[#allocation374_spill] sm:$0xff] %v9834_v26 }
 0x40f   :  { %v3409_v21 = vpop.f32.mrf.mxu2  ;;  %v3059_v26 = vpop.f32.mrf.mxu1 }
 0x410   :  { %v3410_v5 = vadd.f32 %v3409_v21, %v3057_v45  ;;  %v13681_v21 = vld [vmem:[#allocation280_spill] sm:$0xff] }
 0x411   :  { %v3762_v2 = vpop.f32.mrf.mxu3  ;;  %v3060_v37 = vadd.f32 %v3059_v26, %v13681_v21  ;;  %v2165_v21 = vrot.slane %v13678_v57, 1 }
 0x412   :  { %v3763_v35 = vadd.f32 %v3762_v2, %v3410_v5  ;;  %3106 = vmatmul.f32.gmra.mxu1 %v13663_v54 }
 0x414   :  { %v9855_v47 = vadd.f32 %v4115_v36, %v3763_v35  ;;  %3459 = vmatmul.f32.gmra.mxu2 %v9853_v1  ;;  %3812 = vmatmul.f32.gmra.mxu3 %v13682_v52  ;;  %v13683_v36 = vld [vmem:[#allocation110_spill] sm:$0xff]  ;;  %v9868_v35 = vsel %vm2187_vm1, %v2163_v44, %v2164_v31 }
 0x415   :  { %v4118_v45 = vpop.f32.mrf.mxu0  ;;  %4165 = vmatmul.f32.gmra.mxu0 %v13683_v36  ;;  %13684 = vst [vmem:[#allocation280_spill] sm:$0xff] %v9868_v35 }
 0x416   :  { %13680 = vst [vmem:[#allocation375_spill] sm:$0xff] %v9855_v47 }
 0x417   :  { %v3412_v59 = vpop.f32.mrf.mxu2  ;;  %v3062_v5 = vpop.f32.mrf.mxu1 }
 0x418   :  { %v3413_v2 = vadd.f32 %v3412_v59, %v3060_v37  ;;  %v3063_v59 = vadd.f32 %v3062_v5, %v13686_v34  ;;  %v13687_v37 = vld [vmem:[#allocation126_spill] sm:$0xff]  ;;  %v13691_v34 = vld [vmem:[#allocation287_spill] sm:$0xff] }
 0x419   :  { %v3765_v4 = vpop.f32.mrf.mxu3 }
 0x41a   :  { %v3766_v47 = vadd.f32 %v3765_v4, %v3413_v2  ;;  %3109 = vmatmul.f32.gmra.mxu1 %v13668_v30  ;;  %v2166_v4 = vrot.slane %v13683_v36, 1 }
 0x41c   :  { %v9870_v1 = vadd.f32 %v4118_v45, %v3766_v47  ;;  %3462 = vmatmul.f32.gmra.mxu2 %v9868_v35  ;;  %3815 = vmatmul.f32.gmra.mxu3 %v13687_v37  ;;  %v9880_v47 = vsel %vm2187_vm1, %v2164_v31, %v2165_v21  ;;  %v13693_v35 = vld [vmem:[#allocation127_spill] sm:$0xff] }
 0x41d   :  { %v4121_v26 = vpop.f32.mrf.mxu0  ;;  %4168 = vmatmul.f32.gmra.mxu0 %v13688_v55  ;;  %13689 = vst [vmem:[#allocation283_spill] sm:$0xff] %v9880_v47 }
 0x41e   :  { %13685 = vst [vmem:[#allocation376_spill] sm:$0xff] %v9870_v1 }
 0x41f   :  { %v3415_v52 = vpop.f32.mrf.mxu2  ;;  %v3065_v44 = vpop.f32.mrf.mxu1 }
 0x420   :  { %v3416_v54 = vadd.f32 %v3415_v52, %v3063_v59  ;;  %v3066_v52 = vadd.f32 %v3065_v44, %v13691_v34  ;;  %v13692_v59 = vld [vmem:[#allocation137_spill] sm:$0xff]  ;;  %v13696_v34 = vld [vmem:[#allocation291_spill] sm:$0xff] }
 0x421   :  { %v3768_v28 = vpop.f32.mrf.mxu3 }
 0x422   :  { %v3769_v45 = vadd.f32 %v3768_v28, %v3416_v54  ;;  %3112 = vmatmul.f32.gmra.mxu1 %v13673_v56  ;;  %v9892_v28 = vsel %vm2187_vm1, %v2165_v21, %v2166_v4 }
 0x423   :  { %13694 = vst [vmem:[#allocation287_spill] sm:$0xff] %v9892_v28 }
 0x424   :  { %v9882_v2 = vadd.f32 %v4121_v26, %v3769_v45  ;;  %3465 = vmatmul.f32.gmra.mxu2 %v9880_v47  ;;  %3818 = vmatmul.f32.gmra.mxu3 %v13692_v59  ;;  %v2167_v45 = vrot.slane %v13688_v55, 1  ;;  %v13698_v47 = vld [vmem:[#allocation138_spill] sm:$0xff] }
 0x425   :  { %v4124_v5 = vpop.f32.mrf.mxu0  ;;  %4171 = vmatmul.f32.gmra.mxu0 %v13693_v35 }
 0x426   :  { %13690 = vst [vmem:[#allocation377_spill] sm:$0xff] %v9882_v2 }
 0x427   :  { %v3418_v1 = vpop.f32.mrf.mxu2  ;;  %v3068_v31 = vpop.f32.mrf.mxu1 }
 0x428   :  { %v3419_v37 = vadd.f32 %v3418_v1, %v3066_v52  ;;  %v3069_v1 = vadd.f32 %v3068_v31, %v13696_v34  ;;  %v13697_v52 = vld [vmem:[#allocation148_spill] sm:$0xff]  ;;  %v13701_v34 = vld [vmem:[#allocation295_spill] sm:$0xff] }
 0x429   :  { %v3771_v30 = vpop.f32.mrf.mxu3 }
 0x42a   :  { %v3772_v54 = vadd.f32 %v3771_v30, %v3419_v37  ;;  %3115 = vmatmul.f32.gmra.mxu1 %v13678_v57  ;;  %v9904_v30 = vsel %vm2187_vm1, %v2166_v4, %v2167_v45 }
 0x42b   :  { %13699 = vst [vmem:[#allocation291_spill] sm:$0xff] %v9904_v30 }
 0x42c   :  { %v9894_v26 = vadd.f32 %v4124_v5, %v3772_v54  ;;  %3468 = vmatmul.f32.gmra.mxu2 %v9892_v28  ;;  %3821 = vmatmul.f32.gmra.mxu3 %v13697_v52  ;;  %v2168_v54 = vrot.slane %v13693_v35, 1  ;;  %v13703_v28 = vld [vmem:[#allocation149_spill] sm:$0xff] }
 0x42d   :  { %v4127_v44 = vpop.f32.mrf.mxu0  ;;  %4174 = vmatmul.f32.gmra.mxu0 %v13698_v47 }
 0x42e   :  { %13695 = vst [vmem:[#allocation378_spill] sm:$0xff] %v9894_v26 }
 0x42f   :  { %v3421_v2 = vpop.f32.mrf.mxu2  ;;  %v3071_v21 = vpop.f32.mrf.mxu1 }
 0x430   :  { %v3422_v59 = vadd.f32 %v3421_v2, %v3069_v1  ;;  %v3072_v2 = vadd.f32 %v3071_v21, %v13701_v34  ;;  %v13702_v1 = vld [vmem:[#allocation160_spill] sm:$0xff]  ;;  %v13706_v34 = vld [vmem:[#allocation133_spill] sm:$0xff] }
 0x431   :  { %v3774_v56 = vpop.f32.mrf.mxu3 }
 0x432   :  { %v3775_v37 = vadd.f32 %v3774_v56, %v3422_v59  ;;  %3118 = vmatmul.f32.gmra.mxu1 %v13683_v36  ;;  %v9916_v56 = vsel %vm2187_vm1, %v2167_v45, %v2168_v54 }
 0x433   :  { %13704 = vst [vmem:[#allocation295_spill] sm:$0xff] %v9916_v56 }
 0x434   :  { %v9906_v5 = vadd.f32 %v4127_v44, %v3775_v37  ;;  %3471 = vmatmul.f32.gmra.mxu2 %v9904_v30  ;;  %3824 = vmatmul.f32.gmra.mxu3 %v13702_v1  ;;  %v2169_v37 = vrot.slane %v13698_v47, 1  ;;  %v13708_v30 = vld [vmem:[#allocation161_spill] sm:$0xff] }
 0x435   :  { %v4130_v31 = vpop.f32.mrf.mxu0  ;;  %4177 = vmatmul.f32.gmra.mxu0 %v13703_v28 }
 0x436   :  { %13700 = vst [vmem:[#allocation379_spill] sm:$0xff] %v9906_v5 }
 0x437   :  { %v3424_v26 = vpop.f32.mrf.mxu2  ;;  %v3074_v4 = vpop.f32.mrf.mxu1 }
 0x438   :  { %v3425_v52 = vadd.f32 %v3424_v26, %v3072_v2  ;;  %v3075_v26 = vadd.f32 %v3074_v4, %v13706_v34  ;;  %v13707_v2 = vld [vmem:[#allocation171_spill] sm:$0xff]  ;;  %v2404_v4 = vld [vmem:[%s12260_s1 + $0x300] sm:$0xff]  ;;  %v13711_v34 = vld [vmem:[#allocation144_spill] sm:$0xff] }
 0x439   :  { %v3777_v57 = vpop.f32.mrf.mxu3  ;;  %4585 = vmatpush.msra.mxu2 %v2404_v4 }
 0x43a   :  { %v3778_v59 = vadd.f32 %v3777_v57, %v3425_v52  ;;  %3121 = vmatmul.f32.gmra.mxu1 %v13688_v55  ;;  %v9928_v57 = vsel %vm2187_vm1, %v2168_v54, %v2169_v37 }
 0x43b   :  { %13709 = vst [vmem:[#allocation133_spill] sm:$0xff] %v9928_v57 }
 0x43c   :  { %v9918_v44 = vadd.f32 %v4130_v31, %v3778_v59  ;;  %3474 = vmatmul.f32.gmra.mxu2 %v9916_v56  ;;  %3827 = vmatmul.f32.gmra.mxu3 %v13707_v2  ;;  %v2170_v59 = vrot.slane %v13703_v28, 1  ;;  %v13723_v56 = vld [vmem:[#allocation196_spill] sm:$0xff] }
 0x43d   :  { %v4133_v21 = vpop.f32.mrf.mxu0  ;;  %4180 = vmatmul.f32.gmra.mxu0 %v13708_v30 }
 0x43e   :  { %13705 = vst [vmem:[#allocation380_spill] sm:$0xff] %v9918_v44  ;;  %v13712_v44 = vld [vmem:[#allocation183_spill] sm:$0xff] }
 0x43f   :  { %v3427_v5 = vpop.f32.mrf.mxu2  ;;  %v3077_v45 = vpop.f32.mrf.mxu1 }
 0x440   :  { %v3428_v1 = vadd.f32 %v3427_v5, %v3075_v26  ;;  %v3078_v26 = vadd.f32 %v3077_v45, %v13711_v34  ;;  %v9949_v45 = vsel %vm2187_vm1, %v2169_v37, %v2170_v59  ;;  %v2436_v37 = vld [vmem:[%s12260_s1 + $0x400] sm:$0xff] }
 0x441   :  { %v3780_v36 = vpop.f32.mrf.mxu3  ;;  %13714 = vst [vmem:[#allocation144_spill] sm:$0xff] %v9949_v45  ;;  %5291 = vmatpush.msra.mxu0 %v2436_v37  ;;  %v13721_v37 = vld [vmem:[#allocation167_spill] sm:$0xff] }
 0x442   :  { %v3781_v52 = vadd.f32 %v3780_v36, %v3428_v1  ;;  %3124 = vmatmul.f32.gmra.mxu1 %v13693_v35  ;;  %v2420_v36 = vld [vmem:[%s12260_s1 + $0x380] sm:$0xff] }
 0x443   :  { %4938 = vmatpush.msra.mxu3 %v2420_v36  ;;  %v2171_v36 = vrot.slane %v13708_v30, 1 }
 0x444   :  { %v9930_v31 = vadd.f32 %v4133_v21, %v3781_v52  ;;  %3477 = vmatmul.f32.gmra.mxu2 %v9928_v57  ;;  %3830 = vmatmul.f32.gmra.mxu3 %v13712_v44  ;;  %v13713_v21 = vld [vmem:[#allocation172_spill] sm:$0xff]  ;;  %v2388_v52 = vld [vmem:[%s12260_s1 + $0x280] sm:$0xff]  ;;  %v13717_v57 = vld [vmem:[#allocation195_spill] sm:$0xff] }
 0x445   :  { %v4136_v5 = vpop.f32.mrf.mxu0  ;;  %4183 = vmatmul.f32.gmra.mxu0 %v13713_v21  ;;  %4232 = vmatpush.msra.mxu1 %v2388_v52 }
 0x446   :  { %13710 = vst [vmem:[#allocation381_spill] sm:$0xff] %v9930_v31 }
 0x447   :  { %v3430_v54 = vpop.f32.mrf.mxu2  ;;  %v3080_v31 = vpop.f32.mrf.mxu1 }
 0x448   :  { %v3431_v1 = vadd.f32 %v3430_v54, %v3078_v26  ;;  %v13716_v54 = vld [vmem:[#allocation156_spill] sm:$0xff] }
 0x449   :  { %v3783_v2 = vpop.f32.mrf.mxu3  ;;  %v3081_v44 = vadd.f32 %v3080_v31, %v13716_v54  ;;  %v2172_v54 = vrot.slane %v13713_v21, 1 }
 0x44a   :  { %v3784_v4 = vadd.f32 %v3783_v2, %v3431_v1  ;;  %3127 = vmatmul.f32.gmra.mxu1 %v13698_v47 }
 0x44c   :  { %v9951_v34 = vadd.f32 %v4136_v5, %v3784_v4  ;;  %3480 = vmatmul.f32.gmra.mxu2 %v9949_v45  ;;  %3833 = vmatmul.f32.gmra.mxu3 %v13717_v57  ;;  %v13718_v5 = vld [vmem:[#allocation184_spill] sm:$0xff]  ;;  %v9964_v4 = vsel %vm2187_vm1, %v2170_v59, %v2171_v36 }
 0x44d   :  { %v4139_v26 = vpop.f32.mrf.mxu0  ;;  %4186 = vmatmul.f32.gmra.mxu0 %v13718_v5  ;;  %13719 = vst [vmem:[#allocation156_spill] sm:$0xff] %v9964_v4 }
 0x44e   :  { %13715 = vst [vmem:[#allocation382_spill] sm:$0xff] %v9951_v34 }
 0x44f   :  { %v3433_v35 = vpop.f32.mrf.mxu2  ;;  %v3083_v1 = vpop.f32.mrf.mxu1 }
 0x450   :  { %v3434_v2 = vadd.f32 %v3433_v35, %v3081_v44  ;;  %v3084_v35 = vadd.f32 %v3083_v1, %v13721_v37  ;;  %v13722_v44 = vld [vmem:[#allocation207_spill] sm:$0xff] }
 0x451   :  { %v3786_v52 = vpop.f32.mrf.mxu3  ;;  %v13726_v37 = vld [vmem:[#allocation179_spill] sm:$0xff] }
 0x452   :  { %v3787_v34 = vadd.f32 %v3786_v52, %v3434_v2  ;;  %3130 = vmatmul.f32.gmra.mxu1 %v13703_v28  ;;  %v2173_v52 = vrot.slane %v13718_v5, 1 }
 0x454   :  { %v9966_v45 = vadd.f32 %v4139_v26, %v3787_v34  ;;  %3483 = vmatmul.f32.gmra.mxu2 %v9964_v4  ;;  %3836 = vmatmul.f32.gmra.mxu3 %v13722_v44  ;;  %v9976_v34 = vsel %vm2187_vm1, %v2171_v36, %v2172_v54  ;;  %v13728_v4 = vld [vmem:[#allocation208_spill] sm:$0xff] }
 0x455   :  { %v4142_v31 = vpop.f32.mrf.mxu0  ;;  %4189 = vmatmul.f32.gmra.mxu0 %v13723_v56  ;;  %13724 = vst [vmem:[#allocation167_spill] sm:$0xff] %v9976_v34 }
 0x456   :  { %13720 = vst [vmem:[#allocation383_spill] sm:$0xff] %v9966_v45 }
 0x457   :  { %v3436_v57 = vpop.f32.mrf.mxu2  ;;  %v3086_v59 = vpop.f32.mrf.mxu1 }
 0x458   :  { %v3437_v47 = vadd.f32 %v3436_v57, %v3084_v35  ;;  %v3087_v57 = vadd.f32 %v3086_v59, %v13726_v37  ;;  %v13727_v35 = vld [vmem:[#allocation219_spill] sm:$0xff] }
 0x459   :  { %v3789_v55 = vpop.f32.mrf.mxu3  ;;  %v13731_v37 = vld [vmem:[#allocation191_spill] sm:$0xff] }
 0x45a   :  { %v3790_v26 = vadd.f32 %v3789_v55, %v3437_v47  ;;  %3133 = vmatmul.f32.gmra.mxu1 %v13708_v30  ;;  %v9988_v55 = vsel %vm2187_vm1, %v2172_v54, %v2173_v52 }
 0x45b   :  { %13729 = vst [vmem:[#allocation179_spill] sm:$0xff] %v9988_v55 }
 0x45c   :  { %v9978_v2 = vadd.f32 %v4142_v31, %v3790_v26  ;;  %3486 = vmatmul.f32.gmra.mxu2 %v9976_v34  ;;  %3839 = vmatmul.f32.gmra.mxu3 %v13727_v35  ;;  %v2174_v26 = vrot.slane %v13723_v56, 1  ;;  %v13733_v34 = vld [vmem:[#allocation220_spill] sm:$0xff] }
 0x45d   :  { %v4145_v1 = vpop.f32.mrf.mxu0  ;;  %4192 = vmatmul.f32.gmra.mxu0 %v13728_v4 }
 0x45e   :  { %13725 = vst [vmem:[#allocation384_spill] sm:$0xff] %v9978_v2 }
 0x45f   :  { %v3439_v45 = vpop.f32.mrf.mxu2  ;;  %v3089_v36 = vpop.f32.mrf.mxu1 }
 0x460   :  { %v3440_v44 = vadd.f32 %v3439_v45, %v3087_v57  ;;  %v3090_v45 = vadd.f32 %v3089_v36, %v13731_v37  ;;  %v13732_v57 = vld [vmem:[#allocation231_spill] sm:$0xff] }
 0x461   :  { %v3792_v28 = vpop.f32.mrf.mxu3  ;;  %v13736_v37 = vld [vmem:[#allocation203_spill] sm:$0xff] }
 0x462   :  { %v3793_v47 = vadd.f32 %v3792_v28, %v3440_v44  ;;  %3136 = vmatmul.f32.gmra.mxu1 %v13713_v21  ;;  %v10000_v28 = vsel %vm2187_vm1, %v2173_v52, %v2174_v26 }
 0x463   :  { %13734 = vst [vmem:[#allocation191_spill] sm:$0xff] %v10000_v28 }
 0x464   :  { %v9990_v31 = vadd.f32 %v4145_v1, %v3793_v47  ;;  %3489 = vmatmul.f32.gmra.mxu2 %v9988_v55  ;;  %3842 = vmatmul.f32.gmra.mxu3 %v13732_v57  ;;  %v2175_v47 = vrot.slane %v13728_v4, 1  ;;  %v13738_v55 = vld [vmem:[#allocation232_spill] sm:$0xff] }
 0x465   :  { %v4148_v59 = vpop.f32.mrf.mxu0  ;;  %4195 = vmatmul.f32.gmra.mxu0 %v13733_v34 }
 0x466   :  { %13730 = vst [vmem:[#allocation385_spill] sm:$0xff] %v9990_v31 }
 0x467   :  { %v3442_v2 = vpop.f32.mrf.mxu2  ;;  %v3092_v54 = vpop.f32.mrf.mxu1 }
 0x468   :  { %v3443_v35 = vadd.f32 %v3442_v2, %v3090_v45  ;;  %v3093_v2 = vadd.f32 %v3092_v54, %v13736_v37  ;;  %v13737_v45 = vld [vmem:[#allocation239_spill] sm:$0xff]  ;;  %v2176_v37 = vrot.slane %v13733_v34, 1 }
 0x469   :  { %v3795_v30 = vpop.f32.mrf.mxu3 }
 0x46a   :  { %v3796_v44 = vadd.f32 %v3795_v30, %v3443_v35  ;;  %3139 = vmatmul.f32.gmra.mxu1 %v13718_v5  ;;  %v1698_v30 = vld [vmem:[%s12261_s0 + $0x380] sm:$0xff] }
 0x46c   :  { %v10002_v1 = vadd.f32 %v4148_v59, %v3796_v44  ;;  %3492 = vmatmul.f32.gmra.mxu2 %v10000_v28  ;;  %3845 = vmatmul.f32.gmra.mxu3 %v13737_v45  ;;  %v10015_v59 = vsel %vm2187_vm1, %v2174_v26, %v2175_v47  ;;  %v13743_v28 = vld [vmem:[#allocation246_spill] sm:$0xff] }
 0x46d   :  { %v4151_v36 = vpop.f32.mrf.mxu0  ;;  %4198 = vmatmul.f32.gmra.mxu0 %v13738_v55  ;;  %13739 = vst [vmem:[#allocation203_spill] sm:$0xff] %v10015_v59 }
 0x46e   :  { %13735 = vst [vmem:[#allocation220_spill] sm:$0xff] %v10002_v1  ;;  %v10017_v1 = vmax.f32 %v1698_v30, 0.0 }
 0x46f   :  { %v3445_v31 = vpop.f32.mrf.mxu2  ;;  %v3095_v52 = vpop.f32.mrf.mxu1 }
 0x470   :  { %v3446_v57 = vadd.f32 %v3445_v31, %v3093_v2  ;;  %13740 = vst [vmem:[#allocation386_spill] sm:$0xff] %v10017_v1  ;;  %v13742_v2 = vld [vmem:[#allocation215_spill] sm:$0xff]  ;;  %v1938_v26 = vrot.slane %v10017_v1, 7 }
 0x471   :  { %v3798_v35 = vpop.f32.mrf.mxu3  ;;  %v3096_v45 = vadd.f32 %v3095_v52, %v13742_v2 }
 0x472   :  { %v3799_v44 = vadd.f32 %v3798_v35, %v3446_v57  ;;  %3142 = vmatmul.f32.gmra.mxu1 %v13723_v56  ;;  %v13744_v57 = vld [vmem:[#allocation240_spill] sm:$0xff] }
 0x473   :  { %v13746_v52 = vrot.slane %v13744_v57, 7 }
 0x474   :  { %v10019_v54 = vadd.f32 %v4151_v36, %v3799_v44  ;;  %3495 = vmatmul.f32.gmra.mxu2 %v10015_v59  ;;  %3848 = vmatmul.f32.gmra.mxu3 %v13743_v28  ;;  %v1699_v36 = vld [vmem:[%s12261_s0 + $0x388] sm:$0xff]  ;;  %v10033_v44 = vsel %vm2187_vm1, %v2175_v47, %v2176_v37  ;;  %v2177_v59 = vrot.slane %v13738_v55, 1 }
 0x475   :  { %v4154_v31 = vpop.f32.mrf.mxu0  ;;  %4201 = vmatmul.f32.gmra.mxu0 %v13744_v57  ;;  %13745 = vst [vmem:[#allocation215_spill] sm:$0xff] %v10033_v44  ;;  %v10039_v2 = vsel %vm1946_vm0, %v13746_v52, %v1938_v26  ;;  %v13750_v47 = vld [vmem:[#allocation227_spill] sm:$0xff] }
 0x476   :  { %13741 = vst [vmem:[#allocation387_spill] sm:$0xff] %v10019_v54 }
 0x477   :  { %v3448_v5 = vpop.f32.mrf.mxu2  ;;  %v3098_v30 = vpop.f32.mrf.mxu1  ;;  %13747 = vst [vmem:[#allocation388_spill] sm:$0xff] %v10039_v2 }
 0x478   :  { %v3449_v21 = vadd.f32 %v3448_v5, %v3096_v45  ;;  %v10041_v5 = vmax.f32 %v1699_v36, 0.0  ;;  %v3099_v56 = vadd.f32 %v3098_v30, %v13750_v47 }
 0x479   :  { %v3801_v35 = vpop.f32.mrf.mxu3 }
 0x47a   :  { %v3802_v54 = vadd.f32 %v3801_v35, %v3449_v21  ;;  %13748 = vst [vmem:[#allocation389_spill] sm:$0xff] %v10041_v5  ;;  %3145 = vmatmul.f32.gmra.mxu1 %v13728_v4  ;;  %v1939_v35 = vrot.slane %v10041_v5, 7  ;;  %v13755_v4 = vld [vmem:[#allocation236_spill] sm:$0xff] }
 0x47c   :  { %v10043_v45 = vadd.f32 %v4154_v31, %v3802_v54  ;;  %3498 = vmatmul.f32.gmra.mxu2 %v10033_v44  ;;  %3851 = vmatmul.f32.gmra.mxu3 %v10039_v2  ;;  %v1700_v54 = vld [vmem:[%s12261_s0 + $0x390] sm:$0xff]  ;;  %v10061_v30 = vsel %vm1946_vm0, %v1938_v26, %v1939_v35  ;;  %v2178_v2 = vrot.slane %v13744_v57, 1 }
 0x47d   :  { %v4157_v28 = vpop.f32.mrf.mxu0  ;;  %4204 = vmatmul.f32.gmra.mxu0 %v10017_v1  ;;  %13752 = vst [vmem:[#allocation391_spill] sm:$0xff] %v10061_v30  ;;  %v10063_v47 = vmax.f32 %v1700_v54, 0.0 }
 0x47e   :  { %13749 = vst [vmem:[#allocation390_spill] sm:$0xff] %v10043_v45  ;;  %v10057_v45 = vsel %vm2187_vm1, %v2176_v37, %v2177_v59 }
 0x47f   :  { %v3451_v21 = vpop.f32.mrf.mxu2  ;;  %v3101_v31 = vpop.f32.mrf.mxu1  ;;  %13751 = vst [vmem:[#allocation227_spill] sm:$0xff] %v10057_v45 }
 0x480   :  { %v3452_v52 = vadd.f32 %v3451_v21, %v3099_v56  ;;  %13753 = vst [vmem:[#allocation392_spill] sm:$0xff] %v10063_v47  ;;  %v3102_v10 = vadd.f32 %v3101_v31, %v13755_v4 }
 0x481   :  { %v3804_v36 = vpop.f32.mrf.mxu3 }
 0x482   :  { %v3805_v44 = vadd.f32 %v3804_v36, %v3452_v52  ;;  %3148 = vmatmul.f32.gmra.mxu1 %v13733_v34  ;;  %v1940_v52 = vrot.slane %v10063_v47, 7  ;;  %v10079_v36 = vsel %vm2187_vm1, %v2177_v59, %v2178_v2 }
 0x483   :  { %13756 = vst [vmem:[#allocation236_spill] sm:$0xff] %v10079_v36 }
 0x484   :  { %v10065_v56 = vadd.f32 %v4157_v28, %v3805_v44  ;;  %3501 = vmatmul.f32.gmra.mxu2 %v10057_v45  ;;  %3854 = vmatmul.f32.gmra.mxu3 %v10061_v30  ;;  %v1701_v28 = vld [vmem:[%s12261_s0 + $0x398] sm:$0xff]  ;;  %v10083_v4 = vsel %vm1946_vm0, %v1939_v35, %v1940_v52  ;;  %v12904_v30 = vrot.slane %v10017_v1, 1  ;;  %v13769_v1 = vld [vmem:[#allocation56_spill] sm:$0xff] }
 0x485   :  { %v4160_v21 = vpop.f32.mrf.mxu0  ;;  %4207 = vmatmul.f32.gmra.mxu0 %v10041_v5  ;;  %13757 = vst [vmem:[#allocation394_spill] sm:$0xff] %v10083_v4  ;;  %v10085_v31 = vmax.f32 %v1701_v28, 0.0  ;;  %v13760_v5 = vld [vmem:[#allocation243_spill] sm:$0xff] }
 0x486   :  { %13754 = vst [vmem:[#allocation393_spill] sm:$0xff] %v10065_v56 }
 0x487   :  { %v3454_v37 = vpop.f32.mrf.mxu2  ;;  %v3104_v44 = vpop.f32.mrf.mxu1  ;;  %13758 = vst [vmem:[#allocation395_spill] sm:$0xff] %v10085_v31 }
 0x488   :  { %v3455_v26 = vadd.f32 %v3454_v37, %v3102_v10  ;;  %v3105_v45 = vadd.f32 %v3104_v44, %v13760_v5 }
 0x489   :  { %v3807_v54 = vpop.f32.mrf.mxu3 }
 0x48a   :  { %v3808_v56 = vadd.f32 %v3807_v54, %v3455_v26  ;;  %3151 = vmatmul.f32.gmra.mxu1 %v13738_v55  ;;  %v12906_v26 = vrot.slane %v10085_v31, 7 }
 0x48c   :  { %v10087_v10 = vadd.f32 %v4160_v21, %v3808_v56  ;;  %3504 = vmatmul.f32.gmra.mxu2 %v10079_v36  ;;  %3857 = vmatmul.f32.gmra.mxu3 %v10083_v4  ;;  %v10100_v21 = vsel %vm2187_vm1, %v2178_v2, %v12904_v30  ;;  %v10106_v5 = vsel %vm1946_vm0, %v1940_v52, %v12906_v26 }
 0x48d   :  { %v4163_v37 = vpop.f32.mrf.mxu0  ;;  %4210 = vmatmul.f32.gmra.mxu0 %v10063_v47  ;;  %13761 = vst [vmem:[#allocation243_spill] sm:$0xff] %v10100_v21 }
 0x48e   :  { %13759 = vst [vmem:[#allocation396_spill] sm:$0xff] %v10087_v10 }
 0x48f   :  { %v3457_v59 = vpop.f32.mrf.mxu2  ;;  %v3107_v28 = vpop.f32.mrf.mxu1  ;;  %13762 = vst [vmem:[#allocation397_spill] sm:$0xff] %v10106_v5 }
 0x490   :  { %v3458_v35 = vadd.f32 %v3457_v59, %v3105_v45  ;;  %v13764_v59 = vld [vmem:[#allocation249_spill] sm:$0xff] }
 0x491   :  { %v3810_v56 = vpop.f32.mrf.mxu3  ;;  %v3108_v10 = vadd.f32 %v3107_v28, %v13764_v59 }
 0x492   :  { %v3811_v54 = vadd.f32 %v3810_v56, %v3458_v35  ;;  %3154 = vmatmul.f32.gmra.mxu1 %v13744_v57 }
 0x494   :  { %v10108_v44 = vadd.f32 %v4163_v37, %v3811_v54  ;;  %3507 = vmatmul.f32.gmra.mxu2 %v10100_v21  ;;  %3860 = vmatmul.f32.gmra.mxu3 %v10106_v5  ;;  %v13766_v37 = vld [vmem:[#allocation258_spill] sm:$0xff]  ;;  %v13767_v54 = vld [vmem:[#allocation63_spill] sm:$0xff] }
 0x495   :  { %v4166_v45 = vpop.f32.mrf.mxu0  ;;  %4213 = vmatmul.f32.gmra.mxu0 %v10085_v31  ;;  %v13770_v5 = vld [vmem:[#allocation270_spill] sm:$0xff] }
 0x496   :  { %13763 = vst [vmem:[#allocation398_spill] sm:$0xff] %v10108_v44  ;;  %v13768_v44 = vld [vmem:[#allocation251_spill] sm:$0xff] }
 0x497   :  { %v3460_v2 = vpop.f32.mrf.mxu2  ;;  %v3110_v35 = vpop.f32.mrf.mxu1 }
 0x498   :  { %v3461_v30 = vadd.f32 %v3460_v2, %v3108_v10  ;;  %v3111_v47 = vadd.f32 %v3110_v35, %v13768_v44  ;;  %v13776_v35 = vld [vmem:[#allocation273_spill] sm:$0xff] }
 0x499   :  { %v3813_v56 = vpop.f32.mrf.mxu3 }
 0x49a   :  { %v3814_v4 = vadd.f32 %v3813_v56, %v3461_v30  ;;  %4233 = vmatmul.f32.vlgmr.msra.gmra.mxu1 %v13766_v37  ;;  %v13772_v30 = vld [vmem:[#allocation261_spill] sm:$0xff] }
 0x49b   :  { %v13774_v56 = vld [vmem:[#allocation253_spill] sm:$0xff] }
 0x49c   :  { %v10115_v52 = vadd.f32 %v4166_v45, %v3814_v4  ;;  %4586 = vmatmul.f32.vlgmr.msra.gmra.mxu2 %v13767_v54  ;;  %4939 = vmatmul.f32.vlgmr.msra.gmra.mxu3 %v13769_v1  ;;  %v13773_v4 = vld [vmem:[#allocation71_spill] sm:$0xff]  ;;  %v13775_v54 = vld [vmem:[#allocation64_spill] sm:$0xff] }
 0x49d   :  { %v4169_v26 = vpop.f32.mrf.mxu0  ;;  %5292 = vmatmul.f32.vlgmr.msra.gmra.mxu0 %v13770_v5 }
 0x49e   :  { %13765 = vst [vmem:[#allocation249_spill] sm:$0xff] %v10115_v52 }
 0x49f   :  { %v3463_v28 = vpop.f32.mrf.mxu2  ;;  %v3113_v10 = vpop.f32.mrf.mxu1 }
 0x4a0   :  { %v3464_v59 = vadd.f32 %v3463_v28, %v3111_v47  ;;  %v3114_v37 = vadd.f32 %v3113_v10, %v13774_v56 }
 0x4a1   :  { %v3816_v2 = vpop.f32.mrf.mxu3 }
 0x4a2   :  { %v3817_v31 = vadd.f32 %v3816_v2, %v3464_v59  ;;  %4236 = vmatmul.f32.gmra.mxu1 %v13772_v30  ;;  %v13780_v2 = vld [vmem:[#allocation255_spill] sm:$0xff] }
 0x4a4   :  { %v10122_v21 = vadd.f32 %v4169_v26, %v3817_v31  ;;  %4589 = vmatmul.f32.gmra.mxu2 %v13773_v4  ;;  %4942 = vmatmul.f32.gmra.mxu3 %v13775_v54  ;;  %v13778_v31 = vld [vmem:[#allocation264_spill] sm:$0xff]  ;;  %v13779_v26 = vld [vmem:[#allocation79_spill] sm:$0xff] }
 0x4a5   :  { %v4172_v45 = vpop.f32.mrf.mxu0  ;;  %5295 = vmatmul.f32.gmra.mxu0 %v13776_v35  ;;  %v13781_v4 = vld [vmem:[#allocation72_spill] sm:$0xff] }
 0x4a6   :  { %13771 = vst [vmem:[#allocation258_spill] sm:$0xff] %v10122_v21  ;;  %v13782_v54 = vld [vmem:[#allocation276_spill] sm:$0xff] }
 0x4a7   :  { %v3466_v44 = vpop.f32.mrf.mxu2  ;;  %v3116_v47 = vpop.f32.mrf.mxu1 }
 0x4a8   :  { %v3467_v1 = vadd.f32 %v3466_v44, %v3114_v37  ;;  %v3117_v30 = vadd.f32 %v3116_v47, %v13780_v2 }
 0x4a9   :  { %v3819_v28 = vpop.f32.mrf.mxu3 }
 0x4aa   :  { %v3820_v52 = vadd.f32 %v3819_v28, %v3467_v1  ;;  %4239 = vmatmul.f32.gmra.mxu1 %v13778_v31  ;;  %v13786_v28 = vld [vmem:[#allocation257_spill] sm:$0xff] }
 0x4ac   :  { %v10129_v57 = vadd.f32 %v4172_v45, %v3820_v52  ;;  %4592 = vmatmul.f32.gmra.mxu2 %v13779_v26  ;;  %4945 = vmatmul.f32.gmra.mxu3 %v13781_v4  ;;  %v13784_v52 = vld [vmem:[#allocation267_spill] sm:$0xff]  ;;  %v13787_v26 = vld [vmem:[#allocation80_spill] sm:$0xff] }
 0x4ad   :  { %v4175_v59 = vpop.f32.mrf.mxu0  ;;  %5298 = vmatmul.f32.gmra.mxu0 %v13782_v54  ;;  %v13785_v45 = vld [vmem:[#allocation87_spill] sm:$0xff] }
 0x4ae   :  { %13777 = vst [vmem:[#allocation63_spill] sm:$0xff] %v10129_v57  ;;  %v13788_v4 = vld [vmem:[#allocation279_spill] sm:$0xff] }
 0x4af   :  { %v3469_v10 = vpop.f32.mrf.mxu2  ;;  %v3119_v37 = vpop.f32.mrf.mxu1 }
 0x4b0   :  { %v3470_v56 = vadd.f32 %v3469_v10, %v3117_v30  ;;  %v3120_v31 = vadd.f32 %v3119_v37, %v13786_v28  ;;  %v13793_v28 = vld [vmem:[#allocation282_spill] sm:$0xff] }
 0x4b1   :  { %v3822_v44 = vpop.f32.mrf.mxu3 }
 0x4b2   :  { %v3823_v21 = vadd.f32 %v3822_v44, %v3470_v56  ;;  %4242 = vmatmul.f32.gmra.mxu1 %v13784_v52  ;;  %v13791_v56 = vld [vmem:[#allocation260_spill] sm:$0xff] }
 0x4b3   :  { %v13792_v52 = vld [vmem:[#allocation88_spill] sm:$0xff] }
 0x4b4   :  { %v10136_v36 = vadd.f32 %v4175_v59, %v3823_v21  ;;  %4595 = vmatmul.f32.gmra.mxu2 %v13785_v45  ;;  %4948 = vmatmul.f32.gmra.mxu3 %v13787_v26  ;;  %v13790_v21 = vld [vmem:[#allocation95_spill] sm:$0xff] }
 0x4b5   :  { %v4178_v1 = vpop.f32.mrf.mxu0  ;;  %5301 = vmatmul.f32.gmra.mxu0 %v13788_v4 }
 0x4b6   :  { %13783 = vst [vmem:[#allocation251_spill] sm:$0xff] %v10136_v36 }
 0x4b7   :  { %v3472_v47 = vpop.f32.mrf.mxu2  ;;  %v3122_v30 = vpop.f32.mrf.mxu1 }
 0x4b8   :  { %v3473_v2 = vadd.f32 %v3472_v47, %v3120_v31  ;;  %v3123_v44 = vadd.f32 %v3122_v30, %v13791_v56  ;;  %v13798_v56 = vld [vmem:[#allocation286_spill] sm:$0xff] }
 0x4b9   :  { %v3825_v10 = vpop.f32.mrf.mxu3 }
 0x4ba   :  { %v3826_v57 = vadd.f32 %v3825_v10, %v3473_v2  ;;  %4245 = vmatmul.f32.gmra.mxu1 %v13770_v5  ;;  %v13797_v10 = vld [vmem:[#allocation96_spill] sm:$0xff] }
 0x4bc   :  { %v10143_v55 = vadd.f32 %v4178_v1, %v3826_v57  ;;  %4598 = vmatmul.f32.gmra.mxu2 %v13790_v21  ;;  %4951 = vmatmul.f32.gmra.mxu3 %v13792_v52  ;;  %v13795_v57 = vld [vmem:[#allocation103_spill] sm:$0xff] }
 0x4bd   :  { %v4181_v59 = vpop.f32.mrf.mxu0  ;;  %5304 = vmatmul.f32.gmra.mxu0 %v13793_v28  ;;  %v13796_v1 = vld [vmem:[#allocation263_spill] sm:$0xff] }
 0x4be   :  { %13789 = vst [vmem:[#allocation56_spill] sm:$0xff] %v10143_v55 }
 0x4bf   :  { %v3475_v37 = vpop.f32.mrf.mxu2  ;;  %v3125_v31 = vpop.f32.mrf.mxu1 }
 0x4c0   :  { %v3476_v45 = vadd.f32 %v3475_v37, %v3123_v44  ;;  %v3126_v2 = vadd.f32 %v3125_v31, %v13796_v1  ;;  %v13803_v1 = vld [vmem:[#allocation290_spill] sm:$0xff] }
 0x4c1   :  { %v3828_v26 = vpop.f32.mrf.mxu3 }
 0x4c2   :  { %v3829_v47 = vadd.f32 %v3828_v26, %v3476_v45  ;;  %4248 = vmatmul.f32.gmra.mxu1 %v13776_v35  ;;  %v13801_v45 = vld [vmem:[#allocation266_spill] sm:$0xff] }
 0x4c4   :  { %v10150_v36 = vadd.f32 %v4181_v59, %v3829_v47  ;;  %4601 = vmatmul.f32.gmra.mxu2 %v13795_v57  ;;  %4954 = vmatmul.f32.gmra.mxu3 %v13797_v10  ;;  %v13800_v59 = vld [vmem:[#allocation111_spill] sm:$0xff]  ;;  %v13802_v47 = vld [vmem:[#allocation104_spill] sm:$0xff] }
 0x4c5   :  { %v4184_v5 = vpop.f32.mrf.mxu0  ;;  %5307 = vmatmul.f32.gmra.mxu0 %v13798_v56 }
 0x4c6   :  { %13794 = vst [vmem:[#allocation270_spill] sm:$0xff] %v10150_v36 }
 0x4c7   :  { %v3478_v30 = vpop.f32.mrf.mxu2  ;;  %v3128_v44 = vpop.f32.mrf.mxu1 }
 0x4c8   :  { %v3479_v21 = vadd.f32 %v3478_v30, %v3126_v2  ;;  %v3129_v26 = vadd.f32 %v3128_v44, %v13801_v45  ;;  %v13808_v45 = vld [vmem:[#allocation294_spill] sm:$0xff] }
 0x4c9   :  { %v3831_v52 = vpop.f32.mrf.mxu3 }
 0x4ca   :  { %v3832_v37 = vadd.f32 %v3831_v52, %v3479_v21  ;;  %4251 = vmatmul.f32.gmra.mxu1 %v13782_v54  ;;  %v13806_v21 = vld [vmem:[#allocation269_spill] sm:$0xff] }
 0x4cc   :  { %v10157_v55 = vadd.f32 %v4184_v5, %v3832_v37  ;;  %4604 = vmatmul.f32.gmra.mxu2 %v13800_v59  ;;  %4957 = vmatmul.f32.gmra.mxu3 %v13802_v47  ;;  %v13805_v5 = vld [vmem:[#allocation119_spill] sm:$0xff]  ;;  %v13807_v37 = vld [vmem:[#allocation112_spill] sm:$0xff] }
 0x4cd   :  { %v4187_v35 = vpop.f32.mrf.mxu0  ;;  %5310 = vmatmul.f32.gmra.mxu0 %v13803_v1 }
 0x4ce   :  { %13799 = vst [vmem:[#allocation261_spill] sm:$0xff] %v10157_v55 }
 0x4cf   :  { %v3481_v31 = vpop.f32.mrf.mxu2  ;;  %v3131_v2 = vpop.f32.mrf.mxu1 }
 0x4d0   :  { %v3482_v57 = vadd.f32 %v3481_v31, %v3129_v26  ;;  %v3132_v52 = vadd.f32 %v3131_v2, %v13806_v21  ;;  %v13813_v21 = vld [vmem:[#allocation297_spill] sm:$0xff] }
 0x4d1   :  { %v3834_v10 = vpop.f32.mrf.mxu3 }
 0x4d2   :  { %v3835_v30 = vadd.f32 %v3834_v10, %v3482_v57  ;;  %4254 = vmatmul.f32.gmra.mxu1 %v13788_v4  ;;  %v13811_v57 = vld [vmem:[#allocation272_spill] sm:$0xff] }
 0x4d4   :  { %v10164_v36 = vadd.f32 %v4187_v35, %v3835_v30  ;;  %4607 = vmatmul.f32.gmra.mxu2 %v13805_v5  ;;  %4960 = vmatmul.f32.gmra.mxu3 %v13807_v37  ;;  %v13810_v35 = vld [vmem:[#allocation128_spill] sm:$0xff] }
 0x4d5   :  { %v4190_v54 = vpop.f32.mrf.mxu0  ;;  %5313 = vmatmul.f32.gmra.mxu0 %v13808_v45  ;;  %v13812_v30 = vld [vmem:[#allocation120_spill] sm:$0xff] }
 0x4d6   :  { %13804 = vst [vmem:[#allocation71_spill] sm:$0xff] %v10164_v36 }
 0x4d7   :  { %v3484_v44 = vpop.f32.mrf.mxu2  ;;  %v3134_v26 = vpop.f32.mrf.mxu1 }
 0x4d8   :  { %v3485_v59 = vadd.f32 %v3484_v44, %v3132_v52  ;;  %v3135_v10 = vadd.f32 %v3134_v26, %v13811_v57  ;;  %v13818_v57 = vld [vmem:[#allocation298_spill] sm:$0xff] }
 0x4d9   :  { %v3837_v47 = vpop.f32.mrf.mxu3 }
 0x4da   :  { %v3838_v31 = vadd.f32 %v3837_v47, %v3485_v59  ;;  %4257 = vmatmul.f32.gmra.mxu1 %v13793_v28  ;;  %v13816_v59 = vld [vmem:[#allocation275_spill] sm:$0xff] }
 0x4dc   :  { %v10171_v55 = vadd.f32 %v4190_v54, %v3838_v31  ;;  %4610 = vmatmul.f32.gmra.mxu2 %v13810_v35  ;;  %4963 = vmatmul.f32.gmra.mxu3 %v13812_v30  ;;  %v13815_v54 = vld [vmem:[#allocation139_spill] sm:$0xff]  ;;  %v13817_v31 = vld [vmem:[#allocation129_spill] sm:$0xff] }
 0x4dd   :  { %v4193_v4 = vpop.f32.mrf.mxu0  ;;  %5316 = vmatmul.f32.gmra.mxu0 %v13813_v21 }
 0x4de   :  { %13809 = vst [vmem:[#allocation253_spill] sm:$0xff] %v10171_v55 }
 0x4df   :  { %v3487_v2 = vpop.f32.mrf.mxu2  ;;  %v3137_v52 = vpop.f32.mrf.mxu1 }
 0x4e0   :  { %v3488_v5 = vadd.f32 %v3487_v2, %v3135_v10  ;;  %v3138_v47 = vadd.f32 %v3137_v52, %v13816_v59  ;;  %v13823_v59 = vld [vmem:[#allocation175_spill] sm:$0xff] }
 0x4e1   :  { %v3840_v37 = vpop.f32.mrf.mxu3 }
 0x4e2   :  { %v3841_v44 = vadd.f32 %v3840_v37, %v3488_v5  ;;  %4260 = vmatmul.f32.gmra.mxu1 %v13798_v56  ;;  %v13821_v5 = vld [vmem:[#allocation278_spill] sm:$0xff] }
 0x4e4   :  { %v10178_v36 = vadd.f32 %v4193_v4, %v3841_v44  ;;  %4613 = vmatmul.f32.gmra.mxu2 %v13815_v54  ;;  %4966 = vmatmul.f32.gmra.mxu3 %v13817_v31  ;;  %v13820_v4 = vld [vmem:[#allocation151_spill] sm:$0xff]  ;;  %v13822_v44 = vld [vmem:[#allocation140_spill] sm:$0xff] }
 0x4e5   :  { %v4196_v28 = vpop.f32.mrf.mxu0  ;;  %5319 = vmatmul.f32.gmra.mxu0 %v13818_v57 }
 0x4e6   :  { %13814 = vst [vmem:[#allocation64_spill] sm:$0xff] %v10178_v36 }
 0x4e7   :  { %v3490_v26 = vpop.f32.mrf.mxu2  ;;  %v3140_v10 = vpop.f32.mrf.mxu1 }
 0x4e8   :  { %v3491_v35 = vadd.f32 %v3490_v26, %v3138_v47  ;;  %v3141_v37 = vadd.f32 %v3140_v10, %v13821_v5  ;;  %v13828_v5 = vld [vmem:[#allocation150_spill] sm:$0xff] }
 0x4e9   :  { %v3843_v30 = vpop.f32.mrf.mxu3 }
 0x4ea   :  { %v3844_v2 = vadd.f32 %v3843_v30, %v3491_v35  ;;  %4263 = vmatmul.f32.gmra.mxu1 %v13803_v1  ;;  %v13826_v35 = vld [vmem:[#allocation281_spill] sm:$0xff] }
 0x4ec   :  { %v10185_v55 = vadd.f32 %v4196_v28, %v3844_v2  ;;  %4616 = vmatmul.f32.gmra.mxu2 %v13820_v4  ;;  %4969 = vmatmul.f32.gmra.mxu3 %v13822_v44  ;;  %v13825_v28 = vld [vmem:[#allocation163_spill] sm:$0xff]  ;;  %v13827_v2 = vld [vmem:[#allocation152_spill] sm:$0xff] }
 0x4ed   :  { %v4199_v56 = vpop.f32.mrf.mxu0  ;;  %5322 = vmatmul.f32.gmra.mxu0 %v13823_v59 }
 0x4ee   :  { %13819 = vst [vmem:[#allocation273_spill] sm:$0xff] %v10185_v55 }
 0x4ef   :  { %v3493_v52 = vpop.f32.mrf.mxu2  ;;  %v3143_v47 = vpop.f32.mrf.mxu1 }
 0x4f0   :  { %v3494_v54 = vadd.f32 %v3493_v52, %v3141_v37  ;;  %v3144_v30 = vadd.f32 %v3143_v47, %v13826_v35 }
 0x4f1   :  { %v3846_v31 = vpop.f32.mrf.mxu3 }
 0x4f2   :  { %v3847_v26 = vadd.f32 %v3846_v31, %v3494_v54  ;;  %4266 = vmatmul.f32.gmra.mxu1 %v13808_v45  ;;  %v13831_v54 = vld [vmem:[#allocation285_spill] sm:$0xff] }
 0x4f4   :  { %v10192_v36 = vadd.f32 %v4199_v56, %v3847_v26  ;;  %4619 = vmatmul.f32.gmra.mxu2 %v13825_v28  ;;  %4972 = vmatmul.f32.gmra.mxu3 %v13827_v2  ;;  %v13830_v56 = vld [vmem:[#allocation174_spill] sm:$0xff] }
 0x4f5   :  { %v4202_v1 = vpop.f32.mrf.mxu0  ;;  %5325 = vmatmul.f32.gmra.mxu0 %v13828_v5  ;;  %v13832_v28 = vld [vmem:[#allocation162_spill] sm:$0xff] }
 0x4f6   :  { %13824 = vst [vmem:[#allocation264_spill] sm:$0xff] %v10192_v36 }
 0x4f7   :  { %v3496_v10 = vpop.f32.mrf.mxu2  ;;  %v3146_v37 = vpop.f32.mrf.mxu1 }
 0x4f8   :  { %v3497_v4 = vadd.f32 %v3496_v10, %v3144_v30  ;;  %v3147_v31 = vadd.f32 %v3146_v37, %v13831_v54 }
 0x4f9   :  { %v3849_v44 = vpop.f32.mrf.mxu3 }
 0x4fa   :  { %v3850_v52 = vadd.f32 %v3849_v44, %v3497_v4  ;;  %4269 = vmatmul.f32.gmra.mxu1 %v13813_v21  ;;  %v13835_v4 = vld [vmem:[#allocation289_spill] sm:$0xff] }
 0x4fc   :  { %v10199_v55 = vadd.f32 %v4202_v1, %v3850_v52  ;;  %4622 = vmatmul.f32.gmra.mxu2 %v13830_v56  ;;  %4975 = vmatmul.f32.gmra.mxu3 %v8044_v29  ;;  %v13834_v1 = vld [vmem:[#allocation186_spill] sm:$0xff] }
 0x4fd   :  { %v4205_v45 = vpop.f32.mrf.mxu0  ;;  %5328 = vmatmul.f32.gmra.mxu0 %v13832_v28 }
 0x4fe   :  { %13829 = vst [vmem:[#allocation79_spill] sm:$0xff] %v10199_v55 }
 0x4ff   :  { %v3499_v47 = vpop.f32.mrf.mxu2  ;;  %v3149_v35 = vpop.f32.mrf.mxu1 }
 0x500   :  { %v3500_v26 = vadd.f32 %v3499_v47, %v3147_v31  ;;  %v3150_v44 = vadd.f32 %v3149_v35, %v13835_v4  ;;  %v13838_v47 = vld [vmem:[#allocation293_spill] sm:$0xff] }
 0x501   :  { %v3852_v30 = vpop.f32.mrf.mxu3 }
 0x502   :  { %v3853_v2 = vadd.f32 %v3852_v30, %v3500_v26  ;;  %4272 = vmatmul.f32.gmra.mxu1 %v13818_v57 }
 0x504   :  { %v10206_v10 = vadd.f32 %v4205_v45, %v3853_v2  ;;  %4625 = vmatmul.f32.gmra.mxu2 %v13834_v1  ;;  %4978 = vmatmul.f32.gmra.mxu3 %v13342_v39  ;;  %v13837_v45 = vld [vmem:[#allocation198_spill] sm:$0xff] }
 0x505   :  { %v4208_v21 = vpop.f32.mrf.mxu0  ;;  %5331 = vmatmul.f32.gmra.mxu0 %v8836_v9 }
 0x506   :  { %13833 = vst [vmem:[#allocation255_spill] sm:$0xff] %v10206_v10 }
 0x507   :  { %v3502_v37 = vpop.f32.mrf.mxu2  ;;  %v3152_v52 = vpop.f32.mrf.mxu1 }
 0x508   :  { %v3503_v29 = vadd.f32 %v3502_v37, %v3150_v44  ;;  %v3153_v26 = vadd.f32 %v3152_v52, %v13838_v47  ;;  %v13841_v44 = vld [vmem:[#allocation296_spill] sm:$0xff]  ;;  %v13844_v47 = vld [vmem:[#allocation299_spill] sm:$0xff] }
 0x509   :  { %v3855_v56 = vpop.f32.mrf.mxu3 }
 0x50a   :  { %v3856_v54 = vadd.f32 %v3855_v56, %v3503_v29  ;;  %4275 = vmatmul.f32.gmra.mxu1 %v13823_v59 }
 0x50c   :  { %v10213_v31 = vadd.f32 %v4208_v21, %v3856_v54  ;;  %4628 = vmatmul.f32.gmra.mxu2 %v13837_v45  ;;  %4981 = vmatmul.f32.gmra.mxu3 %v13347_v51  ;;  %v13840_v21 = vld [vmem:[#allocation210_spill] sm:$0xff] }
 0x50d   :  { %v4211_v57 = vpop.f32.mrf.mxu0  ;;  %5334 = vmatmul.f32.gmra.mxu0 %v8848_v63 }
 0x50e   :  { %13836 = vst [vmem:[#allocation72_spill] sm:$0xff] %v10213_v31 }
 0x50f   :  { %v3505_v35 = vpop.f32.mrf.mxu2  ;;  %v3155_v30 = vpop.f32.mrf.mxu1 }
 0x510   :  { %v3506_v39 = vadd.f32 %v3505_v35, %v3153_v26  ;;  %v3156_v37 = vadd.f32 %v3155_v30, %v13841_v44  ;;  %v13845_v35 = vld [vmem:[#allocation211_spill] sm:$0xff]  ;;  %v13846_v30 = vld [vmem:[#allocation209_spill] sm:$0xff] }
 0x511   :  { %v3858_v2 = vpop.f32.mrf.mxu3 }
 0x512   :  { %v3859_v1 = vadd.f32 %v3858_v2, %v3506_v39  ;;  %4278 = vmatmul.f32.gmra.mxu1 %v13828_v5 }
 0x514   :  { %v10220_v4 = vadd.f32 %v4211_v57, %v3859_v1  ;;  %4631 = vmatmul.f32.gmra.mxu2 %v13840_v21  ;;  %4984 = vmatmul.f32.gmra.mxu3 %v13352_v16  ;;  %v13843_v57 = vld [vmem:[#allocation222_spill] sm:$0xff] }
 0x515   :  { %v4214_v59 = vpop.f32.mrf.mxu0  ;;  %5337 = vmatmul.f32.gmra.mxu0 %v8860_v32 }
 0x516   :  { %13839 = vst [vmem:[#allocation276_spill] sm:$0xff] %v10220_v4 }
 0x517   :  { %v3508_v29 = vpop.f32.mrf.mxu2  ;;  %v4234_v56 = vpop.f32.mrf.mxu1 }
 0x518   :  { %v3509_v51 = vadd.f32 %v3508_v29, %v3156_v37  ;;  %v4235_v26 = vadd.f32 %v4234_v56, %v13844_v47  ;;  %v13848_v37 = vld [vmem:[#allocation300_spill] sm:$0xff] }
 0x519   :  { %v3861_v52 = vpop.f32.mrf.mxu3 }
 0x51a   :  { %v3862_v54 = vadd.f32 %v3861_v52, %v3509_v51  ;;  %4281 = vmatmul.f32.gmra.mxu1 %v13832_v28  ;;  %v13849_v51 = vld [vmem:[#allocation223_spill] sm:$0xff] }
 0x51c   :  { %v10227_v45 = vadd.f32 %v4214_v59, %v3862_v54  ;;  %4634 = vmatmul.f32.gmra.mxu2 %v13843_v57  ;;  %4987 = vmatmul.f32.gmra.mxu3 %v13845_v35  ;;  %v13847_v59 = vld [vmem:[#allocation233_spill] sm:$0xff] }
 0x51d   :  { %v5293_v5 = vpop.f32.mrf.mxu0  ;;  %5340 = vmatmul.f32.gmra.mxu0 %v13846_v30  ;;  %v13850_v54 = vld [vmem:[#allocation221_spill] sm:$0xff] }
 0x51e   :  { %13842 = vst [vmem:[#allocation267_spill] sm:$0xff] %v10227_v45 }
 0x51f   :  { %v4587_v39 = vpop.f32.mrf.mxu2  ;;  %v4237_v2 = vpop.f32.mrf.mxu1 }
 0x520   :  { %v4588_v16 = vadd.f32 %v4587_v39, %v4235_v26  ;;  %v4238_v29 = vadd.f32 %v4237_v2, %v13848_v37  ;;  %v13853_v39 = vld [vmem:[#allocation187_spill] sm:$0xff] }
 0x521   :  { %v4940_v1 = vpop.f32.mrf.mxu3 }
 0x522   :  { %v4941_v21 = vadd.f32 %v4940_v1, %v4588_v16  ;;  %4284 = vmatmul.f32.gmra.mxu1 %v8836_v9 }
 0x524   :  { %v10234_v44 = vadd.f32 %v5293_v5, %v4941_v21  ;;  %4637 = vmatmul.f32.gmra.mxu2 %v13847_v59  ;;  %4990 = vmatmul.f32.gmra.mxu3 %v13849_v51  ;;  %v13852_v5 = vld [vmem:[#allocation241_spill] sm:$0xff] }
 0x525   :  { %v5296_v28 = vpop.f32.mrf.mxu0  ;;  %5343 = vmatmul.f32.gmra.mxu0 %v13850_v54  ;;  %v13854_v21 = vld [vmem:[#allocation9_spill] sm:$0xff] }
 0x527   :  { %v4590_v52 = vpop.f32.mrf.mxu2  ;;  %v4240_v57 = vpop.f32.mrf.mxu1 }
 0x528   :  { %v4591_v56 = vadd.f32 %v4590_v52, %v4238_v29  ;;  %v4241_v16 = vadd.f32 %v4240_v57, %v13853_v39  ;;  %v13857_v52 = vld [vmem:[#allocation199_spill] sm:$0xff] }
 0x529   :  { %v4943_v47 = vpop.f32.mrf.mxu3 }
 0x52a   :  { %v4944_v26 = vadd.f32 %v4943_v47, %v4591_v56  ;;  %4287 = vmatmul.f32.gmra.mxu1 %v8848_v63  ;;  %v13858_v47 = vld [vmem:[#allocation14_spill] sm:$0xff] }
 0x52c   :  { %v10241_v35 = vadd.f32 %v5296_v28, %v4944_v26  ;;  %4640 = vmatmul.f32.gmra.mxu2 %v13852_v5  ;;  %4993 = vmatmul.f32.gmra.mxu3 %v8392_v58  ;;  %v13856_v28 = vld [vmem:[#allocation247_spill] sm:$0xff] }
 0x52d   :  { %v5299_v9 = vpop.f32.mrf.mxu0  ;;  %5346 = vmatmul.f32.gmra.mxu0 %v13854_v21 }
 0x52e   :  { %13851 = vst [vmem:[#allocation87_spill] sm:$0xff] %v10241_v35 }
 0x52f   :  { %v4593_v2 = vpop.f32.mrf.mxu2  ;;  %v4243_v59 = vpop.f32.mrf.mxu1 }
 0x530   :  { %v4594_v1 = vadd.f32 %v4593_v2, %v4241_v16  ;;  %v4244_v56 = vadd.f32 %v4243_v59, %v13857_v52  ;;  %v13861_v2 = vld [vmem:[#allocation173_spill] sm:$0xff] }
 0x531   :  { %v4946_v37 = vpop.f32.mrf.mxu3 }
 0x532   :  { %v4947_v29 = vadd.f32 %v4946_v37, %v4594_v1  ;;  %4290 = vmatmul.f32.gmra.mxu1 %v8860_v32  ;;  %v13862_v37 = vld [vmem:[#allocation20_spill] sm:$0xff] }
 0x534   :  { %v10248_v51 = vadd.f32 %v5299_v9, %v4947_v29  ;;  %4643 = vmatmul.f32.gmra.mxu2 %v13856_v28  ;;  %4996 = vmatmul.f32.gmra.mxu3 %v6928_v18  ;;  %v13860_v9 = vld [vmem:[#allocation8_spill] sm:$0xff] }
 0x535   :  { %v5302_v63 = vpop.f32.mrf.mxu0  ;;  %5349 = vmatmul.f32.gmra.mxu0 %v13858_v47 }
 0x536   :  { %13855 = vst [vmem:[#allocation257_spill] sm:$0xff] %v10248_v51 }
 0x537   :  { %v4596_v57 = vpop.f32.mrf.mxu2  ;;  %v4246_v26 = vpop.f32.mrf.mxu1 }
 0x538   :  { %v4597_v58 = vadd.f32 %v4596_v57, %v4244_v56  ;;  %v4247_v1 = vadd.f32 %v4246_v26, %v13861_v2  ;;  %v13864_v57 = vld [vmem:[#allocation185_spill] sm:$0xff] }
 0x539   :  { %v4949_v5 = vpop.f32.mrf.mxu3 }
 0x53a   :  { %v4950_v39 = vadd.f32 %v4949_v5, %v4597_v58  ;;  %4293 = vmatmul.f32.gmra.mxu1 %v13846_v30  ;;  %v13865_v5 = vld [vmem:[#allocation305_spill] sm:$0xff] }
 0x53c   :  { %v10255_v16 = vadd.f32 %v5302_v63, %v4950_v39  ;;  %4646 = vmatmul.f32.gmra.mxu2 %v13860_v9  ;;  %4999 = vmatmul.f32.gmra.mxu3 %v13369_v38  ;;  %v13863_v63 = vld [vmem:[#allocation15_spill] sm:$0xff] }
 0x53d   :  { %v5305_v32 = vpop.f32.mrf.mxu0  ;;  %5352 = vmatmul.f32.gmra.mxu0 %v13862_v37 }
 0x53e   :  { %13859 = vst [vmem:[#allocation80_spill] sm:$0xff] %v10255_v16 }
 0x53f   :  { %v4599_v59 = vpop.f32.mrf.mxu2  ;;  %v4249_v29 = vpop.f32.mrf.mxu1 }
 0x540   :  { %v4600_v18 = vadd.f32 %v4599_v59, %v4247_v1  ;;  %v4250_v58 = vadd.f32 %v4249_v29, %v13864_v57  ;;  %v13867_v59 = vld [vmem:[#allocation197_spill] sm:$0xff] }
 0x541   :  { %v4952_v28 = vpop.f32.mrf.mxu3 }
 0x542   :  { %v4953_v52 = vadd.f32 %v4952_v28, %v4600_v18  ;;  %4296 = vmatmul.f32.gmra.mxu1 %v13850_v54 }
 0x544   :  { %v10262_v56 = vadd.f32 %v5305_v32, %v4953_v52  ;;  %4649 = vmatmul.f32.gmra.mxu2 %v13863_v63  ;;  %5002 = vmatmul.f32.gmra.mxu3 %v13373_v15  ;;  %v13866_v32 = vld [vmem:[#allocation21_spill] sm:$0xff] }
 0x545   :  { %v5308_v30 = vpop.f32.mrf.mxu0  ;;  %5355 = vmatmul.f32.gmra.mxu0 %v13865_v5 }
 0x547   :  { %v4602_v26 = vpop.f32.mrf.mxu2  ;;  %v4252_v39 = vpop.f32.mrf.mxu1 }
 0x548   :  { %v4603_v38 = vadd.f32 %v4602_v26, %v4250_v58  ;;  %v4253_v18 = vadd.f32 %v4252_v39, %v13867_v59  ;;  %v13869_v58 = vld [vmem:[#allocation301_spill] sm:$0xff]  ;;  %v13870_v39 = vld [vmem:[#allocation40_spill] sm:$0xff] }
 0x549   :  { %v4955_v9 = vpop.f32.mrf.mxu3 }
 0x54a   :  { %v4956_v2 = vadd.f32 %v4955_v9, %v4603_v38  ;;  %4299 = vmatmul.f32.gmra.mxu1 %v13854_v21 }
 0x54c   :  { %v10269_v1 = vadd.f32 %v5308_v30, %v4956_v2  ;;  %4652 = vmatmul.f32.gmra.mxu2 %v13866_v32  ;;  %5005 = vmatmul.f32.gmra.mxu3 %v13377_v33  ;;  %v13868_v30 = vld [vmem:[#allocation26_spill] sm:$0xff] }
 0x54d   :  { %v5311_v54 = vpop.f32.mrf.mxu0  ;;  %5358 = vmatmul.f32.gmra.mxu0 %v8956_v46 }
 0x54f   :  { %v4605_v29 = vpop.f32.mrf.mxu2  ;;  %v4255_v28 = vpop.f32.mrf.mxu1 }
 0x550   :  { %v4606_v15 = vadd.f32 %v4605_v29, %v4253_v18  ;;  %v4256_v26 = vadd.f32 %v4255_v28, %v13869_v58  ;;  %v13873_v18 = vld [vmem:[#allocation2_spill] sm:$0xff] }
 0x551   :  { %v4958_v52 = vpop.f32.mrf.mxu3 }
 0x552   :  { %v4959_v63 = vadd.f32 %v4958_v52, %v4606_v15  ;;  %4302 = vmatmul.f32.gmra.mxu1 %v13858_v47  ;;  %v13874_v15 = vld [vmem:[#allocation28_spill] sm:$0xff] }
 0x553   :  { %v13875_v52 = vld [vmem:[#allocation44_spill] sm:$0xff] }
 0x554   :  { %v10276_v57 = vadd.f32 %v5311_v54, %v4959_v63  ;;  %4655 = vmatmul.f32.gmra.mxu2 %v13868_v30  ;;  %5008 = vmatmul.f32.gmra.mxu3 %v13381_v48  ;;  %v13872_v54 = vld [vmem:[#allocation33_spill] sm:$0xff] }
 0x555   :  { %v5314_v21 = vpop.f32.mrf.mxu0  ;;  %5361 = vmatmul.f32.gmra.mxu0 %v13870_v39 }
 0x557   :  { %v4608_v38 = vpop.f32.mrf.mxu2  ;;  %v4258_v9 = vpop.f32.mrf.mxu1 }
 0x558   :  { %v4609_v33 = vadd.f32 %v4608_v38, %v4256_v26  ;;  %v4259_v29 = vadd.f32 %v4258_v9, %v13873_v18  ;;  %v13877_v38 = vld [vmem:[#allocation302_spill] sm:$0xff] }
 0x559   :  { %v4961_v2 = vpop.f32.mrf.mxu3 }
 0x55a   :  { %v4962_v32 = vadd.f32 %v4961_v2, %v4609_v33  ;;  %4305 = vmatmul.f32.gmra.mxu1 %v13862_v37 }
 0x55c   :  { %v10283_v59 = vadd.f32 %v5314_v21, %v4962_v32  ;;  %4658 = vmatmul.f32.gmra.mxu2 %v13872_v54  ;;  %5011 = vmatmul.f32.gmra.mxu3 %v13874_v15  ;;  %v13876_v21 = vld [vmem:[#allocation38_spill] sm:$0xff]  ;;  %v13878_v32 = vld [vmem:[#allocation52_spill] sm:$0xff] }
 0x55d   :  { %v5317_v47 = vpop.f32.mrf.mxu0  ;;  %5364 = vmatmul.f32.gmra.mxu0 %v13875_v52 }
 0x55e   :  { %13871 = vst [vmem:[#allocation279_spill] sm:$0xff] %v10283_v59 }
 0x55f   :  { %v4611_v28 = vpop.f32.mrf.mxu2  ;;  %v4261_v63 = vpop.f32.mrf.mxu1 }
 0x560   :  { %v4612_v48 = vadd.f32 %v4611_v28, %v4259_v29  ;;  %v4262_v33 = vadd.f32 %v4261_v63, %v13877_v38  ;;  %v13881_v28 = vld [vmem:[#allocation303_spill] sm:$0xff] }
 0x561   :  { %v4964_v30 = vpop.f32.mrf.mxu3 }
 0x562   :  { %v4965_v58 = vadd.f32 %v4964_v30, %v4612_v48  ;;  %4308 = vmatmul.f32.gmra.mxu1 %v13865_v5  ;;  %v13882_v30 = vld [vmem:[#allocation57_spill] sm:$0xff] }
 0x564   :  { %v10290_v26 = vadd.f32 %v5317_v47, %v4965_v58  ;;  %4661 = vmatmul.f32.gmra.mxu2 %v13876_v21  ;;  %5014 = vmatmul.f32.gmra.mxu3 %v13389_v41  ;;  %v13880_v47 = vld [vmem:[#allocation45_spill] sm:$0xff] }
 0x565   :  { %v5320_v37 = vpop.f32.mrf.mxu0  ;;  %5367 = vmatmul.f32.gmra.mxu0 %v13878_v32 }
 0x567   :  { %v4614_v9 = vpop.f32.mrf.mxu2  ;;  %v4264_v54 = vpop.f32.mrf.mxu1 }
 0x568   :  { %v4615_v2 = vadd.f32 %v4614_v9, %v4262_v33  ;;  %v4265_v48 = vadd.f32 %v4264_v54, %v13881_v28  ;;  %v13885_v9 = vld [vmem:[#allocation304_spill] sm:$0xff] }
 0x569   :  { %v4967_v18 = vpop.f32.mrf.mxu3 }
 0x56a   :  { %v4968_v29 = vadd.f32 %v4967_v18, %v4615_v2  ;;  %4311 = vmatmul.f32.gmra.mxu1 %v8956_v46  ;;  %v13886_v18 = vld [vmem:[#allocation67_spill] sm:$0xff] }
 0x56c   :  { %v10297_v15 = vadd.f32 %v5320_v37, %v4968_v29  ;;  %4664 = vmatmul.f32.gmra.mxu2 %v13880_v47  ;;  %5017 = vmatmul.f32.gmra.mxu3 %v13392_v23  ;;  %v13884_v37 = vld [vmem:[#allocation50_spill] sm:$0xff] }
 0x56d   :  { %v5323_v5 = vpop.f32.mrf.mxu0  ;;  %5370 = vmatmul.f32.gmra.mxu0 %v13882_v30 }
 0x56e   :  { %13879 = vst [vmem:[#allocation95_spill] sm:$0xff] %v10297_v15 }
 0x56f   :  { %v4617_v63 = vpop.f32.mrf.mxu2  ;;  %v4267_v58 = vpop.f32.mrf.mxu1 }
 0x570   :  { %v4618_v41 = vadd.f32 %v4617_v63, %v4265_v48  ;;  %v4268_v2 = vadd.f32 %v4267_v58, %v13885_v9  ;;  %v13889_v63 = vld [vmem:[#allocation306_spill] sm:$0xff] }
 0x571   :  { %v4970_v21 = vpop.f32.mrf.mxu3 }
 0x572   :  { %v4971_v38 = vadd.f32 %v4970_v21, %v4618_v41  ;;  %4314 = vmatmul.f32.gmra.mxu1 %v13870_v39  ;;  %v13890_v21 = vld [vmem:[#allocation312_spill] sm:$0xff] }
 0x574   :  { %v10304_v33 = vadd.f32 %v5323_v5, %v4971_v38  ;;  %4667 = vmatmul.f32.gmra.mxu2 %v13884_v37  ;;  %5020 = vmatmul.f32.gmra.mxu3 %v13396_v42  ;;  %v13888_v5 = vld [vmem:[#allocation58_spill] sm:$0xff] }
 0x575   :  { %v5326_v46 = vpop.f32.mrf.mxu0  ;;  %5373 = vmatmul.f32.gmra.mxu0 %v13886_v18 }
 0x576   :  { %13883 = vst [vmem:[#allocation260_spill] sm:$0xff] %v10304_v33 }
 0x577   :  { %v4620_v54 = vpop.f32.mrf.mxu2  ;;  %v4270_v29 = vpop.f32.mrf.mxu1 }
 0x578   :  { %v4621_v23 = vadd.f32 %v4620_v54, %v4268_v2  ;;  %v4271_v41 = vadd.f32 %v4270_v29, %v13889_v63  ;;  %v13893_v54 = vld [vmem:[#allocation32_spill] sm:$0xff] }
 0x579   :  { %v4973_v47 = vpop.f32.mrf.mxu3 }
 0x57a   :  { %v4974_v28 = vadd.f32 %v4973_v47, %v4621_v23  ;;  %4317 = vmatmul.f32.gmra.mxu1 %v13875_v52 }
 0x57c   :  { %v10311_v48 = vadd.f32 %v5326_v46, %v4974_v28  ;;  %4670 = vmatmul.f32.gmra.mxu2 %v13888_v5  ;;  %5023 = vmatmul.f32.gmra.mxu3 %v13400_v24  ;;  %v13892_v46 = vld [vmem:[#allocation65_spill] sm:$0xff] }
 0x57d   :  { %v5329_v39 = vpop.f32.mrf.mxu0  ;;  %5376 = vmatmul.f32.gmra.mxu0 %v13890_v21 }
 0x57e   :  { %13887 = vst [vmem:[#allocation88_spill] sm:$0xff] %v10311_v48 }
 0x57f   :  { %v4623_v58 = vpop.f32.mrf.mxu2  ;;  %v4273_v38 = vpop.f32.mrf.mxu1 }
 0x580   :  { %v4624_v42 = vadd.f32 %v4623_v58, %v4271_v41  ;;  %v4274_v23 = vadd.f32 %v4273_v38, %v13893_v54  ;;  %v13896_v41 = vld [vmem:[#allocation307_spill] sm:$0xff]  ;;  %v13897_v38 = vld [vmem:[#allocation89_spill] sm:$0xff] }
 0x581   :  { %v4976_v37 = vpop.f32.mrf.mxu3 }
 0x582   :  { %v4977_v9 = vadd.f32 %v4976_v37, %v4624_v42  ;;  %4320 = vmatmul.f32.gmra.mxu1 %v13878_v32 }
 0x584   :  { %v10318_v2 = vadd.f32 %v5329_v39, %v4977_v9  ;;  %4673 = vmatmul.f32.gmra.mxu2 %v13892_v46  ;;  %5026 = vmatmul.f32.gmra.mxu3 %v13404_v3  ;;  %v13895_v39 = vld [vmem:[#allocation74_spill] sm:$0xff] }
 0x585   :  { %v5332_v52 = vpop.f32.mrf.mxu0  ;;  %5379 = vmatmul.f32.gmra.mxu0 %v9052_v60 }
 0x586   :  { %13891 = vst [vmem:[#allocation282_spill] sm:$0xff] %v10318_v2 }
 0x587   :  { %v4626_v29 = vpop.f32.mrf.mxu2  ;;  %v4276_v47 = vpop.f32.mrf.mxu1 }
 0x588   :  { %v4627_v24 = vadd.f32 %v4626_v29, %v4274_v23  ;;  %v4277_v58 = vadd.f32 %v4276_v47, %v13896_v41  ;;  %v13900_v23 = vld [vmem:[#allocation308_spill] sm:$0xff] }
 0x589   :  { %v4979_v28 = vpop.f32.mrf.mxu3 }
 0x58a   :  { %v4980_v5 = vadd.f32 %v4979_v28, %v4627_v24  ;;  %4323 = vmatmul.f32.gmra.mxu1 %v13882_v30  ;;  %v13901_v24 = vld [vmem:[#allocation73_spill] sm:$0xff]  ;;  %v13902_v28 = vld [vmem:[#allocation99_spill] sm:$0xff] }
 0x58c   :  { %v10325_v63 = vadd.f32 %v5332_v52, %v4980_v5  ;;  %4676 = vmatmul.f32.gmra.mxu2 %v13895_v39  ;;  %5029 = vmatmul.f32.gmra.mxu3 %v13408_v40  ;;  %v13899_v52 = vld [vmem:[#allocation81_spill] sm:$0xff] }
 0x58d   :  { %v5335_v32 = vpop.f32.mrf.mxu0  ;;  %5382 = vmatmul.f32.gmra.mxu0 %v13897_v38 }
 0x58e   :  { %13894 = vst [vmem:[#allocation103_spill] sm:$0xff] %v10325_v63 }
 0x58f   :  { %v4629_v42 = vpop.f32.mrf.mxu2  ;;  %v4279_v37 = vpop.f32.mrf.mxu1 }
 0x590   :  { %v4630_v3 = vadd.f32 %v4629_v42, %v4277_v58  ;;  %v4280_v29 = vadd.f32 %v4279_v37, %v13900_v23  ;;  %v13905_v42 = vld [vmem:[#allocation309_spill] sm:$0xff] }
 0x591   :  { %v4982_v9 = vpop.f32.mrf.mxu3 }
 0x592   :  { %v4983_v46 = vadd.f32 %v4982_v9, %v4630_v3  ;;  %4326 = vmatmul.f32.gmra.mxu1 %v13886_v18 }
 0x594   :  { %v10332_v54 = vadd.f32 %v5335_v32, %v4983_v46  ;;  %4679 = vmatmul.f32.gmra.mxu2 %v13899_v52  ;;  %5032 = vmatmul.f32.gmra.mxu3 %v13901_v24  ;;  %v13904_v32 = vld [vmem:[#allocation90_spill] sm:$0xff]  ;;  %v13906_v46 = vld [vmem:[#allocation316_spill] sm:$0xff] }
 0x595   :  { %v5338_v30 = vpop.f32.mrf.mxu0  ;;  %5385 = vmatmul.f32.gmra.mxu0 %v13902_v28 }
 0x596   :  { %13898 = vst [vmem:[#allocation263_spill] sm:$0xff] %v10332_v54 }
 0x597   :  { %v4632_v47 = vpop.f32.mrf.mxu2  ;;  %v4282_v5 = vpop.f32.mrf.mxu1 }
 0x598   :  { %v4633_v40 = vadd.f32 %v4632_v47, %v4280_v29  ;;  %v4283_v3 = vadd.f32 %v4282_v5, %v13905_v42  ;;  %v13909_v47 = vld [vmem:[#allocation310_spill] sm:$0xff] }
 0x599   :  { %v4985_v39 = vpop.f32.mrf.mxu3 }
 0x59a   :  { %v4986_v41 = vadd.f32 %v4985_v39, %v4633_v40  ;;  %4329 = vmatmul.f32.gmra.mxu1 %v13890_v21  ;;  %v13910_v39 = vld [vmem:[#allocation318_spill] sm:$0xff] }
 0x59c   :  { %v10339_v58 = vadd.f32 %v5338_v30, %v4986_v41  ;;  %4682 = vmatmul.f32.gmra.mxu2 %v13904_v32  ;;  %5035 = vmatmul.f32.gmra.mxu3 %v13416_v7  ;;  %v13908_v30 = vld [vmem:[#allocation97_spill] sm:$0xff] }
 0x59d   :  { %v5341_v18 = vpop.f32.mrf.mxu0  ;;  %5388 = vmatmul.f32.gmra.mxu0 %v13906_v46 }
 0x59e   :  { %13903 = vst [vmem:[#allocation96_spill] sm:$0xff] %v10339_v58 }
 0x59f   :  { %v4635_v37 = vpop.f32.mrf.mxu2  ;;  %v4285_v52 = vpop.f32.mrf.mxu1 }
 0x5a0   :  { %v4636_v9 = vadd.f32 %v4635_v37, %v4283_v3  ;;  %v4286_v40 = vadd.f32 %v4285_v52, %v13909_v47  ;;  %v13913_v37 = vld [vmem:[#allocation311_spill] sm:$0xff] }
 0x5a1   :  { %v4988_v23 = vpop.f32.mrf.mxu3 }
 0x5a2   :  { %v4989_v29 = vadd.f32 %v4988_v23, %v4636_v9  ;;  %4332 = vmatmul.f32.gmra.mxu1 %v9052_v60  ;;  %v13914_v23 = vld [vmem:[#allocation320_spill] sm:$0xff] }
 0x5a4   :  { %v10346_v24 = vadd.f32 %v5341_v18, %v4989_v29  ;;  %4685 = vmatmul.f32.gmra.mxu2 %v13908_v30  ;;  %5038 = vmatmul.f32.gmra.mxu3 %v13419_v20  ;;  %v13912_v18 = vld [vmem:[#allocation106_spill] sm:$0xff] }
 0x5a5   :  { %v5344_v21 = vpop.f32.mrf.mxu0  ;;  %5391 = vmatmul.f32.gmra.mxu0 %v13910_v39 }
 0x5a6   :  { %13907 = vst [vmem:[#allocation286_spill] sm:$0xff] %v10346_v24 }
 0x5a7   :  { %v4638_v5 = vpop.f32.mrf.mxu2  ;;  %v4288_v41 = vpop.f32.mrf.mxu1 }
 0x5a8   :  { %v4639_v7 = vadd.f32 %v4638_v5, %v4286_v40  ;;  %v4289_v9 = vadd.f32 %v4288_v41, %v13913_v37  ;;  %v13917_v5 = vld [vmem:[#allocation313_spill] sm:$0xff] }
 0x5a9   :  { %v4991_v32 = vpop.f32.mrf.mxu3 }
 0x5aa   :  { %v4992_v42 = vadd.f32 %v4991_v32, %v4639_v7  ;;  %4335 = vmatmul.f32.gmra.mxu1 %v13897_v38  ;;  %v13918_v32 = vld [vmem:[#allocation105_spill] sm:$0xff] }
 0x5ac   :  { %v10353_v3 = vadd.f32 %v5344_v21, %v4992_v42  ;;  %4688 = vmatmul.f32.gmra.mxu2 %v13912_v18  ;;  %5041 = vmatmul.f32.gmra.mxu3 %v13423_v13  ;;  %v13916_v21 = vld [vmem:[#allocation113_spill] sm:$0xff]  ;;  %v13919_v42 = vld [vmem:[#allocation322_spill] sm:$0xff] }
 0x5ad   :  { %v5347_v60 = vpop.f32.mrf.mxu0  ;;  %5394 = vmatmul.f32.gmra.mxu0 %v13914_v23 }
 0x5ae   :  { %13911 = vst [vmem:[#allocation111_spill] sm:$0xff] %v10353_v3 }
 0x5af   :  { %v4641_v52 = vpop.f32.mrf.mxu2  ;;  %v4291_v29 = vpop.f32.mrf.mxu1 }
 0x5b0   :  { %v4642_v20 = vadd.f32 %v4641_v52, %v4289_v9  ;;  %v4292_v7 = vadd.f32 %v4291_v29, %v13917_v5  ;;  %v13924_v5 = vld [vmem:[#allocation324_spill] sm:$0xff] }
 0x5b1   :  { %v4994_v30 = vpop.f32.mrf.mxu3 }
 0x5b2   :  { %v4995_v47 = vadd.f32 %v4994_v30, %v4642_v20  ;;  %4338 = vmatmul.f32.gmra.mxu1 %v13902_v28  ;;  %v13922_v20 = vld [vmem:[#allocation83_spill] sm:$0xff] }
 0x5b4   :  { %v10360_v40 = vadd.f32 %v5347_v60, %v4995_v47  ;;  %4691 = vmatmul.f32.gmra.mxu2 %v13916_v21  ;;  %5044 = vmatmul.f32.gmra.mxu3 %v13918_v32  ;;  %v13921_v60 = vld [vmem:[#allocation123_spill] sm:$0xff] }
 0x5b5   :  { %v5350_v38 = vpop.f32.mrf.mxu0  ;;  %5397 = vmatmul.f32.gmra.mxu0 %v13919_v42  ;;  %v13923_v47 = vld [vmem:[#allocation115_spill] sm:$0xff] }
 0x5b6   :  { %13915 = vst [vmem:[#allocation266_spill] sm:$0xff] %v10360_v40 }
 0x5b7   :  { %v4644_v41 = vpop.f32.mrf.mxu2  ;;  %v4294_v18 = vpop.f32.mrf.mxu1 }
 0x5b8   :  { %v4645_v13 = vadd.f32 %v4644_v41, %v4292_v7  ;;  %v4295_v30 = vadd.f32 %v4294_v18, %v13922_v20  ;;  %v13929_v20 = vld [vmem:[#allocation122_spill] sm:$0xff] }
 0x5b9   :  { %v4997_v37 = vpop.f32.mrf.mxu3 }
 0x5ba   :  { %v4998_v9 = vadd.f32 %v4997_v37, %v4645_v13  ;;  %4341 = vmatmul.f32.gmra.mxu1 %v13906_v46  ;;  %v13927_v13 = vld [vmem:[#allocation314_spill] sm:$0xff] }
 0x5bc   :  { %v10367_v52 = vadd.f32 %v5350_v38, %v4998_v9  ;;  %4694 = vmatmul.f32.gmra.mxu2 %v13921_v60  ;;  %5047 = vmatmul.f32.gmra.mxu3 %v13923_v47  ;;  %v13926_v38 = vld [vmem:[#allocation131_spill] sm:$0xff]  ;;  %v13928_v9 = vld [vmem:[#allocation121_spill] sm:$0xff] }
 0x5bd   :  { %v5353_v28 = vpop.f32.mrf.mxu0  ;;  %5400 = vmatmul.f32.gmra.mxu0 %v13924_v5 }
 0x5be   :  { %13920 = vst [vmem:[#allocation104_spill] sm:$0xff] %v10367_v52 }
 0x5bf   :  { %v4647_v29 = vpop.f32.mrf.mxu2  ;;  %v4297_v7 = vpop.f32.mrf.mxu1 }
 0x5c0   :  { %v4648_v21 = vadd.f32 %v4647_v29, %v4295_v30  ;;  %v4298_v37 = vadd.f32 %v4297_v7, %v13927_v13  ;;  %v13934_v13 = vld [vmem:[#allocation132_spill] sm:$0xff] }
 0x5c1   :  { %v5000_v32 = vpop.f32.mrf.mxu3 }
 0x5c2   :  { %v5001_v41 = vadd.f32 %v5000_v32, %v4648_v21  ;;  %4344 = vmatmul.f32.gmra.mxu1 %v13910_v39  ;;  %v13932_v21 = vld [vmem:[#allocation315_spill] sm:$0xff] }
 0x5c4   :  { %v10374_v45 = vadd.f32 %v5353_v28, %v5001_v41  ;;  %4697 = vmatmul.f32.gmra.mxu2 %v13926_v38  ;;  %5050 = vmatmul.f32.gmra.mxu3 %v13928_v9  ;;  %v13931_v28 = vld [vmem:[#allocation145_spill] sm:$0xff]  ;;  %v13933_v41 = vld [vmem:[#allocation135_spill] sm:$0xff] }
 0x5c5   :  { %v5356_v46 = vpop.f32.mrf.mxu0  ;;  %5403 = vmatmul.f32.gmra.mxu0 %v13929_v20 }
 0x5c6   :  { %13925 = vst [vmem:[#allocation290_spill] sm:$0xff] %v10374_v45 }
 0x5c7   :  { %v4650_v18 = vpop.f32.mrf.mxu2  ;;  %v4300_v30 = vpop.f32.mrf.mxu1 }
 0x5c8   :  { %v4651_v60 = vadd.f32 %v4650_v18, %v4298_v37  ;;  %v4301_v32 = vadd.f32 %v4300_v30, %v13932_v21  ;;  %v13939_v21 = vld [vmem:[#allocation143_spill] sm:$0xff] }
 0x5c9   :  { %v5003_v47 = vpop.f32.mrf.mxu3 }
 0x5ca   :  { %v5004_v29 = vadd.f32 %v5003_v47, %v4651_v60  ;;  %4347 = vmatmul.f32.gmra.mxu1 %v13914_v23  ;;  %v13937_v60 = vld [vmem:[#allocation317_spill] sm:$0xff] }
 0x5cc   :  { %v10381_v4 = vadd.f32 %v5356_v46, %v5004_v29  ;;  %4700 = vmatmul.f32.gmra.mxu2 %v13931_v28  ;;  %5053 = vmatmul.f32.gmra.mxu3 %v13933_v41  ;;  %v13936_v46 = vld [vmem:[#allocation154_spill] sm:$0xff] }
 0x5cd   :  { %v5359_v39 = vpop.f32.mrf.mxu0  ;;  %5406 = vmatmul.f32.gmra.mxu0 %v13934_v13  ;;  %v13938_v29 = vld [vmem:[#allocation142_spill] sm:$0xff] }
 0x5ce   :  { %13930 = vst [vmem:[#allocation119_spill] sm:$0xff] %v10381_v4 }
 0x5cf   :  { %v4653_v7 = vpop.f32.mrf.mxu2  ;;  %v4303_v37 = vpop.f32.mrf.mxu1 }
 0x5d0   :  { %v4654_v38 = vadd.f32 %v4653_v7, %v4301_v32  ;;  %v4304_v47 = vadd.f32 %v4303_v37, %v13937_v60 }
 0x5d1   :  { %v5006_v9 = vpop.f32.mrf.mxu3 }
 0x5d2   :  { %v5007_v18 = vadd.f32 %v5006_v9, %v4654_v38  ;;  %4350 = vmatmul.f32.gmra.mxu1 %v13919_v42  ;;  %v13942_v38 = vld [vmem:[#allocation319_spill] sm:$0xff] }
 0x5d4   :  { %v10388_v31 = vadd.f32 %v5359_v39, %v5007_v18  ;;  %4703 = vmatmul.f32.gmra.mxu2 %v13936_v46  ;;  %5056 = vmatmul.f32.gmra.mxu3 %v13938_v29  ;;  %v13941_v39 = vld [vmem:[#allocation168_spill] sm:$0xff]  ;;  %v13943_v46 = vld [vmem:[#allocation155_spill] sm:$0xff] }
 0x5d5   :  { %v5362_v23 = vpop.f32.mrf.mxu0  ;;  %5409 = vmatmul.f32.gmra.mxu0 %v13939_v21 }
 0x5d6   :  { %13935 = vst [vmem:[#allocation269_spill] sm:$0xff] %v10388_v31 }
 0x5d7   :  { %v4656_v30 = vpop.f32.mrf.mxu2  ;;  %v4306_v32 = vpop.f32.mrf.mxu1 }
 0x5d8   :  { %v4657_v28 = vadd.f32 %v4656_v30, %v4304_v47  ;;  %v4307_v9 = vadd.f32 %v4306_v32, %v13942_v38 }
 0x5d9   :  { %v5009_v41 = vpop.f32.mrf.mxu3 }
 0x5da   :  { %v5010_v7 = vadd.f32 %v5009_v41, %v4657_v28  ;;  %4353 = vmatmul.f32.gmra.mxu1 %v13924_v5  ;;  %v13946_v28 = vld [vmem:[#allocation321_spill] sm:$0xff] }
 0x5dc   :  { %v10395_v10 = vadd.f32 %v5362_v23, %v5010_v7  ;;  %4706 = vmatmul.f32.gmra.mxu2 %v13941_v39  ;;  %5059 = vmatmul.f32.gmra.mxu3 %v13448_v25  ;;  %v13945_v23 = vld [vmem:[#allocation177_spill] sm:$0xff]  ;;  %v13948_v39 = vld [vmem:[#allocation166_spill] sm:$0xff] }
 0x5dd   :  { %v5365_v42 = vpop.f32.mrf.mxu0  ;;  %5412 = vmatmul.f32.gmra.mxu0 %v13943_v46  ;;  %v13947_v7 = vld [vmem:[#allocation165_spill] sm:$0xff] }
 0x5de   :  { %13940 = vst [vmem:[#allocation112_spill] sm:$0xff] %v10395_v10 }
 0x5df   :  { %v4659_v37 = vpop.f32.mrf.mxu2  ;;  %v4309_v60 = vpop.f32.mrf.mxu1 }
 0x5e0   :  { %v4660_v18 = vadd.f32 %v4659_v37, %v4307_v9  ;;  %v4310_v41 = vadd.f32 %v4309_v60, %v13946_v28 }
 0x5e1   :  { %v5012_v47 = vpop.f32.mrf.mxu3 }
 0x5e2   :  { %v5013_v29 = vadd.f32 %v5012_v47, %v4660_v18  ;;  %4356 = vmatmul.f32.gmra.mxu1 %v13929_v20  ;;  %v13951_v18 = vld [vmem:[#allocation323_spill] sm:$0xff] }
 0x5e4   :  { %v10402_v30 = vadd.f32 %v5365_v42, %v5013_v29  ;;  %4709 = vmatmul.f32.gmra.mxu2 %v13945_v23  ;;  %5062 = vmatmul.f32.gmra.mxu3 %v13947_v7  ;;  %v13950_v42 = vld [vmem:[#allocation192_spill] sm:$0xff] }
 0x5e5   :  { %v5368_v5 = vpop.f32.mrf.mxu0  ;;  %5415 = vmatmul.f32.gmra.mxu0 %v13948_v39 }
 0x5e6   :  { %13944 = vst [vmem:[#allocation294_spill] sm:$0xff] %v10402_v30 }
 0x5e7   :  { %v4662_v32 = vpop.f32.mrf.mxu2  ;;  %v4312_v38 = vpop.f32.mrf.mxu1 }
 0x5e8   :  { %v4663_v25 = vadd.f32 %v4662_v32, %v4310_v41  ;;  %v4313_v47 = vadd.f32 %v4312_v38, %v13951_v18  ;;  %v13954_v32 = vld [vmem:[#allocation325_spill] sm:$0xff] }
 0x5e9   :  { %v5015_v9 = vpop.f32.mrf.mxu3 }
 0x5ea   :  { %v5016_v37 = vadd.f32 %v5015_v9, %v4663_v25  ;;  %4359 = vmatmul.f32.gmra.mxu1 %v13934_v13  ;;  %v13955_v9 = vld [vmem:[#allocation189_spill] sm:$0xff] }
 0x5ec   :  { %v10409_v36 = vadd.f32 %v5368_v5, %v5016_v37  ;;  %4712 = vmatmul.f32.gmra.mxu2 %v13950_v42  ;;  %5065 = vmatmul.f32.gmra.mxu3 %v13458_v0  ;;  %v13953_v5 = vld [vmem:[#allocation201_spill] sm:$0xff]  ;;  %v13956_v37 = vld [vmem:[#allocation190_spill] sm:$0xff] }
 0x5ed   :  { %v5371_v20 = vpop.f32.mrf.mxu0  ;;  %5418 = vmatmul.f32.gmra.mxu0 %v9232_v6 }
 0x5ee   :  { %13949 = vst [vmem:[#allocation128_spill] sm:$0xff] %v10409_v36 }
 0x5ef   :  { %v4665_v60 = vpop.f32.mrf.mxu2  ;;  %v4315_v23 = vpop.f32.mrf.mxu1 }
 0x5f0   :  { %v4666_v29 = vadd.f32 %v4665_v60, %v4313_v47  ;;  %v4316_v25 = vadd.f32 %v4315_v23, %v13954_v32  ;;  %v13961_v32 = vld [vmem:[#allocation202_spill] sm:$0xff] }
 0x5f1   :  { %v5018_v28 = vpop.f32.mrf.mxu3 }
 0x5f2   :  { %v5019_v41 = vadd.f32 %v5018_v28, %v4666_v29  ;;  %4362 = vmatmul.f32.gmra.mxu1 %v13939_v21  ;;  %v13959_v29 = vld [vmem:[#allocation158_spill] sm:$0xff] }
 0x5f4   :  { %v10416_v7 = vadd.f32 %v5371_v20, %v5019_v41  ;;  %4715 = vmatmul.f32.gmra.mxu2 %v13953_v5  ;;  %5068 = vmatmul.f32.gmra.mxu3 %v13955_v9  ;;  %v13958_v20 = vld [vmem:[#allocation216_spill] sm:$0xff]  ;;  %v13960_v41 = vld [vmem:[#allocation205_spill] sm:$0xff] }
 0x5f5   :  { %v5374_v13 = vpop.f32.mrf.mxu0  ;;  %5421 = vmatmul.f32.gmra.mxu0 %v13956_v37 }
 0x5f6   :  { %13952 = vst [vmem:[#allocation272_spill] sm:$0xff] %v10416_v7 }
 0x5f7   :  { %v4668_v38 = vpop.f32.mrf.mxu2  ;;  %v4318_v42 = vpop.f32.mrf.mxu1 }
 0x5f8   :  { %v4669_v0 = vadd.f32 %v4668_v38, %v4316_v25  ;;  %v4319_v28 = vadd.f32 %v4318_v42, %v13959_v29  ;;  %v13966_v29 = vld [vmem:[#allocation214_spill] sm:$0xff] }
 0x5f9   :  { %v5021_v18 = vpop.f32.mrf.mxu3 }
 0x5fa   :  { %v5022_v47 = vadd.f32 %v5021_v18, %v4669_v0  ;;  %4365 = vmatmul.f32.gmra.mxu1 %v13943_v46  ;;  %v13964_v0 = vld [vmem:[#allocation326_spill] sm:$0xff] }
 0x5fc   :  { %v10423_v60 = vadd.f32 %v5374_v13, %v5022_v47  ;;  %4718 = vmatmul.f32.gmra.mxu2 %v13958_v20  ;;  %5071 = vmatmul.f32.gmra.mxu3 %v13960_v41  ;;  %v13963_v13 = vld [vmem:[#allocation225_spill] sm:$0xff] }
 0x5fd   :  { %v5377_v21 = vpop.f32.mrf.mxu0  ;;  %5424 = vmatmul.f32.gmra.mxu0 %v13961_v32  ;;  %v13965_v47 = vld [vmem:[#allocation213_spill] sm:$0xff] }
 0x5fe   :  { %13957 = vst [vmem:[#allocation120_spill] sm:$0xff] %v10423_v60 }
 0x5ff   :  { %v4671_v23 = vpop.f32.mrf.mxu2  ;;  %v4321_v25 = vpop.f32.mrf.mxu1 }
 0x600   :  { %v4672_v5 = vadd.f32 %v4671_v23, %v4319_v28  ;;  %v4322_v18 = vadd.f32 %v4321_v25, %v13964_v0 }
 0x601   :  { %v5024_v9 = vpop.f32.mrf.mxu3 }
 0x602   :  { %v5025_v38 = vadd.f32 %v5024_v9, %v4672_v5  ;;  %4368 = vmatmul.f32.gmra.mxu1 %v13948_v39  ;;  %v13969_v5 = vld [vmem:[#allocation181_spill] sm:$0xff] }
 0x604   :  { %v10430_v55 = vadd.f32 %v5377_v21, %v5025_v38  ;;  %4721 = vmatmul.f32.gmra.mxu2 %v13963_v13  ;;  %5074 = vmatmul.f32.gmra.mxu3 %v13965_v47  ;;  %v13968_v21 = vld [vmem:[#allocation237_spill] sm:$0xff]  ;;  %v13970_v13 = vld [vmem:[#allocation226_spill] sm:$0xff] }
 0x605   :  { %v5380_v46 = vpop.f32.mrf.mxu0  ;;  %5427 = vmatmul.f32.gmra.mxu0 %v13966_v29 }
 0x606   :  { %13962 = vst [vmem:[#allocation297_spill] sm:$0xff] %v10430_v55 }
 0x607   :  { %v4674_v42 = vpop.f32.mrf.mxu2  ;;  %v4324_v28 = vpop.f32.mrf.mxu1 }
 0x608   :  { %v4675_v20 = vadd.f32 %v4674_v42, %v4322_v18  ;;  %v4325_v9 = vadd.f32 %v4324_v28, %v13969_v5 }
 0x609   :  { %v5027_v41 = vpop.f32.mrf.mxu3 }
 0x60a   :  { %v5028_v23 = vadd.f32 %v5027_v41, %v4675_v20  ;;  %4371 = vmatmul.f32.gmra.mxu1 %v9232_v6  ;;  %v13973_v20 = vld [vmem:[#allocation327_spill] sm:$0xff] }
 0x60c   :  { %v10437_v7 = vadd.f32 %v5380_v46, %v5028_v23  ;;  %4724 = vmatmul.f32.gmra.mxu2 %v13968_v21  ;;  %5077 = vmatmul.f32.gmra.mxu3 %v13476_v14  ;;  %v13972_v46 = vld [vmem:[#allocation244_spill] sm:$0xff]  ;;  %v13974_v23 = vld [vmem:[#allocation235_spill] sm:$0xff] }
 0x60d   :  { %v5383_v39 = vpop.f32.mrf.mxu0  ;;  %5430 = vmatmul.f32.gmra.mxu0 %v13970_v13 }
 0x60e   :  { %13967 = vst [vmem:[#allocation139_spill] sm:$0xff] %v10437_v7 }
 0x60f   :  { %v4677_v25 = vpop.f32.mrf.mxu2  ;;  %v4327_v0 = vpop.f32.mrf.mxu1 }
 0x610   :  { %v4678_v38 = vadd.f32 %v4677_v25, %v4325_v9  ;;  %v4328_v41 = vadd.f32 %v4327_v0, %v13973_v20 }
 0x611   :  { %v5030_v18 = vpop.f32.mrf.mxu3 }
 0x612   :  { %v5031_v47 = vadd.f32 %v5030_v18, %v4678_v38  ;;  %4374 = vmatmul.f32.gmra.mxu1 %v13956_v37  ;;  %v13977_v38 = vld [vmem:[#allocation328_spill] sm:$0xff] }
 0x614   :  { %v10444_v42 = vadd.f32 %v5383_v39, %v5031_v47  ;;  %4727 = vmatmul.f32.gmra.mxu2 %v13972_v46  ;;  %5080 = vmatmul.f32.gmra.mxu3 %v6938_v22  ;;  %v13976_v39 = vld [vmem:[#allocation10_spill] sm:$0xff]  ;;  %v13978_v47 = vld [vmem:[#allocation23_spill] sm:$0xff] }
 0x615   :  { %v5386_v6 = vpop.f32.mrf.mxu0  ;;  %5433 = vmatmul.f32.gmra.mxu0 %v13974_v23 }
 0x616   :  { %13971 = vst [vmem:[#allocation275_spill] sm:$0xff] %v10444_v42 }
 0x617   :  { %v4680_v28 = vpop.f32.mrf.mxu2  ;;  %v4330_v21 = vpop.f32.mrf.mxu1 }
 0x618   :  { %v4681_v14 = vadd.f32 %v4680_v28, %v4328_v41  ;;  %v4331_v18 = vadd.f32 %v4330_v21, %v13977_v38 }
 0x619   :  { %v5033_v5 = vpop.f32.mrf.mxu3 }
 0x61a   :  { %v5034_v9 = vadd.f32 %v5033_v5, %v4681_v14  ;;  %4377 = vmatmul.f32.gmra.mxu1 %v13961_v32  ;;  %v13981_v14 = vld [vmem:[#allocation178_spill] sm:$0xff] }
 0x61c   :  { %v10451_v25 = vadd.f32 %v5386_v6, %v5034_v9  ;;  %4730 = vmatmul.f32.gmra.mxu2 %v13976_v39  ;;  %5083 = vmatmul.f32.gmra.mxu3 %v13484_v43  ;;  %v13980_v6 = vld [vmem:[#allocation16_spill] sm:$0xff]  ;;  %v13982_v9 = vld [vmem:[#allocation331_spill] sm:$0xff] }
 0x61d   :  { %v5389_v37 = vpop.f32.mrf.mxu0  ;;  %5436 = vmatmul.f32.gmra.mxu0 %v13978_v47 }
 0x61e   :  { %13975 = vst [vmem:[#allocation129_spill] sm:$0xff] %v10451_v25 }
 0x61f   :  { %v4683_v0 = vpop.f32.mrf.mxu2  ;;  %v4333_v46 = vpop.f32.mrf.mxu1 }
 0x620   :  { %v4684_v22 = vadd.f32 %v4683_v0, %v4331_v18  ;;  %v4334_v5 = vadd.f32 %v4333_v46, %v13981_v14 }
 0x621   :  { %v5036_v20 = vpop.f32.mrf.mxu3 }
 0x622   :  { %v5037_v41 = vadd.f32 %v5036_v20, %v4684_v22  ;;  %4380 = vmatmul.f32.gmra.mxu1 %v13966_v29  ;;  %v13985_v22 = vld [vmem:[#allocation229_spill] sm:$0xff] }
 0x624   :  { %v10458_v28 = vadd.f32 %v5389_v37, %v5037_v41  ;;  %4733 = vmatmul.f32.gmra.mxu2 %v13980_v6  ;;  %5086 = vmatmul.f32.gmra.mxu3 %v13489_v27  ;;  %v13984_v37 = vld [vmem:[#allocation22_spill] sm:$0xff] }
 0x625   :  { %v5392_v32 = vpop.f32.mrf.mxu0  ;;  %5439 = vmatmul.f32.gmra.mxu0 %v13982_v9 }
 0x626   :  { %13979 = vst [vmem:[#allocation298_spill] sm:$0xff] %v10458_v28 }
 0x627   :  { %v4686_v21 = vpop.f32.mrf.mxu2  ;;  %v4336_v39 = vpop.f32.mrf.mxu1 }
 0x628   :  { %v4687_v43 = vadd.f32 %v4686_v21, %v4334_v5  ;;  %v4337_v20 = vadd.f32 %v4336_v39, %v13985_v22  ;;  %v13988_v21 = vld [vmem:[#allocation329_spill] sm:$0xff] }
 0x629   :  { %v5039_v38 = vpop.f32.mrf.mxu3 }
 0x62a   :  { %v5040_v18 = vadd.f32 %v5039_v38, %v4687_v43  ;;  %4383 = vmatmul.f32.gmra.mxu1 %v13970_v13  ;;  %v13989_v38 = vld [vmem:[#allocation41_spill] sm:$0xff] }
 0x62c   :  { %v10465_v0 = vadd.f32 %v5392_v32, %v5040_v18  ;;  %4736 = vmatmul.f32.gmra.mxu2 %v13984_v37  ;;  %5089 = vmatmul.f32.gmra.mxu3 %v13494_v8  ;;  %v13987_v32 = vld [vmem:[#allocation27_spill] sm:$0xff] }
 0x62d   :  { %v5395_v29 = vpop.f32.mrf.mxu0  ;;  %5442 = vmatmul.f32.gmra.mxu0 %v9340_v12 }
 0x62e   :  { %13983 = vst [vmem:[#allocation151_spill] sm:$0xff] %v10465_v0 }
 0x62f   :  { %v4689_v46 = vpop.f32.mrf.mxu2  ;;  %v4339_v41 = vpop.f32.mrf.mxu1 }
 0x630   :  { %v4690_v27 = vadd.f32 %v4689_v46, %v4337_v20  ;;  %v4340_v43 = vadd.f32 %v4339_v41, %v13988_v21  ;;  %v13992_v46 = vld [vmem:[#allocation3_spill] sm:$0xff] }
 0x631   :  { %v5042_v6 = vpop.f32.mrf.mxu3 }
 0x632   :  { %v5043_v14 = vadd.f32 %v5042_v6, %v4690_v27  ;;  %4386 = vmatmul.f32.gmra.mxu1 %v13974_v23  ;;  %v13993_v6 = vld [vmem:[#allocation29_spill] sm:$0xff] }
 0x634   :  { %v10472_v5 = vadd.f32 %v5395_v29, %v5043_v14  ;;  %4739 = vmatmul.f32.gmra.mxu2 %v13987_v32  ;;  %5092 = vmatmul.f32.gmra.mxu3 %v13498_v62  ;;  %v13991_v29 = vld [vmem:[#allocation34_spill] sm:$0xff]  ;;  %v13994_v14 = vld [vmem:[#allocation47_spill] sm:$0xff] }
 0x635   :  { %v5398_v13 = vpop.f32.mrf.mxu0  ;;  %5445 = vmatmul.f32.gmra.mxu0 %v13989_v38 }
 0x636   :  { %13986 = vst [vmem:[#allocation278_spill] sm:$0xff] %v10472_v5 }
 0x637   :  { %v4692_v39 = vpop.f32.mrf.mxu2  ;;  %v4342_v18 = vpop.f32.mrf.mxu1 }
 0x638   :  { %v4693_v8 = vadd.f32 %v4692_v39, %v4340_v43  ;;  %v4343_v27 = vadd.f32 %v4342_v18, %v13992_v46 }
 0x639   :  { %v5045_v37 = vpop.f32.mrf.mxu3 }
 0x63a   :  { %v5046_v22 = vadd.f32 %v5045_v37, %v4693_v8  ;;  %4389 = vmatmul.f32.gmra.mxu1 %v13978_v47  ;;  %v13997_v8 = vld [vmem:[#allocation11_spill] sm:$0xff] }
 0x63c   :  { %v10479_v20 = vadd.f32 %v5398_v13, %v5046_v22  ;;  %4742 = vmatmul.f32.gmra.mxu2 %v13991_v29  ;;  %5095 = vmatmul.f32.gmra.mxu3 %v13993_v6  ;;  %v13996_v13 = vld [vmem:[#allocation39_spill] sm:$0xff]  ;;  %v13998_v29 = vld [vmem:[#allocation53_spill] sm:$0xff] }
 0x63d   :  { %v5401_v23 = vpop.f32.mrf.mxu0  ;;  %5448 = vmatmul.f32.gmra.mxu0 %v13994_v14 }
 0x63e   :  { %13990 = vst [vmem:[#allocation140_spill] sm:$0xff] %v10479_v20 }
 0x63f   :  { %v4695_v41 = vpop.f32.mrf.mxu2  ;;  %v4345_v32 = vpop.f32.mrf.mxu1 }
 0x640   :  { %v4696_v62 = vadd.f32 %v4695_v41, %v4343_v27  ;;  %v4346_v37 = vadd.f32 %v4345_v32, %v13997_v8 }
 0x641   :  { %v5048_v21 = vpop.f32.mrf.mxu3 }
 0x642   :  { %v5049_v43 = vadd.f32 %v5048_v21, %v4696_v62  ;;  %4392 = vmatmul.f32.gmra.mxu1 %v13982_v9  ;;  %v14001_v62 = vld [vmem:[#allocation17_spill] sm:$0xff] }
 0x644   :  { %v10486_v39 = vadd.f32 %v5401_v23, %v5049_v43  ;;  %4745 = vmatmul.f32.gmra.mxu2 %v13996_v13  ;;  %5098 = vmatmul.f32.gmra.mxu3 %v13506_v19  ;;  %v14000_v23 = vld [vmem:[#allocation46_spill] sm:$0xff]  ;;  %v14002_v43 = vld [vmem:[#allocation60_spill] sm:$0xff] }
 0x645   :  { %v5404_v47 = vpop.f32.mrf.mxu0  ;;  %5451 = vmatmul.f32.gmra.mxu0 %v13998_v29 }
 0x646   :  { %13995 = vst [vmem:[#allocation175_spill] sm:$0xff] %v10486_v39 }
 0x647   :  { %v4698_v18 = vpop.f32.mrf.mxu2  ;;  %v4348_v46 = vpop.f32.mrf.mxu1 }
 0x648   :  { %v4699_v22 = vadd.f32 %v4698_v18, %v4346_v37  ;;  %v4349_v21 = vadd.f32 %v4348_v46, %v14001_v62 }
 0x649   :  { %v5051_v27 = vpop.f32.mrf.mxu3 }
 0x64a   :  { %v5052_v6 = vadd.f32 %v5051_v27, %v4699_v22  ;;  %4395 = vmatmul.f32.gmra.mxu1 %v9340_v12  ;;  %v14005_v22 = vld [vmem:[#allocation330_spill] sm:$0xff] }
 0x64c   :  { %v10493_v41 = vadd.f32 %v5404_v47, %v5052_v6  ;;  %4748 = vmatmul.f32.gmra.mxu2 %v14000_v23  ;;  %5101 = vmatmul.f32.gmra.mxu3 %v13509_v53  ;;  %v14004_v47 = vld [vmem:[#allocation51_spill] sm:$0xff]  ;;  %v14006_v6 = vld [vmem:[#allocation337_spill] sm:$0xff] }
 0x64d   :  { %v5407_v9 = vpop.f32.mrf.mxu0  ;;  %5454 = vmatmul.f32.gmra.mxu0 %v14002_v43 }
 0x64e   :  { %13999 = vst [vmem:[#allocation163_spill] sm:$0xff] %v10493_v41 }
 0x64f   :  { %v4701_v32 = vpop.f32.mrf.mxu2  ;;  %v4351_v13 = vpop.f32.mrf.mxu1 }
 0x650   :  { %v4702_v19 = vadd.f32 %v4701_v32, %v4349_v21  ;;  %v4352_v27 = vadd.f32 %v4351_v13, %v14005_v22 }
 0x651   :  { %v5054_v8 = vpop.f32.mrf.mxu3 }
 0x652   :  { %v5055_v37 = vadd.f32 %v5054_v8, %v4702_v19  ;;  %4398 = vmatmul.f32.gmra.mxu1 %v13989_v38  ;;  %v14009_v19 = vld [vmem:[#allocation332_spill] sm:$0xff] }
 0x654   :  { %v10500_v18 = vadd.f32 %v5407_v9, %v5055_v37  ;;  %4751 = vmatmul.f32.gmra.mxu2 %v14004_v47  ;;  %5104 = vmatmul.f32.gmra.mxu3 %v13513_v61  ;;  %v14008_v9 = vld [vmem:[#allocation59_spill] sm:$0xff] }
 0x655   :  { %v5410_v12 = vpop.f32.mrf.mxu0  ;;  %5457 = vmatmul.f32.gmra.mxu0 %v14006_v6  ;;  %v14010_v37 = vld [vmem:[#allocation339_spill] sm:$0xff] }
 0x656   :  { %14003 = vst [vmem:[#allocation281_spill] sm:$0xff] %v10500_v18 }
 0x657   :  { %v4704_v46 = vpop.f32.mrf.mxu2  ;;  %v4354_v23 = vpop.f32.mrf.mxu1 }
 0x658   :  { %v4705_v53 = vadd.f32 %v4704_v46, %v4352_v27  ;;  %v4355_v8 = vadd.f32 %v4354_v23, %v14009_v19 }
 0x659   :  { %v5057_v62 = vpop.f32.mrf.mxu3 }
 0x65a   :  { %v5058_v21 = vadd.f32 %v5057_v62, %v4705_v53  ;;  %4401 = vmatmul.f32.gmra.mxu1 %v13994_v14  ;;  %v14013_v53 = vld [vmem:[#allocation35_spill] sm:$0xff] }
 0x65c   :  { %v10507_v32 = vadd.f32 %v5410_v12, %v5058_v21  ;;  %4754 = vmatmul.f32.gmra.mxu2 %v14008_v9  ;;  %5107 = vmatmul.f32.gmra.mxu3 %v13517_v49  ;;  %v14012_v12 = vld [vmem:[#allocation66_spill] sm:$0xff] }
 0x65d   :  { %v5413_v38 = vpop.f32.mrf.mxu0  ;;  %5460 = vmatmul.f32.gmra.mxu0 %v14010_v37 }
 0x65e   :  { %14007 = vst [vmem:[#allocation152_spill] sm:$0xff] %v10507_v32 }
 0x65f   :  { %v4707_v13 = vpop.f32.mrf.mxu2  ;;  %v4357_v47 = vpop.f32.mrf.mxu1 }
 0x660   :  { %v4708_v61 = vadd.f32 %v4707_v13, %v4355_v8  ;;  %v4358_v62 = vadd.f32 %v4357_v47, %v14013_v53  ;;  %v14016_v13 = vld [vmem:[#allocation333_spill] sm:$0xff] }
 0x661   :  { %v5060_v22 = vpop.f32.mrf.mxu3 }
 0x662   :  { %v5061_v27 = vadd.f32 %v5060_v22, %v4708_v61  ;;  %4404 = vmatmul.f32.gmra.mxu1 %v13998_v29  ;;  %v14017_v22 = vld [vmem:[#allocation68_spill] sm:$0xff] }
 0x664   :  { %v10514_v46 = vadd.f32 %v5413_v38, %v5061_v27  ;;  %4757 = vmatmul.f32.gmra.mxu2 %v14012_v12  ;;  %5110 = vmatmul.f32.gmra.mxu3 %v13521_v11  ;;  %v14015_v38 = vld [vmem:[#allocation75_spill] sm:$0xff]  ;;  %v14018_v27 = vld [vmem:[#allocation342_spill] sm:$0xff] }
 0x665   :  { %v5416_v14 = vpop.f32.mrf.mxu0  ;;  %5463 = vmatmul.f32.gmra.mxu0 %v9436_v50 }
 0x666   :  { %14011 = vst [vmem:[#allocation150_spill] sm:$0xff] %v10514_v46 }
 0x667   :  { %v4710_v23 = vpop.f32.mrf.mxu2  ;;  %v4360_v21 = vpop.f32.mrf.mxu1 }
 0x668   :  { %v4711_v49 = vadd.f32 %v4710_v23, %v4358_v62  ;;  %v4361_v61 = vadd.f32 %v4360_v21, %v14016_v13  ;;  %v14023_v13 = vld [vmem:[#allocation344_spill] sm:$0xff] }
 0x669   :  { %v5063_v9 = vpop.f32.mrf.mxu3 }
 0x66a   :  { %v5064_v19 = vadd.f32 %v5063_v9, %v4711_v49  ;;  %4407 = vmatmul.f32.gmra.mxu1 %v14002_v43  ;;  %v14021_v49 = vld [vmem:[#allocation334_spill] sm:$0xff] }
 0x66c   :  { %v10521_v8 = vadd.f32 %v5416_v14, %v5064_v19  ;;  %4760 = vmatmul.f32.gmra.mxu2 %v14015_v38  ;;  %5113 = vmatmul.f32.gmra.mxu3 %v14017_v22  ;;  %v14020_v14 = vld [vmem:[#allocation82_spill] sm:$0xff]  ;;  %v14022_v19 = vld [vmem:[#allocation76_spill] sm:$0xff] }
 0x66d   :  { %v5419_v29 = vpop.f32.mrf.mxu0  ;;  %5466 = vmatmul.f32.gmra.mxu0 %v14018_v27 }
 0x66e   :  { %14014 = vst [vmem:[#allocation174_spill] sm:$0xff] %v10521_v8 }
 0x66f   :  { %v4713_v47 = vpop.f32.mrf.mxu2  ;;  %v4363_v12 = vpop.f32.mrf.mxu1 }
 0x670   :  { %v4714_v11 = vadd.f32 %v4713_v47, %v4361_v61  ;;  %v4364_v9 = vadd.f32 %v4363_v12, %v14021_v49  ;;  %v14028_v49 = vld [vmem:[#allocation346_spill] sm:$0xff] }
 0x671   :  { %v5066_v53 = vpop.f32.mrf.mxu3 }
 0x672   :  { %v5067_v62 = vadd.f32 %v5066_v53, %v4714_v11  ;;  %4410 = vmatmul.f32.gmra.mxu1 %v14006_v6  ;;  %v14026_v11 = vld [vmem:[#allocation335_spill] sm:$0xff] }
 0x674   :  { %v10528_v23 = vadd.f32 %v5419_v29, %v5067_v62  ;;  %4763 = vmatmul.f32.gmra.mxu2 %v14020_v14  ;;  %5116 = vmatmul.f32.gmra.mxu3 %v14022_v19  ;;  %v14025_v29 = vld [vmem:[#allocation91_spill] sm:$0xff]  ;;  %v14027_v62 = vld [vmem:[#allocation84_spill] sm:$0xff] }
 0x675   :  { %v5422_v43 = vpop.f32.mrf.mxu0  ;;  %5469 = vmatmul.f32.gmra.mxu0 %v14023_v13 }
 0x676   :  { %14019 = vst [vmem:[#allocation285_spill] sm:$0xff] %v10528_v23 }
 0x677   :  { %v4716_v21 = vpop.f32.mrf.mxu2  ;;  %v4366_v61 = vpop.f32.mrf.mxu1 }
 0x678   :  { %v4717_v38 = vadd.f32 %v4716_v21, %v4364_v9  ;;  %v4367_v53 = vadd.f32 %v4366_v61, %v14026_v11  ;;  %v14033_v11 = vld [vmem:[#allocation348_spill] sm:$0xff] }
 0x679   :  { %v5069_v22 = vpop.f32.mrf.mxu3 }
 0x67a   :  { %v5070_v47 = vadd.f32 %v5069_v22, %v4717_v38  ;;  %4413 = vmatmul.f32.gmra.mxu1 %v14010_v37  ;;  %v14031_v38 = vld [vmem:[#allocation336_spill] sm:$0xff] }
 0x67c   :  { %v10535_v8 = vadd.f32 %v5422_v43, %v5070_v47  ;;  %4766 = vmatmul.f32.gmra.mxu2 %v14025_v29  ;;  %5119 = vmatmul.f32.gmra.mxu3 %v14027_v62  ;;  %v14030_v43 = vld [vmem:[#allocation98_spill] sm:$0xff]  ;;  %v14032_v47 = vld [vmem:[#allocation92_spill] sm:$0xff] }
 0x67d   :  { %v5425_v6 = vpop.f32.mrf.mxu0  ;;  %5472 = vmatmul.f32.gmra.mxu0 %v14028_v49 }
 0x67e   :  { %14024 = vst [vmem:[#allocation162_spill] sm:$0xff] %v10535_v8 }
 0x67f   :  { %v4719_v12 = vpop.f32.mrf.mxu2  ;;  %v4369_v9 = vpop.f32.mrf.mxu1 }
 0x680   :  { %v4720_v14 = vadd.f32 %v4719_v12, %v4367_v53  ;;  %v4370_v22 = vadd.f32 %v4369_v9, %v14031_v38  ;;  %v14038_v38 = vld [vmem:[#allocation284_spill] sm:$0xff] }
 0x681   :  { %v5072_v19 = vpop.f32.mrf.mxu3 }
 0x682   :  { %v5073_v21 = vadd.f32 %v5072_v19, %v4720_v14  ;;  %4416 = vmatmul.f32.gmra.mxu1 %v9436_v50  ;;  %v14036_v14 = vld [vmem:[#allocation338_spill] sm:$0xff] }
 0x684   :  { %v10542_v23 = vadd.f32 %v5425_v6, %v5073_v21  ;;  %4769 = vmatmul.f32.gmra.mxu2 %v14030_v43  ;;  %5122 = vmatmul.f32.gmra.mxu3 %v14032_v47  ;;  %v14035_v6 = vld [vmem:[#allocation107_spill] sm:$0xff]  ;;  %v14037_v21 = vld [vmem:[#allocation100_spill] sm:$0xff] }
 0x685   :  { %v5428_v37 = vpop.f32.mrf.mxu0  ;;  %5475 = vmatmul.f32.gmra.mxu0 %v14033_v11 }
 0x686   :  { %14029 = vst [vmem:[#allocation186_spill] sm:$0xff] %v10542_v23 }
 0x687   :  { %v4722_v61 = vpop.f32.mrf.mxu2  ;;  %v4372_v53 = vpop.f32.mrf.mxu1 }
 0x688   :  { %v4723_v29 = vadd.f32 %v4722_v61, %v4370_v22  ;;  %v4373_v19 = vadd.f32 %v4372_v53, %v14036_v14  ;;  %v14043_v14 = vld [vmem:[#allocation288_spill] sm:$0xff] }
 0x689   :  { %v5075_v62 = vpop.f32.mrf.mxu3 }
 0x68a   :  { %v5076_v12 = vadd.f32 %v5075_v62, %v4723_v29  ;;  %4419 = vmatmul.f32.gmra.mxu1 %v14018_v27  ;;  %v14041_v29 = vld [vmem:[#allocation340_spill] sm:$0xff] }
 0x68c   :  { %v10549_v8 = vadd.f32 %v5428_v37, %v5076_v12  ;;  %4772 = vmatmul.f32.gmra.mxu2 %v14035_v6  ;;  %5125 = vmatmul.f32.gmra.mxu3 %v14037_v21  ;;  %v14040_v37 = vld [vmem:[#allocation114_spill] sm:$0xff]  ;;  %v14042_v12 = vld [vmem:[#allocation108_spill] sm:$0xff] }
 0x68d   :  { %v5431_v50 = vpop.f32.mrf.mxu0  ;;  %5478 = vmatmul.f32.gmra.mxu0 %v14038_v38 }
 0x68e   :  { %14034 = vst [vmem:[#allocation289_spill] sm:$0xff] %v10549_v8 }
 0x68f   :  { %v4725_v9 = vpop.f32.mrf.mxu2  ;;  %v4375_v22 = vpop.f32.mrf.mxu1 }
 0x690   :  { %v4726_v43 = vadd.f32 %v4725_v9, %v4373_v19  ;;  %v4376_v62 = vadd.f32 %v4375_v22, %v14041_v29  ;;  %v14048_v29 = vld [vmem:[#allocation292_spill] sm:$0xff] }
 0x691   :  { %v5078_v47 = vpop.f32.mrf.mxu3 }
 0x692   :  { %v5079_v61 = vadd.f32 %v5078_v47, %v4726_v43  ;;  %4422 = vmatmul.f32.gmra.mxu1 %v14023_v13  ;;  %v14046_v43 = vld [vmem:[#allocation341_spill] sm:$0xff] }
 0x694   :  { %v10556_v23 = vadd.f32 %v5431_v50, %v5079_v61  ;;  %4775 = vmatmul.f32.gmra.mxu2 %v14040_v37  ;;  %5128 = vmatmul.f32.gmra.mxu3 %v14042_v12  ;;  %v14045_v50 = vld [vmem:[#allocation124_spill] sm:$0xff] }
 0x695   :  { %v5434_v27 = vpop.f32.mrf.mxu0  ;;  %5481 = vmatmul.f32.gmra.mxu0 %v14043_v14  ;;  %v14047_v61 = vld [vmem:[#allocation116_spill] sm:$0xff] }
 0x696   :  { %14039 = vst [vmem:[#allocation198_spill] sm:$0xff] %v10556_v23 }
 0x697   :  { %v4728_v53 = vpop.f32.mrf.mxu2  ;;  %v4378_v19 = vpop.f32.mrf.mxu1 }
 0x698   :  { %v4729_v6 = vadd.f32 %v4728_v53, %v4376_v62  ;;  %v4379_v47 = vadd.f32 %v4378_v19, %v14046_v43  ;;  %v14053_v43 = vld [vmem:[#allocation130_spill] sm:$0xff] }
 0x699   :  { %v5081_v21 = vpop.f32.mrf.mxu3 }
 0x69a   :  { %v5082_v9 = vadd.f32 %v5081_v21, %v4729_v6  ;;  %4425 = vmatmul.f32.gmra.mxu1 %v14028_v49  ;;  %v14051_v6 = vld [vmem:[#allocation343_spill] sm:$0xff] }
 0x69c   :  { %v10563_v8 = vadd.f32 %v5434_v27, %v5082_v9  ;;  %4778 = vmatmul.f32.gmra.mxu2 %v14045_v50  ;;  %5131 = vmatmul.f32.gmra.mxu3 %v14047_v61  ;;  %v14050_v27 = vld [vmem:[#allocation134_spill] sm:$0xff]  ;;  %v14052_v9 = vld [vmem:[#allocation125_spill] sm:$0xff] }
 0x69d   :  { %v5437_v13 = vpop.f32.mrf.mxu0  ;;  %5484 = vmatmul.f32.gmra.mxu0 %v14048_v29 }
 0x69e   :  { %14044 = vst [vmem:[#allocation293_spill] sm:$0xff] %v10563_v8 }
 0x69f   :  { %v4731_v22 = vpop.f32.mrf.mxu2  ;;  %v4381_v62 = vpop.f32.mrf.mxu1 }
 0x6a0   :  { %v4732_v37 = vadd.f32 %v4731_v22, %v4379_v47  ;;  %v4382_v21 = vadd.f32 %v4381_v62, %v14051_v6  ;;  %v14058_v6 = vld [vmem:[#allocation141_spill] sm:$0xff] }
 0x6a1   :  { %v5084_v12 = vpop.f32.mrf.mxu3 }
 0x6a2   :  { %v5085_v53 = vadd.f32 %v5084_v12, %v4732_v37  ;;  %4428 = vmatmul.f32.gmra.mxu1 %v14033_v11  ;;  %v14056_v37 = vld [vmem:[#allocation345_spill] sm:$0xff] }
 0x6a4   :  { %v10570_v23 = vadd.f32 %v5437_v13, %v5085_v53  ;;  %4781 = vmatmul.f32.gmra.mxu2 %v14050_v27  ;;  %5134 = vmatmul.f32.gmra.mxu3 %v14052_v9  ;;  %v14055_v13 = vld [vmem:[#allocation146_spill] sm:$0xff]  ;;  %v14057_v53 = vld [vmem:[#allocation136_spill] sm:$0xff] }
 0x6a5   :  { %v5440_v49 = vpop.f32.mrf.mxu0  ;;  %5487 = vmatmul.f32.gmra.mxu0 %v14053_v43 }
 0x6a6   :  { %14049 = vst [vmem:[#allocation210_spill] sm:$0xff] %v10570_v23 }
 0x6a7   :  { %v4734_v19 = vpop.f32.mrf.mxu2  ;;  %v4384_v47 = vpop.f32.mrf.mxu1 }
 0x6a8   :  { %v4735_v50 = vadd.f32 %v4734_v19, %v4382_v21  ;;  %v4385_v12 = vadd.f32 %v4384_v47, %v14056_v37  ;;  %v14063_v37 = vld [vmem:[#allocation153_spill] sm:$0xff] }
 0x6a9   :  { %v5087_v61 = vpop.f32.mrf.mxu3 }
 0x6aa   :  { %v5088_v22 = vadd.f32 %v5087_v61, %v4735_v50  ;;  %4431 = vmatmul.f32.gmra.mxu1 %v14038_v38  ;;  %v14061_v50 = vld [vmem:[#allocation347_spill] sm:$0xff] }
 0x6ac   :  { %v10577_v8 = vadd.f32 %v5440_v49, %v5088_v22  ;;  %4784 = vmatmul.f32.gmra.mxu2 %v14055_v13  ;;  %5137 = vmatmul.f32.gmra.mxu3 %v14057_v53  ;;  %v14060_v49 = vld [vmem:[#allocation157_spill] sm:$0xff]  ;;  %v14062_v22 = vld [vmem:[#allocation147_spill] sm:$0xff] }
 0x6ad   :  { %v5443_v11 = vpop.f32.mrf.mxu0  ;;  %5490 = vmatmul.f32.gmra.mxu0 %v14058_v6 }
 0x6ae   :  { %14054 = vst [vmem:[#allocation296_spill] sm:$0xff] %v10577_v8 }
 0x6af   :  { %v4737_v62 = vpop.f32.mrf.mxu2  ;;  %v4387_v21 = vpop.f32.mrf.mxu1 }
 0x6b0   :  { %v4738_v27 = vadd.f32 %v4737_v62, %v4385_v12  ;;  %v4388_v61 = vadd.f32 %v4387_v21, %v14061_v50  ;;  %v14068_v50 = vld [vmem:[#allocation164_spill] sm:$0xff] }
 0x6b1   :  { %v5090_v9 = vpop.f32.mrf.mxu3 }
 0x6b2   :  { %v5091_v19 = vadd.f32 %v5090_v9, %v4738_v27  ;;  %4434 = vmatmul.f32.gmra.mxu1 %v14043_v14  ;;  %v14066_v27 = vld [vmem:[#allocation349_spill] sm:$0xff] }
 0x6b4   :  { %v10584_v23 = vadd.f32 %v5443_v11, %v5091_v19  ;;  %4787 = vmatmul.f32.gmra.mxu2 %v14060_v49  ;;  %5140 = vmatmul.f32.gmra.mxu3 %v14062_v22  ;;  %v14065_v11 = vld [vmem:[#allocation169_spill] sm:$0xff]  ;;  %v14067_v19 = vld [vmem:[#allocation159_spill] sm:$0xff] }
 0x6b5   :  { %v5446_v38 = vpop.f32.mrf.mxu0  ;;  %5493 = vmatmul.f32.gmra.mxu0 %v14063_v37 }
 0x6b6   :  { %14059 = vst [vmem:[#allocation222_spill] sm:$0xff] %v10584_v23 }
 0x6b7   :  { %v4740_v47 = vpop.f32.mrf.mxu2  ;;  %v4390_v12 = vpop.f32.mrf.mxu1 }
 0x6b8   :  { %v4741_v13 = vadd.f32 %v4740_v47, %v4388_v61  ;;  %v4391_v9 = vadd.f32 %v4390_v12, %v14066_v27  ;;  %v14073_v27 = vld [vmem:[#allocation176_spill] sm:$0xff] }
 0x6b9   :  { %v5093_v53 = vpop.f32.mrf.mxu3 }
 0x6ba   :  { %v5094_v62 = vadd.f32 %v5093_v53, %v4741_v13  ;;  %4437 = vmatmul.f32.gmra.mxu1 %v14048_v29  ;;  %v14071_v13 = vld [vmem:[#allocation350_spill] sm:$0xff] }
 0x6bc   :  { %v10591_v8 = vadd.f32 %v5446_v38, %v5094_v62  ;;  %4790 = vmatmul.f32.gmra.mxu2 %v14065_v11  ;;  %5143 = vmatmul.f32.gmra.mxu3 %v14067_v19  ;;  %v14070_v38 = vld [vmem:[#allocation180_spill] sm:$0xff]  ;;  %v14072_v62 = vld [vmem:[#allocation170_spill] sm:$0xff] }
 0x6bd   :  { %v5449_v14 = vpop.f32.mrf.mxu0  ;;  %5496 = vmatmul.f32.gmra.mxu0 %v14068_v50 }
 0x6be   :  { %14064 = vst [vmem:[#allocation299_spill] sm:$0xff] %v10591_v8 }
 0x6bf   :  { %v4743_v21 = vpop.f32.mrf.mxu2  ;;  %v4393_v61 = vpop.f32.mrf.mxu1 }
 0x6c0   :  { %v4744_v49 = vadd.f32 %v4743_v21, %v4391_v9  ;;  %v4394_v53 = vadd.f32 %v4393_v61, %v14071_v13  ;;  %v14078_v13 = vld [vmem:[#allocation188_spill] sm:$0xff] }
 0x6c1   :  { %v5096_v22 = vpop.f32.mrf.mxu3 }
 0x6c2   :  { %v5097_v47 = vadd.f32 %v5096_v22, %v4744_v49  ;;  %4440 = vmatmul.f32.gmra.mxu1 %v14053_v43  ;;  %v14076_v49 = vld [vmem:[#allocation351_spill] sm:$0xff] }
 0x6c4   :  { %v10598_v23 = vadd.f32 %v5449_v14, %v5097_v47  ;;  %4793 = vmatmul.f32.gmra.mxu2 %v14070_v38  ;;  %5146 = vmatmul.f32.gmra.mxu3 %v14072_v62  ;;  %v14075_v14 = vld [vmem:[#allocation193_spill] sm:$0xff]  ;;  %v14077_v47 = vld [vmem:[#allocation182_spill] sm:$0xff] }
 0x6c5   :  { %v5452_v29 = vpop.f32.mrf.mxu0  ;;  %5499 = vmatmul.f32.gmra.mxu0 %v14073_v27 }
 0x6c6   :  { %14069 = vst [vmem:[#allocation211_spill] sm:$0xff] %v10598_v23 }
 0x6c7   :  { %v4746_v12 = vpop.f32.mrf.mxu2  ;;  %v4396_v9 = vpop.f32.mrf.mxu1 }
 0x6c8   :  { %v4747_v11 = vadd.f32 %v4746_v12, %v4394_v53  ;;  %v4397_v22 = vadd.f32 %v4396_v9, %v14076_v49  ;;  %v14083_v49 = vld [vmem:[#allocation200_spill] sm:$0xff] }
 0x6c9   :  { %v5099_v19 = vpop.f32.mrf.mxu3 }
 0x6ca   :  { %v5100_v21 = vadd.f32 %v5099_v19, %v4747_v11  ;;  %4443 = vmatmul.f32.gmra.mxu1 %v14058_v6  ;;  %v14081_v11 = vld [vmem:[#allocation352_spill] sm:$0xff] }
 0x6cc   :  { %v10605_v8 = vadd.f32 %v5452_v29, %v5100_v21  ;;  %4796 = vmatmul.f32.gmra.mxu2 %v14075_v14  ;;  %5149 = vmatmul.f32.gmra.mxu3 %v14077_v47  ;;  %v14080_v29 = vld [vmem:[#allocation204_spill] sm:$0xff]  ;;  %v14082_v21 = vld [vmem:[#allocation194_spill] sm:$0xff] }
 0x6cd   :  { %v5455_v43 = vpop.f32.mrf.mxu0  ;;  %5502 = vmatmul.f32.gmra.mxu0 %v14078_v13 }
 0x6ce   :  { %14074 = vst [vmem:[#allocation209_spill] sm:$0xff] %v10605_v8 }
 0x6cf   :  { %v4749_v61 = vpop.f32.mrf.mxu2  ;;  %v4399_v53 = vpop.f32.mrf.mxu1 }
 0x6d0   :  { %v4750_v38 = vadd.f32 %v4749_v61, %v4397_v22  ;;  %v4400_v19 = vadd.f32 %v4399_v53, %v14081_v11  ;;  %v14088_v11 = vld [vmem:[#allocation212_spill] sm:$0xff] }
 0x6d1   :  { %v5102_v62 = vpop.f32.mrf.mxu3 }
 0x6d2   :  { %v5103_v12 = vadd.f32 %v5102_v62, %v4750_v38  ;;  %4446 = vmatmul.f32.gmra.mxu1 %v14063_v37  ;;  %v14086_v38 = vld [vmem:[#allocation353_spill] sm:$0xff] }
 0x6d4   :  { %v10612_v23 = vadd.f32 %v5455_v43, %v5103_v12  ;;  %4799 = vmatmul.f32.gmra.mxu2 %v14080_v29  ;;  %5152 = vmatmul.f32.gmra.mxu3 %v14082_v21  ;;  %v14085_v43 = vld [vmem:[#allocation217_spill] sm:$0xff]  ;;  %v14087_v12 = vld [vmem:[#allocation206_spill] sm:$0xff] }
 0x6d5   :  { %v5458_v6 = vpop.f32.mrf.mxu0  ;;  %5505 = vmatmul.f32.gmra.mxu0 %v14083_v49 }
 0x6d6   :  { %14079 = vst [vmem:[#allocation233_spill] sm:$0xff] %v10612_v23 }
 0x6d7   :  { %v4752_v9 = vpop.f32.mrf.mxu2  ;;  %v4402_v22 = vpop.f32.mrf.mxu1 }
 0x6d8   :  { %v4753_v14 = vadd.f32 %v4752_v9, %v4400_v19  ;;  %v4403_v62 = vadd.f32 %v4402_v22, %v14086_v38  ;;  %v14093_v38 = vld [vmem:[#allocation224_spill] sm:$0xff] }
 0x6d9   :  { %v5105_v47 = vpop.f32.mrf.mxu3 }
 0x6da   :  { %v5106_v61 = vadd.f32 %v5105_v47, %v4753_v14  ;;  %4449 = vmatmul.f32.gmra.mxu1 %v14068_v50  ;;  %v14091_v14 = vld [vmem:[#allocation354_spill] sm:$0xff] }
 0x6dc   :  { %v10619_v8 = vadd.f32 %v5458_v6, %v5106_v61  ;;  %4802 = vmatmul.f32.gmra.mxu2 %v14085_v43  ;;  %5155 = vmatmul.f32.gmra.mxu3 %v14087_v12  ;;  %v14090_v6 = vld [vmem:[#allocation228_spill] sm:$0xff]  ;;  %v14092_v61 = vld [vmem:[#allocation218_spill] sm:$0xff] }
 0x6dd   :  { %v5461_v37 = vpop.f32.mrf.mxu0  ;;  %5508 = vmatmul.f32.gmra.mxu0 %v14088_v11 }
 0x6de   :  { %14084 = vst [vmem:[#allocation300_spill] sm:$0xff] %v10619_v8 }
 0x6df   :  { %v4755_v53 = vpop.f32.mrf.mxu2  ;;  %v4405_v19 = vpop.f32.mrf.mxu1 }
 0x6e0   :  { %v4756_v29 = vadd.f32 %v4755_v53, %v4403_v62  ;;  %v4406_v47 = vadd.f32 %v4405_v19, %v14091_v14  ;;  %v14098_v14 = vld [vmem:[#allocation234_spill] sm:$0xff] }
 0x6e1   :  { %v5108_v21 = vpop.f32.mrf.mxu3 }
 0x6e2   :  { %v5109_v9 = vadd.f32 %v5108_v21, %v4756_v29  ;;  %4452 = vmatmul.f32.gmra.mxu1 %v14073_v27  ;;  %v14096_v29 = vld [vmem:[#allocation355_spill] sm:$0xff] }
 0x6e4   :  { %v10626_v23 = vadd.f32 %v5461_v37, %v5109_v9  ;;  %4805 = vmatmul.f32.gmra.mxu2 %v14090_v6  ;;  %5158 = vmatmul.f32.gmra.mxu3 %v14092_v61  ;;  %v14095_v37 = vld [vmem:[#allocation238_spill] sm:$0xff] }
 0x6e5   :  { %v5464_v50 = vpop.f32.mrf.mxu0  ;;  %5511 = vmatmul.f32.gmra.mxu0 %v14093_v38  ;;  %v14097_v9 = vld [vmem:[#allocation230_spill] sm:$0xff] }
 0x6e6   :  { %14089 = vst [vmem:[#allocation223_spill] sm:$0xff] %v10626_v23 }
 0x6e7   :  { %v4758_v22 = vpop.f32.mrf.mxu2  ;;  %v4408_v62 = vpop.f32.mrf.mxu1 }
 0x6e8   :  { %v4759_v43 = vadd.f32 %v4758_v22, %v4406_v47  ;;  %v4409_v21 = vadd.f32 %v4408_v62, %v14096_v29  ;;  %v14103_v29 = vld [vmem:[#allocation242_spill] sm:$0xff] }
 0x6e9   :  { %v5111_v12 = vpop.f32.mrf.mxu3 }
 0x6ea   :  { %v5112_v53 = vadd.f32 %v5111_v12, %v4759_v43  ;;  %4455 = vmatmul.f32.gmra.mxu1 %v14078_v13  ;;  %v14101_v43 = vld [vmem:[#allocation356_spill] sm:$0xff] }
 0x6ec   :  { %v10633_v8 = vadd.f32 %v5464_v50, %v5112_v53  ;;  %4808 = vmatmul.f32.gmra.mxu2 %v14095_v37  ;;  %5161 = vmatmul.f32.gmra.mxu3 %v14097_v9  ;;  %v14100_v50 = vld [vmem:[#allocation245_spill] sm:$0xff]  ;;  %v14102_v53 = vld [vmem:[#allocation4_spill] sm:$0xff] }
 0x6ed   :  { %v5467_v27 = vpop.f32.mrf.mxu0  ;;  %5514 = vmatmul.f32.gmra.mxu0 %v14098_v14 }
 0x6ee   :  { %14094 = vst [vmem:[#allocation221_spill] sm:$0xff] %v10633_v8 }
 0x6ef   :  { %v4761_v19 = vpop.f32.mrf.mxu2  ;;  %v4411_v47 = vpop.f32.mrf.mxu1 }
 0x6f0   :  { %v4762_v6 = vadd.f32 %v4761_v19, %v4409_v21  ;;  %v4412_v12 = vadd.f32 %v4411_v47, %v14101_v43  ;;  %v14108_v43 = vld [vmem:[#allocation248_spill] sm:$0xff] }
 0x6f1   :  { %v5114_v61 = vpop.f32.mrf.mxu3 }
 0x6f2   :  { %v5115_v22 = vadd.f32 %v5114_v61, %v4762_v6  ;;  %4458 = vmatmul.f32.gmra.mxu1 %v14083_v49  ;;  %v14106_v6 = vld [vmem:[#allocation357_spill] sm:$0xff] }
 0x6f4   :  { %v10640_v23 = vadd.f32 %v5467_v27, %v5115_v22  ;;  %4811 = vmatmul.f32.gmra.mxu2 %v14100_v50  ;;  %5164 = vmatmul.f32.gmra.mxu3 %v14102_v53  ;;  %v14105_v27 = vld [vmem:[#allocation12_spill] sm:$0xff]  ;;  %v14107_v22 = vld [vmem:[#allocation5_spill] sm:$0xff] }
 0x6f5   :  { %v5470_v13 = vpop.f32.mrf.mxu0  ;;  %5517 = vmatmul.f32.gmra.mxu0 %v14103_v29 }
 0x6f6   :  { %14099 = vst [vmem:[#allocation241_spill] sm:$0xff] %v10640_v23 }
 0x6f7   :  { %v4764_v62 = vpop.f32.mrf.mxu2  ;;  %v4414_v21 = vpop.f32.mrf.mxu1 }
 0x6f8   :  { %v4765_v37 = vadd.f32 %v4764_v62, %v4412_v12  ;;  %v4415_v61 = vadd.f32 %v4414_v21, %v14106_v6  ;;  %v14113_v6 = vld [vmem:[#allocation250_spill] sm:$0xff] }
 0x6f9   :  { %v5117_v9 = vpop.f32.mrf.mxu3 }
 0x6fa   :  { %v5118_v19 = vadd.f32 %v5117_v9, %v4765_v37  ;;  %4461 = vmatmul.f32.gmra.mxu1 %v14088_v11  ;;  %v14111_v37 = vld [vmem:[#allocation358_spill] sm:$0xff] }
 0x6fc   :  { %v10647_v8 = vadd.f32 %v5470_v13, %v5118_v19  ;;  %4814 = vmatmul.f32.gmra.mxu2 %v14105_v27  ;;  %5167 = vmatmul.f32.gmra.mxu3 %v14107_v22  ;;  %v14110_v13 = vld [vmem:[#allocation18_spill] sm:$0xff]  ;;  %v14112_v19 = vld [vmem:[#allocation13_spill] sm:$0xff] }
 0x6fd   :  { %v5473_v49 = vpop.f32.mrf.mxu0  ;;  %5520 = vmatmul.f32.gmra.mxu0 %v14108_v43 }
 0x6fe   :  { %14104 = vst [vmem:[#allocation187_spill] sm:$0xff] %v10647_v8 }
 0x6ff   :  { %v4767_v47 = vpop.f32.mrf.mxu2  ;;  %v4417_v12 = vpop.f32.mrf.mxu1 }
 0x700   :  { %v4768_v50 = vadd.f32 %v4767_v47, %v4415_v61  ;;  %v4418_v9 = vadd.f32 %v4417_v12, %v14111_v37  ;;  %v14118_v37 = vld [vmem:[#allocation252_spill] sm:$0xff] }
 0x701   :  { %v5120_v53 = vpop.f32.mrf.mxu3 }
 0x702   :  { %v5121_v62 = vadd.f32 %v5120_v53, %v4768_v50  ;;  %4464 = vmatmul.f32.gmra.mxu1 %v14093_v38  ;;  %v14116_v50 = vld [vmem:[#allocation359_spill] sm:$0xff] }
 0x704   :  { %v10654_v23 = vadd.f32 %v5473_v49, %v5121_v62  ;;  %4817 = vmatmul.f32.gmra.mxu2 %v14110_v13  ;;  %5170 = vmatmul.f32.gmra.mxu3 %v14112_v19  ;;  %v14115_v49 = vld [vmem:[#allocation24_spill] sm:$0xff]  ;;  %v14117_v62 = vld [vmem:[#allocation19_spill] sm:$0xff] }
 0x705   :  { %v5476_v11 = vpop.f32.mrf.mxu0  ;;  %5523 = vmatmul.f32.gmra.mxu0 %v14113_v6 }
 0x706   :  { %14109 = vst [vmem:[#allocation9_spill] sm:$0xff] %v10654_v23 }
 0x707   :  { %v4770_v21 = vpop.f32.mrf.mxu2  ;;  %v4420_v61 = vpop.f32.mrf.mxu1 }
 0x708   :  { %v4771_v27 = vadd.f32 %v4770_v21, %v4418_v9  ;;  %v4421_v53 = vadd.f32 %v4420_v61, %v14116_v50  ;;  %v14123_v50 = vld [vmem:[#allocation254_spill] sm:$0xff] }
 0x709   :  { %v5123_v22 = vpop.f32.mrf.mxu3 }
 0x70a   :  { %v5124_v47 = vadd.f32 %v5123_v22, %v4771_v27  ;;  %4467 = vmatmul.f32.gmra.mxu1 %v14098_v14  ;;  %v14121_v27 = vld [vmem:[#allocation360_spill] sm:$0xff] }
 0x70c   :  { %v10661_v8 = vadd.f32 %v5476_v11, %v5124_v47  ;;  %4820 = vmatmul.f32.gmra.mxu2 %v14115_v49  ;;  %5173 = vmatmul.f32.gmra.mxu3 %v14117_v62  ;;  %v14120_v11 = vld [vmem:[#allocation30_spill] sm:$0xff]  ;;  %v14122_v47 = vld [vmem:[#allocation25_spill] sm:$0xff] }
 0x70d   :  { %v5479_v38 = vpop.f32.mrf.mxu0  ;;  %5526 = vmatmul.f32.gmra.mxu0 %v14118_v37 }
 0x70e   :  { %14114 = vst [vmem:[#allocation247_spill] sm:$0xff] %v10661_v8 }
 0x70f   :  { %v4773_v12 = vpop.f32.mrf.mxu2  ;;  %v4423_v9 = vpop.f32.mrf.mxu1 }
 0x710   :  { %v4774_v13 = vadd.f32 %v4773_v12, %v4421_v53  ;;  %v4424_v22 = vadd.f32 %v4423_v9, %v14121_v27  ;;  %v14128_v27 = vld [vmem:[#allocation256_spill] sm:$0xff] }
 0x711   :  { %v5126_v19 = vpop.f32.mrf.mxu3 }
 0x712   :  { %v5127_v21 = vadd.f32 %v5126_v19, %v4774_v13  ;;  %4470 = vmatmul.f32.gmra.mxu1 %v14103_v29  ;;  %v14126_v13 = vld [vmem:[#allocation361_spill] sm:$0xff] }
 0x714   :  { %v10668_v23 = vadd.f32 %v5479_v38, %v5127_v21  ;;  %4823 = vmatmul.f32.gmra.mxu2 %v14120_v11  ;;  %5176 = vmatmul.f32.gmra.mxu3 %v14122_v47  ;;  %v14125_v38 = vld [vmem:[#allocation36_spill] sm:$0xff]  ;;  %v14127_v21 = vld [vmem:[#allocation31_spill] sm:$0xff] }
 0x715   :  { %v5482_v14 = vpop.f32.mrf.mxu0  ;;  %5529 = vmatmul.f32.gmra.mxu0 %v14123_v50 }
 0x716   :  { %14119 = vst [vmem:[#allocation199_spill] sm:$0xff] %v10668_v23 }
 0x717   :  { %v4776_v61 = vpop.f32.mrf.mxu2  ;;  %v4426_v53 = vpop.f32.mrf.mxu1 }
 0x718   :  { %v4777_v49 = vadd.f32 %v4776_v61, %v4424_v22  ;;  %v4427_v19 = vadd.f32 %v4426_v53, %v14126_v13  ;;  %v14133_v13 = vld [vmem:[#allocation259_spill] sm:$0xff] }
 0x719   :  { %v5129_v62 = vpop.f32.mrf.mxu3 }
 0x71a   :  { %v5130_v12 = vadd.f32 %v5129_v62, %v4777_v49  ;;  %4473 = vmatmul.f32.gmra.mxu1 %v14108_v43  ;;  %v14131_v49 = vld [vmem:[#allocation362_spill] sm:$0xff] }
 0x71c   :  { %v10675_v8 = vadd.f32 %v5482_v14, %v5130_v12  ;;  %4826 = vmatmul.f32.gmra.mxu2 %v14125_v38  ;;  %5179 = vmatmul.f32.gmra.mxu3 %v14127_v21  ;;  %v14130_v14 = vld [vmem:[#allocation42_spill] sm:$0xff]  ;;  %v14132_v12 = vld [vmem:[#allocation37_spill] sm:$0xff] }
 0x71d   :  { %v5485_v29 = vpop.f32.mrf.mxu0  ;;  %5532 = vmatmul.f32.gmra.mxu0 %v14128_v27 }
 0x71e   :  { %14124 = vst [vmem:[#allocation14_spill] sm:$0xff] %v10675_v8 }
 0x71f   :  { %v4779_v9 = vpop.f32.mrf.mxu2  ;;  %v4429_v22 = vpop.f32.mrf.mxu1 }
 0x720   :  { %v4780_v11 = vadd.f32 %v4779_v9, %v4427_v19  ;;  %v4430_v62 = vadd.f32 %v4429_v22, %v14131_v49  ;;  %v14138_v49 = vld [vmem:[#allocation262_spill] sm:$0xff] }
 0x721   :  { %v5132_v47 = vpop.f32.mrf.mxu3 }
 0x722   :  { %v5133_v61 = vadd.f32 %v5132_v47, %v4780_v11  ;;  %4476 = vmatmul.f32.gmra.mxu1 %v14113_v6  ;;  %v14136_v11 = vld [vmem:[#allocation363_spill] sm:$0xff] }
 0x724   :  { %v10682_v23 = vadd.f32 %v5485_v29, %v5133_v61  ;;  %4829 = vmatmul.f32.gmra.mxu2 %v14130_v14  ;;  %5182 = vmatmul.f32.gmra.mxu3 %v14132_v12  ;;  %v14135_v29 = vld [vmem:[#allocation48_spill] sm:$0xff]  ;;  %v14137_v61 = vld [vmem:[#allocation43_spill] sm:$0xff] }
 0x725   :  { %v5488_v43 = vpop.f32.mrf.mxu0  ;;  %5535 = vmatmul.f32.gmra.mxu0 %v14133_v13 }
 0x726   :  { %14129 = vst [vmem:[#allocation8_spill] sm:$0xff] %v10682_v23 }
 0x727   :  { %v4782_v53 = vpop.f32.mrf.mxu2  ;;  %v4432_v19 = vpop.f32.mrf.mxu1 }
 0x728   :  { %v4783_v38 = vadd.f32 %v4782_v53, %v4430_v62  ;;  %v4433_v47 = vadd.f32 %v4432_v19, %v14136_v11  ;;  %v14143_v11 = vld [vmem:[#allocation265_spill] sm:$0xff] }
 0x729   :  { %v5135_v21 = vpop.f32.mrf.mxu3 }
 0x72a   :  { %v5136_v9 = vadd.f32 %v5135_v21, %v4783_v38  ;;  %4479 = vmatmul.f32.gmra.mxu1 %v14118_v37  ;;  %v14141_v38 = vld [vmem:[#allocation364_spill] sm:$0xff] }
 0x72c   :  { %v10689_v8 = vadd.f32 %v5488_v43, %v5136_v9  ;;  %4832 = vmatmul.f32.gmra.mxu2 %v14135_v29  ;;  %5185 = vmatmul.f32.gmra.mxu3 %v14137_v61  ;;  %v14140_v43 = vld [vmem:[#allocation54_spill] sm:$0xff]  ;;  %v14142_v9 = vld [vmem:[#allocation49_spill] sm:$0xff] }
 0x72d   :  { %v5491_v6 = vpop.f32.mrf.mxu0  ;;  %5538 = vmatmul.f32.gmra.mxu0 %v14138_v49 }
 0x72e   :  { %14134 = vst [vmem:[#allocation173_spill] sm:$0xff] %v10689_v8 }
 0x72f   :  { %v4785_v22 = vpop.f32.mrf.mxu2  ;;  %v4435_v62 = vpop.f32.mrf.mxu1 }
 0x730   :  { %v4786_v14 = vadd.f32 %v4785_v22, %v4433_v47  ;;  %v4436_v21 = vadd.f32 %v4435_v62, %v14141_v38  ;;  %v14148_v38 = vld [vmem:[#allocation268_spill] sm:$0xff] }
 0x731   :  { %v5138_v12 = vpop.f32.mrf.mxu3 }
 0x732   :  { %v5139_v53 = vadd.f32 %v5138_v12, %v4786_v14  ;;  %4482 = vmatmul.f32.gmra.mxu1 %v14123_v50  ;;  %v14146_v14 = vld [vmem:[#allocation365_spill] sm:$0xff] }
 0x734   :  { %v10696_v23 = vadd.f32 %v5491_v6, %v5139_v53  ;;  %4835 = vmatmul.f32.gmra.mxu2 %v14140_v43  ;;  %5188 = vmatmul.f32.gmra.mxu3 %v14142_v9  ;;  %v14145_v6 = vld [vmem:[#allocation61_spill] sm:$0xff]  ;;  %v14147_v53 = vld [vmem:[#allocation55_spill] sm:$0xff] }
 0x735   :  { %v5494_v37 = vpop.f32.mrf.mxu0  ;;  %5541 = vmatmul.f32.gmra.mxu0 %v14143_v11 }
 0x736   :  { %14139 = vst [vmem:[#allocation20_spill] sm:$0xff] %v10696_v23 }
 0x737   :  { %v4788_v19 = vpop.f32.mrf.mxu2  ;;  %v4438_v47 = vpop.f32.mrf.mxu1 }
 0x738   :  { %v4789_v29 = vadd.f32 %v4788_v19, %v4436_v21  ;;  %v4439_v12 = vadd.f32 %v4438_v47, %v14146_v14  ;;  %v14153_v14 = vld [vmem:[#allocation271_spill] sm:$0xff] }
 0x739   :  { %v5141_v61 = vpop.f32.mrf.mxu3 }
 0x73a   :  { %v5142_v22 = vadd.f32 %v5141_v61, %v4789_v29  ;;  %4485 = vmatmul.f32.gmra.mxu1 %v14128_v27  ;;  %v14151_v29 = vld [vmem:[#allocation366_spill] sm:$0xff] }
 0x73c   :  { %v10703_v8 = vadd.f32 %v5494_v37, %v5142_v22  ;;  %4838 = vmatmul.f32.gmra.mxu2 %v14145_v6  ;;  %5191 = vmatmul.f32.gmra.mxu3 %v14147_v53  ;;  %v14150_v37 = vld [vmem:[#allocation69_spill] sm:$0xff]  ;;  %v14152_v22 = vld [vmem:[#allocation62_spill] sm:$0xff] }
 0x73d   :  { %v5497_v50 = vpop.f32.mrf.mxu0  ;;  %5544 = vmatmul.f32.gmra.mxu0 %v14148_v38 }
 0x73e   :  { %14144 = vst [vmem:[#allocation15_spill] sm:$0xff] %v10703_v8 }
 0x73f   :  { %v4791_v62 = vpop.f32.mrf.mxu2  ;;  %v4441_v21 = vpop.f32.mrf.mxu1 }
 0x740   :  { %v4792_v43 = vadd.f32 %v4791_v62, %v4439_v12  ;;  %v4442_v61 = vadd.f32 %v4441_v21, %v14151_v29  ;;  %v14158_v29 = vld [vmem:[#allocation274_spill] sm:$0xff] }
 0x741   :  { %v5144_v9 = vpop.f32.mrf.mxu3 }
 0x742   :  { %v5145_v19 = vadd.f32 %v5144_v9, %v4792_v43  ;;  %4488 = vmatmul.f32.gmra.mxu1 %v14133_v13  ;;  %v14156_v43 = vld [vmem:[#allocation367_spill] sm:$0xff] }
 0x744   :  { %v10710_v23 = vadd.f32 %v5497_v50, %v5145_v19  ;;  %4841 = vmatmul.f32.gmra.mxu2 %v14150_v37  ;;  %5194 = vmatmul.f32.gmra.mxu3 %v14152_v22  ;;  %v14155_v50 = vld [vmem:[#allocation77_spill] sm:$0xff]  ;;  %v14157_v19 = vld [vmem:[#allocation70_spill] sm:$0xff] }
 0x745   :  { %v5500_v27 = vpop.f32.mrf.mxu0  ;;  %5547 = vmatmul.f32.gmra.mxu0 %v14153_v14 }
 0x746   :  { %14149 = vst [vmem:[#allocation185_spill] sm:$0xff] %v10710_v23 }
 0x747   :  { %v4794_v47 = vpop.f32.mrf.mxu2  ;;  %v4444_v12 = vpop.f32.mrf.mxu1 }
 0x748   :  { %v4795_v6 = vadd.f32 %v4794_v47, %v4442_v61  ;;  %v4445_v9 = vadd.f32 %v4444_v12, %v14156_v43  ;;  %v14163_v43 = vld [vmem:[#allocation277_spill] sm:$0xff] }
 0x749   :  { %v5147_v53 = vpop.f32.mrf.mxu3 }
 0x74a   :  { %v5148_v62 = vadd.f32 %v5147_v53, %v4795_v6  ;;  %4491 = vmatmul.f32.gmra.mxu1 %v14138_v49  ;;  %v14161_v6 = vld [vmem:[#allocation368_spill] sm:$0xff] }
 0x74c   :  { %v10717_v8 = vadd.f32 %v5500_v27, %v5148_v62  ;;  %4844 = vmatmul.f32.gmra.mxu2 %v14155_v50  ;;  %5197 = vmatmul.f32.gmra.mxu3 %v14157_v19  ;;  %v14160_v27 = vld [vmem:[#allocation85_spill] sm:$0xff]  ;;  %v14162_v62 = vld [vmem:[#allocation78_spill] sm:$0xff] }
 0x74d   :  { %v5503_v13 = vpop.f32.mrf.mxu0  ;;  %5550 = vmatmul.f32.gmra.mxu0 %v14158_v29 }
 0x74e   :  { %14154 = vst [vmem:[#allocation305_spill] sm:$0xff] %v10717_v8 }
 0x74f   :  { %v4797_v21 = vpop.f32.mrf.mxu2  ;;  %v4447_v61 = vpop.f32.mrf.mxu1 }
 0x750   :  { %v4798_v37 = vadd.f32 %v4797_v21, %v4445_v9  ;;  %v4448_v53 = vadd.f32 %v4447_v61, %v14161_v6  ;;  %v14168_v6 = vld [vmem:[#allocation280_spill] sm:$0xff] }
 0x751   :  { %v5150_v22 = vpop.f32.mrf.mxu3 }
 0x752   :  { %v5151_v47 = vadd.f32 %v5150_v22, %v4798_v37  ;;  %4494 = vmatmul.f32.gmra.mxu1 %v14143_v11  ;;  %v14166_v37 = vld [vmem:[#allocation369_spill] sm:$0xff] }
 0x754   :  { %v10724_v23 = vadd.f32 %v5503_v13, %v5151_v47  ;;  %4847 = vmatmul.f32.gmra.mxu2 %v14160_v27  ;;  %5200 = vmatmul.f32.gmra.mxu3 %v14162_v62  ;;  %v14165_v13 = vld [vmem:[#allocation93_spill] sm:$0xff]  ;;  %v14167_v47 = vld [vmem:[#allocation86_spill] sm:$0xff] }
 0x755   :  { %v5506_v49 = vpop.f32.mrf.mxu0  ;;  %5553 = vmatmul.f32.gmra.mxu0 %v14163_v43 }
 0x756   :  { %14159 = vst [vmem:[#allocation21_spill] sm:$0xff] %v10724_v23 }
 0x757   :  { %v4800_v12 = vpop.f32.mrf.mxu2  ;;  %v4450_v9 = vpop.f32.mrf.mxu1 }
 0x758   :  { %v4801_v50 = vadd.f32 %v4800_v12, %v4448_v53  ;;  %v4451_v22 = vadd.f32 %v4450_v9, %v14166_v37  ;;  %v14173_v37 = vld [vmem:[#allocation283_spill] sm:$0xff] }
 0x759   :  { %v5153_v19 = vpop.f32.mrf.mxu3 }
 0x75a   :  { %v5154_v21 = vadd.f32 %v5153_v19, %v4801_v50  ;;  %4497 = vmatmul.f32.gmra.mxu1 %v14148_v38  ;;  %v14171_v50 = vld [vmem:[#allocation370_spill] sm:$0xff] }
 0x75c   :  { %v10731_v8 = vadd.f32 %v5506_v49, %v5154_v21  ;;  %4850 = vmatmul.f32.gmra.mxu2 %v14165_v13  ;;  %5203 = vmatmul.f32.gmra.mxu3 %v14167_v47  ;;  %v14170_v49 = vld [vmem:[#allocation101_spill] sm:$0xff]  ;;  %v14172_v21 = vld [vmem:[#allocation94_spill] sm:$0xff] }
 0x75d   :  { %v5509_v11 = vpop.f32.mrf.mxu0  ;;  %5556 = vmatmul.f32.gmra.mxu0 %v14168_v6 }
 0x75e   :  { %14164 = vst [vmem:[#allocation197_spill] sm:$0xff] %v10731_v8 }
 0x75f   :  { %v4803_v61 = vpop.f32.mrf.mxu2  ;;  %v4453_v53 = vpop.f32.mrf.mxu1 }
 0x760   :  { %v4804_v27 = vadd.f32 %v4803_v61, %v4451_v22  ;;  %v4454_v19 = vadd.f32 %v4453_v53, %v14171_v50  ;;  %v14178_v50 = vld [vmem:[#allocation287_spill] sm:$0xff] }
 0x761   :  { %v5156_v62 = vpop.f32.mrf.mxu3 }
 0x762   :  { %v5157_v12 = vadd.f32 %v5156_v62, %v4804_v27  ;;  %4500 = vmatmul.f32.gmra.mxu1 %v14153_v14  ;;  %v14176_v27 = vld [vmem:[#allocation371_spill] sm:$0xff] }
 0x764   :  { %v10738_v23 = vadd.f32 %v5509_v11, %v5157_v12  ;;  %4853 = vmatmul.f32.gmra.mxu2 %v14170_v49  ;;  %5206 = vmatmul.f32.gmra.mxu3 %v14172_v21  ;;  %v14175_v11 = vld [vmem:[#allocation109_spill] sm:$0xff]  ;;  %v14177_v12 = vld [vmem:[#allocation102_spill] sm:$0xff] }
 0x765   :  { %v5512_v38 = vpop.f32.mrf.mxu0  ;;  %5559 = vmatmul.f32.gmra.mxu0 %v14173_v37 }
 0x766   :  { %14169 = vst [vmem:[#allocation26_spill] sm:$0xff] %v10738_v23 }
 0x767   :  { %v4806_v9 = vpop.f32.mrf.mxu2  ;;  %v4456_v22 = vpop.f32.mrf.mxu1 }
 0x768   :  { %v4807_v13 = vadd.f32 %v4806_v9, %v4454_v19  ;;  %v4457_v62 = vadd.f32 %v4456_v22, %v14176_v27  ;;  %v14183_v27 = vld [vmem:[#allocation291_spill] sm:$0xff] }
 0x769   :  { %v5159_v47 = vpop.f32.mrf.mxu3 }
 0x76a   :  { %v5160_v61 = vadd.f32 %v5159_v47, %v4807_v13  ;;  %4503 = vmatmul.f32.gmra.mxu1 %v14158_v29  ;;  %v14181_v13 = vld [vmem:[#allocation372_spill] sm:$0xff] }
 0x76c   :  { %v10745_v8 = vadd.f32 %v5512_v38, %v5160_v61  ;;  %4856 = vmatmul.f32.gmra.mxu2 %v14175_v11  ;;  %5209 = vmatmul.f32.gmra.mxu3 %v14177_v12  ;;  %v14180_v38 = vld [vmem:[#allocation117_spill] sm:$0xff]  ;;  %v14182_v61 = vld [vmem:[#allocation110_spill] sm:$0xff] }
 0x76d   :  { %v5515_v14 = vpop.f32.mrf.mxu0  ;;  %5562 = vmatmul.f32.gmra.mxu0 %v14178_v50 }
 0x76e   :  { %14174 = vst [vmem:[#allocation301_spill] sm:$0xff] %v10745_v8 }
 0x76f   :  { %v4809_v53 = vpop.f32.mrf.mxu2  ;;  %v4459_v19 = vpop.f32.mrf.mxu1 }
 0x770   :  { %v4810_v49 = vadd.f32 %v4809_v53, %v4457_v62  ;;  %v4460_v47 = vadd.f32 %v4459_v19, %v14181_v13  ;;  %v14188_v13 = vld [vmem:[#allocation295_spill] sm:$0xff] }
 0x771   :  { %v5162_v21 = vpop.f32.mrf.mxu3 }
 0x772   :  { %v5163_v9 = vadd.f32 %v5162_v21, %v4810_v49  ;;  %4506 = vmatmul.f32.gmra.mxu1 %v14163_v43  ;;  %v14186_v49 = vld [vmem:[#allocation373_spill] sm:$0xff] }
 0x774   :  { %v10752_v23 = vadd.f32 %v5515_v14, %v5163_v9  ;;  %4859 = vmatmul.f32.gmra.mxu2 %v14180_v38  ;;  %5212 = vmatmul.f32.gmra.mxu3 %v14182_v61  ;;  %v14185_v14 = vld [vmem:[#allocation126_spill] sm:$0xff] }
 0x775   :  { %v5518_v29 = vpop.f32.mrf.mxu0  ;;  %5565 = vmatmul.f32.gmra.mxu0 %v14183_v27  ;;  %v14187_v9 = vld [vmem:[#allocation118_spill] sm:$0xff] }
 0x776   :  { %14179 = vst [vmem:[#allocation40_spill] sm:$0xff] %v10752_v23 }
 0x777   :  { %v4812_v22 = vpop.f32.mrf.mxu2  ;;  %v4462_v62 = vpop.f32.mrf.mxu1 }
 0x778   :  { %v4813_v11 = vadd.f32 %v4812_v22, %v4460_v47  ;;  %v4463_v21 = vadd.f32 %v4462_v62, %v14186_v49  ;;  %v14193_v49 = vld [vmem:[#allocation133_spill] sm:$0xff] }
 0x779   :  { %v5165_v12 = vpop.f32.mrf.mxu3 }
 0x77a   :  { %v5166_v53 = vadd.f32 %v5165_v12, %v4813_v11  ;;  %4509 = vmatmul.f32.gmra.mxu1 %v14168_v6  ;;  %v14191_v11 = vld [vmem:[#allocation374_spill] sm:$0xff] }
 0x77c   :  { %v10759_v8 = vadd.f32 %v5518_v29, %v5166_v53  ;;  %4862 = vmatmul.f32.gmra.mxu2 %v14185_v14  ;;  %5215 = vmatmul.f32.gmra.mxu3 %v14187_v9  ;;  %v14190_v29 = vld [vmem:[#allocation137_spill] sm:$0xff]  ;;  %v14192_v53 = vld [vmem:[#allocation127_spill] sm:$0xff] }
 0x77d   :  { %v5521_v43 = vpop.f32.mrf.mxu0  ;;  %5568 = vmatmul.f32.gmra.mxu0 %v14188_v13 }
 0x77e   :  { %14184 = vst [vmem:[#allocation33_spill] sm:$0xff] %v10759_v8 }
 0x77f   :  { %v4815_v19 = vpop.f32.mrf.mxu2  ;;  %v4465_v47 = vpop.f32.mrf.mxu1 }
 0x780   :  { %v4816_v38 = vadd.f32 %v4815_v19, %v4463_v21  ;;  %v4466_v12 = vadd.f32 %v4465_v47, %v14191_v11  ;;  %v14198_v11 = vld [vmem:[#allocation144_spill] sm:$0xff] }
 0x781   :  { %v5168_v61 = vpop.f32.mrf.mxu3 }
 0x782   :  { %v5169_v22 = vadd.f32 %v5168_v61, %v4816_v38  ;;  %4512 = vmatmul.f32.gmra.mxu1 %v14173_v37  ;;  %v14196_v38 = vld [vmem:[#allocation375_spill] sm:$0xff] }
 0x784   :  { %v10766_v23 = vadd.f32 %v5521_v43, %v5169_v22  ;;  %4865 = vmatmul.f32.gmra.mxu2 %v14190_v29  ;;  %5218 = vmatmul.f32.gmra.mxu3 %v14192_v53  ;;  %v14195_v43 = vld [vmem:[#allocation148_spill] sm:$0xff]  ;;  %v14197_v22 = vld [vmem:[#allocation138_spill] sm:$0xff] }
 0x785   :  { %v5524_v6 = vpop.f32.mrf.mxu0  ;;  %5571 = vmatmul.f32.gmra.mxu0 %v14193_v49 }
 0x786   :  { %14189 = vst [vmem:[#allocation2_spill] sm:$0xff] %v10766_v23 }
 0x787   :  { %v4818_v62 = vpop.f32.mrf.mxu2  ;;  %v4468_v21 = vpop.f32.mrf.mxu1 }
 0x788   :  { %v4819_v14 = vadd.f32 %v4818_v62, %v4466_v12  ;;  %v4469_v61 = vadd.f32 %v4468_v21, %v14196_v38  ;;  %v14203_v38 = vld [vmem:[#allocation156_spill] sm:$0xff] }
 0x789   :  { %v5171_v9 = vpop.f32.mrf.mxu3 }
 0x78a   :  { %v5172_v19 = vadd.f32 %v5171_v9, %v4819_v14  ;;  %4515 = vmatmul.f32.gmra.mxu1 %v14178_v50  ;;  %v14201_v14 = vld [vmem:[#allocation376_spill] sm:$0xff] }
 0x78c   :  { %v10773_v8 = vadd.f32 %v5524_v6, %v5172_v19  ;;  %4868 = vmatmul.f32.gmra.mxu2 %v14195_v43  ;;  %5221 = vmatmul.f32.gmra.mxu3 %v14197_v22  ;;  %v14200_v6 = vld [vmem:[#allocation160_spill] sm:$0xff]  ;;  %v14202_v19 = vld [vmem:[#allocation149_spill] sm:$0xff] }
 0x78d   :  { %v5527_v37 = vpop.f32.mrf.mxu0  ;;  %5574 = vmatmul.f32.gmra.mxu0 %v14198_v11 }
 0x78e   :  { %14194 = vst [vmem:[#allocation28_spill] sm:$0xff] %v10773_v8 }
 0x78f   :  { %v4821_v47 = vpop.f32.mrf.mxu2  ;;  %v4471_v12 = vpop.f32.mrf.mxu1 }
 0x790   :  { %v4822_v29 = vadd.f32 %v4821_v47, %v4469_v61  ;;  %v4472_v9 = vadd.f32 %v4471_v12, %v14201_v14  ;;  %v14208_v14 = vld [vmem:[#allocation167_spill] sm:$0xff] }
 0x791   :  { %v5174_v53 = vpop.f32.mrf.mxu3 }
 0x792   :  { %v5175_v62 = vadd.f32 %v5174_v53, %v4822_v29  ;;  %4518 = vmatmul.f32.gmra.mxu1 %v14183_v27  ;;  %v14206_v29 = vld [vmem:[#allocation377_spill] sm:$0xff] }
 0x794   :  { %v10780_v23 = vadd.f32 %v5527_v37, %v5175_v62  ;;  %4871 = vmatmul.f32.gmra.mxu2 %v14200_v6  ;;  %5224 = vmatmul.f32.gmra.mxu3 %v14202_v19  ;;  %v14205_v37 = vld [vmem:[#allocation171_spill] sm:$0xff]  ;;  %v14207_v62 = vld [vmem:[#allocation161_spill] sm:$0xff] }
 0x795   :  { %v5530_v50 = vpop.f32.mrf.mxu0  ;;  %5577 = vmatmul.f32.gmra.mxu0 %v14203_v38 }
 0x796   :  { %14199 = vst [vmem:[#allocation44_spill] sm:$0xff] %v10780_v23 }
 0x797   :  { %v4824_v21 = vpop.f32.mrf.mxu2  ;;  %v4474_v61 = vpop.f32.mrf.mxu1 }
 0x798   :  { %v4825_v43 = vadd.f32 %v4824_v21, %v4472_v9  ;;  %v4475_v53 = vadd.f32 %v4474_v61, %v14206_v29  ;;  %v14213_v29 = vld [vmem:[#allocation179_spill] sm:$0xff] }
 0x799   :  { %v5177_v22 = vpop.f32.mrf.mxu3 }
 0x79a   :  { %v5178_v47 = vadd.f32 %v5177_v22, %v4825_v43  ;;  %4521 = vmatmul.f32.gmra.mxu1 %v14188_v13  ;;  %v14211_v43 = vld [vmem:[#allocation378_spill] sm:$0xff] }
 0x79c   :  { %v10787_v8 = vadd.f32 %v5530_v50, %v5178_v47  ;;  %4874 = vmatmul.f32.gmra.mxu2 %v14205_v37  ;;  %5227 = vmatmul.f32.gmra.mxu3 %v14207_v62  ;;  %v14210_v50 = vld [vmem:[#allocation183_spill] sm:$0xff]  ;;  %v14212_v47 = vld [vmem:[#allocation172_spill] sm:$0xff] }
 0x79d   :  { %v5533_v27 = vpop.f32.mrf.mxu0  ;;  %5580 = vmatmul.f32.gmra.mxu0 %v14208_v14 }
 0x79e   :  { %14204 = vst [vmem:[#allocation38_spill] sm:$0xff] %v10787_v8 }
 0x79f   :  { %v4827_v12 = vpop.f32.mrf.mxu2  ;;  %v4477_v9 = vpop.f32.mrf.mxu1 }
 0x7a0   :  { %v4828_v6 = vadd.f32 %v4827_v12, %v4475_v53  ;;  %v4478_v22 = vadd.f32 %v4477_v9, %v14211_v43  ;;  %v21_v9 = vadd.s32 24, %v6926_v17 }
 0x7a1   :  { %v5180_v19 = vpop.f32.mrf.mxu3 }
 0x7a2   :  { %v5181_v21 = vadd.f32 %v5180_v19, %v4828_v6  ;;  %4524 = vmatmul.f32.gmra.mxu1 %v14193_v49  ;;  %v14216_v6 = vld [vmem:[#allocation379_spill] sm:$0xff] }
 0x7a4   :  { %v10794_v23 = vadd.f32 %v5533_v27, %v5181_v21  ;;  %4877 = vmatmul.f32.gmra.mxu2 %v14210_v50  ;;  %5230 = vmatmul.f32.gmra.mxu3 %v14212_v47  ;;  %v14215_v27 = vld [vmem:[#allocation195_spill] sm:$0xff]  ;;  %v14217_v21 = vld [vmem:[#allocation184_spill] sm:$0xff] }
 0x7a5   :  { %v5536_v13 = vpop.f32.mrf.mxu0  ;;  %5583 = vmatmul.f32.gmra.mxu0 %v14213_v29 }
 0x7a6   :  { %14209 = vst [vmem:[#allocation302_spill] sm:$0xff] %v10794_v23  ;;  %v14227_v23 = vld [vmem:[#allocation208_spill] sm:$0xff] }
 0x7a7   :  { %v4830_v61 = vpop.f32.mrf.mxu2  ;;  %v4480_v53 = vpop.f32.mrf.mxu1 }
 0x7a8   :  { %v4831_v37 = vadd.f32 %v4830_v61, %v4478_v22  ;;  %v4481_v19 = vadd.f32 %v4480_v53, %v14216_v6  ;;  %v14218_v22 = vld [vmem:[#allocation191_spill] sm:$0xff]  ;;  %v14221_v53 = vld [vmem:[#allocation380_spill] sm:$0xff] }
 0x7a9   :  { %v5183_v62 = vpop.f32.mrf.mxu3  ;;  %v14222_v6 = vld [vmem:[#allocation196_spill] sm:$0xff] }
 0x7aa   :  { %v5184_v12 = vadd.f32 %v5183_v62, %v4831_v37  ;;  %4527 = vmatmul.f32.gmra.mxu1 %v14198_v11  ;;  %v14220_v11 = vld [vmem:[#allocation207_spill] sm:$0xff] }
 0x7ac   :  { %v10801_v8 = vadd.f32 %v5536_v13, %v5184_v12  ;;  %4880 = vmatmul.f32.gmra.mxu2 %v14215_v27  ;;  %5233 = vmatmul.f32.gmra.mxu3 %v14217_v21  ;;  %v155_v13 = vand.u32 31, %v21_v9 }
 0x7ad   :  { %v5539_v49 = vpop.f32.mrf.mxu0  ;;  %5586 = vmatmul.f32.gmra.mxu0 %v14218_v22 }
 0x7ae   :  { %14214 = vst [vmem:[#allocation52_spill] sm:$0xff] %v10801_v8  ;;  %vm1477_vm2 = vcmp.lt.s32.totalorder %v155_v13, 28  ;;  %v14223_v8 = vld [vmem:[#allocation203_spill] sm:$0xff] }
 0x7af   :  { %v4833_v50 = vpop.f32.mrf.mxu2  ;;  %v4483_v47 = vpop.f32.mrf.mxu1 }
 0x7b0   :  { %v4834_v43 = vadd.f32 %v4833_v50, %v4481_v19  ;;  %v4484_v27 = vadd.f32 %v4483_v47, %v14221_v53  ;;  %v25_v19 = vadd.s32 56, %v6926_v17  ;;  %v6083_v47 = vmul.f32 %v10234_v44, %v10234_v44 }
 0x7b1   :  { %v5186_v61 = vpop.f32.mrf.mxu3 }
 0x7b2   :  { %v5187_v37 = vadd.f32 %v5186_v61, %v4834_v43  ;;  %4530 = vmatmul.f32.gmra.mxu1 %v14203_v38  ;;  %v5856_v38 = vsel %vm1477_vm2, %v10255_v16, 0.0  ;;  %v183_v13 = vand.u32 31, %v25_v19  ;;  %v6087_v19 = vmul.f32 %v10262_v56, %v10262_v56 }
 0x7b4   :  { %v10809_v62 = vadd.f32 %v5539_v49, %v5187_v37  ;;  %4883 = vmatmul.f32.gmra.mxu2 %v14220_v11  ;;  %5236 = vmatmul.f32.gmra.mxu3 %v14222_v6  ;;  %v6084_v49 = vmul.f32 %v10241_v35, %v10241_v35  ;;  %v6085_v37 = vmul.f32 %v10248_v51, %v10248_v51  ;;  %vm1481_vm3 = vcmp.lt.s32.totalorder %v183_v13, 28 }
 0x7b5   :  { %v5542_v12 = vpop.f32.mrf.mxu0  ;;  %5589 = vmatmul.f32.gmra.mxu0 %v14223_v8  ;;  %v5965_v11 = vadd.f32 %v10241_v35, %v10234_v44  ;;  %v6089_v13 = vmul.f32 %v10276_v57, %v10276_v57 }
 0x7b6   :  { %14219 = vst [vmem:[#allocation45_spill] sm:$0xff] %v10809_v62  ;;  %v6195_v6 = vadd.f32 %v6084_v49, %v6083_v47  ;;  %v6088_v47 = vmul.f32 %v10269_v1, %v10269_v1 }
 0x7b7   :  { %v4836_v21 = vpop.f32.mrf.mxu2  ;;  %v4486_v9 = vpop.f32.mrf.mxu1 }
 0x7b8   :  { %v4837_v50 = vadd.f32 %v4836_v21, %v4484_v27  ;;  %v14225_v27 = vld [vmem:[#allocation219_spill] sm:$0xff]  ;;  %v6086_v21 = vmul.f32 %v5856_v38, %v5856_v38  ;;  %v6196_v46 = vadd.f32 %v6195_v6, %v6085_v37  ;;  %v5860_v37 = vsel %vm1481_vm3, %v10283_v59, 0.0  ;;  %v14231_v59 = vld [vmem:[#allocation382_spill] sm:$0xff] }
 0x7b9   :  { %v5189_v43 = vpop.f32.mrf.mxu3 }
 0x7ba   :  { %v5190_v61 = vadd.f32 %v5189_v43, %v4837_v50  ;;  %4533 = vmatmul.f32.gmra.mxu1 %v14208_v14  ;;  %v5966_v50 = vadd.f32 %v5965_v11, %v10248_v51  ;;  %v14226_v43 = vld [vmem:[#allocation381_spill] sm:$0xff]  ;;  %v6197_v49 = vadd.f32 %v6196_v46, %v6086_v21  ;;  %v14230_v46 = vld [vmem:[#allocation231_spill] sm:$0xff] }
 0x7bb   :  { %v4487_v62 = vadd.f32 %v4486_v9, %v14226_v43 }
 0x7bc   :  { %v10826_v53 = vadd.f32 %v5542_v12, %v5190_v61  ;;  %4886 = vmatmul.f32.gmra.mxu2 %v14225_v27  ;;  %5239 = vmatmul.f32.gmra.mxu3 %v14227_v23  ;;  %v29_v12 = vadd.s32 88, %v6926_v17  ;;  %v5967_v14 = vadd.f32 %v5966_v50, %v5856_v38  ;;  %v14228_v27 = vld [vmem:[#allocation215_spill] sm:$0xff]  ;;  %v6198_v43 = vadd.f32 %v6197_v49, %v6087_v19 }
 0x7bd   :  { %v5545_v16 = vpop.f32.mrf.mxu0  ;;  %5592 = vmatmul.f32.gmra.mxu0 %v14228_v27  ;;  %v6090_v50 = vmul.f32 %v5860_v37, %v5860_v37 }
 0x7be   :  { %14224 = vst [vmem:[#allocation303_spill] sm:$0xff] %v10826_v53  ;;  %v5968_v23 = vadd.f32 %v5967_v14, %v10262_v56  ;;  %v211_v51 = vand.u32 31, %v29_v12  ;;  %v6199_v21 = vadd.f32 %v6198_v43, %v6088_v47  ;;  %v6091_v12 = vmul.f32 %v10290_v26, %v10290_v26 }
 0x7bf   :  { %v4839_v61 = vpop.f32.mrf.mxu2  ;;  %v4489_v11 = vpop.f32.mrf.mxu1 }
 0x7c0   :  { %v4840_v35 = vadd.f32 %v4839_v61, %v4487_v62  ;;  %v5969_v62 = vadd.f32 %v5968_v23, %v10269_v1  ;;  %v6200_v19 = vadd.f32 %v6199_v21, %v6089_v13  ;;  %vm1485_vm4 = vcmp.lt.s32.totalorder %v211_v51, 28  ;;  %v14232_v23 = vld [vmem:[#allocation227_spill] sm:$0xff] }
 0x7c1   :  { %v5192_v9 = vpop.f32.mrf.mxu3  ;;  %v6093_v51 = vmul.f32 %v10304_v33, %v10304_v33 }
 0x7c2   :  { %v5193_v6 = vadd.f32 %v5192_v9, %v4840_v35  ;;  %4536 = vmatmul.f32.gmra.mxu1 %v14213_v29  ;;  %v5970_v14 = vadd.f32 %v5969_v62, %v10276_v57  ;;  %v4490_v35 = vadd.f32 %v4489_v11, %v14231_v59  ;;  %v6201_v47 = vadd.f32 %v6200_v19, %v6090_v50  ;;  %v14234_v50 = vld [vmem:[#allocation239_spill] sm:$0xff] }
 0x7c3   :  { %v5864_v11 = vsel %vm1485_vm4, %v10311_v48, 0.0 }
 0x7c4   :  { %v10844_v38 = vadd.f32 %v5545_v16, %v5193_v6  ;;  %4889 = vmatmul.f32.gmra.mxu2 %v14230_v46  ;;  %5242 = vmatmul.f32.gmra.mxu3 %v13733_v34  ;;  %v33_v16 = vadd.s32 120, %v6926_v17  ;;  %v5971_v29 = vadd.f32 %v5970_v14, %v5860_v37  ;;  %v6092_v6 = vmul.f32 %v10297_v15, %v10297_v15 }
 0x7c5   :  { %v5548_v61 = vpop.f32.mrf.mxu0  ;;  %5595 = vmatmul.f32.gmra.mxu0 %v14232_v23  ;;  %v6202_v62 = vadd.f32 %v6201_v47, %v6091_v12  ;;  %v14236_v12 = vld [vmem:[#allocation232_spill] sm:$0xff] }
 0x7c6   :  { %14229 = vst [vmem:[#allocation57_spill] sm:$0xff] %v10844_v38  ;;  %v5972_v34 = vadd.f32 %v5971_v29, %v10290_v26  ;;  %v239_v46 = vand.u32 31, %v33_v16  ;;  %v14235_v29 = vld [vmem:[#allocation383_spill] sm:$0xff]  ;;  %v6095_v16 = vmul.f32 %v10318_v2, %v10318_v2 }
 0x7c7   :  { %v4842_v49 = vpop.f32.mrf.mxu2  ;;  %v4492_v43 = vpop.f32.mrf.mxu1  ;;  %v6203_v14 = vadd.f32 %v6202_v62, %v6092_v6  ;;  %v6096_v62 = vmul.f32 %v10325_v63, %v10325_v63 }
 0x7c8   :  { %v4843_v9 = vadd.f32 %v4842_v49, %v4490_v35  ;;  %v5973_v37 = vadd.f32 %v5972_v34, %v10297_v15  ;;  %v6094_v35 = vmul.f32 %v5864_v11, %v5864_v11  ;;  %vm1489_vm5 = vcmp.lt.s32.totalorder %v239_v46, 28 }
 0x7c9   :  { %v5195_v59 = vpop.f32.mrf.mxu3  ;;  %v6204_v47 = vadd.f32 %v6203_v14, %v6093_v51  ;;  %v5868_v51 = vsel %vm1489_vm5, %v10339_v58, 0.0  ;;  %v6097_v46 = vmul.f32 %v10332_v54, %v10332_v54  ;;  %v14240_v58 = vld [vmem:[#allocation384_spill] sm:$0xff] }
 0x7ca   :  { %v5196_v13 = vadd.f32 %v5195_v59, %v4843_v9  ;;  %4539 = vmatmul.f32.gmra.mxu1 %v14218_v22  ;;  %v5974_v49 = vadd.f32 %v5973_v37, %v10304_v33  ;;  %v4493_v9 = vadd.f32 %v4492_v43, %v14235_v29 }
 0x7cb   :  { %v6205_v6 = vadd.f32 %v6204_v47, %v6094_v35  ;;  %v14239_v35 = vld [vmem:[#allocation246_spill] sm:$0xff]  ;;  %v6098_v47 = vmul.f32 %v5868_v51, %v5868_v51 }
 0x7cc   :  { %v10862_v21 = vadd.f32 %v5548_v61, %v5196_v13  ;;  %4892 = vmatmul.f32.gmra.mxu2 %v14234_v50  ;;  %5245 = vmatmul.f32.gmra.mxu3 %v14236_v12  ;;  %v37_v61 = vadd.s32 152, %v6926_v17  ;;  %v5975_v22 = vadd.f32 %v5974_v49, %v5864_v11  ;;  %v14237_v13 = vld [vmem:[#allocation236_spill] sm:$0xff] }
 0x7cd   :  { %v5551_v19 = vpop.f32.mrf.mxu0  ;;  %5598 = vmatmul.f32.gmra.mxu0 %v14237_v13  ;;  %v6206_v29 = vadd.f32 %v6205_v6, %v6095_v16  ;;  %v14241_v16 = vld [vmem:[#allocation240_spill] sm:$0xff] }
 0x7ce   :  { %14233 = vst [vmem:[#allocation50_spill] sm:$0xff] %v10862_v21  ;;  %v5976_v50 = vadd.f32 %v5975_v22, %v10318_v2  ;;  %v267_v12 = vand.u32 31, %v37_v61  ;;  %v6099_v61 = vmul.f32 %v10346_v24, %v10346_v24 }
 0x7cf   :  { %v4845_v59 = vpop.f32.mrf.mxu2  ;;  %v4495_v37 = vpop.f32.mrf.mxu1 }
 0x7d0   :  { %v4846_v34 = vadd.f32 %v4845_v59, %v4493_v9  ;;  %v5977_v11 = vadd.f32 %v5976_v50, %v10325_v63  ;;  %v6207_v9 = vadd.f32 %v6206_v29, %v6096_v62  ;;  %vm1493_vm6 = vcmp.lt.s32.totalorder %v267_v12, 28  ;;  %v14244_v12 = vld [vmem:[#allocation385_spill] sm:$0xff] }
 0x7d1   :  { %v5198_v43 = vpop.f32.mrf.mxu3  ;;  %v6100_v29 = vmul.f32 %v10353_v3, %v10353_v3 }
 0x7d2   :  { %v5199_v14 = vadd.f32 %v5198_v43, %v4846_v34  ;;  %4542 = vmatmul.f32.gmra.mxu1 %v14223_v8  ;;  %v5978_v22 = vadd.f32 %v5977_v11, %v10332_v54  ;;  %v4496_v34 = vadd.f32 %v4495_v37, %v14240_v58  ;;  %v6208_v6 = vadd.f32 %v6207_v9, %v6097_v46  ;;  %v14243_v37 = vld [vmem:[#allocation389_spill] sm:$0xff] }
 0x7d3   :  { %v5872_v9 = vsel %vm1493_vm6, %v10367_v52, 0.0  ;;  %v14247_v52 = vld [vmem:[#allocation386_spill] sm:$0xff] }
 0x7d4   :  { %v10880_v49 = vadd.f32 %v5551_v19, %v5199_v14  ;;  %4895 = vmatmul.f32.gmra.mxu2 %v14239_v35  ;;  %5248 = vmatmul.f32.gmra.mxu3 %v14241_v16  ;;  %v41_v19 = vadd.s32 184, %v6926_v17  ;;  %v5979_v8 = vadd.f32 %v5978_v22, %v5868_v51  ;;  %v14242_v14 = vld [vmem:[#allocation243_spill] sm:$0xff]  ;;  %v6209_v62 = vadd.f32 %v6208_v6, %v6098_v47  ;;  %v14246_v6 = vld [vmem:[#allocation388_spill] sm:$0xff] }
 0x7d5   :  { %v5554_v59 = vpop.f32.mrf.mxu0  ;;  %5601 = vmatmul.f32.gmra.mxu0 %v14242_v14  ;;  %v2180_v35 = vrot.slane %v14243_v37, 1  ;;  %v6101_v51 = vmul.f32 %v10360_v40, %v10360_v40  ;;  %v14248_v2 = vrot.slane %v14247_v52, 1 }
 0x7d6   :  { %14238 = vst [vmem:[#allocation304_spill] sm:$0xff] %v10880_v49  ;;  %v5980_v46 = vadd.f32 %v5979_v8, %v10346_v24  ;;  %v6210_v63 = vadd.f32 %v6209_v62, %v6099_v61  ;;  %v295_v22 = vand.u32 31, %v41_v19  ;;  %v6102_v8 = vmul.f32 %v5872_v9, %v5872_v9 }
 0x7d7   :  { %v4848_v43 = vpop.f32.mrf.mxu2  ;;  %v4498_v11 = vpop.f32.mrf.mxu1  ;;  %v10908_v61 = vsel %vm2187_vm1, %v14248_v2, %v2180_v35  ;;  %v6104_v2 = vmul.f32 %v10381_v4, %v10381_v4 }
 0x7d8   :  { %v4849_v50 = vadd.f32 %v4848_v43, %v4496_v34  ;;  %v4499_v16 = vadd.f32 %v4498_v11, %v14244_v12  ;;  %v5981_v47 = vadd.f32 %v5980_v46, %v10353_v3  ;;  %v6211_v43 = vadd.f32 %v6210_v63, %v6100_v29  ;;  %v14249_v46 = vld [vmem:[#allocation392_spill] sm:$0xff]  ;;  %v14316_v3 = vld [vmem:[#allocation2_spill] sm:$0xff] }
 0x7d9   :  { %v5201_v58 = vpop.f32.mrf.mxu3  ;;  %vm1497_vm7 = vcmp.lt.s32.totalorder %v295_v22, 28  ;;  %v14250_v22 = vld [vmem:[#allocation220_spill] sm:$0xff] }
 0x7da   :  { %v5202_v54 = vadd.f32 %v5201_v58, %v4849_v50  ;;  %4545 = vmatmul.f32.gmra.mxu1 %v14228_v27  ;;  %v5982_v50 = vadd.f32 %v5981_v47, %v10360_v40  ;;  %v6212_v19 = vadd.f32 %v6211_v43, %v6101_v51  ;;  %v45_v27 = vadd.s32 216, %v6926_v17 }
 0x7db   :  { %v5876_v51 = vsel %vm1497_vm7, %v10395_v10, 0.0 }
 0x7dc   :  { %v10900_v34 = vadd.f32 %v5554_v59, %v5202_v54  ;;  %4898 = vmatmul.f32.gmra.mxu2 %v14246_v6  ;;  %5251 = vmatmul.f32.gmra.mxu3 %v14247_v52  ;;  %v6103_v54 = vmul.f32 %v10374_v45, %v10374_v45  ;;  %v5983_v59 = vadd.f32 %v5982_v50, %v5872_v9  ;;  %v2181_v52 = vrot.slane %v14249_v46, 1 }
 0x7dd   :  { %v5557_v24 = vpop.f32.mrf.mxu0  ;;  %5604 = vmatmul.f32.gmra.mxu0 %v10908_v61  ;;  %v6213_v29 = vadd.f32 %v6212_v19, %v6102_v8  ;;  %v6105_v9 = vmul.f32 %v10388_v31, %v10388_v31  ;;  %v14252_v19 = vld [vmem:[#allocation391_spill] sm:$0xff] }
 0x7de   :  { %14245 = vst [vmem:[#allocation67_spill] sm:$0xff] %v10900_v34  ;;  %v5984_v12 = vadd.f32 %v5983_v59, %v10374_v45  ;;  %v6106_v59 = vmul.f32 %v5876_v51, %v5876_v51 }
 0x7df   :  { %v4851_v63 = vpop.f32.mrf.mxu2  ;;  %v4501_v11 = vpop.f32.mrf.mxu1  ;;  %v6214_v43 = vadd.f32 %v6213_v29, %v6103_v54 }
 0x7e0   :  { %v4852_v62 = vadd.f32 %v4851_v63, %v4499_v16  ;;  %v4502_v47 = vadd.f32 %v4501_v11, %v14250_v22  ;;  %v323_v16 = vand.u32 31, %v45_v27  ;;  %v5985_v8 = vadd.f32 %v5984_v12, %v10381_v4 }
 0x7e1   :  { %v5204_v58 = vpop.f32.mrf.mxu3  ;;  %v6215_v63 = vadd.f32 %v6214_v43, %v6104_v2  ;;  %v10931_v11 = vsel %vm2187_vm1, %v2180_v35, %v2181_v52  ;;  %v6108_v35 = vmul.f32 %v10409_v36, %v10409_v36 }
 0x7e2   :  { %v5205_v6 = vadd.f32 %v5204_v58, %v4852_v62  ;;  %4548 = vmatmul.f32.gmra.mxu1 %v14232_v23  ;;  %v5986_v54 = vadd.f32 %v5985_v8, %v10388_v31  ;;  %vm1501_vm8 = vcmp.lt.s32.totalorder %v323_v16, 28  ;;  %v49_v23 = vadd.s32 248, %v6926_v17  ;;  %v14254_v16 = vld [vmem:[#allocation387_spill] sm:$0xff]  ;;  %v14315_v31 = vld [vmem:[#allocation40_spill] sm:$0xff] }
 0x7e3   :  { %v6216_v27 = vadd.f32 %v6215_v63, %v6105_v9  ;;  %v5880_v9 = vsel %vm1501_vm8, %v10423_v60, 0.0 }
 0x7e4   :  { %v10925_v50 = vadd.f32 %v5557_v24, %v5205_v6  ;;  %4901 = vmatmul.f32.gmra.mxu2 %v14252_v19  ;;  %5254 = vmatmul.f32.gmra.mxu3 %v14243_v37  ;;  %v6107_v24 = vmul.f32 %v10402_v30, %v10402_v30  ;;  %v5987_v29 = vadd.f32 %v5986_v54, %v5876_v51  ;;  %v14253_v6 = vld [vmem:[#allocation395_spill] sm:$0xff]  ;;  %v14255_v51 = vld [vmem:[#allocation272_spill] sm:$0xff]  ;;  %v351_v54 = vand.u32 31, %v49_v23 }
 0x7e5   :  { %v5560_v45 = vpop.f32.mrf.mxu0  ;;  %5607 = vmatmul.f32.gmra.mxu0 %v10931_v11  ;;  %v6217_v58 = vadd.f32 %v6216_v27, %v6106_v59  ;;  %v2182_v37 = vrot.slane %v14253_v6, 1 }
 0x7e6   :  { %14251 = vst [vmem:[#allocation58_spill] sm:$0xff] %v10925_v50  ;;  %v5988_v43 = vadd.f32 %v5987_v29, %v10402_v30  ;;  %v1702_v29 = vld [vmem:[%s12261_s0 + $0x3a0] sm:$0xff]  ;;  %vm1505_vm9 = vcmp.lt.s32.totalorder %v351_v54, 28 }
 0x7e7   :  { %v4854_v62 = vpop.f32.mrf.mxu2  ;;  %v4504_v12 = vpop.f32.mrf.mxu1  ;;  %v6218_v63 = vadd.f32 %v6217_v58, %v6107_v24  ;;  %v10957_v24 = vsel %vm2187_vm1, %v2181_v52, %v2182_v37  ;;  %v5884_v54 = vsel %vm1505_vm9, %v10451_v25, 0.0 }
 0x7e8   :  { %v4855_v2 = vadd.f32 %v4854_v62, %v4502_v47  ;;  %v4505_v8 = vadd.f32 %v4504_v12, %v14254_v16  ;;  %v6109_v47 = vmul.f32 %v14255_v51, %v14255_v51  ;;  %v5989_v59 = vadd.f32 %v5988_v43, %v10409_v36  ;;  %v14257_v62 = vld [vmem:[#allocation394_spill] sm:$0xff] }
 0x7e9   :  { %v5207_v22 = vpop.f32.mrf.mxu3  ;;  %v6219_v60 = vadd.f32 %v6218_v63, %v6108_v35  ;;  %v6110_v12 = vmul.f32 %v5880_v9, %v5880_v9  ;;  %v53_v35 = vadd.s32 280, %v6926_v17 }
 0x7ea   :  { %v5208_v19 = vadd.f32 %v5207_v22, %v4855_v2  ;;  %4551 = vmatmul.f32.gmra.mxu1 %v14237_v13  ;;  %v5990_v23 = vadd.f32 %v5989_v59, %v14255_v51  ;;  %v6111_v13 = vmul.f32 %v10430_v55, %v10430_v55  ;;  %v10963_v22 = vmax.f32 %v1702_v29, 0.0  ;;  %v14258_v59 = vld [vmem:[#allocation390_spill] sm:$0xff] }
 0x7ec   :  { %v10948_v27 = vadd.f32 %v5560_v45, %v5208_v19  ;;  %4904 = vmatmul.f32.gmra.mxu2 %v14257_v62  ;;  %5257 = vmatmul.f32.gmra.mxu3 %v14249_v46  ;;  %v6220_v45 = vadd.f32 %v6219_v60, %v6109_v47  ;;  %v5991_v43 = vadd.f32 %v5990_v23, %v5880_v9  ;;  %v2183_v60 = vrot.slane %v10963_v22, 1 }
 0x7ed   :  { %v5563_v2 = vpop.f32.mrf.mxu0  ;;  %5610 = vmatmul.f32.gmra.mxu0 %v10957_v24  ;;  %v6112_v19 = vmul.f32 %v10437_v7, %v10437_v7  ;;  %v379_v23 = vand.u32 31, %v53_v35  ;;  %v6115_v35 = vmul.f32 %v10458_v28, %v10458_v28 }
 0x7ee   :  { %14256 = vst [vmem:[#allocation306_spill] sm:$0xff] %v10948_v27  ;;  %v6221_v52 = vadd.f32 %v6220_v45, %v6110_v12  ;;  %v5992_v47 = vadd.f32 %v5991_v43, %v10430_v55  ;;  %v1703_v43 = vld [vmem:[%s12261_s0 + $0x3a8] sm:$0xff] }
 0x7ef   :  { %v4857_v58 = vpop.f32.mrf.mxu2  ;;  %v4507_v63 = vpop.f32.mrf.mxu1  ;;  %vm1509_vm10 = vcmp.lt.s32.totalorder %v379_v23, 28 }
 0x7f0   :  { %v4858_v16 = vadd.f32 %v4857_v58, %v4505_v8  ;;  %v4508_v62 = vadd.f32 %v4507_v63, %v14258_v59  ;;  %v6222_v29 = vadd.f32 %v6221_v52, %v6111_v13  ;;  %v6113_v8 = vmul.f32 %v10444_v42, %v10444_v42  ;;  %v14260_v58 = vld [vmem:[#allocation397_spill] sm:$0xff] }
 0x7f1   :  { %v5210_v46 = vpop.f32.mrf.mxu3  ;;  %v5993_v12 = vadd.f32 %v5992_v47, %v10437_v7  ;;  %v6114_v63 = vmul.f32 %v5884_v54, %v5884_v54  ;;  %v1942_v13 = vrot.slane %v10963_v22, 7  ;;  %v10986_v52 = vsel %vm2187_vm1, %v2182_v37, %v2183_v60 }
 0x7f2   :  { %v5211_v9 = vadd.f32 %v5210_v46, %v4858_v16  ;;  %4554 = vmatmul.f32.gmra.mxu1 %v14242_v14  ;;  %v6223_v25 = vadd.f32 %v6222_v29, %v6112_v19  ;;  %v10992_v47 = vmax.f32 %v1703_v43, 0.0  ;;  %v57_v59 = vadd.s32 312, %v6926_v17 }
 0x7f3   :  { %v6116_v29 = vmul.f32 %v10465_v0, %v10465_v0 }
 0x7f4   :  { %v10976_v45 = vadd.f32 %v5563_v2, %v5211_v9  ;;  %4907 = vmatmul.f32.gmra.mxu2 %v14260_v58  ;;  %v5994_v2 = vadd.f32 %v5993_v12, %v10444_v42  ;;  %5260 = vmatmul.f32.gmra.mxu3 %v14253_v6  ;;  %v6224_v14 = vadd.f32 %v6223_v25, %v6113_v8  ;;  %v14261_v25 = vrot.slane %v14253_v6, 7  ;;  %v1704_v6 = vld [vmem:[%s12261_s0 + $0x3b0] sm:$0xff] }
 0x7f5   :  { %v5566_v16 = vpop.f32.mrf.mxu0  ;;  %5613 = vmatmul.f32.gmra.mxu0 %v10986_v52  ;;  %v2184_v43 = vrot.slane %v10992_v47, 1  ;;  %v407_v42 = vand.u32 31, %v57_v59 }
 0x7f6   :  { %14259 = vst [vmem:[#allocation312_spill] sm:$0xff] %v10976_v45  ;;  %v5995_v19 = vadd.f32 %v5994_v2, %v5884_v54  ;;  %v6225_v37 = vadd.f32 %v6224_v14, %v6114_v63  ;;  %v1950_v8 = vsel %vm1946_vm0, %v14261_v25, %v1942_v13  ;;  %v14262_v54 = vld [vmem:[#allocation393_spill] sm:$0xff]  ;;  %v6117_v63 = vmul.f32 %v10472_v5, %v10472_v5 }
 0x7f7   :  { %v4860_v46 = vpop.f32.mrf.mxu2  ;;  %v4510_v12 = vpop.f32.mrf.mxu1  ;;  %v5888_v14 = vsel %vm1509_vm10, %v10479_v20, 0.0  ;;  %v11020_v25 = vmax.f32 %v1704_v6, 0.0  ;;  %vm1513_vm11 = vcmp.lt.s32.totalorder %v407_v42, 28  ;;  %v6120_v6 = vmul.f32 %v10493_v41, %v10493_v41 }
 0x7f8   :  { %v4861_v9 = vadd.f32 %v4860_v46, %v4508_v62  ;;  %v4511_v23 = vadd.f32 %v4510_v12, %v14262_v54  ;;  %v5996_v62 = vadd.f32 %v5995_v19, %v10458_v28  ;;  %v6226_v46 = vadd.f32 %v6225_v37, %v6115_v35  ;;  %v14311_v28 = vld [vmem:[#allocation21_spill] sm:$0xff] }
 0x7f9   :  { %v5213_v58 = vpop.f32.mrf.mxu3  ;;  %v1943_v35 = vrot.slane %v10992_v47, 7  ;;  %v2190_v37 = vsel %vm2187_vm1, %v2183_v60, %v2184_v43 }
 0x7fa   :  { %v5214_v2 = vadd.f32 %v5213_v58, %v4861_v9  ;;  %4557 = vmatmul.f32.gmra.mxu1 %v10908_v61  ;;  %v5997_v9 = vadd.f32 %v5996_v62, %v10465_v0  ;;  %v6227_v12 = vadd.f32 %v6226_v46, %v6116_v29  ;;  %v6118_v58 = vmul.f32 %v5888_v14, %v5888_v14 }
 0x7fb   :  { %v61_v29 = vadd.s32 344, %v6926_v17  ;;  %v2185_v46 = vrot.slane %v11020_v25, 1 }
 0x7fc   :  { %v11008_v7 = vadd.f32 %v5566_v16, %v5214_v2  ;;  %4910 = vmatmul.f32.gmra.mxu2 %v1950_v8  ;;  %5263 = vmatmul.f32.gmra.mxu3 %v10963_v22  ;;  %v5998_v16 = vadd.f32 %v5997_v9, %v10472_v5  ;;  %v6228_v61 = vadd.f32 %v6227_v12, %v6117_v63  ;;  %v14264_v9 = vld [vmem:[#allocation396_spill] sm:$0xff] }
 0x7fd   :  { %v5569_v19 = vpop.f32.mrf.mxu0  ;;  %v6119_v8 = vmul.f32 %v10486_v39, %v10486_v39  ;;  %5616 = vmatmul.f32.gmra.mxu0 %v2190_v37  ;;  %v1949_v22 = vsel %vm1946_vm0, %v1942_v13, %v1943_v35 }
 0x7fe   :  { %14263 = vst [vmem:[#allocation65_spill] sm:$0xff] %v11008_v7  ;;  %v5999_v2 = vadd.f32 %v5998_v16, %v5888_v14  ;;  %v6229_v63 = vadd.f32 %v6228_v61, %v6118_v58  ;;  %v6121_v14 = vmul.f32 %v10500_v18, %v10500_v18  ;;  %v435_v16 = vand.u32 31, %v61_v29 }
 0x7ff   :  { %v4863_v59 = vpop.f32.mrf.mxu2  ;;  %v4513_v62 = vpop.f32.mrf.mxu1  ;;  %v1944_v61 = vrot.slane %v11020_v25, 7 }
 0x800   :  { %v4864_v54 = vadd.f32 %v4863_v59, %v4511_v23  ;;  %v4514_v12 = vadd.f32 %v4513_v62, %v14264_v9  ;;  %v6000_v42 = vadd.f32 %v5999_v2, %v10486_v39  ;;  %v5892_v23 = vsel %vm1513_vm11, %v10507_v32, 0.0 }
 0x801   :  { %v5216_v60 = vpop.f32.mrf.mxu3  ;;  %v6230_v37 = vadd.f32 %v6229_v63, %v6119_v8  ;;  %v6122_v62 = vmul.f32 %v5892_v23, %v5892_v23  ;;  %vm11046_vm12 = vcmp.lt.s32.totalorder %v435_v16, 28  ;;  %v14271_v16 = vld [vmem:[#allocation398_spill] sm:$0xff] }
 0x802   :  { %v5217_v20 = vadd.f32 %v5216_v60, %v4864_v54  ;;  %4560 = vmatmul.f32.gmra.mxu1 %v10931_v11  ;;  %v6001_v13 = vadd.f32 %v6000_v42, %v10493_v41  ;;  %v2189_v54 = vsel %vm2187_vm1, %v2184_v43, %v2185_v46  ;;  %v65_v43 = vadd.s32 376, %v6926_v17  ;;  %v14269_v42 = vld [vmem:[#allocation7_spill] sm:$0xff] }
 0x803   :  { %v6231_v2 = vadd.f32 %v6230_v37, %v6120_v6  ;;  %v2186_v37 = vrot.slane %v14269_v42, 1 }
 0x804   :  { %v11035_v59 = vadd.f32 %v5569_v19, %v5217_v20  ;;  %4913 = vmatmul.f32.gmra.mxu2 %v1949_v22  ;;  %5266 = vmatmul.f32.gmra.mxu3 %v10992_v47  ;;  %v6002_v8 = vadd.f32 %v6001_v13, %v10500_v18  ;;  %v14266_v19 = vld [vmem:[#allocation150_spill] sm:$0xff]  ;;  %v1948_v47 = vsel %vm1946_vm0, %v1943_v35, %v1944_v61 }
 0x805   :  { %v5572_v58 = vpop.f32.mrf.mxu0  ;;  %v6232_v20 = vadd.f32 %v6231_v2, %v6121_v14  ;;  %v6123_v11 = vmul.f32 %v14266_v19, %v14266_v19  ;;  %5619 = vmatmul.f32.gmra.mxu0 %v2189_v54  ;;  %v14270_v13 = vld [vmem:[#allocation174_spill] sm:$0xff] }
 0x806   :  { %14265 = vst [vmem:[#allocation32_spill] sm:$0xff] %v11035_v59  ;;  %v6003_v63 = vadd.f32 %v6002_v8, %v5892_v23  ;;  %v6124_v2 = vmul.f32 %v14270_v13, %v14270_v13  ;;  %v14272_v23 = vld [vmem:[#allocation285_spill] sm:$0xff] }
 0x807   :  { %v4866_v29 = vpop.f32.mrf.mxu2  ;;  %v4516_v6 = vpop.f32.mrf.mxu1  ;;  %v6233_v14 = vadd.f32 %v6232_v20, %v6122_v62  ;;  %v6125_v8 = vmul.f32 %v14272_v23, %v14272_v23  ;;  %v463_v62 = vand.u32 31, %v65_v43  ;;  %v69_v43 = vadd.s32 408, %v6926_v17 }
 0x808   :  { %v4867_v22 = vadd.f32 %v4866_v29, %v4514_v12  ;;  %v4517_v32 = vadd.f32 %v4516_v6, %v14271_v16  ;;  %v6004_v12 = vadd.f32 %v6003_v63, %v14266_v19  ;;  %v14273_v29 = vld [vmem:[#allocation162_spill] sm:$0xff]  ;;  %v14275_v16 = vrot.slane %v14269_v42, 7 }
 0x809   :  { %v5219_v9 = vpop.f32.mrf.mxu3  ;;  %v6234_v54 = vadd.f32 %v6233_v14, %v6123_v11  ;;  %v5896_v41 = vsel %vm11046_vm12, %v14273_v29, 0.0  ;;  %vm1521_vm13 = vcmp.lt.s32.totalorder %v463_v62, 28  ;;  %v14278_v62 = vld [vmem:[#allocation293_spill] sm:$0xff] }
 0x80a   :  { %v5220_v18 = vadd.f32 %v5219_v9, %v4867_v22  ;;  %4563 = vmatmul.f32.gmra.mxu1 %v10957_v24  ;;  %v2188_v22 = vsel %vm2187_vm1, %v2185_v46, %v2186_v37  ;;  %v6005_v63 = vadd.f32 %v6004_v12, %v14270_v13  ;;  %v6126_v6 = vmul.f32 %v5896_v41, %v5896_v41  ;;  %v14276_v12 = vld [vmem:[#allocation249_spill] sm:$0xff]  ;;  %v14279_v13 = vld [vmem:[#allocation198_spill] sm:$0xff] }
 0x80b   :  { %v6235_v11 = vadd.f32 %v6234_v54, %v6124_v2 }
 0x80c   :  { %v11063_v35 = vadd.f32 %v5572_v58, %v5220_v18  ;;  %4916 = vmatmul.f32.gmra.mxu2 %v1948_v47  ;;  %5269 = vmatmul.f32.gmra.mxu3 %v11020_v25  ;;  %v6006_v60 = vadd.f32 %v6005_v63, %v14272_v23  ;;  %v14274_v58 = vld [vmem:[#allocation186_spill] sm:$0xff]  ;;  %v1947_v25 = vsel %vm1946_vm0, %v1944_v61, %v14275_v16  ;;  %v491_v61 = vand.u32 31, %v69_v43 }
 0x80d   :  { %v5575_v20 = vpop.f32.mrf.mxu0  ;;  %v6236_v14 = vadd.f32 %v6235_v11, %v6125_v8  ;;  %5622 = vmatmul.f32.gmra.mxu0 %v2188_v22  ;;  %v6127_v24 = vmul.f32 %v14274_v58, %v14274_v58 }
 0x80e   :  { %v6007_v2 = vadd.f32 %v6006_v60, %v5896_v41  ;;  %v6129_v41 = vmul.f32 %v14279_v13, %v14279_v13  ;;  %vm1525_vm14 = vcmp.lt.s32.totalorder %v491_v61, 28  ;;  %v14287_v61 = vld [vmem:[#allocation222_spill] sm:$0xff] }
 0x80f   :  { %v4869_v9 = vpop.f32.mrf.mxu2  ;;  %v4519_v47 = vpop.f32.mrf.mxu1  ;;  %v6237_v8 = vadd.f32 %v6236_v14, %v6126_v6 }
 0x810   :  { %v4870_v18 = vadd.f32 %v4869_v9, %v4517_v32  ;;  %v4520_v54 = vadd.f32 %v4519_v47, %v14276_v12  ;;  %v14277_v32 = vld [vmem:[#allocation289_spill] sm:$0xff]  ;;  %v6008_v11 = vadd.f32 %v6007_v2, %v14274_v58  ;;  %v5900_v9 = vsel %vm1521_vm13, %v14278_v62, 0.0  ;;  %v14282_v2 = vld [vmem:[#allocation210_spill] sm:$0xff] }
 0x811   :  { %v5222_v46 = vpop.f32.mrf.mxu3  ;;  %v6128_v22 = vmul.f32 %v14277_v32, %v14277_v32  ;;  %v6238_v23 = vadd.f32 %v6237_v8, %v6127_v24  ;;  %v6131_v43 = vmul.f32 %v14282_v2, %v14282_v2  ;;  %v73_v12 = vadd.s32 440, %v6926_v17 }
 0x812   :  { %v5223_v63 = vadd.f32 %v5222_v46, %v4870_v18  ;;  %4566 = vmatmul.f32.gmra.mxu1 %v10986_v52  ;;  %v14280_v18 = vld [vmem:[#allocation6_spill] sm:$0xff]  ;;  %v6009_v47 = vadd.f32 %v6008_v11, %v14277_v32  ;;  %v6130_v46 = vmul.f32 %v5900_v9, %v5900_v9 }
 0x813   :  { %v14281_v6 = vrot.slane %v14280_v18, 1  ;;  %v14283_v11 = vld [vmem:[#allocation258_spill] sm:$0xff]  ;;  %v519_v62 = vand.u32 31, %v73_v12  ;;  %v14289_v12 = vld [vmem:[#allocation63_spill] sm:$0xff] }
 0x814   :  { %v11083_v29 = vadd.f32 %v5575_v20, %v5223_v63  ;;  %4919 = vmatmul.f32.gmra.mxu2 %v1947_v25  ;;  %5272 = vmatmul.f32.gmra.mxu3 %v14269_v42  ;;  %v6239_v20 = vadd.f32 %v6238_v23, %v6128_v22  ;;  %v6010_v52 = vadd.f32 %v6009_v47, %v14279_v13  ;;  %v14284_v22 = vld [vmem:[#allocation296_spill] sm:$0xff] }
 0x815   :  { %v5578_v60 = vpop.f32.mrf.mxu0  ;;  %v2307_v14 = vsel %vm2187_vm1, %v2186_v37, %v14281_v6  ;;  %v6132_v6 = vmul.f32 %v14284_v22, %v14284_v22  ;;  %vm1529_vm15 = vcmp.lt.s32.totalorder %v519_v62, 28  ;;  %v14292_v62 = vld [vmem:[#allocation233_spill] sm:$0xff] }
 0x816   :  { %5625 = vmatmul.f32.gmra.mxu0 %v2307_v14  ;;  %v6240_v25 = vadd.f32 %v6239_v20, %v6129_v41  ;;  %v6011_v8 = vadd.f32 %v6010_v52, %v5900_v9  ;;  %v14285_v14 = vld [vmem:[#allocation299_spill] sm:$0xff] }
 0x817   :  { %v4872_v16 = vpop.f32.mrf.mxu2  ;;  %v4522_v63 = vpop.f32.mrf.mxu1  ;;  %v5904_v41 = vsel %vm1525_vm14, %v14285_v14, 0.0 }
 0x818   :  { %v4873_v24 = vadd.f32 %v4872_v16, %v4520_v54  ;;  %v4523_v18 = vadd.f32 %v4522_v63, %v14283_v11  ;;  %v6241_v23 = vadd.f32 %v6240_v25, %v6130_v46  ;;  %v6012_v54 = vadd.f32 %v6011_v8, %v14282_v2  ;;  %v14288_v8 = vld [vmem:[#allocation211_spill] sm:$0xff] }
 0x819   :  { %v5225_v37 = vpop.f32.mrf.mxu3  ;;  %v6133_v16 = vmul.f32 %v14287_v61, %v14287_v61  ;;  %v6135_v11 = vmul.f32 %v14288_v8, %v14288_v8 }
 0x81a   :  { %v5226_v42 = vadd.f32 %v5225_v37, %v4873_v24  ;;  %v6242_v20 = vadd.f32 %v6241_v23, %v6131_v43  ;;  %v6013_v9 = vadd.f32 %v6012_v54, %v14284_v22  ;;  %v6134_v24 = vmul.f32 %v5904_v41, %v5904_v41 }
 0x81c   :  { %v11103_v47 = vadd.f32 %v5578_v60, %v5226_v42  ;;  %v6243_v52 = vadd.f32 %v6242_v20, %v6132_v6  ;;  %v6014_v25 = vadd.f32 %v6013_v9, %v14287_v61  ;;  %v77_v60 = vadd.s32 472, %v6926_v17  ;;  %v14290_v6 = vld [vmem:[#allocation209_spill] sm:$0xff] }
 0x81d   :  { %v5581_v13 = vpop.f32.mrf.mxu0  ;;  %v6136_v20 = vmul.f32 %v14290_v6, %v14290_v6  ;;  %v6137_v61 = vmul.f32 %v14292_v62, %v14292_v62 }
 0x81e   :  { %14286 = vst [vmem:[#allocation74_spill] sm:$0xff] %v11103_v47  ;;  %v6244_v37 = vadd.f32 %v6243_v52, %v6133_v16  ;;  %v6015_v23 = vadd.f32 %v6014_v25, %v5904_v41  ;;  %v547_v22 = vand.u32 31, %v77_v60 }
 0x81f   :  { %v4875_v46 = vpop.f32.mrf.mxu2  ;;  %v4525_v43 = vpop.f32.mrf.mxu1 }
 0x820   :  { %v4876_v63 = vadd.f32 %v4875_v46, %v4523_v18  ;;  %v4526_v14 = vadd.f32 %v4525_v43, %v14289_v12  ;;  %v6245_v54 = vadd.f32 %v6244_v37, %v6134_v24  ;;  %v6016_v9 = vadd.f32 %v6015_v23, %v14288_v8  ;;  %v14291_v18 = vld [vmem:[#allocation300_spill] sm:$0xff]  ;;  %v14293_v23 = vld [vmem:[#allocation223_spill] sm:$0xff] }
 0x821   :  { %v5228_v42 = vpop.f32.mrf.mxu3  ;;  %v5908_v16 = vsel %vm1529_vm15, %v14291_v18, 0.0  ;;  %v6139_v12 = vmul.f32 %v14293_v23, %v14293_v23  ;;  %vm1533_vm0 = vcmp.lt.s32.totalorder %v547_v22, 28  ;;  %v14297_v22 = vld [vmem:[#allocation241_spill] sm:$0xff] }
 0x822   :  { %v5229_v2 = vadd.f32 %v5228_v42, %v4876_v63  ;;  %v6246_v46 = vadd.f32 %v6245_v54, %v6135_v11  ;;  %v6017_v41 = vadd.f32 %v6016_v9, %v14290_v6  ;;  %v6138_v63 = vmul.f32 %v5908_v16, %v5908_v16  ;;  %v14294_v54 = vld [vmem:[#allocation251_spill] sm:$0xff] }
 0x823   :  { %v14296_v6 = vld [vmem:[#allocation187_spill] sm:$0xff] }
 0x824   :  { %v11117_v52 = vadd.f32 %v5581_v13, %v5229_v2  ;;  %v6247_v25 = vadd.f32 %v6246_v46, %v6136_v20  ;;  %v6018_v37 = vadd.f32 %v6017_v41, %v14292_v62  ;;  %v81_v13 = vadd.s32 504, %v6926_v17  ;;  %v14295_v20 = vld [vmem:[#allocation221_spill] sm:$0xff] }
 0x825   :  { %v5584_v32 = vpop.f32.mrf.mxu0  ;;  %v6140_v46 = vmul.f32 %v14295_v20, %v14295_v20  ;;  %v5912_v41 = vsel %vm1533_vm0, %v14296_v6, 0.0 }
 0x826   :  { %v6248_v42 = vadd.f32 %v6247_v25, %v6137_v61  ;;  %v6019_v8 = vadd.f32 %v6018_v37, %v5908_v16  ;;  %v575_v62 = vand.u32 31, %v81_v13  ;;  %v6142_v16 = vmul.f32 %v5912_v41, %v5912_v41 }
 0x827   :  { %v4878_v24 = vpop.f32.mrf.mxu2  ;;  %v4528_v2 = vpop.f32.mrf.mxu1 }
 0x828   :  { %v4879_v43 = vadd.f32 %v4878_v24, %v4526_v14  ;;  %v4529_v60 = vadd.f32 %v4528_v2, %v14294_v54  ;;  %v6249_v9 = vadd.f32 %v6248_v42, %v6138_v63  ;;  %v6020_v61 = vadd.f32 %v6019_v8, %v14293_v23  ;;  %v14298_v54 = vld [vmem:[#allocation9_spill] sm:$0xff] }
 0x829   :  { %v5231_v11 = vpop.f32.mrf.mxu3  ;;  %v6141_v24 = vmul.f32 %v14297_v22, %v14297_v22  ;;  %vm1537_vm1 = vcmp.lt.s32.totalorder %v575_v62, 28  ;;  %v14302_v62 = vld [vmem:[#allocation199_spill] sm:$0xff] }
 0x82a   :  { %v5232_v18 = vadd.f32 %v5231_v11, %v4879_v43  ;;  %v6250_v25 = vadd.f32 %v6249_v9, %v6139_v12  ;;  %v6021_v2 = vadd.f32 %v6020_v61, %v14295_v20  ;;  %v85_v12 = vadd.s32 536, %v6926_v17  ;;  %v14299_v9 = vld [vmem:[#allocation56_spill] sm:$0xff] }
 0x82c   :  { %v11130_v14 = vadd.f32 %v5584_v32, %v5232_v18  ;;  %v6251_v43 = vadd.f32 %v6250_v25, %v6140_v46  ;;  %v6022_v42 = vadd.f32 %v6021_v2, %v14297_v22  ;;  %v6143_v32 = vmul.f32 %v14298_v54, %v14298_v54  ;;  %v14300_v46 = vld [vmem:[#allocation247_spill] sm:$0xff] }
 0x82d   :  { %v5587_v58 = vpop.f32.mrf.mxu0  ;;  %v6144_v25 = vmul.f32 %v14300_v46, %v14300_v46  ;;  %v6145_v22 = vmul.f32 %v14302_v62, %v14302_v62  ;;  %v603_v19 = vand.u32 31, %v85_v12 }
 0x82e   :  { %v6252_v11 = vadd.f32 %v6251_v43, %v6141_v24  ;;  %v6023_v23 = vadd.f32 %v6022_v42, %v5912_v41 }
 0x82f   :  { %v4881_v63 = vpop.f32.mrf.mxu2  ;;  %v4531_v8 = vpop.f32.mrf.mxu1  ;;  %vm1541_vm2 = vcmp.lt.s32.totalorder %v603_v19, 28 }
 0x830   :  { %v4882_v37 = vadd.f32 %v4881_v63, %v4529_v60  ;;  %v4532_v13 = vadd.f32 %v4531_v8, %v14299_v9  ;;  %v6253_v61 = vadd.f32 %v6252_v11, %v6142_v16  ;;  %v14301_v60 = vld [vmem:[#allocation14_spill] sm:$0xff]  ;;  %v6024_v24 = vadd.f32 %v6023_v23, %v14298_v54  ;;  %v14303_v9 = vld [vmem:[#allocation8_spill] sm:$0xff] }
 0x831   :  { %v5234_v18 = vpop.f32.mrf.mxu3  ;;  %v5916_v63 = vsel %vm1537_vm1, %v14301_v60, 0.0 }
 0x832   :  { %v5235_v6 = vadd.f32 %v5234_v18, %v4882_v37  ;;  %v6254_v43 = vadd.f32 %v6253_v61, %v6143_v32  ;;  %v6025_v8 = vadd.f32 %v6024_v24, %v14300_v46  ;;  %v6146_v41 = vmul.f32 %v5916_v63, %v5916_v63  ;;  %v14304_v61 = vld [vmem:[#allocation270_spill] sm:$0xff] }
 0x833   :  { %v89_v32 = vadd.s32 568, %v6926_v17 }
 0x834   :  { %v11144_v2 = vadd.f32 %v5587_v58, %v5235_v6  ;;  %v6255_v37 = vadd.f32 %v6254_v43, %v6144_v25  ;;  %v6026_v11 = vadd.f32 %v6025_v8, %v14302_v62  ;;  %v6147_v58 = vmul.f32 %v14303_v9, %v14303_v9  ;;  %v14305_v25 = vld [vmem:[#allocation173_spill] sm:$0xff]  ;;  %v14307_v62 = vld [vmem:[#allocation15_spill] sm:$0xff] }
 0x835   :  { %v5590_v20 = vpop.f32.mrf.mxu0  ;;  %v6148_v43 = vmul.f32 %v14305_v25, %v14305_v25  ;;  %v5920_v19 = vsel %vm1541_vm2, %v14307_v62, 0.0  ;;  %v631_v5 = vand.u32 31, %v89_v32 }
 0x836   :  { %v6256_v18 = vadd.f32 %v6255_v37, %v6145_v22  ;;  %v6027_v39 = vadd.f32 %v6026_v11, %v5916_v63  ;;  %v14306_v37 = vld [vmem:[#allocation20_spill] sm:$0xff] }
 0x837   :  { %v4884_v16 = vpop.f32.mrf.mxu2  ;;  %v4534_v6 = vpop.f32.mrf.mxu1  ;;  %vm1545_vm3 = vcmp.lt.s32.totalorder %v631_v5, 28  ;;  %v6153_v5 = vmul.f32 %v14311_v28, %v14311_v28 }
 0x838   :  { %v4885_v42 = vadd.f32 %v4884_v16, %v4532_v13  ;;  %v4535_v54 = vadd.f32 %v4534_v6, %v14304_v61  ;;  %v6257_v24 = vadd.f32 %v6256_v18, %v6146_v41  ;;  %v6028_v22 = vadd.f32 %v6027_v39, %v14303_v9 }
 0x839   :  { %v5237_v23 = vpop.f32.mrf.mxu3  ;;  %v6149_v16 = vmul.f32 %v14306_v37, %v14306_v37  ;;  %v6150_v41 = vmul.f32 %v5920_v19, %v5920_v19 }
 0x83a   :  { %v5238_v12 = vadd.f32 %v5237_v23, %v4885_v42  ;;  %v6258_v8 = vadd.f32 %v6257_v24, %v6147_v58  ;;  %v6029_v6 = vadd.f32 %v6028_v22, %v14305_v25  ;;  %v14308_v58 = vld [vmem:[#allocation185_spill] sm:$0xff] }
 0x83b   :  { %v6151_v61 = vmul.f32 %v14308_v58, %v14308_v58  ;;  %v14309_v22 = vld [vmem:[#allocation305_spill] sm:$0xff] }
 0x83c   :  { %v11157_v13 = vadd.f32 %v5590_v20, %v5238_v12  ;;  %v6259_v42 = vadd.f32 %v6258_v8, %v6148_v43  ;;  %v6030_v18 = vadd.f32 %v6029_v6, %v14306_v37  ;;  %v93_v12 = vadd.s32 600, %v6926_v17 }
 0x83d   :  { %v5593_v46 = vpop.f32.mrf.mxu0  ;;  %v6152_v43 = vmul.f32 %v14309_v22, %v14309_v22 }
 0x83e   :  { %v6260_v20 = vadd.f32 %v6259_v42, %v6149_v16  ;;  %v6031_v32 = vadd.f32 %v6030_v18, %v5920_v19  ;;  %v14310_v16 = vld [vmem:[#allocation197_spill] sm:$0xff]  ;;  %v659_v55 = vand.u32 31, %v93_v12 }
 0x83f   :  { %v4887_v63 = vpop.f32.mrf.mxu2  ;;  %v11165_v23 = vpop.f32.mrf.mxu1  ;;  %v5924_v6 = vsel %vm1545_vm3, %v14310_v16, 0.0  ;;  %v14322_v16 = vld [vmem:[#allocation45_spill] sm:$0xff] }
 0x840   :  { %v4888_v11 = vadd.f32 %v4887_v63, %v4535_v54  ;;  %v6261_v0 = vadd.f32 %v6260_v20, %v6150_v41  ;;  %v6032_v54 = vadd.f32 %v6031_v32, %v14308_v58  ;;  %v6154_v18 = vmul.f32 %v5924_v6, %v5924_v6  ;;  %v14312_v32 = vld [vmem:[#allocation26_spill] sm:$0xff] }
 0x841   :  { %v5240_v39 = vpop.f32.mrf.mxu3  ;;  %vm1549_vm4 = vcmp.lt.s32.totalorder %v659_v55, 28 }
 0x842   :  { %v5241_v24 = vadd.f32 %v5240_v39, %v4888_v11  ;;  %v6262_v63 = vadd.f32 %v6261_v0, %v6151_v61  ;;  %v6033_v11 = vadd.f32 %v6032_v54, %v14309_v22  ;;  %v6155_v0 = vmul.f32 %v14312_v32, %v14312_v32  ;;  %v14313_v54 = vld [vmem:[#allocation301_spill] sm:$0xff] }
 0x843   :  { %v97_v61 = vadd.s32 632, %v6926_v17  ;;  %v6156_v36 = vmul.f32 %v14313_v54, %v14313_v54 }
 0x844   :  { %v11172_v8 = vadd.f32 %v5593_v46, %v5241_v24  ;;  %v6263_v41 = vadd.f32 %v6262_v63, %v6152_v43  ;;  %v6034_v46 = vadd.f32 %v6033_v11, %v14311_v28  ;;  %v14314_v63 = vld [vmem:[#allocation33_spill] sm:$0xff] }
 0x845   :  { %v11176_v42 = vpop.f32.mrf.mxu0  ;;  %v5928_v11 = vsel %vm1549_vm4, %v14314_v63, 0.0 }
 0x846   :  { %v6264_v24 = vadd.f32 %v6263_v41, %v6153_v5  ;;  %v6035_v12 = vadd.f32 %v6034_v46, %v5924_v6  ;;  %v6157_v5 = vmul.f32 %v14315_v31, %v14315_v31  ;;  %v687_v41 = vand.u32 31, %v97_v61 }
 0x847   :  { %v11181_v19 = vpop.f32.mrf.mxu2  ;;  %v11184_v20 = vpop.f32.mrf.mxu1 }
 0x848   :  { %v6265_v51 = vadd.f32 %v6264_v24, %v6154_v18  ;;  %v6036_v43 = vadd.f32 %v6035_v12, %v14312_v32  ;;  %v6158_v18 = vmul.f32 %v5928_v11, %v5928_v11  ;;  %vm1553_vm5 = vcmp.lt.s32.totalorder %v687_v41, 28 }
 0x849   :  { %v11186_v39 = vpop.f32.mrf.mxu3 }
 0x84a   :  { %v6266_v10 = vadd.f32 %v6265_v51, %v6155_v0  ;;  %v6037_v55 = vadd.f32 %v6036_v43, %v14313_v54  ;;  %v6159_v51 = vmul.f32 %v14316_v3, %v14316_v3  ;;  %v101_v0 = vadd.s32 664, %v6926_v17  ;;  %v14317_v43 = vld [vmem:[#allocation28_spill] sm:$0xff] }
 0x84b   :  { %v6160_v33 = vmul.f32 %v14317_v43, %v14317_v43 }
 0x84c   :  { %v6267_v6 = vadd.f32 %v6266_v10, %v6156_v36  ;;  %v6038_v46 = vadd.f32 %v6037_v55, %v14315_v31  ;;  %v14318_v10 = vld [vmem:[#allocation38_spill] sm:$0xff]  ;;  %v14319_v31 = vld [vmem:[#allocation44_spill] sm:$0xff] }
 0x84d   :  { %v11195_v30 = vpop.f32.mrf.mxu0  ;;  %v5932_v55 = vsel %vm1553_vm5, %v14318_v10, 0.0 }
 0x84e   :  { %v6268_v40 = vadd.f32 %v6267_v6, %v6157_v5  ;;  %v6039_v61 = vadd.f32 %v6038_v46, %v5928_v11  ;;  %v6161_v5 = vmul.f32 %v14319_v31, %v14319_v31  ;;  %v715_v6 = vand.u32 31, %v101_v0 }
 0x84f   :  { %v11200_v4 = vpop.f32.mrf.mxu2  ;;  %v11203_v24 = vpop.f32.mrf.mxu1 }
 0x850   :  { %v6269_v48 = vadd.f32 %v6268_v40, %v6158_v18  ;;  %v6040_v36 = vadd.f32 %v6039_v61, %v14316_v3  ;;  %v6162_v40 = vmul.f32 %v5932_v55, %v5932_v55  ;;  %v14320_v3 = vld [vmem:[#allocation302_spill] sm:$0xff]  ;;  %vm1557_vm6 = vcmp.lt.s32.totalorder %v715_v6, 28 }
 0x851   :  { %v11205_v12 = vpop.f32.mrf.mxu3 }
 0x852   :  { %v6270_v63 = vadd.f32 %v6269_v48, %v6159_v51  ;;  %v6041_v41 = vadd.f32 %v6040_v36, %v14317_v43  ;;  %v6163_v48 = vmul.f32 %v14320_v3, %v14320_v3  ;;  %v105_v51 = vadd.s32 696, %v6926_v17  ;;  %v14321_v36 = vld [vmem:[#allocation52_spill] sm:$0xff] }
 0x853   :  { %v6164_v43 = vmul.f32 %v14321_v36, %v14321_v36 }
 0x854   :  { %v6271_v11 = vadd.f32 %v6270_v63, %v6160_v33  ;;  %v6042_v18 = vadd.f32 %v6041_v41, %v14319_v31  ;;  %v5936_v63 = vsel %vm1557_vm6, %v10826_v53, 0.0 }
 0x855   :  { %v11214_v15 = vpop.f32.mrf.mxu0 }
 0x856   :  { %v6272_v10 = vadd.f32 %v6271_v11, %v6161_v5  ;;  %v6043_v0 = vadd.f32 %v6042_v18, %v5932_v55  ;;  %v6165_v5 = vmul.f32 %v14322_v16, %v14322_v16  ;;  %v743_v11 = vand.u32 31, %v105_v51 }
 0x857   :  { %v11219_v54 = vpop.f32.mrf.mxu2  ;;  %v11222_v46 = vpop.f32.mrf.mxu1 }
 0x858   :  { %v6273_v32 = vadd.f32 %v6272_v10, %v6162_v40  ;;  %v6044_v33 = vadd.f32 %v6043_v0, %v14320_v3  ;;  %v6166_v10 = vmul.f32 %v5936_v63, %v5936_v63  ;;  %vm1561_vm7 = vcmp.lt.s32.totalorder %v743_v11, 28 }
 0x859   :  { %v11224_v61 = vpop.f32.mrf.mxu3 }
 0x85a   :  { %v6274_v31 = vadd.f32 %v6273_v32, %v6163_v48  ;;  %v6045_v6 = vadd.f32 %v6044_v33, %v14321_v36  ;;  %v6167_v32 = vmul.f32 %v10844_v38, %v10844_v38  ;;  %v109_v48 = vadd.s32 728, %v6926_v17 }
 0x85b   :  { %v6168_v33 = vmul.f32 %v10862_v21, %v10862_v21 }
 0x85c   :  { %v6275_v55 = vadd.f32 %v6274_v31, %v6164_v43  ;;  %v6046_v40 = vadd.f32 %v6045_v6, %v14322_v16  ;;  %v5940_v31 = vsel %vm1561_vm7, %v10900_v34, 0.0 }
 0x85d   :  { %v11233_v41 = vpop.f32.mrf.mxu0 }
 0x85e   :  { %v6276_v53 = vadd.f32 %v6275_v55, %v6165_v5  ;;  %v6047_v51 = vadd.f32 %v6046_v40, %v5936_v63  ;;  %v6169_v5 = vmul.f32 %v10880_v49, %v10880_v49  ;;  %v771_v55 = vand.u32 31, %v109_v48 }
 0x85f   :  { %v11238_v28 = vpop.f32.mrf.mxu2  ;;  %v11241_v18 = vpop.f32.mrf.mxu1 }
 0x860   :  { %v6277_v3 = vadd.f32 %v6276_v53, %v6166_v10  ;;  %v6048_v6 = vadd.f32 %v6047_v51, %v10844_v38  ;;  %v6170_v53 = vmul.f32 %v5940_v31, %v5940_v31  ;;  %vm1565_vm8 = vcmp.lt.s32.totalorder %v771_v55, 28 }
 0x861   :  { %v11243_v0 = vpop.f32.mrf.mxu3 }
 0x862   :  { %v6278_v16 = vadd.f32 %v6277_v3, %v6167_v32  ;;  %v6049_v11 = vadd.f32 %v6048_v6, %v10862_v21  ;;  %v6171_v3 = vmul.f32 %v10925_v50, %v10925_v50  ;;  %v113_v32 = vadd.s32 760, %v6926_v17 }
 0x863   :  { %v6172_v6 = vmul.f32 %v10948_v27, %v10948_v27 }
 0x864   :  { %v6279_v63 = vadd.f32 %v6278_v16, %v6168_v33  ;;  %v6050_v34 = vadd.f32 %v6049_v11, %v10880_v49  ;;  %v5944_v16 = vsel %vm1565_vm8, %v11008_v7, 0.0  ;;  %v799_v11 = vand.u32 31, %v113_v32 }
 0x865   :  { %v11251_v43 = vpop.f32.mrf.mxu0  ;;  %v6176_v32 = vmul.f32 %v11063_v35, %v11063_v35 }
 0x866   :  { %v6280_v22 = vadd.f32 %v6279_v63, %v6169_v5  ;;  %v6051_v48 = vadd.f32 %v6050_v34, %v5940_v31  ;;  %v6173_v5 = vmul.f32 %v10976_v45, %v10976_v45  ;;  %vm1569_vm9 = vcmp.lt.s32.totalorder %v799_v11, 28 }
 0x867   :  { %v11256_v36 = vpop.f32.mrf.mxu2  ;;  %v11259_v10 = vpop.f32.mrf.mxu1 }
 0x868   :  { %v6281_v51 = vadd.f32 %v6280_v22, %v6170_v53  ;;  %v6052_v21 = vadd.f32 %v6051_v48, %v10925_v50  ;;  %v6174_v22 = vmul.f32 %v5944_v16, %v5944_v16  ;;  %v6175_v48 = vmul.f32 %v11035_v59, %v11035_v59 }
 0x869   :  { %v11261_v40 = vpop.f32.mrf.mxu3  ;;  %v117_v50 = vadd.s32 792, %v6926_v17 }
 0x86a   :  { %v6282_v38 = vadd.f32 %v6281_v51, %v6171_v3  ;;  %v6053_v55 = vadd.f32 %v6052_v21, %v10948_v27 }
 0x86c   :  { %v6283_v34 = vadd.f32 %v6282_v38, %v6172_v6  ;;  %v6054_v7 = vadd.f32 %v6053_v55, %v10976_v45  ;;  %v6177_v55 = vmul.f32 %v11083_v29, %v11083_v29 }
 0x86d   :  { %v11270_v33 = vpop.f32.mrf.mxu0 }
 0x86e   :  { %v6284_v49 = vadd.f32 %v6283_v34, %v6173_v5  ;;  %v6055_v3 = vadd.f32 %v6054_v7, %v5944_v16  ;;  %v5948_v5 = vsel %vm1569_vm9, %v11103_v47, 0.0  ;;  %v14324_v47 = vld [vmem:[#allocation71_spill] sm:$0xff] }
 0x86f   :  { %v11275_v63 = vpop.f32.mrf.mxu2  ;;  %v4555_v31 = vpop.f32.mrf.mxu1  ;;  %v6178_v16 = vmul.f32 %v5948_v5, %v5948_v5 }
 0x870   :  { %v6285_v51 = vadd.f32 %v6284_v49, %v6174_v22  ;;  %v6056_v38 = vadd.f32 %v6055_v3, %v11035_v59  ;;  %v827_v49 = vand.u32 31, %v117_v50  ;;  %v14323_v22 = vld [vmem:[#allocation261_spill] sm:$0xff]  ;;  %v4541_v59 = vadd.f32 %v11184_v20, %v14324_v47 }
 0x871   :  { %v11278_v53 = vpop.f32.mrf.mxu3  ;;  %v4538_v45 = vadd.f32 %v11165_v23, %v14323_v22  ;;  %v121_v23 = vadd.s32 824, %v6926_v17 }
 0x872   :  { %v6286_v6 = vadd.f32 %v6285_v51, %v6175_v48  ;;  %v6057_v11 = vadd.f32 %v6056_v38, %v11063_v35  ;;  %v6179_v48 = vmul.f32 %v11117_v52, %v11117_v52  ;;  %v14325_v38 = vld [vmem:[#allocation253_spill] sm:$0xff]  ;;  %vm1573_vm10 = vcmp.lt.s32.totalorder %v827_v49, 28  ;;  %v14326_v49 = vld [vmem:[#allocation64_spill] sm:$0xff] }
 0x873   :  { %v4891_v51 = vadd.f32 %v11181_v19, %v4538_v45  ;;  %v4544_v50 = vadd.f32 %v11203_v24, %v14325_v38  ;;  %v6181_v19 = vmul.f32 %v11144_v2, %v11144_v2 }
 0x874   :  { %v6287_v7 = vadd.f32 %v6286_v6, %v6176_v32  ;;  %v6058_v62 = vadd.f32 %v6057_v11, %v11083_v29  ;;  %v6180_v11 = vmul.f32 %v11130_v14, %v11130_v14 }
 0x875   :  { %v11286_v21 = vpop.f32.mrf.mxu0  ;;  %v5244_v20 = vadd.f32 %v11186_v39, %v4891_v51 }
 0x876   :  { %v6288_v3 = vadd.f32 %v6287_v7, %v6177_v55  ;;  %v6059_v32 = vadd.f32 %v6058_v62, %v5948_v5  ;;  %v4894_v55 = vadd.f32 %v11200_v4, %v4541_v59  ;;  %v4897_v7 = vadd.f32 %v11219_v54, %v4544_v50 }
 0x877   :  { %v4908_v34 = vpop.f32.mrf.mxu2  ;;  %v4558_v27 = vpop.f32.mrf.mxu1  ;;  %v5952_v62 = vsel %vm1573_vm10, %v11157_v13, 0.0  ;;  %v4547_v4 = vadd.f32 %v11222_v46, %v14326_v49  ;;  %v855_v59 = vand.u32 31, %v121_v23  ;;  %v11323_v51 = vadd.f32 %v11176_v42, %v5244_v20 }
 0x878   :  { %v6289_v6 = vadd.f32 %v6288_v3, %v6178_v16  ;;  %v6060_v45 = vadd.f32 %v6059_v32, %v11117_v52  ;;  %v5247_v16 = vadd.f32 %v11205_v12, %v4894_v55  ;;  %v5250_v3 = vadd.f32 %v11224_v61, %v4897_v7 }
 0x879   :  { %v5261_v58 = vpop.f32.mrf.mxu3  ;;  %v6182_v32 = vmul.f32 %v5952_v62, %v5952_v62  ;;  %v6183_v12 = vmul.f32 %v11172_v8, %v11172_v8  ;;  %vm11329_vm11 = vcmp.lt.s32.totalorder %v855_v59, 28  ;;  %v125_v49 = vadd.s32 856, %v6926_v17 }
 0x87a   :  { %v6290_v47 = vadd.f32 %v6289_v6, %v6179_v48  ;;  %v6061_v5 = vadd.f32 %v6060_v45, %v11130_v14  ;;  %v4900_v6 = vadd.f32 %v11238_v28, %v4547_v4  ;;  %v14327_v45 = vld [vmem:[#allocation273_spill] sm:$0xff]  ;;  %v11335_v7 = vadd.f32 %v11195_v30, %v5247_v16 }
 0x87b   :  { %v4550_v46 = vadd.f32 %v11241_v18, %v14327_v45  ;;  %v11338_v28 = vadd.f32 %v11214_v15, %v5250_v3 }
 0x87c   :  { %v6291_v54 = vadd.f32 %v6290_v47, %v6180_v11  ;;  %v6062_v50 = vadd.f32 %v6061_v5, %v11144_v2  ;;  %v14330_v11 = vld [vmem:[#allocation79_spill] sm:$0xff]  ;;  %v14331_v47 = vld [vmem:[#allocation264_spill] sm:$0xff]  ;;  %v5253_v20 = vadd.f32 %v11243_v0, %v4900_v6  ;;  %v883_v6 = vand.u32 31, %v125_v49 }
 0x87d   :  { %v11308_v22 = vpop.f32.mrf.mxu0  ;;  %v4556_v55 = vadd.f32 %v4555_v31, %v14330_v11  ;;  %v4903_v42 = vadd.f32 %v11256_v36, %v4550_v46  ;;  %v4553_v18 = vadd.f32 %v11259_v10, %v14331_v47  ;;  %v6184_v31 = vmul.f32 %v11323_v51, %v11323_v51 }
 0x87e   :  { %v6292_v39 = vadd.f32 %v6291_v54, %v6181_v19  ;;  %v6063_v23 = vadd.f32 %v6062_v50, %v5952_v62  ;;  %v6185_v36 = vmul.f32 %v11335_v7, %v11335_v7  ;;  %v5956_v10 = vsel %vm11329_vm11, %v11338_v28, 0.0 }
 0x87f   :  { %v4911_v24 = vpop.f32.mrf.mxu2  ;;  %v4561_v48 = vpop.f32.mrf.mxu1  ;;  %v4909_v5 = vadd.f32 %v4908_v34, %v4556_v55  ;;  %v4906_v30 = vadd.f32 %v11275_v63, %v4553_v18  ;;  %v5256_v0 = vadd.f32 %v11261_v40, %v4903_v42  ;;  %v14332_v34 = vld [vmem:[#allocation255_spill] sm:$0xff]  ;;  %v11358_v63 = vadd.f32 %v11233_v41, %v5253_v20  ;;  %v14334_v42 = vld [vmem:[#allocation276_spill] sm:$0xff] }
 0x880   :  { %v6293_v62 = vadd.f32 %v6292_v39, %v6182_v32  ;;  %v6064_v15 = vadd.f32 %v6063_v23, %v11172_v8  ;;  %v4559_v54 = vadd.f32 %v4558_v27, %v14332_v34  ;;  %v14333_v23 = vld [vmem:[#allocation72_spill] sm:$0xff]  ;;  %v6186_v61 = vmul.f32 %v5956_v10, %v5956_v10 }
 0x881   :  { %v5264_v38 = vpop.f32.mrf.mxu3  ;;  %v5262_v32 = vadd.f32 %v5261_v58, %v4909_v5  ;;  %v5259_v45 = vadd.f32 %v11278_v53, %v4906_v30  ;;  %v11364_v27 = vadd.f32 %v11251_v43, %v5256_v0  ;;  %v6187_v41 = vmul.f32 %v11358_v63, %v11358_v63 }
 0x882   :  { %v6294_v59 = vadd.f32 %v6293_v62, %v6183_v12  ;;  %v6065_v50 = vadd.f32 %v6064_v15, %v11323_v51  ;;  %v4912_v46 = vadd.f32 %v4911_v24, %v4559_v54  ;;  %v4562_v12 = vadd.f32 %v4561_v48, %v14333_v23 }
 0x883   :  { %vm1581_vm12 = vcmp.lt.s32.totalorder %v883_v6, 28  ;;  %v11369_v58 = vadd.f32 %v11286_v21, %v5262_v32  ;;  %v11373_v48 = vadd.f32 %v11270_v33, %v5259_v45  ;;  %v6188_v49 = vmul.f32 %v11364_v27, %v11364_v27 }
 0x884   :  { %v6295_v39 = vadd.f32 %v6294_v59, %v6184_v31  ;;  %v6066_v40 = vadd.f32 %v6065_v50, %v11335_v7  ;;  %v5265_v47 = vadd.f32 %v5264_v38, %v4912_v46  ;;  %v129_v15 = vadd.s32 888, %v6926_v17  ;;  %v14335_v50 = vld [vmem:[#allocation267_spill] sm:$0xff] }
 0x885   :  { %v5620_v19 = vpop.f32.mrf.mxu0  ;;  %v6852_v59 = vmov 784.0   ;;  %v6189_v38 = vmul.f32 %v11373_v48, %v11373_v48 }
 0x886   :  { %v6296_v11 = vadd.f32 %v6295_v39, %v6185_v36  ;;  %v6067_v24 = vadd.f32 %v6066_v40, %v5956_v10  ;;  %6848 = vrcp.f32 %v6852_v59  ;;  %v11384_v36 = vadd.f32 %v11308_v22, %v5265_v47 }
 0x887   :  { %v4914_v4 = vpop.f32.mrf.mxu2  ;;  %v4564_v16 = vpop.f32.mrf.mxu1  ;;  %v911_v32 = vand.u32 31, %v129_v15 }
 0x888   :  { %v4915_v55 = vadd.f32 %v4914_v4, %v4562_v12  ;;  %v4565_v53 = vadd.f32 %v4564_v16, %v14334_v42  ;;  %v6297_v20 = vadd.f32 %v6296_v11, %v6186_v61  ;;  %v6068_v5 = vadd.f32 %v6067_v24, %v11358_v63 }
 0x889   :  { %v5267_v3 = vpop.f32.mrf.mxu3  ;;  %v5960_v4 = vsel %vm1581_vm12, %v11369_v58, 0.0  ;;  %v6191_v45 = vmul.f32 %v11384_v36, %v11384_v36  ;;  %vm1585_vm13 = vcmp.lt.s32.totalorder %v911_v32, 28 }
 0x88a   :  { %v5268_v31 = vadd.f32 %v5267_v3, %v4915_v55  ;;  %v6298_v21 = vadd.f32 %v6297_v20, %v6187_v41  ;;  %v6069_v33 = vadd.f32 %v6068_v5, %v11364_v27  ;;  %v6190_v16 = vmul.f32 %v5960_v4, %v5960_v4 }
 0x88c   :  { %v6299_v34 = vadd.f32 %v6298_v21, %v6188_v49  ;;  %v6070_v54 = vadd.f32 %v6069_v33, %v11373_v48  ;;  %v11387_v3 = vadd.f32 %v5620_v19, %v5268_v31  ;;  %v6849_v23 = vpop.eup %6848 }
 0x88d   :  { %v5623_v62 = vpop.f32.mrf.mxu0  ;;  %v6314_v47 = vmul.f32 784.0, %v6849_v23  ;;  %vm6318_vm14 = vweird.f32 %v6849_v23 }
 0x88e   :  { %v6300_v6 = vadd.f32 %v6299_v34, %v6189_v38  ;;  %v6071_v39 = vadd.f32 %v6070_v54, %v5960_v4  ;;  %v6192_v19 = vmul.f32 %v11387_v3, %v11387_v3 }
 0x88f   :  { %v4917_v18 = vpop.f32.mrf.mxu2  ;;  %v4567_v10 = vpop.f32.mrf.mxu1 }
 0x890   :  { %v4918_v43 = vadd.f32 %v4917_v18, %v4565_v53  ;;  %v4568_v17 = vadd.f32 %v4567_v10, %v14335_v50  ;;  %v6301_v61 = vadd.f32 %v6300_v6, %v6190_v16  ;;  %v6072_v40 = vadd.f32 %v6071_v39, %v11384_v36 }
 0x891   :  { %v5270_v30 = vpop.f32.mrf.mxu3 }
 0x892   :  { %v5271_v0 = vadd.f32 %v5270_v30, %v4918_v43  ;;  %v6302_v42 = vadd.f32 %v6301_v61, %v6191_v45  ;;  %v6073_v53 = vadd.f32 %v6072_v40, %v11387_v3  ;;  %v6315_v30 = vsub.f32 1.0, %v6314_v47 }
 0x894   :  { %v11392_v46 = vadd.f32 %v5623_v62, %v5271_v0  ;;  %v6303_v62 = vadd.f32 %v6302_v42, %v6192_v19  ;;  %v6316_v33 = vmul.f32 %v6849_v23, %v6315_v30  ;;  %v14337_v30 = vld [vmem:[#allocation87_spill] sm:$0xff] }
 0x895   :  { %v5626_v55 = vpop.f32.mrf.mxu0 }
 0x896   :  { %v6193_v24 = vmul.f32 %v11392_v46, %v11392_v46  ;;  %v6074_v20 = vadd.f32 %v6073_v53, %v11392_v46  ;;  %v6317_v54 = vadd.f32 %v6849_v23, %v6316_v33 }
 0x897   :  { %v4920_v22 = vpop.f32.mrf.mxu2 }
 0x898   :  { %v4921_v12 = vadd.f32 %v4920_v22, %v4568_v17  ;;  %v6304_v5 = vadd.f32 %v6303_v62, %v6193_v24  ;;  %v6319_v6 = vsel %vm6318_vm14, %v6849_v23, %v6317_v54  ;;  %v6336_v23 = vld [vmem:[%s12262_s2] sm:$0x1] }
 0x899   :  { %v5273_v11 = vpop.f32.mrf.mxu3 }
 0x89a   :  { %v5274_v41 = vadd.f32 %v5273_v11, %v4921_v12 }
 0x89c   :  { %v11400_v18 = vadd.f32 %v5626_v55, %v5274_v41 }
 0x89e   :  { %14336 = vst [vmem:[#allocation307_spill] sm:$0xff] %v11400_v18  ;;  %v5964_v43 = vsel %vm1585_vm13, %v11400_v18, 0.0 }
 0x89f   :  { %v6075_v49 = vadd.f32 %v6074_v20, %v5964_v43  ;;  %v6194_v31 = vmul.f32 %v5964_v43, %v5964_v43 }
 0x8a1   :  { %v6076_v21 = vrot.slane %v6075_v49, 4  ;;  %v6305_v4 = vadd.f32 %v6304_v5, %v6194_v31  ;;  %v6338_v5 = vld [vmem:[%s12263_s3] sm:$0x1] }
 0x8a3   :  { %v6077_v15 = vadd.f32 %v6076_v21, %v6075_v49  ;;  %v6306_v59 = vrot.slane %v6305_v4, 4 }
 0x8a5   :  { %v6078_v38 = vrot.slane %v6077_v15, 2  ;;  %v6307_v10 = vadd.f32 %v6306_v59, %v6305_v4  ;;  %v14338_v4 = vld [vmem:[#allocation257_spill] sm:$0xff]  ;;  %v14339_v59 = vld [vmem:[#allocation80_spill] sm:$0xff] }
 0x8a7   :  { %v6079_v0 = vadd.f32 %v6078_v38, %v6077_v15  ;;  %v6308_v34 = vrot.slane %v6307_v10, 2 }
 0x8a9   :  { %v6080_v16 = vrot.slane %v6079_v0, 1  ;;  %v6309_v50 = vadd.f32 %v6308_v34, %v6307_v10 }
 0x8ab   :  { %v6081_v17 = vadd.f32 %v6080_v16, %v6079_v0  ;;  %v6310_v32 = vrot.slane %v6309_v50, 1 }
 0x8ad   :  { %v6311_v39 = vadd.f32 %v6310_v32, %v6309_v50  ;;  %v6320_v45 = vmul.f32 %v6319_v6, %v6081_v17  ;;  %v14344_v50 = vld [vmem:[#allocation15_spill] sm:$0xff]  ;;  %v14345_v32 = vld [vmem:[#allocation185_spill] sm:$0xff] }
 0x8af   :  { %v6321_v22 = vmul.f32 %v6319_v6, %v6311_v39  ;;  %v6322_v12 = vmul.f32 %v6320_v45, %v6320_v45 }
 0x8b1   :  { %v6323_v61 = vsub.f32 %v6321_v22, %v6322_v12  ;;  %v14348_v22 = vld [vmem:[#allocation197_spill] sm:$0xff]  ;;  %v14349_v12 = vld [vmem:[#allocation26_spill] sm:$0xff] }
 0x8b3   :  { %v6324_v40 = vmax.f32 %v6323_v61, 0.0  ;;  %v14350_v61 = vld [vmem:[#allocation301_spill] sm:$0xff] }
 0x8b5   :  { %v6325_v19 = vadd.f32 1e-05, %v6324_v40  ;;  %v14351_v40 = vld [vmem:[#allocation40_spill] sm:$0xff] }
 0x8b7   :  { %6850 = vrsqrt.f32 %v6325_v19  ;;  %vm6332_vm0 = vweird.f32 %v6325_v19 }
 0x8bd   :  { %v6851_v11 = vpop.eup %6850 }
 0x8be   :  { %v6327_v55 = vmul.f32 %v6851_v11, %v6325_v19  ;;  %vm6333_vm15 = vweird.f32 %v6851_v11 }
 0x8bf   :  { %vm6334_vm1 = vmor %vm6332_vm0, %vm6333_vm15 }
 0x8c0   :  { %v6328_v41 = vmul.f32 %v6851_v11, %v6327_v55 }
 0x8c2   :  { %v6329_v42 = vmul.f32 0.5, %v6328_v41  ;;  %v14353_v41 = vld [vmem:[#allocation2_spill] sm:$0xff] }
 0x8c4   :  { %v6330_v53 = vsub.f32 1.5, %v6329_v42 }
 0x8c6   :  { %v6331_v24 = vmul.f32 %v6851_v11, %v6330_v53  ;;  %v14354_v53 = vld [vmem:[#allocation28_spill] sm:$0xff] }
 0x8c8   :  { %v6335_v47 = vsel %vm6334_vm1, %v6851_v11, %v6331_v24  ;;  %v14352_v11 = vld [vmem:[#allocation33_spill] sm:$0xff] }
 0x8c9   :  { %v6337_v62 = vmul.f32 %v6336_v23, %v6335_v47  ;;  %v14355_v47 = vld [vmem:[#allocation44_spill] sm:$0xff] }
 0x8cb   :  { %v6339_v20 = vmul.f32 %v6337_v62, %v6320_v45  ;;  %v11407_v43 = vperm.slane %v6337_v62, 0  ;;  %v14347_v45 = vld [vmem:[#allocation21_spill] sm:$0xff]  ;;  %v14356_v62 = vld [vmem:[#allocation38_spill] sm:$0xff] }
 0x8cd   :  { %v6340_v49 = vsub.f32 %v6338_v5, %v6339_v20  ;;  %v6344_v31 = vmul.f32 %v11407_v43, %v10234_v44  ;;  %v6345_v21 = vmul.f32 %v11407_v43, %v14337_v30  ;;  %v6346_v15 = vmul.f32 %v11407_v43, %v14338_v4  ;;  %v14341_v44 = vld [vmem:[#allocation279_spill] sm:$0xff]  ;;  %v14357_v5 = vld [vmem:[#allocation302_spill] sm:$0xff]  ;;  %v14358_v4 = vld [vmem:[#allocation52_spill] sm:$0xff] }
 0x8ce   :  { %v6347_v33 = vmul.f32 %v11407_v43, %v14339_v59  ;;  %v6348_v38 = vmul.f32 %v11407_v43, %v10262_v56  ;;  %v6349_v10 = vmul.f32 %v11407_v43, %v10269_v1  ;;  %v11426_v0 = vmul.f32 %v11407_v43, %v10276_v57 }
 0x8cf   :  { %v11430_v34 = vmul.f32 %v11407_v43, %v14341_v44  ;;  %v11434_v54 = vmul.f32 %v11407_v43, %v10290_v26  ;;  %v6407_v16 = vmul.f32 %v11407_v43, %v14301_v60  ;;  %v6408_v56 = vmul.f32 %v11407_v43, %v14303_v9  ;;  %v14346_v26 = vld [vmem:[#allocation305_spill] sm:$0xff] }
 0x8d0   :  { %14340 = vst [vmem:[#allocation89_spill] sm:$0xff] %v11426_v0  ;;  %v6409_v1 = vmul.f32 %v11407_v43, %v14305_v25  ;;  %v6410_v57 = vmul.f32 %v11407_v43, %v14306_v37  ;;  %v6411_v17 = vmul.f32 %v11407_v43, %v14344_v50  ;;  %v6412_v6 = vmul.f32 %v11407_v43, %v14345_v32  ;;  %v14359_v44 = vld [vmem:[#allocation45_spill] sm:$0xff]  ;;  %v14360_v32 = vld [vmem:[#allocation303_spill] sm:$0xff]  ;;  %v14370_v0 = vld [vmem:[#allocation74_spill] sm:$0xff] }
 0x8d1   :  { %14342 = vst [vmem:[#allocation81_spill] sm:$0xff] %v11430_v34  ;;  %v6413_v39 = vmul.f32 %v11407_v43, %v14346_v26  ;;  %v6414_v60 = vmul.f32 %v11407_v43, %v14347_v45  ;;  %v6415_v9 = vmul.f32 %v11407_v43, %v14348_v22  ;;  %v6416_v25 = vmul.f32 %v11407_v43, %v14349_v12  ;;  %v14361_v45 = vld [vmem:[#allocation57_spill] sm:$0xff]  ;;  %v14362_v12 = vld [vmem:[#allocation50_spill] sm:$0xff]  ;;  %v14369_v34 = vld [vmem:[#allocation32_spill] sm:$0xff] }
 0x8d2   :  { %14343 = vst [vmem:[#allocation308_spill] sm:$0xff] %v11434_v54  ;;  %v6417_v37 = vmul.f32 %v11407_v43, %v14350_v61  ;;  %v6418_v19 = vmul.f32 %v11407_v43, %v14351_v40  ;;  %v6419_v55 = vmul.f32 %v11407_v43, %v14352_v11  ;;  %v6420_v42 = vmul.f32 %v11407_v43, %v14353_v41  ;;  %v14363_v40 = vld [vmem:[#allocation304_spill] sm:$0xff]  ;;  %v14364_v41 = vld [vmem:[#allocation67_spill] sm:$0xff]  ;;  %v14368_v54 = vld [vmem:[#allocation65_spill] sm:$0xff] }
 0x8d3   :  { %v6421_v24 = vmul.f32 %v11407_v43, %v14354_v53  ;;  %v6422_v23 = vmul.f32 %v11407_v43, %v14355_v47  ;;  %v6423_v20 = vmul.f32 %v11407_v43, %v14356_v62  ;;  %v6424_v30 = vmul.f32 %v11407_v43, %v14357_v5  ;;  %v14365_v47 = vld [vmem:[#allocation58_spill] sm:$0xff] }
 0x8d4   :  { %v6425_v59 = vmul.f32 %v11407_v43, %v14358_v4  ;;  %v6426_v50 = vmul.f32 %v11407_v43, %v14359_v44  ;;  %v6427_v26 = vmul.f32 %v11407_v43, %v14360_v32  ;;  %v6428_v22 = vmul.f32 %v11407_v43, %v14361_v45  ;;  %v14366_v5 = vld [vmem:[#allocation306_spill] sm:$0xff]  ;;  %v14367_v44 = vld [vmem:[#allocation312_spill] sm:$0xff] }
 0x8d5   :  { %v6429_v61 = vmul.f32 %v11407_v43, %v14362_v12  ;;  %v6430_v11 = vmul.f32 %v11407_v43, %v14363_v40  ;;  %v6431_v53 = vmul.f32 %v11407_v43, %v14364_v41  ;;  %v6432_v62 = vmul.f32 %v11407_v43, %v14365_v47 }
 0x8d6   :  { %v6433_v4 = vmul.f32 %v11407_v43, %v14366_v5  ;;  %v6434_v32 = vmul.f32 %v11407_v43, %v14367_v44  ;;  %v6435_v45 = vmul.f32 %v11407_v43, %v14368_v54  ;;  %v6436_v12 = vmul.f32 %v11407_v43, %v14369_v34  ;;  %v14371_v34 = vld [vmem:[#allocation307_spill] sm:$0xff] }
 0x8d7   :  { %v6437_v40 = vmul.f32 %v11407_v43, %v11063_v35  ;;  %v6438_v41 = vmul.f32 %v11407_v43, %v11083_v29  ;;  %v6439_v47 = vmul.f32 %v11407_v43, %v14370_v0  ;;  %v6440_v5 = vmul.f32 %v11407_v43, %v11117_v52 }
 0x8d8   :  { %v6441_v44 = vmul.f32 %v11407_v43, %v11130_v14  ;;  %v6442_v54 = vmul.f32 %v11407_v43, %v11144_v2  ;;  %v11508_v18 = vperm.slane %v6340_v49, 0  ;;  %v6443_v35 = vmul.f32 %v11407_v43, %v11157_v13 }
 0x8d9   :  { %v6444_v29 = vmul.f32 %v11407_v43, %v11172_v8  ;;  %v6445_v0 = vmul.f32 %v11407_v43, %v11323_v51  ;;  %v6446_v52 = vmul.f32 %v11407_v43, %v11335_v7  ;;  %v6447_v14 = vmul.f32 %v11407_v43, %v11338_v28 }
 0x8da   :  { %v6448_v2 = vmul.f32 %v11407_v43, %v11358_v63  ;;  %v6449_v49 = vmul.f32 %v11407_v43, %v11364_v27  ;;  %v6450_v13 = vmul.f32 %v11407_v43, %v11373_v48  ;;  %v6451_v8 = vmul.f32 %v11407_v43, %v11369_v58 }
 0x8db   :  { %v6452_v51 = vmul.f32 %v11407_v43, %v11384_v36  ;;  %v6453_v7 = vmul.f32 %v11407_v43, %v11387_v3  ;;  %v6454_v28 = vmul.f32 %v11407_v43, %v11392_v46  ;;  %v6455_v63 = vmul.f32 %v11407_v43, %v14371_v34 }
 0x8dc   :  { %v11537_v27 = vadd.f32 %v11508_v18, %v6344_v31  ;;  %v11540_v48 = vadd.f32 %v11508_v18, %v6345_v21  ;;  %v11543_v58 = vadd.f32 %v11508_v18, %v6346_v15  ;;  %v11546_v36 = vadd.f32 %v11508_v18, %v6347_v33 }
 0x8dd   :  { %v11549_v3 = vadd.f32 %v11508_v18, %v6348_v38  ;;  %v11552_v46 = vadd.f32 %v11508_v18, %v6349_v10  ;;  %v11555_v34 = vadd.f32 %v11508_v18, %v6407_v16  ;;  %v11558_v31 = vadd.f32 %v11508_v18, %v6408_v56 }
 0x8de   :  { %v11561_v21 = vadd.f32 %v11508_v18, %v6409_v1  ;;  %v11564_v15 = vadd.f32 %v11508_v18, %v6410_v57  ;;  %v11567_v33 = vadd.f32 %v11508_v18, %v6411_v17  ;;  %v11570_v38 = vadd.f32 %v11508_v18, %v6412_v6 }
 0x8df   :  { %v11573_v10 = vadd.f32 %v11508_v18, %v6413_v39  ;;  %v11576_v16 = vadd.f32 %v11508_v18, %v6414_v60  ;;  %v11579_v56 = vadd.f32 %v11508_v18, %v6415_v9  ;;  %v11582_v1 = vadd.f32 %v11508_v18, %v6416_v25 }
 0x8e0   :  { %v11585_v57 = vadd.f32 %v11508_v18, %v6417_v37  ;;  %v11588_v17 = vadd.f32 %v11508_v18, %v6418_v19  ;;  %v11591_v6 = vadd.f32 %v11508_v18, %v6419_v55  ;;  %v11594_v39 = vadd.f32 %v11508_v18, %v6420_v42 }
 0x8e1   :  { %v11597_v60 = vadd.f32 %v11508_v18, %v6421_v24  ;;  %v11600_v9 = vadd.f32 %v11508_v18, %v6422_v23  ;;  %v11603_v25 = vadd.f32 %v11508_v18, %v6423_v20  ;;  %v11606_v37 = vadd.f32 %v11508_v18, %v6424_v30 }
 0x8e2   :  { %v11609_v19 = vadd.f32 %v11508_v18, %v6425_v59  ;;  %v11612_v55 = vadd.f32 %v11508_v18, %v6426_v50  ;;  %v11615_v42 = vadd.f32 %v11508_v18, %v6427_v26  ;;  %v11618_v24 = vadd.f32 %v11508_v18, %v6428_v22 }
 0x8e3   :  { %v11621_v23 = vadd.f32 %v11508_v18, %v6429_v61  ;;  %v11624_v20 = vadd.f32 %v11508_v18, %v6430_v11  ;;  %v11627_v30 = vadd.f32 %v11508_v18, %v6431_v53  ;;  %v11630_v59 = vadd.f32 %v11508_v18, %v6432_v62 }
 0x8e4   :  { %v11633_v50 = vadd.f32 %v11508_v18, %v6433_v4  ;;  %v11636_v26 = vadd.f32 %v11508_v18, %v6434_v32  ;;  %v11639_v22 = vadd.f32 %v11508_v18, %v6435_v45  ;;  %v11642_v61 = vadd.f32 %v11508_v18, %v6436_v12 }
 0x8e5   :  { %v11645_v11 = vadd.f32 %v11508_v18, %v6437_v40  ;;  %v11648_v53 = vadd.f32 %v11508_v18, %v6438_v41  ;;  %v11651_v62 = vadd.f32 %v11508_v18, %v6439_v47  ;;  %v11654_v4 = vadd.f32 %v11508_v18, %v6440_v5 }
 0x8e6   :  { %v11657_v32 = vadd.f32 %v11508_v18, %v6441_v44  ;;  %v11660_v45 = vadd.f32 %v11508_v18, %v6442_v54  ;;  %v11663_v12 = vadd.f32 %v11508_v18, %v6443_v35  ;;  %v11666_v40 = vadd.f32 %v11508_v18, %v6444_v29 }
 0x8e7   :  { %v11669_v41 = vadd.f32 %v11508_v18, %v6445_v0  ;;  %v11672_v47 = vadd.f32 %v11508_v18, %v6446_v52  ;;  %v11675_v5 = vadd.f32 %v11508_v18, %v6447_v14  ;;  %v11678_v44 = vadd.f32 %v11508_v18, %v6448_v2 }
 0x8e8   :  { %v11681_v54 = vadd.f32 %v11508_v18, %v6449_v49  ;;  %v11684_v35 = vadd.f32 %v11508_v18, %v6450_v13  ;;  %v11687_v29 = vadd.f32 %v11508_v18, %v6451_v8  ;;  %v11690_v0 = vadd.f32 %v11508_v18, %v6452_v51  ;;  %v14378_v49 = vld [vmem:[#allocation89_spill] sm:$0xff]  ;;  %v14379_v51 = vld [vmem:[#allocation95_spill] sm:$0xff] }
 0x8e9   :  { %v11693_v52 = vadd.f32 %v11508_v18, %v6453_v7  ;;  %v11696_v14 = vadd.f32 %v11508_v18, %v6454_v28  ;;  %v11699_v2 = vadd.f32 %v11508_v18, %v6455_v63  ;;  %v6571_v13 = vmax.f32 %v11537_v27, 0.0  ;;  %v14380_v7 = vld [vmem:[#allocation81_spill] sm:$0xff] }
 0x8ea   :  { %14372 = vst [vmem:[#allocation73_spill] sm:$0xff] %v11681_v54  ;;  %v6465_v54 = vadd.f32 %v11508_v18, %v14378_v49  ;;  %v6572_v8 = vmax.f32 %v11540_v48, 0.0  ;;  %v6574_v28 = vmax.f32 %v11546_v36, 0.0  ;;  %v6575_v27 = vmax.f32 %v11549_v3, 0.0  ;;  %v14383_v48 = vld [vmem:[#allocation88_spill] sm:$0xff]  ;;  %v14384_v36 = vld [vmem:[#allocation282_spill] sm:$0xff] }
 0x8eb   :  { %14373 = vst [vmem:[#allocation99_spill] sm:$0xff] %v11687_v29  ;;  %v6573_v29 = vmax.f32 %v11543_v58, 0.0  ;;  %v6355_v58 = vmul.f32 %v11407_v43, %v14383_v48 }
 0x8ec   :  { %14374 = vst [vmem:[#allocation90_spill] sm:$0xff] %v11690_v0  ;;  %v6353_v0 = vmul.f32 %v11407_v43, %v14379_v51 }
 0x8ed   :  { %14375 = vst [vmem:[#allocation309_spill] sm:$0xff] %v11693_v52  ;;  %v6466_v52 = vadd.f32 %v11508_v18, %v14380_v7  ;;  %v6576_v7 = vmax.f32 %v11552_v46, 0.0 }
 0x8ee   :  { %14376 = vst [vmem:[#allocation316_spill] sm:$0xff] %v11696_v14  ;;  %v14381_v14 = vld [vmem:[#allocation260_spill] sm:$0xff]  ;;  %v6468_v51 = vadd.f32 %v11508_v18, %v6353_v0  ;;  %v6470_v0 = vadd.f32 %v11508_v18, %v6355_v58 }
 0x8ef   :  { %14377 = vst [vmem:[#allocation97_spill] sm:$0xff] %v11699_v2  ;;  %v6354_v63 = vmul.f32 %v11407_v43, %v14381_v14  ;;  %v14382_v2 = vld [vmem:[#allocation308_spill] sm:$0xff]  ;;  %v6356_v14 = vmul.f32 %v11407_v43, %v14384_v36  ;;  %v6578_v46 = vmax.f32 %v6466_v52, 0.0 }
 0x8f0   :  { %v6467_v49 = vadd.f32 %v11508_v18, %v14382_v2  ;;  %6683 = vst [vmem:[%s12264_s4] sm:$0xff] %v6571_v13  ;;  %v6577_v2 = vmax.f32 %v6465_v54, 0.0  ;;  %v14385_v13 = vld [vmem:[#allocation103_spill] sm:$0xff]  ;;  %v6580_v52 = vmax.f32 %v6468_v51, 0.0  ;;  %v6582_v51 = vmax.f32 %v6470_v0, 0.0 }
 0x8f1   :  { %6684 = vst [vmem:[%s12264_s4 + $0x8] sm:$0xff] %v6572_v8  ;;  %v6469_v3 = vadd.f32 %v11508_v18, %v6354_v63  ;;  %v6357_v48 = vmul.f32 %v11407_v43, %v14385_v13  ;;  %v14386_v8 = vld [vmem:[#allocation263_spill] sm:$0xff]  ;;  %v6471_v63 = vadd.f32 %v11508_v18, %v6356_v14 }
 0x8f2   :  { %6685 = vst [vmem:[%s12264_s4 + $0x10] sm:$0xff] %v6573_v29  ;;  %v6358_v36 = vmul.f32 %v11407_v43, %v14386_v8  ;;  %v6579_v54 = vmax.f32 %v6467_v49, 0.0  ;;  %v14387_v29 = vld [vmem:[#allocation96_spill] sm:$0xff] }
 0x8f3   :  { %6686 = vst [vmem:[%s12264_s4 + $0x18] sm:$0xf] %v6574_v28  ;;  %v6359_v13 = vmul.f32 %v11407_v43, %v14387_v29  ;;  %v6472_v58 = vadd.f32 %v11508_v18, %v6357_v48  ;;  %v14388_v28 = vld [vmem:[#allocation286_spill] sm:$0xff]  ;;  %v6581_v49 = vmax.f32 %v6469_v3, 0.0  ;;  %v6583_v3 = vmax.f32 %v6471_v63, 0.0 }
 0x8f4   :  { %6687 = vst [vmem:[%s12264_s4 + $0x20] sm:$0xff] %v6575_v27  ;;  %v6360_v8 = vmul.f32 %v11407_v43, %v14388_v28  ;;  %v6473_v14 = vadd.f32 %v11508_v18, %v6358_v36  ;;  %v14389_v27 = vld [vmem:[#allocation111_spill] sm:$0xff] }
 0x8f5   :  { %6688 = vst [vmem:[%s12264_s4 + $0x28] sm:$0xff] %v6576_v7  ;;  %v6361_v29 = vmul.f32 %v11407_v43, %v14389_v27  ;;  %v6474_v48 = vadd.f32 %v11508_v18, %v6359_v13  ;;  %v14390_v7 = vld [vmem:[#allocation266_spill] sm:$0xff]  ;;  %v6584_v0 = vmax.f32 %v6472_v58, 0.0 }
 0x8f6   :  { %6689 = vst [vmem:[%s12264_s4 + $0x30] sm:$0xff] %v6577_v2  ;;  %v6362_v28 = vmul.f32 %v11407_v43, %v14390_v7  ;;  %v6475_v36 = vadd.f32 %v11508_v18, %v6360_v8  ;;  %v14391_v2 = vld [vmem:[#allocation104_spill] sm:$0xff]  ;;  %v6585_v63 = vmax.f32 %v6473_v14, 0.0 }
 0x8f7   :  { %6690 = vst [vmem:[%s12264_s4 + $0x38] sm:$0xf] %v6578_v46  ;;  %v6363_v27 = vmul.f32 %v11407_v43, %v14391_v2  ;;  %v6476_v13 = vadd.f32 %v11508_v18, %v6361_v29  ;;  %v14392_v46 = vld [vmem:[#allocation290_spill] sm:$0xff]  ;;  %v6586_v58 = vmax.f32 %v6474_v48, 0.0 }
 0x8f8   :  { %6691 = vst [vmem:[%s12264_s4 + $0x40] sm:$0xff] %v6579_v54  ;;  %v6364_v7 = vmul.f32 %v11407_v43, %v14392_v46  ;;  %v6477_v8 = vadd.f32 %v11508_v18, %v6362_v28  ;;  %v14393_v54 = vld [vmem:[#allocation119_spill] sm:$0xff]  ;;  %v6587_v14 = vmax.f32 %v6475_v36, 0.0 }
 0x8f9   :  { %6692 = vst [vmem:[%s12264_s4 + $0x48] sm:$0xff] %v6580_v52  ;;  %v6365_v2 = vmul.f32 %v11407_v43, %v14393_v54  ;;  %v6478_v29 = vadd.f32 %v11508_v18, %v6363_v27  ;;  %v14394_v52 = vld [vmem:[#allocation269_spill] sm:$0xff]  ;;  %v6588_v48 = vmax.f32 %v6476_v13, 0.0 }
 0x8fa   :  { %6693 = vst [vmem:[%s12264_s4 + $0x50] sm:$0xff] %v6581_v49  ;;  %v6366_v46 = vmul.f32 %v11407_v43, %v14394_v52  ;;  %v6479_v28 = vadd.f32 %v11508_v18, %v6364_v7  ;;  %v14395_v49 = vld [vmem:[#allocation112_spill] sm:$0xff]  ;;  %v6589_v36 = vmax.f32 %v6477_v8, 0.0 }
 0x8fb   :  { %6694 = vst [vmem:[%s12264_s4 + $0x58] sm:$0xf] %v6582_v51  ;;  %v6367_v54 = vmul.f32 %v11407_v43, %v14395_v49  ;;  %v6480_v27 = vadd.f32 %v11508_v18, %v6365_v2  ;;  %v14396_v51 = vld [vmem:[#allocation294_spill] sm:$0xff]  ;;  %v6590_v13 = vmax.f32 %v6478_v29, 0.0 }
 0x8fc   :  { %6695 = vst [vmem:[%s12264_s4 + $0x60] sm:$0xff] %v6583_v3  ;;  %v6368_v52 = vmul.f32 %v11407_v43, %v14396_v51  ;;  %v6481_v7 = vadd.f32 %v11508_v18, %v6366_v46  ;;  %v14397_v3 = vld [vmem:[#allocation128_spill] sm:$0xff]  ;;  %v6591_v8 = vmax.f32 %v6479_v28, 0.0 }
 0x8fd   :  { %6696 = vst [vmem:[%s12264_s4 + $0x68] sm:$0xff] %v6584_v0  ;;  %v6369_v49 = vmul.f32 %v11407_v43, %v14397_v3  ;;  %v6482_v2 = vadd.f32 %v11508_v18, %v6367_v54  ;;  %v14398_v0 = vld [vmem:[#allocation272_spill] sm:$0xff]  ;;  %v6592_v29 = vmax.f32 %v6480_v27, 0.0 }
 0x8fe   :  { %6697 = vst [vmem:[%s12264_s4 + $0x70] sm:$0xff] %v6585_v63  ;;  %v6370_v51 = vmul.f32 %v11407_v43, %v14398_v0  ;;  %v6483_v46 = vadd.f32 %v11508_v18, %v6368_v52  ;;  %v14399_v63 = vld [vmem:[#allocation120_spill] sm:$0xff]  ;;  %v6593_v28 = vmax.f32 %v6481_v7, 0.0 }
 0x8ff   :  { %6698 = vst [vmem:[%s12264_s4 + $0x78] sm:$0xf] %v6586_v58  ;;  %v6371_v3 = vmul.f32 %v11407_v43, %v14399_v63  ;;  %v6484_v54 = vadd.f32 %v11508_v18, %v6369_v49  ;;  %v14400_v58 = vld [vmem:[#allocation297_spill] sm:$0xff]  ;;  %v6594_v27 = vmax.f32 %v6482_v2, 0.0 }
 0x900   :  { %6699 = vst [vmem:[%s12264_s4 + $0x80] sm:$0xff] %v6587_v14  ;;  %v6372_v0 = vmul.f32 %v11407_v43, %v14400_v58  ;;  %v6485_v52 = vadd.f32 %v11508_v18, %v6370_v51  ;;  %v14401_v14 = vld [vmem:[#allocation139_spill] sm:$0xff]  ;;  %v6595_v7 = vmax.f32 %v6483_v46, 0.0 }
 0x901   :  { %6700 = vst [vmem:[%s12264_s4 + $0x88] sm:$0xff] %v6588_v48  ;;  %v6373_v63 = vmul.f32 %v11407_v43, %v14401_v14  ;;  %v6486_v49 = vadd.f32 %v11508_v18, %v6371_v3  ;;  %v14402_v48 = vld [vmem:[#allocation275_spill] sm:$0xff]  ;;  %v6596_v2 = vmax.f32 %v6484_v54, 0.0 }
 0x902   :  { %6701 = vst [vmem:[%s12264_s4 + $0x90] sm:$0xff] %v6589_v36  ;;  %v6374_v58 = vmul.f32 %v11407_v43, %v14402_v48  ;;  %v6487_v51 = vadd.f32 %v11508_v18, %v6372_v0  ;;  %v14403_v36 = vld [vmem:[#allocation129_spill] sm:$0xff]  ;;  %v6597_v46 = vmax.f32 %v6485_v52, 0.0 }
 0x903   :  { %6702 = vst [vmem:[%s12264_s4 + $0x98] sm:$0xf] %v6590_v13  ;;  %v6375_v14 = vmul.f32 %v11407_v43, %v14403_v36  ;;  %v6488_v3 = vadd.f32 %v11508_v18, %v6373_v63  ;;  %v14404_v13 = vld [vmem:[#allocation298_spill] sm:$0xff]  ;;  %v6598_v54 = vmax.f32 %v6486_v49, 0.0 }
 0x904   :  { %6703 = vst [vmem:[%s12264_s4 + $0xa0] sm:$0xff] %v6591_v8  ;;  %v6376_v48 = vmul.f32 %v11407_v43, %v14404_v13  ;;  %v6489_v0 = vadd.f32 %v11508_v18, %v6374_v58  ;;  %v14405_v8 = vld [vmem:[#allocation151_spill] sm:$0xff]  ;;  %v6599_v52 = vmax.f32 %v6487_v51, 0.0 }
 0x905   :  { %6704 = vst [vmem:[%s12264_s4 + $0xa8] sm:$0xff] %v6592_v29  ;;  %v6377_v36 = vmul.f32 %v11407_v43, %v14405_v8  ;;  %v6490_v63 = vadd.f32 %v11508_v18, %v6375_v14  ;;  %v14406_v29 = vld [vmem:[#allocation278_spill] sm:$0xff]  ;;  %v6600_v49 = vmax.f32 %v6488_v3, 0.0 }
 0x906   :  { %6705 = vst [vmem:[%s12264_s4 + $0xb0] sm:$0xff] %v6593_v28  ;;  %v6378_v13 = vmul.f32 %v11407_v43, %v14406_v29  ;;  %v6491_v58 = vadd.f32 %v11508_v18, %v6376_v48  ;;  %v14407_v28 = vld [vmem:[#allocation140_spill] sm:$0xff]  ;;  %v6601_v51 = vmax.f32 %v6489_v0, 0.0 }
 0x907   :  { %6706 = vst [vmem:[%s12264_s4 + $0xb8] sm:$0xf] %v6594_v27  ;;  %v6379_v8 = vmul.f32 %v11407_v43, %v14407_v28  ;;  %v6492_v14 = vadd.f32 %v11508_v18, %v6377_v36  ;;  %v14408_v27 = vld [vmem:[#allocation175_spill] sm:$0xff]  ;;  %v6602_v3 = vmax.f32 %v6490_v63, 0.0 }
 0x908   :  { %6707 = vst [vmem:[%s12264_s4 + $0xc0] sm:$0xff] %v6595_v7  ;;  %v6380_v29 = vmul.f32 %v11407_v43, %v14408_v27  ;;  %v6493_v48 = vadd.f32 %v11508_v18, %v6378_v13  ;;  %v14409_v7 = vld [vmem:[#allocation163_spill] sm:$0xff]  ;;  %v6603_v0 = vmax.f32 %v6491_v58, 0.0 }
 0x909   :  { %6708 = vst [vmem:[%s12264_s4 + $0xc8] sm:$0xff] %v6596_v2  ;;  %v6381_v28 = vmul.f32 %v11407_v43, %v14409_v7  ;;  %v6494_v36 = vadd.f32 %v11508_v18, %v6379_v8  ;;  %v14410_v2 = vld [vmem:[#allocation281_spill] sm:$0xff]  ;;  %v6604_v63 = vmax.f32 %v6492_v14, 0.0 }
 0x90a   :  { %6709 = vst [vmem:[%s12264_s4 + $0xd0] sm:$0xff] %v6597_v46  ;;  %v6382_v27 = vmul.f32 %v11407_v43, %v14410_v2  ;;  %v6495_v13 = vadd.f32 %v11508_v18, %v6380_v29  ;;  %v14411_v46 = vld [vmem:[#allocation152_spill] sm:$0xff]  ;;  %v6605_v58 = vmax.f32 %v6493_v48, 0.0 }
 0x90b   :  { %6710 = vst [vmem:[%s12264_s4 + $0xd8] sm:$0xf] %v6598_v54  ;;  %v6383_v7 = vmul.f32 %v11407_v43, %v14411_v46  ;;  %v6496_v8 = vadd.f32 %v11508_v18, %v6381_v28  ;;  %v14412_v54 = vld [vmem:[#allocation150_spill] sm:$0xff]  ;;  %v6606_v14 = vmax.f32 %v6494_v36, 0.0 }
 0x90c   :  { %6711 = vst [vmem:[%s12264_s4 + $0xe0] sm:$0xff] %v6599_v52  ;;  %v6384_v2 = vmul.f32 %v11407_v43, %v14412_v54  ;;  %v6497_v29 = vadd.f32 %v11508_v18, %v6382_v27  ;;  %v14413_v52 = vld [vmem:[#allocation174_spill] sm:$0xff]  ;;  %v6607_v48 = vmax.f32 %v6495_v13, 0.0 }
 0x90d   :  { %6712 = vst [vmem:[%s12264_s4 + $0xe8] sm:$0xff] %v6600_v49  ;;  %v6385_v46 = vmul.f32 %v11407_v43, %v14413_v52  ;;  %v6498_v28 = vadd.f32 %v11508_v18, %v6383_v7  ;;  %v14414_v49 = vld [vmem:[#allocation285_spill] sm:$0xff]  ;;  %v6608_v36 = vmax.f32 %v6496_v8, 0.0 }
 0x90e   :  { %6713 = vst [vmem:[%s12264_s4 + $0xf0] sm:$0xff] %v6601_v51  ;;  %v6386_v54 = vmul.f32 %v11407_v43, %v14414_v49  ;;  %v6499_v27 = vadd.f32 %v11508_v18, %v6384_v2  ;;  %v14415_v51 = vld [vmem:[#allocation162_spill] sm:$0xff]  ;;  %v6609_v13 = vmax.f32 %v6497_v29, 0.0 }
 0x90f   :  { %6714 = vst [vmem:[%s12264_s4 + $0xf8] sm:$0xf] %v6602_v3  ;;  %v6387_v52 = vmul.f32 %v11407_v43, %v14415_v51  ;;  %v6500_v7 = vadd.f32 %v11508_v18, %v6385_v46  ;;  %v14416_v3 = vld [vmem:[#allocation186_spill] sm:$0xff]  ;;  %v6610_v8 = vmax.f32 %v6498_v28, 0.0 }
 0x910   :  { %6715 = vst [vmem:[%s12264_s4 + $0x100] sm:$0xff] %v6603_v0  ;;  %v6388_v49 = vmul.f32 %v11407_v43, %v14416_v3  ;;  %v6501_v2 = vadd.f32 %v11508_v18, %v6386_v54  ;;  %v14417_v0 = vld [vmem:[#allocation289_spill] sm:$0xff]  ;;  %v6611_v29 = vmax.f32 %v6499_v27, 0.0 }
 0x911   :  { %6716 = vst [vmem:[%s12264_s4 + $0x108] sm:$0xff] %v6604_v63  ;;  %v6389_v51 = vmul.f32 %v11407_v43, %v14417_v0  ;;  %v6502_v46 = vadd.f32 %v11508_v18, %v6387_v52  ;;  %v14418_v63 = vld [vmem:[#allocation198_spill] sm:$0xff]  ;;  %v6612_v28 = vmax.f32 %v6500_v7, 0.0 }
 0x912   :  { %6717 = vst [vmem:[%s12264_s4 + $0x110] sm:$0xff] %v6605_v58  ;;  %v6390_v3 = vmul.f32 %v11407_v43, %v14418_v63  ;;  %v6503_v54 = vadd.f32 %v11508_v18, %v6388_v49  ;;  %v14419_v58 = vld [vmem:[#allocation293_spill] sm:$0xff]  ;;  %v6613_v27 = vmax.f32 %v6501_v2, 0.0 }
 0x913   :  { %6718 = vst [vmem:[%s12264_s4 + $0x118] sm:$0xf] %v6606_v14  ;;  %v6391_v0 = vmul.f32 %v11407_v43, %v14419_v58  ;;  %v6504_v52 = vadd.f32 %v11508_v18, %v6389_v51  ;;  %v14420_v14 = vld [vmem:[#allocation210_spill] sm:$0xff]  ;;  %v6614_v7 = vmax.f32 %v6502_v46, 0.0 }
 0x914   :  { %6719 = vst [vmem:[%s12264_s4 + $0x120] sm:$0xff] %v6607_v48  ;;  %v6392_v63 = vmul.f32 %v11407_v43, %v14420_v14  ;;  %v6505_v49 = vadd.f32 %v11508_v18, %v6390_v3  ;;  %v14421_v48 = vld [vmem:[#allocation296_spill] sm:$0xff]  ;;  %v6615_v2 = vmax.f32 %v6503_v54, 0.0 }
 0x915   :  { %6720 = vst [vmem:[%s12264_s4 + $0x128] sm:$0xff] %v6608_v36  ;;  %v6393_v58 = vmul.f32 %v11407_v43, %v14421_v48  ;;  %v6506_v51 = vadd.f32 %v11508_v18, %v6391_v0  ;;  %v14422_v36 = vld [vmem:[#allocation222_spill] sm:$0xff]  ;;  %v6616_v46 = vmax.f32 %v6504_v52, 0.0 }
 0x916   :  { %6721 = vst [vmem:[%s12264_s4 + $0x130] sm:$0xff] %v6609_v13  ;;  %v6394_v14 = vmul.f32 %v11407_v43, %v14422_v36  ;;  %v6507_v3 = vadd.f32 %v11508_v18, %v6392_v63  ;;  %v14423_v13 = vld [vmem:[#allocation299_spill] sm:$0xff]  ;;  %v6617_v54 = vmax.f32 %v6505_v49, 0.0 }
 0x917   :  { %6722 = vst [vmem:[%s12264_s4 + $0x138] sm:$0xf] %v6610_v8  ;;  %v6395_v48 = vmul.f32 %v11407_v43, %v14423_v13  ;;  %v6508_v0 = vadd.f32 %v11508_v18, %v6393_v58  ;;  %v14424_v8 = vld [vmem:[#allocation211_spill] sm:$0xff]  ;;  %v6618_v52 = vmax.f32 %v6506_v51, 0.0 }
 0x918   :  { %6723 = vst [vmem:[%s12264_s4 + $0x140] sm:$0xff] %v6611_v29  ;;  %v6396_v36 = vmul.f32 %v11407_v43, %v14424_v8  ;;  %v6509_v63 = vadd.f32 %v11508_v18, %v6394_v14  ;;  %v14425_v29 = vld [vmem:[#allocation209_spill] sm:$0xff]  ;;  %v6619_v49 = vmax.f32 %v6507_v3, 0.0 }
 0x919   :  { %6724 = vst [vmem:[%s12264_s4 + $0x148] sm:$0xff] %v6612_v28  ;;  %v6397_v13 = vmul.f32 %v11407_v43, %v14425_v29  ;;  %v6510_v58 = vadd.f32 %v11508_v18, %v6395_v48  ;;  %v14426_v28 = vld [vmem:[#allocation233_spill] sm:$0xff]  ;;  %v6620_v51 = vmax.f32 %v6508_v0, 0.0 }
 0x91a   :  { %6725 = vst [vmem:[%s12264_s4 + $0x150] sm:$0xff] %v6613_v27  ;;  %v6398_v8 = vmul.f32 %v11407_v43, %v14426_v28  ;;  %v6511_v14 = vadd.f32 %v11508_v18, %v6396_v36  ;;  %v14427_v27 = vld [vmem:[#allocation300_spill] sm:$0xff]  ;;  %v6621_v3 = vmax.f32 %v6509_v63, 0.0 }
 0x91b   :  { %6726 = vst [vmem:[%s12264_s4 + $0x158] sm:$0xf] %v6614_v7  ;;  %v6399_v29 = vmul.f32 %v11407_v43, %v14427_v27  ;;  %v6512_v48 = vadd.f32 %v11508_v18, %v6397_v13  ;;  %v14428_v7 = vld [vmem:[#allocation223_spill] sm:$0xff]  ;;  %v6622_v0 = vmax.f32 %v6510_v58, 0.0 }
 0x91c   :  { %6727 = vst [vmem:[%s12264_s4 + $0x160] sm:$0xff] %v6615_v2  ;;  %v6400_v28 = vmul.f32 %v11407_v43, %v14428_v7  ;;  %v6513_v36 = vadd.f32 %v11508_v18, %v6398_v8  ;;  %v14429_v2 = vld [vmem:[#allocation221_spill] sm:$0xff]  ;;  %v6623_v63 = vmax.f32 %v6511_v14, 0.0 }
 0x91d   :  { %6728 = vst [vmem:[%s12264_s4 + $0x168] sm:$0xff] %v6616_v46  ;;  %v6401_v27 = vmul.f32 %v11407_v43, %v14429_v2  ;;  %v6514_v13 = vadd.f32 %v11508_v18, %v6399_v29  ;;  %v14430_v46 = vld [vmem:[#allocation241_spill] sm:$0xff]  ;;  %v6624_v58 = vmax.f32 %v6512_v48, 0.0 }
 0x91e   :  { %6729 = vst [vmem:[%s12264_s4 + $0x170] sm:$0xff] %v6617_v54  ;;  %v6402_v7 = vmul.f32 %v11407_v43, %v14430_v46  ;;  %v6515_v8 = vadd.f32 %v11508_v18, %v6400_v28  ;;  %v14431_v54 = vld [vmem:[#allocation187_spill] sm:$0xff]  ;;  %v6625_v14 = vmax.f32 %v6513_v36, 0.0 }
 0x91f   :  { %6730 = vst [vmem:[%s12264_s4 + $0x178] sm:$0xf] %v6618_v52  ;;  %v6403_v2 = vmul.f32 %v11407_v43, %v14431_v54  ;;  %v6516_v29 = vadd.f32 %v11508_v18, %v6401_v27  ;;  %v14432_v52 = vld [vmem:[#allocation9_spill] sm:$0xff]  ;;  %v6626_v48 = vmax.f32 %v6514_v13, 0.0 }
 0x920   :  { %6731 = vst [vmem:[%s12264_s4 + $0x180] sm:$0xff] %v6619_v49  ;;  %v6404_v46 = vmul.f32 %v11407_v43, %v14432_v52  ;;  %v6517_v28 = vadd.f32 %v11508_v18, %v6402_v7  ;;  %v14433_v49 = vld [vmem:[#allocation247_spill] sm:$0xff]  ;;  %v6627_v36 = vmax.f32 %v6515_v8, 0.0 }
 0x921   :  { %6732 = vst [vmem:[%s12264_s4 + $0x188] sm:$0xff] %v6620_v51  ;;  %v6405_v54 = vmul.f32 %v11407_v43, %v14433_v49  ;;  %v6518_v27 = vadd.f32 %v11508_v18, %v6403_v2  ;;  %v14434_v51 = vld [vmem:[#allocation199_spill] sm:$0xff]  ;;  %v6628_v49 = vmax.f32 %v6516_v29, 0.0  ;;  %v6634_v2 = vmax.f32 %v11555_v34, 0.0 }
 0x922   :  { %6733 = vst [vmem:[%s12264_s4 + $0x190] sm:$0xff] %v6621_v3  ;;  %v6406_v52 = vmul.f32 %v11407_v43, %v14434_v51  ;;  %v6519_v7 = vadd.f32 %v11508_v18, %v6404_v46  ;;  %v6635_v29 = vmax.f32 %v11558_v31, 0.0  ;;  %v6637_v46 = vmax.f32 %v11564_v15, 0.0 }
 0x923   :  { %6734 = vst [vmem:[%s12264_s4 + $0x198] sm:$0xf] %v6622_v0  ;;  %v6520_v3 = vadd.f32 %v11508_v18, %v6405_v54  ;;  %v6629_v0 = vmax.f32 %v6517_v28, 0.0  ;;  %v6630_v43 = vmax.f32 %v6518_v27, 0.0  ;;  %v6638_v34 = vmax.f32 %v11567_v33, 0.0  ;;  %v14438_v27 = vld [vmem:[#allocation309_spill] sm:$0xff] }
 0x924   :  { %6735 = vst [vmem:[%s12264_s4 + $0x1a0] sm:$0xff] %v6623_v63  ;;  %v6521_v13 = vadd.f32 %v11508_v18, %v6406_v52  ;;  %v6631_v8 = vmax.f32 %v6519_v7, 0.0  ;;  %v6639_v31 = vmax.f32 %v11570_v38, 0.0  ;;  %v6641_v15 = vmax.f32 %v11576_v16, 0.0  ;;  %v14440_v52 = vld [vmem:[#allocation97_spill] sm:$0xff] }
 0x925   :  { %6736 = vst [vmem:[%s12264_s4 + $0x1a8] sm:$0xff] %v6624_v58  ;;  %v6632_v63 = vmax.f32 %v6520_v3, 0.0  ;;  %v6636_v58 = vmax.f32 %v11561_v21, 0.0  ;;  %v6640_v21 = vmax.f32 %v11573_v10, 0.0  ;;  %v6642_v33 = vmax.f32 %v11579_v56, 0.0 }
 0x926   :  { %6737 = vst [vmem:[%s12264_s4 + $0x1b0] sm:$0xff] %v6625_v14  ;;  %v6633_v18 = vmax.f32 %v6521_v13, 0.0  ;;  %v6643_v38 = vmax.f32 %v11582_v1, 0.0  ;;  %v6644_v10 = vmax.f32 %v11585_v57, 0.0  ;;  %v6645_v16 = vmax.f32 %v11588_v17, 0.0 }
 0x927   :  { %6738 = vst [vmem:[%s12264_s4 + $0x1b8] sm:$0xf] %v6626_v48  ;;  %v6646_v56 = vmax.f32 %v11591_v6, 0.0  ;;  %v6647_v1 = vmax.f32 %v11594_v39, 0.0  ;;  %v6648_v57 = vmax.f32 %v11597_v60, 0.0  ;;  %v6649_v17 = vmax.f32 %v11600_v9, 0.0 }
 0x928   :  { %6739 = vst [vmem:[%s12264_s4 + $0x1c0] sm:$0xff] %v6627_v36  ;;  %v6650_v6 = vmax.f32 %v11603_v25, 0.0  ;;  %v6651_v39 = vmax.f32 %v11606_v37, 0.0  ;;  %v6652_v60 = vmax.f32 %v11609_v19, 0.0  ;;  %v6653_v9 = vmax.f32 %v11612_v55, 0.0 }
 0x929   :  { %6740 = vst [vmem:[%s12264_s4 + $0x1c8] sm:$0xff] %v6628_v49  ;;  %v6654_v25 = vmax.f32 %v11615_v42, 0.0  ;;  %v6655_v37 = vmax.f32 %v11618_v24, 0.0  ;;  %v6656_v19 = vmax.f32 %v11621_v23, 0.0  ;;  %v6657_v55 = vmax.f32 %v11624_v20, 0.0 }
 0x92a   :  { %6741 = vst [vmem:[%s12264_s4 + $0x1d0] sm:$0xff] %v6629_v0  ;;  %v6658_v42 = vmax.f32 %v11627_v30, 0.0  ;;  %v6659_v24 = vmax.f32 %v11630_v59, 0.0  ;;  %v6660_v23 = vmax.f32 %v11633_v50, 0.0  ;;  %v6661_v20 = vmax.f32 %v11636_v26, 0.0 }
 0x92b   :  { %6742 = vst [vmem:[%s12264_s4 + $0x1d8] sm:$0xf] %v6630_v43  ;;  %v6662_v30 = vmax.f32 %v11639_v22, 0.0  ;;  %v6663_v59 = vmax.f32 %v11642_v61, 0.0  ;;  %v6664_v50 = vmax.f32 %v11645_v11, 0.0  ;;  %v6665_v26 = vmax.f32 %v11648_v53, 0.0 }
 0x92c   :  { %6743 = vst [vmem:[%s12264_s4 + $0x1e0] sm:$0xff] %v6631_v8  ;;  %v6666_v22 = vmax.f32 %v11651_v62, 0.0  ;;  %v6667_v61 = vmax.f32 %v11654_v4, 0.0  ;;  %v6668_v11 = vmax.f32 %v11657_v32, 0.0  ;;  %v6669_v53 = vmax.f32 %v11660_v45, 0.0 }
 0x92d   :  { %6744 = vst [vmem:[%s12264_s4 + $0x1e8] sm:$0xff] %v6632_v63  ;;  %v6670_v62 = vmax.f32 %v11663_v12, 0.0  ;;  %v6671_v4 = vmax.f32 %v11666_v40, 0.0  ;;  %v6672_v32 = vmax.f32 %v11669_v41, 0.0  ;;  %v6673_v45 = vmax.f32 %v11672_v47, 0.0  ;;  %v14435_v41 = vld [vmem:[#allocation73_spill] sm:$0xff] }
 0x92e   :  { %6745 = vst [vmem:[%s12264_s4 + $0x1f0] sm:$0xff] %v6633_v18  ;;  %v6674_v12 = vmax.f32 %v11675_v5, 0.0  ;;  %v6675_v40 = vmax.f32 %v11678_v44, 0.0  ;;  %v6676_v28 = vmax.f32 %v14435_v41, 0.0  ;;  %v6677_v47 = vmax.f32 %v11684_v35, 0.0  ;;  %v14436_v5 = vld [vmem:[#allocation99_spill] sm:$0xff] }
 0x92f   :  { %6746 = vst [vmem:[%s12264_s4 + $0x1f8] sm:$0xf] %v6634_v2  ;;  %v6678_v14 = vmax.f32 %v14436_v5, 0.0  ;;  %v14437_v44 = vld [vmem:[#allocation90_spill] sm:$0xff]  ;;  %v6680_v48 = vmax.f32 %v14438_v27, 0.0  ;;  %v14439_v35 = vld [vmem:[#allocation316_spill] sm:$0xff] }
 0x930   :  { %6747 = vst [vmem:[%s12264_s4 + $0x200] sm:$0xff] %v6635_v29  ;;  %v6679_v54 = vmax.f32 %v14437_v44, 0.0  ;;  %v6681_v51 = vmax.f32 %v14439_v35, 0.0  ;;  %v6682_v7 = vmax.f32 %v14440_v52, 0.0 }
 0x931   :  { %6748 = vst [vmem:[%s12264_s4 + $0x208] sm:$0xff] %v6636_v58 }
 0x932   :  { %6749 = vst [vmem:[%s12264_s4 + $0x210] sm:$0xff] %v6637_v46 }
 0x933   :  { %6750 = vst [vmem:[%s12264_s4 + $0x218] sm:$0xf] %v6638_v34 }
 0x934   :  { %6751 = vst [vmem:[%s12264_s4 + $0x220] sm:$0xff] %v6639_v31 }
 0x935   :  { %6752 = vst [vmem:[%s12264_s4 + $0x228] sm:$0xff] %v6640_v21 }
 0x936   :  { %6753 = vst [vmem:[%s12264_s4 + $0x230] sm:$0xff] %v6641_v15 }
 0x937   :  { %6754 = vst [vmem:[%s12264_s4 + $0x238] sm:$0xf] %v6642_v33 }
 0x938   :  { %6755 = vst [vmem:[%s12264_s4 + $0x240] sm:$0xff] %v6643_v38 }
 0x939   :  { %6756 = vst [vmem:[%s12264_s4 + $0x248] sm:$0xff] %v6644_v10 }
 0x93a   :  { %6757 = vst [vmem:[%s12264_s4 + $0x250] sm:$0xff] %v6645_v16 }
 0x93b   :  { %6758 = vst [vmem:[%s12264_s4 + $0x258] sm:$0xf] %v6646_v56 }
 0x93c   :  { %6759 = vst [vmem:[%s12264_s4 + $0x260] sm:$0xff] %v6647_v1 }
 0x93d   :  { %6760 = vst [vmem:[%s12264_s4 + $0x268] sm:$0xff] %v6648_v57 }
 0x93e   :  { %6761 = vst [vmem:[%s12264_s4 + $0x270] sm:$0xff] %v6649_v17 }
 0x93f   :  { %6762 = vst [vmem:[%s12264_s4 + $0x278] sm:$0xf] %v6650_v6 }
 0x940   :  { %6763 = vst [vmem:[%s12264_s4 + $0x280] sm:$0xff] %v6651_v39 }
 0x941   :  { %6764 = vst [vmem:[%s12264_s4 + $0x288] sm:$0xff] %v6652_v60 }
 0x942   :  { %6765 = vst [vmem:[%s12264_s4 + $0x290] sm:$0xff] %v6653_v9 }
 0x943   :  { %6766 = vst [vmem:[%s12264_s4 + $0x298] sm:$0xf] %v6654_v25 }
 0x944   :  { %6767 = vst [vmem:[%s12264_s4 + $0x2a0] sm:$0xff] %v6655_v37 }
 0x945   :  { %6768 = vst [vmem:[%s12264_s4 + $0x2a8] sm:$0xff] %v6656_v19 }
 0x946   :  { %6769 = vst [vmem:[%s12264_s4 + $0x2b0] sm:$0xff] %v6657_v55 }
 0x947   :  { %6770 = vst [vmem:[%s12264_s4 + $0x2b8] sm:$0xf] %v6658_v42 }
 0x948   :  { %6771 = vst [vmem:[%s12264_s4 + $0x2c0] sm:$0xff] %v6659_v24 }
 0x949   :  { %6772 = vst [vmem:[%s12264_s4 + $0x2c8] sm:$0xff] %v6660_v23 }
 0x94a   :  { %6773 = vst [vmem:[%s12264_s4 + $0x2d0] sm:$0xff] %v6661_v20 }
 0x94b   :  { %6774 = vst [vmem:[%s12264_s4 + $0x2d8] sm:$0xf] %v6662_v30 }
 0x94c   :  { %6775 = vst [vmem:[%s12264_s4 + $0x2e0] sm:$0xff] %v6663_v59 }
 0x94d   :  { %6776 = vst [vmem:[%s12264_s4 + $0x2e8] sm:$0xff] %v6664_v50 }
 0x94e   :  { %6777 = vst [vmem:[%s12264_s4 + $0x2f0] sm:$0xff] %v6665_v26 }
 0x94f   :  { %6778 = vst [vmem:[%s12264_s4 + $0x2f8] sm:$0xf] %v6666_v22 }
 0x950   :  { %6779 = vst [vmem:[%s12264_s4 + $0x300] sm:$0xff] %v6667_v61 }
 0x951   :  { %6780 = vst [vmem:[%s12264_s4 + $0x308] sm:$0xff] %v6668_v11 }
 0x952   :  { %6781 = vst [vmem:[%s12264_s4 + $0x310] sm:$0xff] %v6669_v53 }
 0x953   :  { %6782 = vst [vmem:[%s12264_s4 + $0x318] sm:$0xf] %v6670_v62 }
 0x954   :  { %6783 = vst [vmem:[%s12264_s4 + $0x320] sm:$0xff] %v6671_v4 }
 0x955   :  { %6784 = vst [vmem:[%s12264_s4 + $0x328] sm:$0xff] %v6672_v32 }
 0x956   :  { %6785 = vst [vmem:[%s12264_s4 + $0x330] sm:$0xff] %v6673_v45 }
 0x957   :  { %6786 = vst [vmem:[%s12264_s4 + $0x338] sm:$0xf] %v6674_v12 }
 0x958   :  { %6787 = vst [vmem:[%s12264_s4 + $0x340] sm:$0xff] %v6675_v40 }
 0x959   :  { %6788 = vst [vmem:[%s12264_s4 + $0x348] sm:$0xff] %v6676_v28 }
 0x95a   :  { %6789 = vst [vmem:[%s12264_s4 + $0x350] sm:$0xff] %v6677_v47 }
 0x95b   :  { %6790 = vst [vmem:[%s12264_s4 + $0x358] sm:$0xf] %v6678_v14 }
 0x95c   :  { %6791 = vst [vmem:[%s12264_s4 + $0x360] sm:$0xff] %v6679_v54 }
 0x95d   :  { %6792 = vst [vmem:[%s12264_s4 + $0x368] sm:$0xff] %v6680_v48 }
 0x95e   :  { %6793 = vst [vmem:[%s12264_s4 + $0x370] sm:$0xff] %v6681_v51 }
 0x95f   :  { %6794 = vst [vmem:[%s12264_s4 + $0x378] sm:$0xf] %v6682_v7 }

</bundles_post_ra>
